<compile_context>
chip_gen: v7x
topology: tpu7x:2x2x1
jax: 0.10.0
libtpu: 0.0.40
codegen_flags: <defaults>
</compile_context>

<pallas_src>
import jax
import jax.numpy as jnp
from jax.experimental import pallas as pl
from jax.experimental.pallas import tpu as pltpu

FEATURE_DIM = 1536                 # self.feature_dim in the module
PATCH = 14                         # ViT-g/14 patch size
IN_CH = 3
P_RAW = IN_CH * PATCH * PATCH      # 588
P_PAD = 640                        # contraction dim padded to a multiple of 128


def _num_output_tiles():
    """One output tile per TensorCore: 1 on v5e/v6e, 2 on v7x / v4 / v5p."""
    try:
        kind = jax.devices()[0].device_kind.lower()
    except Exception:
        return 1
    if "v7" in kind or "v5p" in kind or "v4" in kind:
        return 2
    return 1


# --------------------------------------------------------------------------
# Fused kernel: patch-embed matmul (+bias)  ->  head Linear(1536,1536) (+bias)
# With grid == #TensorCores each core runs this body exactly once, so the
# patch-embed matmul is never recomputed.
# --------------------------------------------------------------------------
def _fused_kernel(pooled_ref, wp_ref, bp_ref, wn_ref, bn_ref, o_ref):
    # pooled_ref: (Bp, P_PAD)   bf16  -- token-mean-pooled flattened patches
    # wp_ref:     (P_PAD, D)    bf16  -- patch-embed weight (same block every step)
    # bp_ref:     (1, D)        f32   -- patch-embed bias
    # wn_ref:     (1, D, T)     bf16  -- head weight tile (contiguous HBM slab)
    # bn_ref:     (1, 1, T)     f32   -- head bias tile
    # o_ref:      (Bp, T)       f32
    feats = jnp.dot(pooled_ref[...], wp_ref[...],
                    preferred_element_type=jnp.float32) + bp_ref[...]   # (Bp, D) f32
    feats = feats.astype(jnp.bfloat16)
    o_ref[...] = jnp.dot(feats, wn_ref[0],
                         preferred_element_type=jnp.float32) + bn_ref[0]


def fused_forward(pooled_bf16, wp_bf16, bp_f32, wn_tiled_bf16, bn_tiled_f32):
    b, p_pad = pooled_bf16.shape
    d = wp_bf16.shape[1]
    n_tiles, _, tile = wn_tiled_bf16.shape
    assert tile % 128 == 0 and b % 8 == 0
    d_out = n_tiles * tile
    return pl.pallas_call(
        _fused_kernel,
        out_shape=jax.ShapeDtypeStruct((b, d_out), jnp.float32),
        grid_spec=pltpu.PrefetchScalarGridSpec(
            num_scalar_prefetch=0,
            grid=(n_tiles,),
            in_specs=[
                pl.BlockSpec((b, p_pad), lambda j: (0, 0)),        # pooled patches (tiny)
                pl.BlockSpec((p_pad, d), lambda j: (0, 0)),        # patch-embed W (resident)
                pl.BlockSpec((1, d), lambda j: (0, 0)),            # patch-embed b
                pl.BlockSpec((1, d, tile), lambda j: (j, 0, 0)),   # head W tile (contiguous)
                pl.BlockSpec((1, 1, tile), lambda j: (j, 0, 0)),   # head b tile
            ],
            out_specs=pl.BlockSpec((b, tile), lambda j: (0, j)),
        ),
        compiler_params=pltpu.CompilerParams(
            dimension_semantics=("parallel",),
            vmem_limit_bytes=32 * 1024 * 1024),
    )(pooled_bf16, wp_bf16, bp_f32, wn_tiled_bf16, bn_tiled_f32)


# --------------------------------------------------------------------------
# Wrapper: pool-first (no im2col materialization), pad, bf16 cast, call kernel
# --------------------------------------------------------------------------
def pooled_patches(x):
    """NCHW image -> token-mean-pooled flattened patches (B, C*p*p), f32.

    Pool over the patch grid directly: mean over tokens of patch element
    (c, i, j) == mean over patch-grid positions of pixel (c, i, j).  Avoids
    the (B, N, 588) im2col slab and the 6-D transpose.
    """
    b, c, h, w = x.shape
    nh, nw = h // PATCH, w // PATCH
    pooled = x.reshape(b, c, nh, PATCH, nw, PATCH).mean(axis=(2, 4))   # (B, C, p, p)
    return pooled.reshape(b, c * PATCH * PATCH)                        # (B, 588)


def prepare_device_params(params, n_tiles):
    """Pre-layout the head weight/bias so each output tile is contiguous in HBM."""
    tile = FEATURE_DIM // n_tiles
    wn = params["w_nl_bf16"].reshape(FEATURE_DIM, n_tiles, tile).transpose(1, 0, 2)
    bn = params["b_nl"].reshape(1, n_tiles, tile).transpose(1, 0, 2)
    out = dict(params)
    out["w_nl_tiled_bf16"] = wn      # (n_tiles, 1536, tile)
    out["b_nl_tiled"] = bn           # (n_tiles, 1, tile)
    return out


def feature_extractor_forward(x, device_params):
    """x: (B, C, H, W) NCHW float32 -> (B, 1536) features."""
    b = x.shape[0]
    pooled = pooled_patches(x)                                    # (B, 588) f32
    pooled = jnp.pad(pooled, ((0, 0), (0, P_PAD - P_RAW)))        # (B, 640)
    b_pad = max(8, -(-b // 8) * 8)                                # sublane-align the batch
    if b_pad != b:
        pooled = jnp.pad(pooled, ((0, b_pad - b), (0, 0)))
    out = fused_forward(pooled.astype(jnp.bfloat16),
                        device_params["w_patch_pad_bf16"],
                        device_params["b_patch"],
                        device_params["w_nl_tiled_bf16"],
                        device_params["b_nl_tiled"])
    return out[:b]


# --------------------------------------------------------------------------
# Params + references
# --------------------------------------------------------------------------
def make_params(key):
    k1, k2, k3, k4 = jax.random.split(key, 4)
    # patch-embed conv weight in PyTorch layout (D, C, p, p) -> (P, D) matmul form
    w_conv = 0.02 * jax.random.normal(k1, (FEATURE_DIM, IN_CH, PATCH, PATCH), jnp.float32)
    w_patch = w_conv.reshape(FEATURE_DIM, P_RAW).T                   # (588, 1536)
    b_patch = 0.01 * jax.random.normal(k2, (1, FEATURE_DIM), jnp.float32)
    # nn.Linear(1536, 1536): PyTorch weight (out, in) -> (in, out)
    w_nl = (0.02 * jax.random.normal(k3, (FEATURE_DIM, FEATURE_DIM), jnp.float32)).T
    b_nl = 0.01 * jax.random.normal(k4, (1, FEATURE_DIM), jnp.float32)
    # zero-pad the contraction dim 588 -> 640 (zero rows contribute nothing)
    w_patch_pad = jnp.zeros((P_PAD, FEATURE_DIM), jnp.float32).at[:P_RAW].set(w_patch)
    return {
        "w_patch": w_patch, "b_patch": b_patch, "w_nl": w_nl, "b_nl": b_nl,
        "w_patch_pad_bf16": w_patch_pad.astype(jnp.bfloat16),
        "w_nl_bf16": w_nl.astype(jnp.bfloat16),
    }


def _pooled_patches_im2col(x):
    """Original im2col-style pooling, kept only as an independent reference."""
    b, c, h, w = x.shape
    nh, nw = h // PATCH, w // PATCH
    xp = x.reshape(b, c, nh, PATCH, nw, PATCH)
    xp = jnp.transpose(xp, (0, 2, 4, 1, 3, 5))            # (B, nh, nw, C, p, p)
    patches = xp.reshape(b, nh * nw, c * PATCH * PATCH)   # matches Conv2d weight flatten order
    return jnp.mean(patches, axis=1)


def reference_forward_f32(x, params):
    pooled = _pooled_patches_im2col(x)
    feats = pooled @ params["w_patch"] + params["b_patch"]
    return feats @ params["w_nl"] + params["b_nl"]


def reference_forward_bf16(x, params):
    # Same bf16 casts / f32 accumulation as the kernel, expressed in plain jnp,
    # using the independent im2col pooling path.
    pooled = _pooled_patches_im2col(x)
    pooled = jnp.pad(pooled, ((0, 0), (0, P_PAD - P_RAW))).astype(jnp.bfloat16)
    feats = jnp.dot(pooled, params["w_patch_pad_bf16"],
                    preferred_element_type=jnp.float32) + params["b_patch"]
    feats = feats.astype(jnp.bfloat16)
    return jnp.dot(feats, params["w_nl_bf16"],
                   preferred_element_type=jnp.float32) + params["b_nl"]


if __name__ == "__main__":
    key = jax.random.PRNGKey(0)
    kx, kp = jax.random.split(key)
    # small image: 28x28 -> 2x2 = 4 patches of 14x14
    x = jax.random.normal(kx, (2, IN_CH, 28, 28), jnp.float32)
    params = make_params(kp)

    n_tiles = _num_output_tiles()
    device_params = prepare_device_params(params, n_tiles)

    out = feature_extractor_forward(x, device_params)
    out = jax.block_until_ready(out)
    assert out.shape == (2, FEATURE_DIM), out.shape

    ref_bf16 = reference_forward_bf16(x, params)     # same math as the kernel
    ref_f32 = reference_forward_f32(x, params)       # full-precision spec
    assert jnp.allclose(out, ref_bf16, atol=2e-3, rtol=2e-3), "mismatch vs bf16 reference"
    assert jnp.allclose(out, ref_f32, atol=3e-2, rtol=3e-2), "mismatch vs f32 reference"

    print("KERNEL_OK")
</pallas_src>

<mosaic_0001>
module attributes {stable_mosaic.version = 11 : i64} {
  func.func @_fused_kernel(%arg0: i32, %arg1: memref<8x640xbf16, #tpu.memory_space<vmem>>, %arg2: memref<640x1536xbf16, #tpu.memory_space<vmem>>, %arg3: memref<1x1536xf32, #tpu.memory_space<vmem>>, %arg4: memref<1x1536x1536xbf16, #tpu.memory_space<vmem>>, %arg5: memref<1x1x1536xf32, #tpu.memory_space<vmem>>, %arg6: memref<8x1536xf32, #tpu.memory_space<vmem>>) attributes {dimension_semantics = [#tpu.dimension_semantics<parallel>], iteration_bounds = array<i64: 1>, scalar_prefetch = 0 : i64, scratch_operands = 0 : i64, tpu.core_type = #tpu.core_type<tc>, window_params = [{pipeline_mode = #tpu.pipeline_mode<synchronous>, transform_indices = @transform_0, window_bounds = array<i64: 8, 640>}, {pipeline_mode = #tpu.pipeline_mode<synchronous>, transform_indices = @transform_1, window_bounds = array<i64: 640, 1536>}, {pipeline_mode = #tpu.pipeline_mode<synchronous>, transform_indices = @transform_2, window_bounds = array<i64: 1, 1536>}, {transform_indices = @transform_3, window_bounds = array<i64: 1, 1536, 1536>}, {transform_indices = @transform_4, window_bounds = array<i64: 1, 1, 1536>}, {transform_indices = @transform_5, window_bounds = array<i64: 8, 1536>}]} {
    %c0 = arith.constant 0 : index
    %c0_0 = arith.constant 0 : index
    %0 = vector.load %arg1[%c0, %c0_0] : memref<8x640xbf16, #tpu.memory_space<vmem>>, vector<8x640xbf16>
    %c0_1 = arith.constant 0 : index
    %c0_2 = arith.constant 0 : index
    %1 = vector.load %arg2[%c0_1, %c0_2] : memref<640x1536xbf16, #tpu.memory_space<vmem>>, vector<640x1536xbf16>
    %cst = arith.constant dense<0.000000e+00> : vector<8x1536xf32>
    %2 = tpu.matmul %0, %1, %cst {dimension_numbers = #tpu.dot_dimension_numbers<[1], [0], [0], [1], [0, 0, 1, 1], [], []>} : vector<8x640xbf16>, vector<640x1536xbf16>, vector<8x1536xf32> -> vector<8x1536xf32>
    %c0_3 = arith.constant 0 : index
    %c0_4 = arith.constant 0 : index
    %3 = vector.load %arg3[%c0_3, %c0_4] : memref<1x1536xf32, #tpu.memory_space<vmem>>, vector<1x1536xf32>
    %4 = vector.broadcast %3 : vector<1x1536xf32> to vector<8x1536xf32>
    %5 = arith.addf %2, %4 : vector<8x1536xf32>
    %6 = arith.truncf %5 : vector<8x1536xf32> to vector<8x1536xbf16>
    %c0_5 = arith.constant 0 : index
    %c0_6 = arith.constant 0 : index
    %c0_7 = arith.constant 0 : index
    %7 = vector.load %arg4[%c0_5, %c0_6, %c0_7] : memref<1x1536x1536xbf16, #tpu.memory_space<vmem>>, vector<1x1536x1536xbf16>
    %8 = vector.shape_cast %7 : vector<1x1536x1536xbf16> to vector<1536x1536xbf16>
    %cst_8 = arith.constant dense<0.000000e+00> : vector<8x1536xf32>
    %9 = tpu.matmul %6, %8, %cst_8 {dimension_numbers = #tpu.dot_dimension_numbers<[1], [0], [0], [1], [0, 0, 1, 1], [], []>} : vector<8x1536xbf16>, vector<1536x1536xbf16>, vector<8x1536xf32> -> vector<8x1536xf32>
    %c0_9 = arith.constant 0 : index
    %c0_10 = arith.constant 0 : index
    %c0_11 = arith.constant 0 : index
    %10 = vector.load %arg5[%c0_9, %c0_10, %c0_11] : memref<1x1x1536xf32, #tpu.memory_space<vmem>>, vector<1x1x1536xf32>
    %11 = vector.shape_cast %10 : vector<1x1x1536xf32> to vector<1x1536xf32>
    %12 = vector.broadcast %11 : vector<1x1536xf32> to vector<8x1536xf32>
    %13 = arith.addf %9, %12 : vector<8x1536xf32>
    %c0_12 = arith.constant 0 : index
    %c0_13 = arith.constant 0 : index
    %14 = vector.load %arg6[%c0_12, %c0_13] : memref<8x1536xf32, #tpu.memory_space<vmem>>, vector<8x1536xf32>
    tpu.vector_store %arg6[%c0_12, %c0_13], %13 {strides = array<i32>} : memref<8x1536xf32, #tpu.memory_space<vmem>>, vector<8x1536xf32>,
    return
  }
  func.func @transform_0(%arg0: i32) -> (i32, i32) {
    %c0_i32 = arith.constant 0 : i32
    %c0_i32_0 = arith.constant 0 : i32
    %c0_i32_1 = arith.constant 0 : i32
    return %c0_i32, %c0_i32_0 : i32, i32
  }
  func.func @transform_1(%arg0: i32) -> (i32, i32) {
    %c0_i32 = arith.constant 0 : i32
    %c0_i32_0 = arith.constant 0 : i32
    %c0_i32_1 = arith.constant 0 : i32
    return %c0_i32, %c0_i32_0 : i32, i32
  }
  func.func @transform_2(%arg0: i32) -> (i32, i32) {
    %c0_i32 = arith.constant 0 : i32
    %c0_i32_0 = arith.constant 0 : i32
    %c0_i32_1 = arith.constant 0 : i32
    return %c0_i32, %c0_i32_0 : i32, i32
  }
  func.func @transform_3(%arg0: i32) -> (i32, i32, i32) {
    %c0_i32 = arith.constant 0 : i32
    %c0_i32_0 = arith.constant 0 : i32
    %c0_i32_1 = arith.constant 0 : i32
    return %arg0, %c0_i32, %c0_i32_0 : i32, i32, i32
  }
  func.func @transform_4(%arg0: i32) -> (i32, i32, i32) {
    %c0_i32 = arith.constant 0 : i32
    %c0_i32_0 = arith.constant 0 : i32
    %c0_i32_1 = arith.constant 0 : i32
    return %arg0, %c0_i32, %c0_i32_0 : i32, i32, i32
  }
  func.func @transform_5(%arg0: i32) -> (i32, i32) {
    %c0_i32 = arith.constant 0 : i32
    %c0_i32_0 = arith.constant 0 : i32
    return %c0_i32, %arg0 : i32, i32
  }
}

</mosaic_0001>

<bundles_post_ra>
// kernel: tpu_custom_call.1
= control target key start
LH: loop header
LB: loop body
LE: loop exit
PB: predicated region body
PF: predicated region fallthrough
CT: control target
= control target key end

     0   :  { %10 = vsyncpa [#allocation3], 0  ;;  %s17072_s0 = inlined_call_operand.hbm [shape: bf16[8,640], index: 0, kind: input, shape index: {}]   ;;  %s17073_s1 = inlined_call_operand.hbm [shape: bf16[640,1536], index: 1, kind: input, shape index: {}]   ;;  %s17074_s2 = inlined_call_operand.hbm [shape: f32[1,1536], index: 2, kind: input, shape index: {}]   ;;  %s17075_s3 = inlined_call_operand.hbm [shape: bf16[1,1536,1536], index: 3, kind: input, shape index: {}]   ;;  %s17076_s4 = inlined_call_operand.hbm [shape: f32[1,1,1536], index: 4, kind: input, shape index: {}]   ;;  %s17077_s5 = inlined_call_operand.hbm [shape: f32[8,1536], index: 5, kind: output, shape index: {}]  }
   0x1   :  { %11 = vsyncpa [#allocation6], 0 }
   0x2   :  { %12 = vsyncpa [#allocation9], 0 }
   0x3   :  { %13 = vsyncpa [#allocation4], 0  ;;  %s16716_s18 = smov [#allocation5]   ;;  %s16576_s22 = scalar_lea.hbm %s17073_s1, 61440 }
   0x4   :  { %s29_s19 = sshll.u32 %s16716_s18, 4  ;;  %p16577_p0 = scmp.ne.s32.totalorder %s17073_s1, %s16576_s22  ;;  %s30_s19 = int_to_ptr.vmem [resolvable:$true] %s29_s19 }
   0x5   :  { %p16580_p1 = scmp.lt.u32.totalorder %s16576_s22, %s17073_s1 }
   0x7   :  { %p16582_p2 = pnand %p16580_p1, %p16577_p0 }
   0x9   :  { %16585 = shalt.err (!%p16582_p2)
}
   0xa   :  { %s16586_s27 = scalar_lea.vmem %s30_s19, 61440  ;;  %p16591_p4 = scmp.lt.s32.totalorder %s30_s19, %s30_s19 }
   0xb   :  { %p16587_p3 = scmp.ne.s32.totalorder %s30_s19, %s16586_s27  ;;  %p16592_p5 = scmp.lt.s32.totalorder %s16586_s27, %s16586_s27 }
   0xd   :  { %p16593_p6 = por %p16592_p5, %p16591_p4 }
   0xf   :  { %p16594_p7 = pnand %p16593_p6, %p16587_p3 }
  0x11   :  { %16597 = shalt.err (!%p16594_p7)
}
  0x12   :  { %s16717_s28 = smov 768   ;;  %s16718_s29 = smov 48  }
  0x13   :  { %35 = dma.hbm_to_vmem [thread:$0]  %s17073_s1, 61440, %s30_s19, [#allocation6], %s16717_s28, %s16717_s28, %s16718_s29  }
  0x14   :  { %s16719_s7 = smov [#allocation8]   ;;  %s16720_s9 = smov [#allocation2]  }
  0x15   :  { %s51_s8 = sshll.u32 %s16719_s7, 4  ;;  %s20_s10 = sshll.u32 %s16720_s9, 4  ;;  %s52_s8 = int_to_ptr.vmem [resolvable:$true] %s51_s8  ;;  %s21_s10 = int_to_ptr.vmem [resolvable:$true] %s20_s10 }
  0x16   :  { %s16598_s13 = scalar_lea.hbm %s17075_s3, 147456 }
  0x17   :  { %p16599_p8 = scmp.ne.s32.totalorder %s17075_s3, %s16598_s13  ;;  %p16602_p9 = scmp.lt.u32.totalorder %s16598_s13, %s17075_s3 }
  0x19   :  { %p16604_p10 = pnand %p16602_p9, %p16599_p8 }
  0x1b   :  { %16607 = shalt.err (!%p16604_p10)
}
  0x1c   :  { %s16608_s1 = scalar_lea.vmem %s52_s8, 147456  ;;  %p16613_p12 = scmp.lt.s32.totalorder %s52_s8, %s52_s8 }
  0x1d   :  { %p16609_p11 = scmp.ne.s32.totalorder %s52_s8, %s16608_s1  ;;  %p16614_p13 = scmp.lt.s32.totalorder %s16608_s1, %s16608_s1 }
  0x1f   :  { %p16615_p0 = por %p16614_p13, %p16613_p12 }
  0x21   :  { %p16616_p1 = pnand %p16615_p0, %p16609_p11 }
  0x23   :  { %16619 = shalt.err (!%p16616_p1)
}
  0x24   :  { %57 = dma.hbm_to_vmem [thread:$0]  %s17075_s3, 147456, %s52_s8, [#allocation9], %s16717_s28, %s16717_s28, %s16718_s29  }
  0x25   :  { %s16620_s22 = scalar_lea.hbm %s17072_s0, 320 }
  0x26   :  { %p16621_p2 = scmp.ne.s32.totalorder %s17072_s0, %s16620_s22  ;;  %p16624_p3 = scmp.lt.u32.totalorder %s16620_s22, %s17072_s0 }
  0x28   :  { %p16626_p4 = pnand %p16624_p3, %p16621_p2 }
  0x2a   :  { %16629 = shalt.err (!%p16626_p4)
}
  0x2b   :  { %s16630_s27 = scalar_lea.vmem %s21_s10, 320  ;;  %p16635_p6 = scmp.lt.s32.totalorder %s21_s10, %s21_s10 }
  0x2c   :  { %p16631_p5 = scmp.ne.s32.totalorder %s21_s10, %s16630_s27  ;;  %p16636_p7 = scmp.lt.s32.totalorder %s16630_s27, %s16630_s27 }
  0x2e   :  { %p16637_p8 = por %p16636_p7, %p16635_p6 }
  0x30   :  { %p16638_p9 = pnand %p16637_p8, %p16631_p5 }
  0x32   :  { %16641 = shalt.err (!%p16638_p9)
}
  0x33   :  { %23 = dma.hbm_to_vmem [thread:$0]  %s17072_s0, 320, %s21_s10, [#allocation3]  }
  0x34   :  { %s16721_s29 = smov [#allocation7]   ;;  %s16722_s6 = smov [#allocation10]  }
  0x35   :  { %s42_s30 = sshll.u32 %s16721_s29, 4  ;;  %s64_s7 = sshll.u32 %s16722_s6, 4  ;;  %s43_s30 = int_to_ptr.vmem [resolvable:$true] %s42_s30  ;;  %s65_s7 = int_to_ptr.vmem [resolvable:$true] %s64_s7 }
  0x36   :  { %s16642_s11 = scalar_lea.hbm %s17074_s2, 192 }
  0x37   :  { %p16643_p10 = scmp.ne.s32.totalorder %s17074_s2, %s16642_s11  ;;  %p16646_p11 = scmp.lt.u32.totalorder %s16642_s11, %s17074_s2 }
  0x39   :  { %p16648_p12 = pnand %p16646_p11, %p16643_p10 }
  0x3b   :  { %16651 = shalt.err (!%p16648_p12)
}
  0x3c   :  { %s16652_s0 = scalar_lea.vmem %s43_s30, 192  ;;  %p16657_p0 = scmp.lt.s32.totalorder %s43_s30, %s43_s30 }
  0x3d   :  { %p16653_p13 = scmp.ne.s32.totalorder %s43_s30, %s16652_s0  ;;  %p16658_p1 = scmp.lt.s32.totalorder %s16652_s0, %s16652_s0 }
  0x3f   :  { %p16659_p2 = por %p16658_p1, %p16657_p0 }
  0x41   :  { %p16660_p3 = pnand %p16659_p2, %p16653_p13 }
  0x43   :  { %16663 = shalt.err (!%p16660_p3)
}
  0x44   :  { %45 = dma.hbm_to_vmem [thread:$0]  %s17074_s2, 192, %s43_s30, [#allocation6]  }
  0x45   :  { %s16664_s18 = scalar_lea.hbm %s17076_s4, 192 }
  0x46   :  { %p16665_p4 = scmp.ne.s32.totalorder %s17076_s4, %s16664_s18  ;;  %p16668_p5 = scmp.lt.u32.totalorder %s16664_s18, %s17076_s4 }
  0x48   :  { %p16670_p6 = pnand %p16668_p5, %p16665_p4 }
  0x4a   :  { %16673 = shalt.err (!%p16670_p6)
}
  0x4b   :  { %s16674_s23 = scalar_lea.vmem %s65_s7, 192  ;;  %p16679_p8 = scmp.lt.s32.totalorder %s65_s7, %s65_s7 }
  0x4c   :  { %p16675_p7 = scmp.ne.s32.totalorder %s65_s7, %s16674_s23  ;;  %p16680_p9 = scmp.lt.s32.totalorder %s16674_s23, %s16674_s23 }
  0x4e   :  { %p16681_p10 = por %p16680_p9, %p16679_p8 }
  0x50   :  { %p16682_p11 = pnand %p16681_p10, %p16675_p7 }
  0x52   :  { %16685 = shalt.err (!%p16682_p11)
}
  0x53   :  { %67 = dma.hbm_to_vmem [thread:$0]  %s17076_s4, 192, %s65_s7, [#allocation9]  }
  0x54   :  { %16708 = dma.done.wait [#allocation3], 320  }
  0x55   :  { %16709 = vsyncadd [#allocation3], 4294966976 }
  0x56   :  { %16710 = dma.done.wait [#allocation6], 61632  }
  0x57   :  { %16711 = vsyncadd [#allocation6], 4294905664 }
  0x58   :  { %16712 = dma.done.wait [#allocation9], 147648  }
  0x59   :  { %16713 = vsyncadd [#allocation9], 4294819648  ;;  %v14118_v0 = vld [vmem:[#allocation5 + $0x4] ss:$48 sps:$4 sm:$0xff]   ;;  %v14120_v1 = vld [vmem:[#allocation5 + $0xc] ss:$48 sps:$4 sm:$0xff]  }
  0x5a   :  { %3049 = vmatprep.subr.bf16.mxu0 %v14118_v0  ;;  %v14122_v2 = vld [vmem:[#allocation5] ss:$48 sps:$4 sm:$0xff]   ;;  %v14123_v3 = vld [vmem:[#allocation5 + $0x8] ss:$48 sps:$4 sm:$0xff]   ;;  %3172 = vmatprep.subr.bf16.mxu1 %v14120_v1  ;;  %v14124_v4 = vld [vmem:[#allocation5 + $0x64] ss:$48 sps:$4 sm:$0xff]  }
  0x5b   :  { %3050 = vmatpush1.bf16.msra.mxu0 %v14122_v2  ;;  %3173 = vmatpush1.bf16.msra.mxu1 %v14123_v3  ;;  %v14126_v5 = vld [vmem:[#allocation5 + $0x6c] ss:$48 sps:$4 sm:$0xff]   ;;  %v14128_v6 = vld [vmem:[#allocation5 + $0x60] ss:$48 sps:$4 sm:$0xff]   ;;  %v14129_v7 = vld [vmem:[#allocation5 + $0x68] ss:$48 sps:$4 sm:$0xff]  }
  0x5c   :  { %3051 = vmatprep.subr.bf16.mxu0 %v14124_v4  ;;  %3174 = vmatprep.subr.bf16.mxu1 %v14126_v5  ;;  %v14130_v8 = vld [vmem:[#allocation5 + $0xc4] ss:$48 sps:$4 sm:$0xff]   ;;  %v14132_v9 = vld [vmem:[#allocation5 + $0xcc] ss:$48 sps:$4 sm:$0xff]   ;;  %v14134_v10 = vld [vmem:[#allocation5 + $0xc0] ss:$48 sps:$4 sm:$0xff]  }
  0x5d   :  { %v14135_v11 = vld [vmem:[#allocation5 + $0xc8] ss:$48 sps:$4 sm:$0xff]   ;;  %v14136_v12 = vld [vmem:[#allocation5 + $0x124] ss:$48 sps:$4 sm:$0xff]   ;;  %v14138_v13 = vld [vmem:[#allocation5 + $0x12c] ss:$48 sps:$4 sm:$0xff]  }
  0x5e   :  { %v14140_v14 = vld [vmem:[#allocation5 + $0x120] ss:$48 sps:$4 sm:$0xff]   ;;  %v14141_v15 = vld [vmem:[#allocation5 + $0x128] ss:$48 sps:$4 sm:$0xff]   ;;  %v14142_v16 = vld [vmem:[#allocation5 + $0x184] ss:$48 sps:$4 sm:$0xff]  }
  0x5f   :  { %3052 = vmatpush1.bf16.msra.mxu0 %v14128_v6  ;;  %3175 = vmatpush1.bf16.msra.mxu1 %v14129_v7  ;;  %v14144_v17 = vld [vmem:[#allocation5 + $0x18c] ss:$48 sps:$4 sm:$0xff]   ;;  %v14146_v18 = vld [vmem:[#allocation5 + $0x180] ss:$48 sps:$4 sm:$0xff]   ;;  %v14147_v19 = vld [vmem:[#allocation5 + $0x188] ss:$48 sps:$4 sm:$0xff]  }
  0x60   :  { %3053 = vmatprep.subr.bf16.mxu0 %v14130_v8  ;;  %3176 = vmatprep.subr.bf16.mxu1 %v14132_v9  ;;  %v14148_v20 = vld [vmem:[#allocation5 + $0x1e4] ss:$48 sps:$4 sm:$0xff]   ;;  %v14150_v21 = vld [vmem:[#allocation5 + $0x1ec] ss:$48 sps:$4 sm:$0xff]   ;;  %v14152_v22 = vld [vmem:[#allocation5 + $0x1e0] ss:$48 sps:$4 sm:$0xff]  }
  0x61   :  { %v14153_v23 = vld [vmem:[#allocation5 + $0x1e8] ss:$48 sps:$4 sm:$0xff]   ;;  %v14154_v24 = vld [vmem:[#allocation5 + $0x244] ss:$48 sps:$4 sm:$0xff]   ;;  %v14156_v25 = vld [vmem:[#allocation5 + $0x24c] ss:$48 sps:$4 sm:$0xff]  }
  0x62   :  { %v14158_v26 = vld [vmem:[#allocation5 + $0x240] ss:$48 sps:$4 sm:$0xff]   ;;  %v14159_v27 = vld [vmem:[#allocation5 + $0x248] ss:$48 sps:$4 sm:$0xff]   ;;  %v14160_v28 = vld [vmem:[#allocation5 + $0x2a4] ss:$48 sps:$4 sm:$0xff]  }
  0x63   :  { %3054 = vmatpush1.bf16.msra.mxu0 %v14134_v10  ;;  %3177 = vmatpush1.bf16.msra.mxu1 %v14135_v11  ;;  %v14162_v29 = vld [vmem:[#allocation5 + $0x2ac] ss:$48 sps:$4 sm:$0xff]   ;;  %v14164_v30 = vld [vmem:[#allocation5 + $0x2a0] ss:$48 sps:$4 sm:$0xff]   ;;  %v14165_v31 = vld [vmem:[#allocation5 + $0x2a8] ss:$48 sps:$4 sm:$0xff]  }
  0x64   :  { %3055 = vmatprep.subr.bf16.mxu0 %v14136_v12  ;;  %3178 = vmatprep.subr.bf16.mxu1 %v14138_v13  ;;  %v14166_v32 = vld [vmem:[#allocation5 + $0x304] ss:$48 sps:$4 sm:$0xff]   ;;  %v14168_v33 = vld [vmem:[#allocation5 + $0x30c] ss:$48 sps:$4 sm:$0xff]   ;;  %v14170_v34 = vld [vmem:[#allocation5 + $0x300] ss:$48 sps:$4 sm:$0xff]  }
  0x65   :  { %v14171_v35 = vld [vmem:[#allocation5 + $0x308] ss:$48 sps:$4 sm:$0xff]   ;;  %v14172_v36 = vld [vmem:[#allocation5 + $0x364] ss:$48 sps:$4 sm:$0xff]   ;;  %v14174_v37 = vld [vmem:[#allocation5 + $0x36c] ss:$48 sps:$4 sm:$0xff]  }
  0x66   :  { %v14176_v38 = vld [vmem:[#allocation5 + $0x360] ss:$48 sps:$4 sm:$0xff]   ;;  %v14177_v39 = vld [vmem:[#allocation5 + $0x368] ss:$48 sps:$4 sm:$0xff]   ;;  %v14178_v40 = vld [vmem:[#allocation5 + $0x3c4] ss:$48 sps:$4 sm:$0xff]  }
  0x67   :  { %3056 = vmatpush1.bf16.msra.mxu0 %v14140_v14  ;;  %3179 = vmatpush1.bf16.msra.mxu1 %v14141_v15  ;;  %v14180_v41 = vld [vmem:[#allocation5 + $0x3cc] ss:$48 sps:$4 sm:$0xff]   ;;  %v14182_v42 = vld [vmem:[#allocation5 + $0x3c0] ss:$48 sps:$4 sm:$0xff]   ;;  %v14183_v43 = vld [vmem:[#allocation5 + $0x3c8] ss:$48 sps:$4 sm:$0xff]  }
  0x68   :  { %3057 = vmatprep.subr.bf16.mxu0 %v14142_v16  ;;  %3180 = vmatprep.subr.bf16.mxu1 %v14144_v17  ;;  %v14184_v44 = vld [vmem:[#allocation5 + $0x424] ss:$48 sps:$4 sm:$0xff]   ;;  %v14186_v45 = vld [vmem:[#allocation5 + $0x42c] ss:$48 sps:$4 sm:$0xff]   ;;  %v14188_v47 = vld [vmem:[#allocation5 + $0x420] ss:$48 sps:$4 sm:$0xff]  }
  0x69   :  { %v84_v46 = vld [vmem:[#allocation2] sm:$0xff]  ;;  %v14189_v49 = vld [vmem:[#allocation5 + $0x428] ss:$48 sps:$4 sm:$0xff]   ;;  %v14190_v50 = vld [vmem:[#allocation5 + $0x484] ss:$48 sps:$4 sm:$0xff]   ;;  %s16724_s4 = smov [#allocation11]  }
  0x6a   :  { %v16815_v48 = vcombine.high %v84_v46, %v84_v46  ;;  %v14192_v51 = vld [vmem:[#allocation5 + $0x48c] ss:$48 sps:$4 sm:$0xff]   ;;  %v14194_v52 = vld [vmem:[#allocation5 + $0x480] ss:$48 sps:$4 sm:$0xff]   ;;  %v14195_v53 = vld [vmem:[#allocation5 + $0x488] ss:$48 sps:$4 sm:$0xff]   ;;  %v16819_v5 = vcombine.low %v84_v46, %v84_v46 }
  0x6b   :  { %3058 = vmatpush1.bf16.msra.mxu0 %v14146_v18  ;;  %3181 = vmatpush1.bf16.msra.mxu1 %v14147_v19  ;;  %v14196_v54 = vld [vmem:[#allocation5 + $0x4e4] ss:$48 sps:$4 sm:$0xff]   ;;  %v14198_v55 = vld [vmem:[#allocation5 + $0x4ec] ss:$48 sps:$4 sm:$0xff]   ;;  %v14200_v56 = vld [vmem:[#allocation5 + $0x4e0] ss:$48 sps:$4 sm:$0xff]  }
  0x6c   :  { %3059 = vmatprep.subr.bf16.mxu0 %v14148_v20  ;;  %3182 = vmatprep.subr.bf16.mxu1 %v14150_v21  ;;  %v14201_v57 = vld [vmem:[#allocation5 + $0x4e8] ss:$48 sps:$4 sm:$0xff]   ;;  %v14202_v58 = vld [vmem:[#allocation5 + $0x544] ss:$48 sps:$4 sm:$0xff]   ;;  %v14204_v59 = vld [vmem:[#allocation5 + $0x54c] ss:$48 sps:$4 sm:$0xff]  }
  0x6d   :  { %3081 = vmatprep.mubr.bf16.mxu0 %v16815_v48  ;;  %3204 = vmatprep.mubr.bf16.mxu1 %v16815_v48  ;;  %v14206_v60 = vld [vmem:[#allocation5 + $0x540] ss:$48 sps:$4 sm:$0xff]   ;;  %v14207_v61 = vld [vmem:[#allocation5 + $0x548] ss:$48 sps:$4 sm:$0xff]   ;;  %v14208_v62 = vld [vmem:[#allocation5 + $0x5a4] ss:$48 sps:$4 sm:$0xff]  }
  0x6e   :  { %v14210_v63 = vld [vmem:[#allocation5 + $0x5ac] ss:$48 sps:$4 sm:$0xff]   ;;  %v14212_v0 = vld [vmem:[#allocation5 + $0x5a0] ss:$48 sps:$4 sm:$0xff]   ;;  %v14213_v1 = vld [vmem:[#allocation5 + $0x5a8] ss:$48 sps:$4 sm:$0xff]  }
  0x6f   :  { %3060 = vmatpush1.bf16.msra.mxu0 %v14152_v22  ;;  %3183 = vmatpush1.bf16.msra.mxu1 %v14153_v23  ;;  %v14217_v2 = vld [vmem:[#allocation5 + $0x604] ss:$48 sps:$4 sm:$0xff]   ;;  %v14220_v3 = vld [vmem:[#allocation5 + $0x60c] ss:$48 sps:$4 sm:$0xff]   ;;  %v14215_v4 = vld [vmem:[#allocation5 + $0x600] ss:$48 sps:$4 sm:$0xff]  }
  0x70   :  { %3061 = vmatprep.subr.bf16.mxu0 %v14154_v24  ;;  %3184 = vmatprep.subr.bf16.mxu1 %v14156_v25  ;;  %v14218_v6 = vld [vmem:[#allocation5 + $0x608] ss:$48 sps:$4 sm:$0xff]   ;;  %v14224_v7 = vld [vmem:[#allocation5 + $0x664] ss:$48 sps:$4 sm:$0xff]   ;;  %v14227_v8 = vld [vmem:[#allocation5 + $0x66c] ss:$48 sps:$4 sm:$0xff]  }
  0x71   :  { %v14222_v9 = vld [vmem:[#allocation5 + $0x660] ss:$48 sps:$4 sm:$0xff]   ;;  %v14225_v10 = vld [vmem:[#allocation5 + $0x668] ss:$48 sps:$4 sm:$0xff]   ;;  %v14230_v11 = vld [vmem:[#allocation5 + $0x6c4] ss:$48 sps:$4 sm:$0xff]  }
  0x72   :  { %v14233_v12 = vld [vmem:[#allocation5 + $0x6cc] ss:$48 sps:$4 sm:$0xff]   ;;  %v14228_v13 = vld [vmem:[#allocation5 + $0x6c0] ss:$48 sps:$4 sm:$0xff]   ;;  %v14231_v14 = vld [vmem:[#allocation5 + $0x6c8] ss:$48 sps:$4 sm:$0xff]  }
  0x73   :  { %3062 = vmatpush1.bf16.msra.mxu0 %v14158_v26  ;;  %3185 = vmatpush1.bf16.msra.mxu1 %v14159_v27  ;;  %v14236_v15 = vld [vmem:[#allocation5 + $0x724] ss:$48 sps:$4 sm:$0xff]   ;;  %v14239_v16 = vld [vmem:[#allocation5 + $0x72c] ss:$48 sps:$4 sm:$0xff]   ;;  %v14234_v17 = vld [vmem:[#allocation5 + $0x720] ss:$48 sps:$4 sm:$0xff]  }
  0x74   :  { %3063 = vmatprep.subr.bf16.mxu0 %v14160_v28  ;;  %3186 = vmatprep.subr.bf16.mxu1 %v14162_v29  ;;  %v14237_v18 = vld [vmem:[#allocation5 + $0x728] ss:$48 sps:$4 sm:$0xff]   ;;  %v14242_v19 = vld [vmem:[#allocation5 + $0x784] ss:$48 sps:$4 sm:$0xff]   ;;  %v14245_v20 = vld [vmem:[#allocation5 + $0x78c] ss:$48 sps:$4 sm:$0xff]  }
  0x75   :  { %v14240_v21 = vld [vmem:[#allocation5 + $0x780] ss:$48 sps:$4 sm:$0xff]   ;;  %v14243_v22 = vld [vmem:[#allocation5 + $0x788] ss:$48 sps:$4 sm:$0xff]   ;;  %v14248_v23 = vld [vmem:[#allocation5 + $0x7e4] ss:$48 sps:$4 sm:$0xff]  }
  0x76   :  { %v14251_v24 = vld [vmem:[#allocation5 + $0x7ec] ss:$48 sps:$4 sm:$0xff]   ;;  %v14246_v25 = vld [vmem:[#allocation5 + $0x7e0] ss:$48 sps:$4 sm:$0xff]   ;;  %v14249_v26 = vld [vmem:[#allocation5 + $0x7e8] ss:$48 sps:$4 sm:$0xff]  }
  0x77   :  { %3064 = vmatpush1.bf16.msra.mxu0 %v14164_v30  ;;  %3187 = vmatpush1.bf16.msra.mxu1 %v14165_v31  ;;  %v14254_v27 = vld [vmem:[#allocation5 + $0x844] ss:$48 sps:$4 sm:$0xff]   ;;  %v14257_v28 = vld [vmem:[#allocation5 + $0x84c] ss:$48 sps:$4 sm:$0xff]   ;;  %v14252_v31 = vld [vmem:[#allocation5 + $0x840] ss:$48 sps:$4 sm:$0xff]  }
  0x78   :  { %3065 = vmatprep.subr.bf16.mxu0 %v14166_v32  ;;  %3188 = vmatprep.subr.bf16.mxu1 %v14168_v33  ;;  %v16823_v29 = vld [vmem:[#allocation2 + $0x8] sm:$0xff]  ;;  %v14281_v46 = vld [vmem:[#allocation5 + $0x9cc] ss:$48 sps:$4 sm:$0xff]   ;;  %s12269_s25 = sshll.u32 %s16724_s4, 4  ;;  %s12270_s25 = int_to_ptr.vmem [resolvable:$true] %s12269_s25 }
  0x79   :  { %v16827_v30 = vcombine.high %v16823_v29, %v16823_v29  ;;  %v14255_v32 = vld [vmem:[#allocation5 + $0x848] ss:$48 sps:$4 sm:$0xff]   ;;  %v14260_v33 = vld [vmem:[#allocation5 + $0x8a4] ss:$48 sps:$4 sm:$0xff]   ;;  %s16686_s26 = scalar_lea.vmem %s12270_s25, 1536  ;;  %p16691_p13 = scmp.lt.s32.totalorder %s12270_s25, %s12270_s25 }
  0x7a   :  { %p16687_p12 = scmp.ne.s32.totalorder %s12270_s25, %s16686_s26  ;;  %p16692_p0 = scmp.lt.s32.totalorder %s16686_s26, %s16686_s26 }
  0x7b   :  { %3066 = vmatpush1.bf16.msra.mxu0 %v14170_v34  ;;  %3189 = vmatpush1.bf16.msra.mxu1 %v14171_v35  ;;  %v14263_v34 = vld [vmem:[#allocation5 + $0x8ac] ss:$48 sps:$4 sm:$0xff]   ;;  %v14258_v35 = vld [vmem:[#allocation5 + $0x8a0] ss:$48 sps:$4 sm:$0xff]  }
  0x7c   :  { %3067 = vmatprep.subr.bf16.mxu0 %v14172_v36  ;;  %3190 = vmatprep.subr.bf16.mxu1 %v14174_v37  ;;  %v14261_v36 = vld [vmem:[#allocation5 + $0x8a8] ss:$48 sps:$4 sm:$0xff]   ;;  %v14266_v37 = vld [vmem:[#allocation5 + $0x904] ss:$48 sps:$4 sm:$0xff]   ;;  %p16693_p1 = por %p16692_p0, %p16691_p13 }
  0x7e   :  { %p16694_p2 = pnand %p16693_p1, %p16687_p12 }
  0x7f   :  { %3068 = vmatpush1.bf16.msra.mxu0 %v14176_v38  ;;  %3191 = vmatpush1.bf16.msra.mxu1 %v14177_v39  ;;  %v14269_v38 = vld [vmem:[#allocation5 + $0x90c] ss:$48 sps:$4 sm:$0xff]   ;;  %v14264_v39 = vld [vmem:[#allocation5 + $0x900] ss:$48 sps:$4 sm:$0xff]  }
  0x80   :  { %3069 = vmatprep.subr.bf16.mxu0 %v14178_v40  ;;  %3192 = vmatprep.subr.bf16.mxu1 %v14180_v41  ;;  %v14267_v40 = vld [vmem:[#allocation5 + $0x908] ss:$48 sps:$4 sm:$0xff]   ;;  %v14272_v41 = vld [vmem:[#allocation5 + $0x964] ss:$48 sps:$4 sm:$0xff]  }
  0x83   :  { %3070 = vmatpush1.bf16.msra.mxu0 %v14182_v42  ;;  %3193 = vmatpush1.bf16.msra.mxu1 %v14183_v43  ;;  %v14275_v42 = vld [vmem:[#allocation5 + $0x96c] ss:$48 sps:$4 sm:$0xff]   ;;  %v14270_v43 = vld [vmem:[#allocation5 + $0x960] ss:$48 sps:$4 sm:$0xff]  }
  0x84   :  { %3071 = vmatprep.subr.bf16.mxu0 %v14184_v44  ;;  %3194 = vmatprep.subr.bf16.mxu1 %v14186_v45  ;;  %v14273_v44 = vld [vmem:[#allocation5 + $0x968] ss:$48 sps:$4 sm:$0xff]   ;;  %v14278_v45 = vld [vmem:[#allocation5 + $0x9c4] ss:$48 sps:$4 sm:$0xff]  }
  0x87   :  { %3072 = vmatpush1.bf16.msra.mxu0 %v14188_v47  ;;  %3195 = vmatpush1.bf16.msra.mxu1 %v14189_v49  ;;  %v14276_v47 = vld [vmem:[#allocation5 + $0x9c0] ss:$48 sps:$4 sm:$0xff]   ;;  %v14279_v49 = vld [vmem:[#allocation5 + $0x9c8] ss:$48 sps:$4 sm:$0xff]  }
  0x88   :  { %3073 = vmatprep.subr.bf16.mxu0 %v14190_v50  ;;  %3196 = vmatprep.subr.bf16.mxu1 %v14192_v51  ;;  %v14284_v50 = vld [vmem:[#allocation5 + $0xa24] ss:$48 sps:$4 sm:$0xff]   ;;  %v14287_v51 = vld [vmem:[#allocation5 + $0xa2c] ss:$48 sps:$4 sm:$0xff]  }
  0x8b   :  { %3074 = vmatpush1.bf16.msra.mxu0 %v14194_v52  ;;  %3197 = vmatpush1.bf16.msra.mxu1 %v14195_v53  ;;  %v14282_v52 = vld [vmem:[#allocation5 + $0xa20] ss:$48 sps:$4 sm:$0xff]   ;;  %v14285_v53 = vld [vmem:[#allocation5 + $0xa28] ss:$48 sps:$4 sm:$0xff]  }
  0x8c   :  { %3075 = vmatprep.subr.bf16.mxu0 %v14196_v54  ;;  %3198 = vmatprep.subr.bf16.mxu1 %v14198_v55  ;;  %v14290_v54 = vld [vmem:[#allocation5 + $0xa84] ss:$48 sps:$4 sm:$0xff]   ;;  %v14293_v55 = vld [vmem:[#allocation5 + $0xa8c] ss:$48 sps:$4 sm:$0xff]  }
  0x8f   :  { %3076 = vmatpush1.bf16.msra.mxu0 %v14200_v56  ;;  %3199 = vmatpush1.bf16.msra.mxu1 %v14201_v57  ;;  %v14288_v56 = vld [vmem:[#allocation5 + $0xa80] ss:$48 sps:$4 sm:$0xff]   ;;  %v14291_v57 = vld [vmem:[#allocation5 + $0xa88] ss:$48 sps:$4 sm:$0xff]  }
  0x90   :  { %3077 = vmatprep.subr.bf16.mxu0 %v14202_v58  ;;  %3200 = vmatprep.subr.bf16.mxu1 %v14204_v59  ;;  %v14296_v58 = vld [vmem:[#allocation5 + $0xae4] ss:$48 sps:$4 sm:$0xff]   ;;  %v14299_v59 = vld [vmem:[#allocation5 + $0xaec] ss:$48 sps:$4 sm:$0xff]  }
  0x93   :  { %3078 = vmatpush1.bf16.msra.mxu0 %v14206_v60  ;;  %3201 = vmatpush1.bf16.msra.mxu1 %v14207_v61  ;;  %v14294_v60 = vld [vmem:[#allocation5 + $0xae0] ss:$48 sps:$4 sm:$0xff]   ;;  %v14297_v61 = vld [vmem:[#allocation5 + $0xae8] ss:$48 sps:$4 sm:$0xff]  }
  0x94   :  { %3079 = vmatprep.subr.bf16.mxu0 %v14208_v62  ;;  %3202 = vmatprep.subr.bf16.mxu1 %v14210_v63  ;;  %v14302_v62 = vld [vmem:[#allocation5 + $0xb44] ss:$48 sps:$4 sm:$0xff]   ;;  %v14305_v63 = vld [vmem:[#allocation5 + $0xb4c] ss:$48 sps:$4 sm:$0xff]  }
  0x97   :  { %3080 = vmatpush1.bf16.msra.mxu0 %v14212_v0  ;;  %3203 = vmatpush1.bf16.msra.mxu1 %v14213_v1  ;;  %v14300_v0 = vld [vmem:[#allocation5 + $0xb40] ss:$48 sps:$4 sm:$0xff]   ;;  %v14303_v1 = vld [vmem:[#allocation5 + $0xb48] ss:$48 sps:$4 sm:$0xff]  }
  0x98   :  { %3090 = vmatprep.subr.bf16.mxu0 %v14217_v2  ;;  %3213 = vmatprep.subr.bf16.mxu1 %v14220_v3  ;;  %v14308_v2 = vld [vmem:[#allocation5 + $0xba4] ss:$48 sps:$4 sm:$0xff]   ;;  %v14311_v3 = vld [vmem:[#allocation5 + $0xbac] ss:$48 sps:$4 sm:$0xff]  }
  0x9a   :  { %3082 = vmatmul.mubr.bf16.vlgmr.msra.gmra.mrb[0].mxu0 %v16819_v5  ;;  %3205 = vmatmul.mubr.bf16.vlgmr.msra.gmra.mrb[0].mxu1 %v16819_v5 }
  0x9b   :  { %3091 = vmatpush1.bf16.msra.mxu0 %v14215_v4  ;;  %3214 = vmatpush1.bf16.msra.mxu1 %v14218_v6  ;;  %v14306_v4 = vld [vmem:[#allocation5 + $0xba0] ss:$48 sps:$4 sm:$0xff]   ;;  %v14309_v6 = vld [vmem:[#allocation5 + $0xba8] ss:$48 sps:$4 sm:$0xff]  }
  0x9c   :  { %3092 = vmatprep.subr.bf16.mxu0 %v14224_v7  ;;  %3215 = vmatprep.subr.bf16.mxu1 %v14227_v8  ;;  %v14315_v7 = vld [vmem:[#allocation5 + $0xc04] ss:$48 sps:$4 sm:$0xff]   ;;  %v14318_v8 = vld [vmem:[#allocation5 + $0xc0c] ss:$48 sps:$4 sm:$0xff]  }
  0x9d   :  { %3122 = vmatprep.mubr.bf16.mxu0 %v16827_v30  ;;  %3245 = vmatprep.mubr.bf16.mxu1 %v16827_v30 }
  0x9f   :  { %3093 = vmatpush1.bf16.msra.mxu0 %v14222_v9  ;;  %3216 = vmatpush1.bf16.msra.mxu1 %v14225_v10  ;;  %v14313_v9 = vld [vmem:[#allocation5 + $0xc00] ss:$48 sps:$4 sm:$0xff]   ;;  %v14316_v10 = vld [vmem:[#allocation5 + $0xc08] ss:$48 sps:$4 sm:$0xff]  }
  0xa0   :  { %3094 = vmatprep.subr.bf16.mxu0 %v14230_v11  ;;  %3217 = vmatprep.subr.bf16.mxu1 %v14233_v12  ;;  %v16833_v11 = vcombine.low %v16823_v29, %v16823_v29  ;;  %v14322_v12 = vld [vmem:[#allocation5 + $0xc64] ss:$48 sps:$4 sm:$0xff]  }
  0xa1   :  { %v14346_v29 = vld [vmem:[#allocation5 + $0xde4] ss:$48 sps:$4 sm:$0xff]  }
  0xa3   :  { %3095 = vmatpush1.bf16.msra.mxu0 %v14228_v13  ;;  %3218 = vmatpush1.bf16.msra.mxu1 %v14231_v14  ;;  %v14325_v13 = vld [vmem:[#allocation5 + $0xc6c] ss:$48 sps:$4 sm:$0xff]   ;;  %v14320_v14 = vld [vmem:[#allocation5 + $0xc60] ss:$48 sps:$4 sm:$0xff]  }
  0xa4   :  { %3096 = vmatprep.subr.bf16.mxu0 %v14236_v15  ;;  %3219 = vmatprep.subr.bf16.mxu1 %v14239_v16  ;;  %v14323_v15 = vld [vmem:[#allocation5 + $0xc68] ss:$48 sps:$4 sm:$0xff]   ;;  %v14328_v16 = vld [vmem:[#allocation5 + $0xcc4] ss:$48 sps:$4 sm:$0xff]  }
  0xa7   :  { %3097 = vmatpush1.bf16.msra.mxu0 %v14234_v17  ;;  %3220 = vmatpush1.bf16.msra.mxu1 %v14237_v18  ;;  %v14331_v17 = vld [vmem:[#allocation5 + $0xccc] ss:$48 sps:$4 sm:$0xff]   ;;  %v16723_v18 = vmov 0  }
  0xa8   :  { %3098 = vmatprep.subr.bf16.mxu0 %v14242_v19  ;;  %3221 = vmatprep.subr.bf16.mxu1 %v14245_v20  ;;  %v14326_v19 = vld [vmem:[#allocation5 + $0xcc0] ss:$48 sps:$4 sm:$0xff]   ;;  %v14329_v20 = vld [vmem:[#allocation5 + $0xcc8] ss:$48 sps:$4 sm:$0xff]  }
  0xab   :  { %3099 = vmatpush1.bf16.msra.mxu0 %v14240_v21  ;;  %3222 = vmatpush1.bf16.msra.mxu1 %v14243_v22  ;;  %v14334_v21 = vld [vmem:[#allocation5 + $0xd24] ss:$48 sps:$4 sm:$0xff]   ;;  %v14337_v22 = vld [vmem:[#allocation5 + $0xd2c] ss:$48 sps:$4 sm:$0xff]  }
  0xac   :  { %3100 = vmatprep.subr.bf16.mxu0 %v14248_v23  ;;  %3223 = vmatprep.subr.bf16.mxu1 %v14251_v24  ;;  %v14332_v23 = vld [vmem:[#allocation5 + $0xd20] ss:$48 sps:$4 sm:$0xff]   ;;  %v14335_v24 = vld [vmem:[#allocation5 + $0xd28] ss:$48 sps:$4 sm:$0xff]  }
  0xaf   :  { %3101 = vmatpush1.bf16.msra.mxu0 %v14246_v25  ;;  %3224 = vmatpush1.bf16.msra.mxu1 %v14249_v26  ;;  %v14340_v25 = vld [vmem:[#allocation5 + $0xd84] ss:$48 sps:$4 sm:$0xff]   ;;  %v14343_v26 = vld [vmem:[#allocation5 + $0xd8c] ss:$48 sps:$4 sm:$0xff]  }
  0xb0   :  { %3102 = vmatprep.subr.bf16.mxu0 %v14254_v27  ;;  %3225 = vmatprep.subr.bf16.mxu1 %v14257_v28  ;;  %v14338_v27 = vld [vmem:[#allocation5 + $0xd80] ss:$48 sps:$4 sm:$0xff]   ;;  %v14341_v28 = vld [vmem:[#allocation5 + $0xd88] ss:$48 sps:$4 sm:$0xff]  }
  0xb3   :  { %3103 = vmatpush1.bf16.msra.mxu0 %v14252_v31  ;;  %3226 = vmatpush1.bf16.msra.mxu1 %v14255_v32  ;;  %v14349_v31 = vld [vmem:[#allocation5 + $0xdec] ss:$48 sps:$4 sm:$0xff]   ;;  %v14344_v32 = vld [vmem:[#allocation5 + $0xde0] ss:$48 sps:$4 sm:$0xff]  }
  0xb4   :  { %3104 = vmatprep.subr.bf16.mxu0 %v14260_v33  ;;  %3227 = vmatprep.subr.bf16.mxu1 %v14263_v34  ;;  %v14347_v33 = vld [vmem:[#allocation5 + $0xde8] ss:$48 sps:$4 sm:$0xff]   ;;  %v14352_v34 = vld [vmem:[#allocation5 + $0xe44] ss:$48 sps:$4 sm:$0xff]  }
  0xb7   :  { %3105 = vmatpush1.bf16.msra.mxu0 %v14258_v35  ;;  %3228 = vmatpush1.bf16.msra.mxu1 %v14261_v36  ;;  %v14355_v35 = vld [vmem:[#allocation5 + $0xe4c] ss:$48 sps:$4 sm:$0xff]   ;;  %v14350_v36 = vld [vmem:[#allocation5 + $0xe40] ss:$48 sps:$4 sm:$0xff]  }
  0xb8   :  { %3106 = vmatprep.subr.bf16.mxu0 %v14266_v37  ;;  %3229 = vmatprep.subr.bf16.mxu1 %v14269_v38  ;;  %v14353_v37 = vld [vmem:[#allocation5 + $0xe48] ss:$48 sps:$4 sm:$0xff]   ;;  %v14358_v38 = vld [vmem:[#allocation5 + $0xea4] ss:$48 sps:$4 sm:$0xff]  }
  0xbb   :  { %3107 = vmatpush1.bf16.msra.mxu0 %v14264_v39  ;;  %3230 = vmatpush1.bf16.msra.mxu1 %v14267_v40  ;;  %v14361_v39 = vld [vmem:[#allocation5 + $0xeac] ss:$48 sps:$4 sm:$0xff]   ;;  %v14356_v40 = vld [vmem:[#allocation5 + $0xea0] ss:$48 sps:$4 sm:$0xff]  }
  0xbc   :  { %3108 = vmatprep.subr.bf16.mxu0 %v14272_v41  ;;  %3231 = vmatprep.subr.bf16.mxu1 %v14275_v42  ;;  %v14359_v41 = vld [vmem:[#allocation5 + $0xea8] ss:$48 sps:$4 sm:$0xff]   ;;  %v14365_v42 = vld [vmem:[#allocation5 + $0x14] ss:$48 sps:$4 sm:$0xff]  }
  0xbf   :  { %3109 = vmatpush1.bf16.msra.mxu0 %v14270_v43  ;;  %3232 = vmatpush1.bf16.msra.mxu1 %v14273_v44  ;;  %v14368_v43 = vld [vmem:[#allocation5 + $0x1c] ss:$48 sps:$4 sm:$0xff]  }
  0xc0   :  { %3110 = vmatprep.subr.bf16.mxu0 %v14278_v45  ;;  %3233 = vmatprep.subr.bf16.mxu1 %v14281_v46  ;;  %v14362_v44 = vld [vmem:[#allocation2 + $0x10] ss:$0 sps:$4 sm:$0xff]   ;;  %v14363_v45 = vld [vmem:[#allocation5 + $0x10] ss:$48 sps:$4 sm:$0xff]   ;;  %v14366_v46 = vld [vmem:[#allocation5 + $0x18] ss:$48 sps:$4 sm:$0xff]  }
  0xc3   :  { %3111 = vmatpush1.bf16.msra.mxu0 %v14276_v47  ;;  %3234 = vmatpush1.bf16.msra.mxu1 %v14279_v49  ;;  %v14371_v47 = vld [vmem:[#allocation5 + $0x74] ss:$48 sps:$4 sm:$0xff]   ;;  %v14374_v49 = vld [vmem:[#allocation5 + $0x7c] ss:$48 sps:$4 sm:$0xff]  }
  0xc4   :  { %3112 = vmatprep.subr.bf16.mxu0 %v14284_v50  ;;  %3235 = vmatprep.subr.bf16.mxu1 %v14287_v51  ;;  %v14369_v50 = vld [vmem:[#allocation5 + $0x70] ss:$48 sps:$4 sm:$0xff]   ;;  %v14372_v51 = vld [vmem:[#allocation5 + $0x78] ss:$48 sps:$4 sm:$0xff]  }
  0xc7   :  { %3113 = vmatpush1.bf16.msra.mxu0 %v14282_v52  ;;  %3236 = vmatpush1.bf16.msra.mxu1 %v14285_v53  ;;  %v14377_v52 = vld [vmem:[#allocation5 + $0xd4] ss:$48 sps:$4 sm:$0xff]   ;;  %v14380_v53 = vld [vmem:[#allocation5 + $0xdc] ss:$48 sps:$4 sm:$0xff]  }
  0xc8   :  { %3114 = vmatprep.subr.bf16.mxu0 %v14290_v54  ;;  %3237 = vmatprep.subr.bf16.mxu1 %v14293_v55  ;;  %v14375_v54 = vld [vmem:[#allocation5 + $0xd0] ss:$48 sps:$4 sm:$0xff]   ;;  %v14378_v55 = vld [vmem:[#allocation5 + $0xd8] ss:$48 sps:$4 sm:$0xff]  }
  0xcb   :  { %3115 = vmatpush1.bf16.msra.mxu0 %v14288_v56  ;;  %3238 = vmatpush1.bf16.msra.mxu1 %v14291_v57  ;;  %v14383_v56 = vld [vmem:[#allocation5 + $0x134] ss:$48 sps:$4 sm:$0xff]   ;;  %v14386_v57 = vld [vmem:[#allocation5 + $0x13c] ss:$48 sps:$4 sm:$0xff]  }
  0xcc   :  { %3116 = vmatprep.subr.bf16.mxu0 %v14296_v58  ;;  %3239 = vmatprep.subr.bf16.mxu1 %v14299_v59  ;;  %v14381_v58 = vld [vmem:[#allocation5 + $0x130] ss:$48 sps:$4 sm:$0xff]   ;;  %v14384_v59 = vld [vmem:[#allocation5 + $0x138] ss:$48 sps:$4 sm:$0xff]  }
  0xcf   :  { %3117 = vmatpush1.bf16.msra.mxu0 %v14294_v60  ;;  %3240 = vmatpush1.bf16.msra.mxu1 %v14297_v61  ;;  %v14389_v60 = vld [vmem:[#allocation5 + $0x194] ss:$48 sps:$4 sm:$0xff]   ;;  %v14392_v61 = vld [vmem:[#allocation5 + $0x19c] ss:$48 sps:$4 sm:$0xff]  }
  0xd0   :  { %3118 = vmatprep.subr.bf16.mxu0 %v14302_v62  ;;  %3241 = vmatprep.subr.bf16.mxu1 %v14305_v63  ;;  %v14387_v62 = vld [vmem:[#allocation5 + $0x190] ss:$48 sps:$4 sm:$0xff]   ;;  %v14390_v63 = vld [vmem:[#allocation5 + $0x198] ss:$48 sps:$4 sm:$0xff]  }
  0xd3   :  { %3119 = vmatpush1.bf16.msra.mxu0 %v14300_v0  ;;  %3242 = vmatpush1.bf16.msra.mxu1 %v14303_v1  ;;  %v14395_v0 = vld [vmem:[#allocation5 + $0x1f4] ss:$48 sps:$4 sm:$0xff]   ;;  %v14398_v1 = vld [vmem:[#allocation5 + $0x1fc] ss:$48 sps:$4 sm:$0xff]  }
  0xd4   :  { %3120 = vmatprep.subr.bf16.mxu0 %v14308_v2  ;;  %3243 = vmatprep.subr.bf16.mxu1 %v14311_v3  ;;  %v14393_v2 = vld [vmem:[#allocation5 + $0x1f0] ss:$48 sps:$4 sm:$0xff]   ;;  %v14396_v3 = vld [vmem:[#allocation5 + $0x1f8] ss:$48 sps:$4 sm:$0xff]  }
  0xd7   :  { %3121 = vmatpush1.bf16.msra.mxu0 %v14306_v4  ;;  %3244 = vmatpush1.bf16.msra.mxu1 %v14309_v6  ;;  %v14401_v4 = vld [vmem:[#allocation5 + $0x254] ss:$48 sps:$4 sm:$0xff]   ;;  %v14404_v6 = vld [vmem:[#allocation5 + $0x25c] ss:$48 sps:$4 sm:$0xff]  }
  0xd8   :  { %3131 = vmatprep.subr.bf16.mxu0 %v14315_v7  ;;  %3254 = vmatprep.subr.bf16.mxu1 %v14318_v8  ;;  %v14399_v7 = vld [vmem:[#allocation5 + $0x250] ss:$48 sps:$4 sm:$0xff]   ;;  %v14402_v8 = vld [vmem:[#allocation5 + $0x258] ss:$48 sps:$4 sm:$0xff]  }
  0xda   :  { %3123 = vmatmul.mubr.bf16.vlgmr.msra.gmra.mrb[0].mxu0 %v16833_v11  ;;  %3246 = vmatmul.mubr.bf16.vlgmr.msra.gmra.mrb[0].mxu1 %v16833_v11 }
  0xdb   :  { %3132 = vmatpush1.bf16.msra.mxu0 %v14313_v9  ;;  %3255 = vmatpush1.bf16.msra.mxu1 %v14316_v10  ;;  %v14407_v9 = vld [vmem:[#allocation5 + $0x2b4] ss:$48 sps:$4 sm:$0xff]   ;;  %v14410_v10 = vld [vmem:[#allocation5 + $0x2bc] ss:$48 sps:$4 sm:$0xff]  }
  0xdc   :  { %3133 = vmatprep.subr.bf16.mxu0 %v14322_v12  ;;  %3256 = vmatprep.subr.bf16.mxu1 %v14325_v13  ;;  %v14405_v12 = vld [vmem:[#allocation5 + $0x2b0] ss:$48 sps:$4 sm:$0xff]   ;;  %v14408_v13 = vld [vmem:[#allocation5 + $0x2b8] ss:$48 sps:$4 sm:$0xff]  }
  0xdd   :  { %3163 = vmatprep.mubr.bf16.mxu0 %v16723_v18  ;;  %3286 = vmatprep.mubr.bf16.mxu1 %v16723_v18 }
  0xdf   :  { %3134 = vmatpush1.bf16.msra.mxu0 %v14320_v14  ;;  %3257 = vmatpush1.bf16.msra.mxu1 %v14323_v15  ;;  %v14413_v14 = vld [vmem:[#allocation5 + $0x314] ss:$48 sps:$4 sm:$0xff]   ;;  %v14416_v15 = vld [vmem:[#allocation5 + $0x31c] ss:$48 sps:$4 sm:$0xff]  }
  0xe0   :  { %3135 = vmatprep.subr.bf16.mxu0 %v14328_v16  ;;  %3258 = vmatprep.subr.bf16.mxu1 %v14331_v17  ;;  %v14411_v16 = vld [vmem:[#allocation5 + $0x310] ss:$48 sps:$4 sm:$0xff]   ;;  %v14414_v17 = vld [vmem:[#allocation5 + $0x318] ss:$48 sps:$4 sm:$0xff]  }
  0xe3   :  { %3136 = vmatpush1.bf16.msra.mxu0 %v14326_v19  ;;  %3259 = vmatpush1.bf16.msra.mxu1 %v14329_v20  ;;  %v14419_v19 = vld [vmem:[#allocation5 + $0x374] ss:$48 sps:$4 sm:$0xff]   ;;  %v14422_v20 = vld [vmem:[#allocation5 + $0x37c] ss:$48 sps:$4 sm:$0xff]  }
  0xe4   :  { %3137 = vmatprep.subr.bf16.mxu0 %v14334_v21  ;;  %3260 = vmatprep.subr.bf16.mxu1 %v14337_v22  ;;  %v14417_v21 = vld [vmem:[#allocation5 + $0x370] ss:$48 sps:$4 sm:$0xff]   ;;  %v14420_v22 = vld [vmem:[#allocation5 + $0x378] ss:$48 sps:$4 sm:$0xff]  }
  0xe7   :  { %3138 = vmatpush1.bf16.msra.mxu0 %v14332_v23  ;;  %3261 = vmatpush1.bf16.msra.mxu1 %v14335_v24  ;;  %v14425_v23 = vld [vmem:[#allocation5 + $0x3d4] ss:$48 sps:$4 sm:$0xff]   ;;  %v14428_v24 = vld [vmem:[#allocation5 + $0x3dc] ss:$48 sps:$4 sm:$0xff]  }
  0xe8   :  { %3139 = vmatprep.subr.bf16.mxu0 %v14340_v25  ;;  %3262 = vmatprep.subr.bf16.mxu1 %v14343_v26  ;;  %v14423_v25 = vld [vmem:[#allocation5 + $0x3d0] ss:$48 sps:$4 sm:$0xff]   ;;  %v14426_v26 = vld [vmem:[#allocation5 + $0x3d8] ss:$48 sps:$4 sm:$0xff]  }
  0xeb   :  { %3140 = vmatpush1.bf16.msra.mxu0 %v14338_v27  ;;  %3263 = vmatpush1.bf16.msra.mxu1 %v14341_v28  ;;  %v14431_v27 = vld [vmem:[#allocation5 + $0x434] ss:$48 sps:$4 sm:$0xff]   ;;  %v14434_v28 = vld [vmem:[#allocation5 + $0x43c] ss:$48 sps:$4 sm:$0xff]  }
  0xec   :  { %3141 = vmatprep.subr.bf16.mxu0 %v14346_v29  ;;  %3264 = vmatprep.subr.bf16.mxu1 %v14349_v31  ;;  %v14429_v29 = vld [vmem:[#allocation5 + $0x430] ss:$48 sps:$4 sm:$0xff]   ;;  %v14432_v31 = vld [vmem:[#allocation5 + $0x438] ss:$48 sps:$4 sm:$0xff]  }
  0xef   :  { %3142 = vmatpush1.bf16.msra.mxu0 %v14344_v32  ;;  %3265 = vmatpush1.bf16.msra.mxu1 %v14347_v33  ;;  %v14437_v32 = vld [vmem:[#allocation5 + $0x494] ss:$48 sps:$4 sm:$0xff]   ;;  %v14440_v33 = vld [vmem:[#allocation5 + $0x49c] ss:$48 sps:$4 sm:$0xff]  }
  0xf0   :  { %3143 = vmatprep.subr.bf16.mxu0 %v14352_v34  ;;  %3266 = vmatprep.subr.bf16.mxu1 %v14355_v35  ;;  %v14435_v34 = vld [vmem:[#allocation5 + $0x490] ss:$48 sps:$4 sm:$0xff]   ;;  %v14438_v35 = vld [vmem:[#allocation5 + $0x498] ss:$48 sps:$4 sm:$0xff]  }
  0xf3   :  { %3144 = vmatpush1.bf16.msra.mxu0 %v14350_v36  ;;  %3267 = vmatpush1.bf16.msra.mxu1 %v14353_v37  ;;  %v14443_v36 = vld [vmem:[#allocation5 + $0x4f4] ss:$48 sps:$4 sm:$0xff]   ;;  %v14446_v37 = vld [vmem:[#allocation5 + $0x4fc] ss:$48 sps:$4 sm:$0xff]  }
  0xf4   :  { %3145 = vmatprep.subr.bf16.mxu0 %v14358_v38  ;;  %3268 = vmatprep.subr.bf16.mxu1 %v14361_v39  ;;  %v14441_v38 = vld [vmem:[#allocation5 + $0x4f0] ss:$48 sps:$4 sm:$0xff]   ;;  %v14444_v39 = vld [vmem:[#allocation5 + $0x4f8] ss:$48 sps:$4 sm:$0xff]  }
  0xf7   :  { %3146 = vmatpush1.bf16.msra.mxu0 %v14356_v40  ;;  %3269 = vmatpush1.bf16.msra.mxu1 %v14359_v41  ;;  %v14449_v40 = vld [vmem:[#allocation5 + $0x554] ss:$48 sps:$4 sm:$0xff]   ;;  %v14452_v41 = vld [vmem:[#allocation5 + $0x55c] ss:$48 sps:$4 sm:$0xff]  }
  0xf8   :  { %3295 = vmatprep.subr.bf16.mxu0 %v14365_v42  ;;  %3418 = vmatprep.subr.bf16.mxu1 %v14368_v43  ;;  %v14447_v42 = vld [vmem:[#allocation5 + $0x550] ss:$48 sps:$4 sm:$0xff]   ;;  %v14450_v43 = vld [vmem:[#allocation5 + $0x558] ss:$48 sps:$4 sm:$0xff]  }
  0xfa   :  { %3164 = vmatmul.mubr.bf16.vlgmr.msra.gmra.mrb[0].mxu0 %v14362_v44  ;;  %3287 = vmatmul.mubr.bf16.vlgmr.msra.gmra.mrb[0].mxu1 %v14362_v44  ;;  %v14455_v44 = vld [vmem:[#allocation5 + $0x5b4] ss:$48 sps:$4 sm:$0xff]  }
  0xfb   :  { %3296 = vmatpush1.bf16.msra.mxu0 %v14363_v45  ;;  %3419 = vmatpush1.bf16.msra.mxu1 %v14366_v46  ;;  %v14458_v45 = vld [vmem:[#allocation5 + $0x5bc] ss:$48 sps:$4 sm:$0xff]   ;;  %v14453_v46 = vld [vmem:[#allocation5 + $0x5b0] ss:$48 sps:$4 sm:$0xff]  }
  0xfc   :  { %3297 = vmatprep.subr.bf16.mxu0 %v14371_v47  ;;  %3420 = vmatprep.subr.bf16.mxu1 %v14374_v49  ;;  %v14456_v47 = vld [vmem:[#allocation5 + $0x5b8] ss:$48 sps:$4 sm:$0xff]   ;;  %v14461_v49 = vld [vmem:[#allocation5 + $0x614] ss:$48 sps:$4 sm:$0xff]  }
  0xfd   :  { %3327 = vmatprep.mubr.bf16.mxu0 %v16815_v48  ;;  %3450 = vmatprep.mubr.bf16.mxu1 %v16815_v48 }
  0xff   :  { %3298 = vmatpush1.bf16.msra.mxu0 %v14369_v50  ;;  %3421 = vmatpush1.bf16.msra.mxu1 %v14372_v51  ;;  %v14464_v50 = vld [vmem:[#allocation5 + $0x61c] ss:$48 sps:$4 sm:$0xff]   ;;  %v14459_v51 = vld [vmem:[#allocation5 + $0x610] ss:$48 sps:$4 sm:$0xff]  }
 0x100   :  { %3299 = vmatprep.subr.bf16.mxu0 %v14377_v52  ;;  %3422 = vmatprep.subr.bf16.mxu1 %v14380_v53  ;;  %v14462_v52 = vld [vmem:[#allocation5 + $0x618] ss:$48 sps:$4 sm:$0xff]   ;;  %v14467_v53 = vld [vmem:[#allocation5 + $0x674] ss:$48 sps:$4 sm:$0xff]  }
 0x103   :  { %3300 = vmatpush1.bf16.msra.mxu0 %v14375_v54  ;;  %3423 = vmatpush1.bf16.msra.mxu1 %v14378_v55  ;;  %v14470_v54 = vld [vmem:[#allocation5 + $0x67c] ss:$48 sps:$4 sm:$0xff]   ;;  %v14465_v55 = vld [vmem:[#allocation5 + $0x670] ss:$48 sps:$4 sm:$0xff]  }
 0x104   :  { %3301 = vmatprep.subr.bf16.mxu0 %v14383_v56  ;;  %3424 = vmatprep.subr.bf16.mxu1 %v14386_v57  ;;  %v14468_v56 = vld [vmem:[#allocation5 + $0x678] ss:$48 sps:$4 sm:$0xff]   ;;  %v14473_v57 = vld [vmem:[#allocation5 + $0x6d4] ss:$48 sps:$4 sm:$0xff]  }
 0x107   :  { %3302 = vmatpush1.bf16.msra.mxu0 %v14381_v58  ;;  %3425 = vmatpush1.bf16.msra.mxu1 %v14384_v59  ;;  %v14476_v58 = vld [vmem:[#allocation5 + $0x6dc] ss:$48 sps:$4 sm:$0xff]   ;;  %v14471_v59 = vld [vmem:[#allocation5 + $0x6d0] ss:$48 sps:$4 sm:$0xff]  }
 0x108   :  { %3303 = vmatprep.subr.bf16.mxu0 %v14389_v60  ;;  %3426 = vmatprep.subr.bf16.mxu1 %v14392_v61  ;;  %v14474_v60 = vld [vmem:[#allocation5 + $0x6d8] ss:$48 sps:$4 sm:$0xff]   ;;  %v14479_v61 = vld [vmem:[#allocation5 + $0x734] ss:$48 sps:$4 sm:$0xff]  }
 0x10b   :  { %3304 = vmatpush1.bf16.msra.mxu0 %v14387_v62  ;;  %3427 = vmatpush1.bf16.msra.mxu1 %v14390_v63  ;;  %v14482_v62 = vld [vmem:[#allocation5 + $0x73c] ss:$48 sps:$4 sm:$0xff]   ;;  %v14477_v63 = vld [vmem:[#allocation5 + $0x730] ss:$48 sps:$4 sm:$0xff]  }
 0x10c   :  { %3305 = vmatprep.subr.bf16.mxu0 %v14395_v0  ;;  %3428 = vmatprep.subr.bf16.mxu1 %v14398_v1  ;;  %v14480_v0 = vld [vmem:[#allocation5 + $0x738] ss:$48 sps:$4 sm:$0xff]   ;;  %v14485_v1 = vld [vmem:[#allocation5 + $0x794] ss:$48 sps:$4 sm:$0xff]  }
 0x10f   :  { %3306 = vmatpush1.bf16.msra.mxu0 %v14393_v2  ;;  %3429 = vmatpush1.bf16.msra.mxu1 %v14396_v3  ;;  %v14488_v2 = vld [vmem:[#allocation5 + $0x79c] ss:$48 sps:$4 sm:$0xff]   ;;  %v14483_v3 = vld [vmem:[#allocation5 + $0x790] ss:$48 sps:$4 sm:$0xff]  }
 0x110   :  { %3307 = vmatprep.subr.bf16.mxu0 %v14401_v4  ;;  %3430 = vmatprep.subr.bf16.mxu1 %v14404_v6  ;;  %v14486_v4 = vld [vmem:[#allocation5 + $0x798] ss:$48 sps:$4 sm:$0xff]   ;;  %v14491_v6 = vld [vmem:[#allocation5 + $0x7f4] ss:$48 sps:$4 sm:$0xff]  }
 0x113   :  { %3308 = vmatpush1.bf16.msra.mxu0 %v14399_v7  ;;  %3431 = vmatpush1.bf16.msra.mxu1 %v14402_v8  ;;  %v14494_v7 = vld [vmem:[#allocation5 + $0x7fc] ss:$48 sps:$4 sm:$0xff]   ;;  %v14489_v8 = vld [vmem:[#allocation5 + $0x7f0] ss:$48 sps:$4 sm:$0xff]  }
 0x114   :  { %3309 = vmatprep.subr.bf16.mxu0 %v14407_v9  ;;  %3432 = vmatprep.subr.bf16.mxu1 %v14410_v10  ;;  %v14492_v9 = vld [vmem:[#allocation5 + $0x7f8] ss:$48 sps:$4 sm:$0xff]   ;;  %v14497_v10 = vld [vmem:[#allocation5 + $0x854] ss:$48 sps:$4 sm:$0xff]  }
 0x117   :  { %3310 = vmatpush1.bf16.msra.mxu0 %v14405_v12  ;;  %3433 = vmatpush1.bf16.msra.mxu1 %v14408_v13  ;;  %v14500_v12 = vld [vmem:[#allocation5 + $0x85c] ss:$48 sps:$4 sm:$0xff]   ;;  %v14495_v13 = vld [vmem:[#allocation5 + $0x850] ss:$48 sps:$4 sm:$0xff]  }
 0x118   :  { %3311 = vmatprep.subr.bf16.mxu0 %v14413_v14  ;;  %3434 = vmatprep.subr.bf16.mxu1 %v14416_v15  ;;  %v14498_v14 = vld [vmem:[#allocation5 + $0x858] ss:$48 sps:$4 sm:$0xff]   ;;  %v14503_v15 = vld [vmem:[#allocation5 + $0x8b4] ss:$48 sps:$4 sm:$0xff]  }
 0x11b   :  { %3312 = vmatpush1.bf16.msra.mxu0 %v14411_v16  ;;  %3435 = vmatpush1.bf16.msra.mxu1 %v14414_v17  ;;  %v14506_v16 = vld [vmem:[#allocation5 + $0x8bc] ss:$48 sps:$4 sm:$0xff]   ;;  %v14501_v17 = vld [vmem:[#allocation5 + $0x8b0] ss:$48 sps:$4 sm:$0xff]  }
 0x11c   :  { %3313 = vmatprep.subr.bf16.mxu0 %v14419_v19  ;;  %3436 = vmatprep.subr.bf16.mxu1 %v14422_v20  ;;  %v14504_v19 = vld [vmem:[#allocation5 + $0x8b8] ss:$48 sps:$4 sm:$0xff]   ;;  %v14509_v20 = vld [vmem:[#allocation5 + $0x914] ss:$48 sps:$4 sm:$0xff]  }
 0x11f   :  { %3314 = vmatpush1.bf16.msra.mxu0 %v14417_v21  ;;  %3437 = vmatpush1.bf16.msra.mxu1 %v14420_v22  ;;  %v14512_v21 = vld [vmem:[#allocation5 + $0x91c] ss:$48 sps:$4 sm:$0xff]   ;;  %v14507_v22 = vld [vmem:[#allocation5 + $0x910] ss:$48 sps:$4 sm:$0xff]  }
 0x120   :  { %3315 = vmatprep.subr.bf16.mxu0 %v14425_v23  ;;  %3438 = vmatprep.subr.bf16.mxu1 %v14428_v24  ;;  %v14510_v23 = vld [vmem:[#allocation5 + $0x918] ss:$48 sps:$4 sm:$0xff]   ;;  %v14515_v24 = vld [vmem:[#allocation5 + $0x974] ss:$48 sps:$4 sm:$0xff]  }
 0x123   :  { %3316 = vmatpush1.bf16.msra.mxu0 %v14423_v25  ;;  %3439 = vmatpush1.bf16.msra.mxu1 %v14426_v26  ;;  %v14518_v25 = vld [vmem:[#allocation5 + $0x97c] ss:$48 sps:$4 sm:$0xff]   ;;  %v14513_v26 = vld [vmem:[#allocation5 + $0x970] ss:$48 sps:$4 sm:$0xff]  }
 0x124   :  { %3317 = vmatprep.subr.bf16.mxu0 %v14431_v27  ;;  %3440 = vmatprep.subr.bf16.mxu1 %v14434_v28  ;;  %v14516_v27 = vld [vmem:[#allocation5 + $0x978] ss:$48 sps:$4 sm:$0xff]   ;;  %v14521_v28 = vld [vmem:[#allocation5 + $0x9d4] ss:$48 sps:$4 sm:$0xff]  }
 0x127   :  { %3318 = vmatpush1.bf16.msra.mxu0 %v14429_v29  ;;  %3441 = vmatpush1.bf16.msra.mxu1 %v14432_v31  ;;  %v14524_v29 = vld [vmem:[#allocation5 + $0x9dc] ss:$48 sps:$4 sm:$0xff]   ;;  %v14519_v31 = vld [vmem:[#allocation5 + $0x9d0] ss:$48 sps:$4 sm:$0xff]  }
 0x128   :  { %3319 = vmatprep.subr.bf16.mxu0 %v14437_v32  ;;  %3442 = vmatprep.subr.bf16.mxu1 %v14440_v33  ;;  %v14522_v32 = vld [vmem:[#allocation5 + $0x9d8] ss:$48 sps:$4 sm:$0xff]   ;;  %v14527_v33 = vld [vmem:[#allocation5 + $0xa34] ss:$48 sps:$4 sm:$0xff]  }
 0x12b   :  { %3320 = vmatpush1.bf16.msra.mxu0 %v14435_v34  ;;  %3443 = vmatpush1.bf16.msra.mxu1 %v14438_v35  ;;  %v14530_v34 = vld [vmem:[#allocation5 + $0xa3c] ss:$48 sps:$4 sm:$0xff]   ;;  %v14525_v35 = vld [vmem:[#allocation5 + $0xa30] ss:$48 sps:$4 sm:$0xff]  }
 0x12c   :  { %3321 = vmatprep.subr.bf16.mxu0 %v14443_v36  ;;  %3444 = vmatprep.subr.bf16.mxu1 %v14446_v37  ;;  %v14528_v36 = vld [vmem:[#allocation5 + $0xa38] ss:$48 sps:$4 sm:$0xff]   ;;  %v14533_v37 = vld [vmem:[#allocation5 + $0xa94] ss:$48 sps:$4 sm:$0xff]  }
 0x12f   :  { %3322 = vmatpush1.bf16.msra.mxu0 %v14441_v38  ;;  %3445 = vmatpush1.bf16.msra.mxu1 %v14444_v39  ;;  %v14536_v38 = vld [vmem:[#allocation5 + $0xa9c] ss:$48 sps:$4 sm:$0xff]   ;;  %v14531_v39 = vld [vmem:[#allocation5 + $0xa90] ss:$48 sps:$4 sm:$0xff]  }
 0x130   :  { %3323 = vmatprep.subr.bf16.mxu0 %v14449_v40  ;;  %3446 = vmatprep.subr.bf16.mxu1 %v14452_v41  ;;  %v14534_v40 = vld [vmem:[#allocation5 + $0xa98] ss:$48 sps:$4 sm:$0xff]   ;;  %v14539_v41 = vld [vmem:[#allocation5 + $0xaf4] ss:$48 sps:$4 sm:$0xff]  }
 0x133   :  { %3324 = vmatpush1.bf16.msra.mxu0 %v14447_v42  ;;  %3447 = vmatpush1.bf16.msra.mxu1 %v14450_v43  ;;  %v14542_v42 = vld [vmem:[#allocation5 + $0xafc] ss:$48 sps:$4 sm:$0xff]   ;;  %v14537_v43 = vld [vmem:[#allocation5 + $0xaf0] ss:$48 sps:$4 sm:$0xff]  }
 0x134   :  { %3325 = vmatprep.subr.bf16.mxu0 %v14455_v44  ;;  %3448 = vmatprep.subr.bf16.mxu1 %v14458_v45  ;;  %v14540_v44 = vld [vmem:[#allocation5 + $0xaf8] ss:$48 sps:$4 sm:$0xff]   ;;  %v14545_v45 = vld [vmem:[#allocation5 + $0xb54] ss:$48 sps:$4 sm:$0xff]  }
 0x137   :  { %3326 = vmatpush1.bf16.msra.mxu0 %v14453_v46  ;;  %3449 = vmatpush1.bf16.msra.mxu1 %v14456_v47  ;;  %v14548_v46 = vld [vmem:[#allocation5 + $0xb5c] ss:$48 sps:$4 sm:$0xff]   ;;  %v14543_v47 = vld [vmem:[#allocation5 + $0xb50] ss:$48 sps:$4 sm:$0xff]  }
 0x138   :  { %3336 = vmatprep.subr.bf16.mxu0 %v14461_v49  ;;  %3459 = vmatprep.subr.bf16.mxu1 %v14464_v50  ;;  %v14546_v49 = vld [vmem:[#allocation5 + $0xb58] ss:$48 sps:$4 sm:$0xff]   ;;  %v14551_v50 = vld [vmem:[#allocation5 + $0xbb4] ss:$48 sps:$4 sm:$0xff]  }
 0x13a   :  { %3328 = vmatmul.mubr.bf16.vlgmr.msra.gmra.mrb[4].mxu0 %v16819_v5  ;;  %3451 = vmatmul.mubr.bf16.vlgmr.msra.gmra.mrb[4].mxu1 %v16819_v5 }
 0x13b   :  { %3337 = vmatpush1.bf16.msra.mxu0 %v14459_v51  ;;  %3460 = vmatpush1.bf16.msra.mxu1 %v14462_v52  ;;  %v14554_v51 = vld [vmem:[#allocation5 + $0xbbc] ss:$48 sps:$4 sm:$0xff]   ;;  %v14549_v52 = vld [vmem:[#allocation5 + $0xbb0] ss:$48 sps:$4 sm:$0xff]  }
 0x13c   :  { %3338 = vmatprep.subr.bf16.mxu0 %v14467_v53  ;;  %3461 = vmatprep.subr.bf16.mxu1 %v14470_v54  ;;  %v14552_v53 = vld [vmem:[#allocation5 + $0xbb8] ss:$48 sps:$4 sm:$0xff]   ;;  %v14557_v54 = vld [vmem:[#allocation5 + $0xc14] ss:$48 sps:$4 sm:$0xff]  }
 0x13d   :  { %3368 = vmatprep.mubr.bf16.mxu0 %v16827_v30  ;;  %3491 = vmatprep.mubr.bf16.mxu1 %v16827_v30 }
 0x13f   :  { %3339 = vmatpush1.bf16.msra.mxu0 %v14465_v55  ;;  %3462 = vmatpush1.bf16.msra.mxu1 %v14468_v56  ;;  %v14560_v55 = vld [vmem:[#allocation5 + $0xc1c] ss:$48 sps:$4 sm:$0xff]   ;;  %v14555_v56 = vld [vmem:[#allocation5 + $0xc10] ss:$48 sps:$4 sm:$0xff]  }
 0x140   :  { %3340 = vmatprep.subr.bf16.mxu0 %v14473_v57  ;;  %3463 = vmatprep.subr.bf16.mxu1 %v14476_v58  ;;  %v14558_v57 = vld [vmem:[#allocation5 + $0xc18] ss:$48 sps:$4 sm:$0xff]   ;;  %v14563_v58 = vld [vmem:[#allocation5 + $0xc74] ss:$48 sps:$4 sm:$0xff]  }
 0x143   :  { %3341 = vmatpush1.bf16.msra.mxu0 %v14471_v59  ;;  %3464 = vmatpush1.bf16.msra.mxu1 %v14474_v60  ;;  %v14566_v59 = vld [vmem:[#allocation5 + $0xc7c] ss:$48 sps:$4 sm:$0xff]   ;;  %v14561_v60 = vld [vmem:[#allocation5 + $0xc70] ss:$48 sps:$4 sm:$0xff]  }
 0x144   :  { %3342 = vmatprep.subr.bf16.mxu0 %v14479_v61  ;;  %3465 = vmatprep.subr.bf16.mxu1 %v14482_v62  ;;  %v14564_v61 = vld [vmem:[#allocation5 + $0xc78] ss:$48 sps:$4 sm:$0xff]   ;;  %v14569_v62 = vld [vmem:[#allocation5 + $0xcd4] ss:$48 sps:$4 sm:$0xff]  }
 0x147   :  { %3343 = vmatpush1.bf16.msra.mxu0 %v14477_v63  ;;  %3466 = vmatpush1.bf16.msra.mxu1 %v14480_v0  ;;  %v14572_v63 = vld [vmem:[#allocation5 + $0xcdc] ss:$48 sps:$4 sm:$0xff]   ;;  %v14567_v0 = vld [vmem:[#allocation5 + $0xcd0] ss:$48 sps:$4 sm:$0xff]  }
 0x148   :  { %3344 = vmatprep.subr.bf16.mxu0 %v14485_v1  ;;  %3467 = vmatprep.subr.bf16.mxu1 %v14488_v2  ;;  %v14570_v1 = vld [vmem:[#allocation5 + $0xcd8] ss:$48 sps:$4 sm:$0xff]   ;;  %v14575_v2 = vld [vmem:[#allocation5 + $0xd34] ss:$48 sps:$4 sm:$0xff]  }
 0x14b   :  { %3345 = vmatpush1.bf16.msra.mxu0 %v14483_v3  ;;  %3468 = vmatpush1.bf16.msra.mxu1 %v14486_v4  ;;  %v14578_v3 = vld [vmem:[#allocation5 + $0xd3c] ss:$48 sps:$4 sm:$0xff]   ;;  %v14573_v4 = vld [vmem:[#allocation5 + $0xd30] ss:$48 sps:$4 sm:$0xff]  }
 0x14c   :  { %3346 = vmatprep.subr.bf16.mxu0 %v14491_v6  ;;  %3469 = vmatprep.subr.bf16.mxu1 %v14494_v7  ;;  %v14576_v6 = vld [vmem:[#allocation5 + $0xd38] ss:$48 sps:$4 sm:$0xff]   ;;  %v14581_v7 = vld [vmem:[#allocation5 + $0xd94] ss:$48 sps:$4 sm:$0xff]  }
 0x14f   :  { %3347 = vmatpush1.bf16.msra.mxu0 %v14489_v8  ;;  %3470 = vmatpush1.bf16.msra.mxu1 %v14492_v9  ;;  %v14584_v8 = vld [vmem:[#allocation5 + $0xd9c] ss:$48 sps:$4 sm:$0xff]   ;;  %v14579_v9 = vld [vmem:[#allocation5 + $0xd90] ss:$48 sps:$4 sm:$0xff]  }
 0x150   :  { %3348 = vmatprep.subr.bf16.mxu0 %v14497_v10  ;;  %3471 = vmatprep.subr.bf16.mxu1 %v14500_v12  ;;  %v14582_v10 = vld [vmem:[#allocation5 + $0xd98] ss:$48 sps:$4 sm:$0xff]   ;;  %v14587_v12 = vld [vmem:[#allocation5 + $0xdf4] ss:$48 sps:$4 sm:$0xff]  }
 0x153   :  { %3349 = vmatpush1.bf16.msra.mxu0 %v14495_v13  ;;  %3472 = vmatpush1.bf16.msra.mxu1 %v14498_v14  ;;  %v14590_v13 = vld [vmem:[#allocation5 + $0xdfc] ss:$48 sps:$4 sm:$0xff]   ;;  %v14585_v14 = vld [vmem:[#allocation5 + $0xdf0] ss:$48 sps:$4 sm:$0xff]  }
 0x154   :  { %3350 = vmatprep.subr.bf16.mxu0 %v14503_v15  ;;  %3473 = vmatprep.subr.bf16.mxu1 %v14506_v16  ;;  %v14588_v15 = vld [vmem:[#allocation5 + $0xdf8] ss:$48 sps:$4 sm:$0xff]   ;;  %v14593_v16 = vld [vmem:[#allocation5 + $0xe54] ss:$48 sps:$4 sm:$0xff]  }
 0x157   :  { %3351 = vmatpush1.bf16.msra.mxu0 %v14501_v17  ;;  %3474 = vmatpush1.bf16.msra.mxu1 %v14504_v19  ;;  %v14596_v17 = vld [vmem:[#allocation5 + $0xe5c] ss:$48 sps:$4 sm:$0xff]   ;;  %v14591_v19 = vld [vmem:[#allocation5 + $0xe50] ss:$48 sps:$4 sm:$0xff]  }
 0x158   :  { %3352 = vmatprep.subr.bf16.mxu0 %v14509_v20  ;;  %3475 = vmatprep.subr.bf16.mxu1 %v14512_v21  ;;  %v14594_v20 = vld [vmem:[#allocation5 + $0xe58] ss:$48 sps:$4 sm:$0xff]   ;;  %v14599_v21 = vld [vmem:[#allocation5 + $0xeb4] ss:$48 sps:$4 sm:$0xff]  }
 0x15b   :  { %3353 = vmatpush1.bf16.msra.mxu0 %v14507_v22  ;;  %3476 = vmatpush1.bf16.msra.mxu1 %v14510_v23  ;;  %v14602_v22 = vld [vmem:[#allocation5 + $0xebc] ss:$48 sps:$4 sm:$0xff]   ;;  %v14597_v23 = vld [vmem:[#allocation5 + $0xeb0] ss:$48 sps:$4 sm:$0xff]  }
 0x15c   :  { %3354 = vmatprep.subr.bf16.mxu0 %v14515_v24  ;;  %3477 = vmatprep.subr.bf16.mxu1 %v14518_v25  ;;  %v14600_v24 = vld [vmem:[#allocation5 + $0xeb8] ss:$48 sps:$4 sm:$0xff]   ;;  %v14605_v25 = vld [vmem:[#allocation5 + $0x24] ss:$48 sps:$4 sm:$0xff]  }
 0x15f   :  { %3355 = vmatpush1.bf16.msra.mxu0 %v14513_v26  ;;  %3478 = vmatpush1.bf16.msra.mxu1 %v14516_v27  ;;  %v14608_v26 = vld [vmem:[#allocation5 + $0x2c] ss:$48 sps:$4 sm:$0xff]   ;;  %v14603_v27 = vld [vmem:[#allocation5 + $0x20] ss:$48 sps:$4 sm:$0xff]  }
 0x160   :  { %3356 = vmatprep.subr.bf16.mxu0 %v14521_v28  ;;  %3479 = vmatprep.subr.bf16.mxu1 %v14524_v29  ;;  %v14606_v28 = vld [vmem:[#allocation5 + $0x28] ss:$48 sps:$4 sm:$0xff]   ;;  %v14611_v29 = vld [vmem:[#allocation5 + $0x84] ss:$48 sps:$4 sm:$0xff]  }
 0x163   :  { %3357 = vmatpush1.bf16.msra.mxu0 %v14519_v31  ;;  %3480 = vmatpush1.bf16.msra.mxu1 %v14522_v32  ;;  %v14614_v31 = vld [vmem:[#allocation5 + $0x8c] ss:$48 sps:$4 sm:$0xff]  }
 0x164   :  { %3358 = vmatprep.subr.bf16.mxu0 %v14527_v33  ;;  %3481 = vmatprep.subr.bf16.mxu1 %v14530_v34  ;;  %v16571_v32 = vld [vmem:[#allocation2 + $0x10] ss:$0 sps:$4 sm:$0xff]   ;;  %v14609_v33 = vld [vmem:[#allocation5 + $0x80] ss:$48 sps:$4 sm:$0xff]   ;;  %v14612_v34 = vld [vmem:[#allocation5 + $0x88] ss:$48 sps:$4 sm:$0xff]  }
 0x167   :  { %3359 = vmatpush1.bf16.msra.mxu0 %v14525_v35  ;;  %3482 = vmatpush1.bf16.msra.mxu1 %v14528_v36  ;;  %v14617_v35 = vld [vmem:[#allocation5 + $0xe4] ss:$48 sps:$4 sm:$0xff]   ;;  %v14620_v36 = vld [vmem:[#allocation5 + $0xec] ss:$48 sps:$4 sm:$0xff]  }
 0x168   :  { %3360 = vmatprep.subr.bf16.mxu0 %v14533_v37  ;;  %3483 = vmatprep.subr.bf16.mxu1 %v14536_v38  ;;  %v14615_v37 = vld [vmem:[#allocation5 + $0xe0] ss:$48 sps:$4 sm:$0xff]   ;;  %v14618_v38 = vld [vmem:[#allocation5 + $0xe8] ss:$48 sps:$4 sm:$0xff]  }
 0x16b   :  { %3361 = vmatpush1.bf16.msra.mxu0 %v14531_v39  ;;  %3484 = vmatpush1.bf16.msra.mxu1 %v14534_v40  ;;  %v14623_v39 = vld [vmem:[#allocation5 + $0x144] ss:$48 sps:$4 sm:$0xff]   ;;  %v14626_v40 = vld [vmem:[#allocation5 + $0x14c] ss:$48 sps:$4 sm:$0xff]  }
 0x16c   :  { %3362 = vmatprep.subr.bf16.mxu0 %v14539_v41  ;;  %3485 = vmatprep.subr.bf16.mxu1 %v14542_v42  ;;  %v14621_v41 = vld [vmem:[#allocation5 + $0x140] ss:$48 sps:$4 sm:$0xff]   ;;  %v14624_v42 = vld [vmem:[#allocation5 + $0x148] ss:$48 sps:$4 sm:$0xff]  }
 0x16f   :  { %3363 = vmatpush1.bf16.msra.mxu0 %v14537_v43  ;;  %3486 = vmatpush1.bf16.msra.mxu1 %v14540_v44  ;;  %v14629_v43 = vld [vmem:[#allocation5 + $0x1a4] ss:$48 sps:$4 sm:$0xff]   ;;  %v14632_v44 = vld [vmem:[#allocation5 + $0x1ac] ss:$48 sps:$4 sm:$0xff]  }
 0x170   :  { %3364 = vmatprep.subr.bf16.mxu0 %v14545_v45  ;;  %3487 = vmatprep.subr.bf16.mxu1 %v14548_v46  ;;  %v14627_v45 = vld [vmem:[#allocation5 + $0x1a0] ss:$48 sps:$4 sm:$0xff]   ;;  %v14635_v46 = vld [vmem:[#allocation5 + $0x204] ss:$48 sps:$4 sm:$0xff]  }
 0x173   :  { %3365 = vmatpush1.bf16.msra.mxu0 %v14543_v47  ;;  %3488 = vmatpush1.bf16.msra.mxu1 %v14546_v49  ;;  %v14638_v47 = vld [vmem:[#allocation5 + $0x20c] ss:$48 sps:$4 sm:$0xff]   ;;  %v14633_v49 = vld [vmem:[#allocation5 + $0x200] ss:$48 sps:$4 sm:$0xff]  }
 0x174   :  { %3366 = vmatprep.subr.bf16.mxu0 %v14551_v50  ;;  %3489 = vmatprep.subr.bf16.mxu1 %v14554_v51  ;;  %v14636_v50 = vld [vmem:[#allocation5 + $0x208] ss:$48 sps:$4 sm:$0xff]   ;;  %v14641_v51 = vld [vmem:[#allocation5 + $0x264] ss:$48 sps:$4 sm:$0xff]  }
 0x177   :  { %3367 = vmatpush1.bf16.msra.mxu0 %v14549_v52  ;;  %3490 = vmatpush1.bf16.msra.mxu1 %v14552_v53  ;;  %v14644_v52 = vld [vmem:[#allocation5 + $0x26c] ss:$48 sps:$4 sm:$0xff]   ;;  %v14639_v53 = vld [vmem:[#allocation5 + $0x260] ss:$48 sps:$4 sm:$0xff]  }
 0x178   :  { %3377 = vmatprep.subr.bf16.mxu0 %v14557_v54  ;;  %3500 = vmatprep.subr.bf16.mxu1 %v14560_v55  ;;  %v14642_v54 = vld [vmem:[#allocation5 + $0x268] ss:$48 sps:$4 sm:$0xff]   ;;  %v14647_v55 = vld [vmem:[#allocation5 + $0x2c4] ss:$48 sps:$4 sm:$0xff]  }
 0x17a   :  { %3369 = vmatmul.mubr.bf16.vlgmr.msra.gmra.mrb[4].mxu0 %v16833_v11  ;;  %3492 = vmatmul.mubr.bf16.vlgmr.msra.gmra.mrb[4].mxu1 %v16833_v11 }
 0x17b   :  { %3378 = vmatpush1.bf16.msra.mxu0 %v14555_v56  ;;  %3501 = vmatpush1.bf16.msra.mxu1 %v14558_v57  ;;  %v14650_v56 = vld [vmem:[#allocation5 + $0x2cc] ss:$48 sps:$4 sm:$0xff]   ;;  %v14645_v57 = vld [vmem:[#allocation5 + $0x2c0] ss:$48 sps:$4 sm:$0xff]  }
 0x17c   :  { %3379 = vmatprep.subr.bf16.mxu0 %v14563_v58  ;;  %3502 = vmatprep.subr.bf16.mxu1 %v14566_v59  ;;  %v14648_v58 = vld [vmem:[#allocation5 + $0x2c8] ss:$48 sps:$4 sm:$0xff]   ;;  %v14653_v59 = vld [vmem:[#allocation5 + $0x324] ss:$48 sps:$4 sm:$0xff]  }
 0x17d   :  { %3409 = vmatprep.mubr.bf16.mxu0 %v16723_v18  ;;  %3532 = vmatprep.mubr.bf16.mxu1 %v16723_v18 }
 0x17f   :  { %3380 = vmatpush1.bf16.msra.mxu0 %v14561_v60  ;;  %3503 = vmatpush1.bf16.msra.mxu1 %v14564_v61  ;;  %v14656_v60 = vld [vmem:[#allocation5 + $0x32c] ss:$48 sps:$4 sm:$0xff]   ;;  %v14651_v61 = vld [vmem:[#allocation5 + $0x320] ss:$48 sps:$4 sm:$0xff]  }
 0x180   :  { %3381 = vmatprep.subr.bf16.mxu0 %v14569_v62  ;;  %3504 = vmatprep.subr.bf16.mxu1 %v14572_v63  ;;  %v14654_v62 = vld [vmem:[#allocation5 + $0x328] ss:$48 sps:$4 sm:$0xff]   ;;  %v14659_v63 = vld [vmem:[#allocation5 + $0x384] ss:$48 sps:$4 sm:$0xff]  }
 0x183   :  { %3382 = vmatpush1.bf16.msra.mxu0 %v14567_v0  ;;  %3505 = vmatpush1.bf16.msra.mxu1 %v14570_v1  ;;  %v14662_v0 = vld [vmem:[#allocation5 + $0x38c] ss:$48 sps:$4 sm:$0xff]   ;;  %v14657_v1 = vld [vmem:[#allocation5 + $0x380] ss:$48 sps:$4 sm:$0xff]  }
 0x184   :  { %3383 = vmatprep.subr.bf16.mxu0 %v14575_v2  ;;  %3506 = vmatprep.subr.bf16.mxu1 %v14578_v3  ;;  %v14660_v2 = vld [vmem:[#allocation5 + $0x388] ss:$48 sps:$4 sm:$0xff]   ;;  %v14665_v3 = vld [vmem:[#allocation5 + $0x3e4] ss:$48 sps:$4 sm:$0xff]  }
 0x187   :  { %3384 = vmatpush1.bf16.msra.mxu0 %v14573_v4  ;;  %3507 = vmatpush1.bf16.msra.mxu1 %v14576_v6  ;;  %v14668_v4 = vld [vmem:[#allocation5 + $0x3ec] ss:$48 sps:$4 sm:$0xff]   ;;  %v14663_v6 = vld [vmem:[#allocation5 + $0x3e0] ss:$48 sps:$4 sm:$0xff]  }
 0x188   :  { %3385 = vmatprep.subr.bf16.mxu0 %v14581_v7  ;;  %3508 = vmatprep.subr.bf16.mxu1 %v14584_v8  ;;  %v14666_v7 = vld [vmem:[#allocation5 + $0x3e8] ss:$48 sps:$4 sm:$0xff]   ;;  %v14671_v8 = vld [vmem:[#allocation5 + $0x444] ss:$48 sps:$4 sm:$0xff]  }
 0x18b   :  { %3386 = vmatpush1.bf16.msra.mxu0 %v14579_v9  ;;  %3509 = vmatpush1.bf16.msra.mxu1 %v14582_v10  ;;  %v14674_v9 = vld [vmem:[#allocation5 + $0x44c] ss:$48 sps:$4 sm:$0xff]   ;;  %v14669_v10 = vld [vmem:[#allocation5 + $0x440] ss:$48 sps:$4 sm:$0xff]  }
 0x18c   :  { %3387 = vmatprep.subr.bf16.mxu0 %v14587_v12  ;;  %3510 = vmatprep.subr.bf16.mxu1 %v14590_v13  ;;  %v14672_v12 = vld [vmem:[#allocation5 + $0x448] ss:$48 sps:$4 sm:$0xff]   ;;  %v14677_v13 = vld [vmem:[#allocation5 + $0x4a4] ss:$48 sps:$4 sm:$0xff]  }
 0x18f   :  { %3388 = vmatpush1.bf16.msra.mxu0 %v14585_v14  ;;  %3511 = vmatpush1.bf16.msra.mxu1 %v14588_v15  ;;  %v14680_v14 = vld [vmem:[#allocation5 + $0x4ac] ss:$48 sps:$4 sm:$0xff]   ;;  %v14675_v15 = vld [vmem:[#allocation5 + $0x4a0] ss:$48 sps:$4 sm:$0xff]  }
 0x190   :  { %3389 = vmatprep.subr.bf16.mxu0 %v14593_v16  ;;  %3512 = vmatprep.subr.bf16.mxu1 %v14596_v17  ;;  %v14678_v16 = vld [vmem:[#allocation5 + $0x4a8] ss:$48 sps:$4 sm:$0xff]   ;;  %v14683_v17 = vld [vmem:[#allocation5 + $0x504] ss:$48 sps:$4 sm:$0xff]  }
 0x193   :  { %3390 = vmatpush1.bf16.msra.mxu0 %v14591_v19  ;;  %3513 = vmatpush1.bf16.msra.mxu1 %v14594_v20  ;;  %v14686_v19 = vld [vmem:[#allocation5 + $0x50c] ss:$48 sps:$4 sm:$0xff]   ;;  %v14681_v20 = vld [vmem:[#allocation5 + $0x500] ss:$48 sps:$4 sm:$0xff]  }
 0x194   :  { %3391 = vmatprep.subr.bf16.mxu0 %v14599_v21  ;;  %3514 = vmatprep.subr.bf16.mxu1 %v14602_v22  ;;  %v14684_v21 = vld [vmem:[#allocation5 + $0x508] ss:$48 sps:$4 sm:$0xff]   ;;  %v14689_v22 = vld [vmem:[#allocation5 + $0x564] ss:$48 sps:$4 sm:$0xff]  }
 0x197   :  { %3392 = vmatpush1.bf16.msra.mxu0 %v14597_v23  ;;  %3515 = vmatpush1.bf16.msra.mxu1 %v14600_v24  ;;  %v14692_v23 = vld [vmem:[#allocation5 + $0x56c] ss:$48 sps:$4 sm:$0xff]  }
 0x198   :  { %3541 = vmatprep.subr.bf16.mxu0 %v14605_v25  ;;  %3664 = vmatprep.subr.bf16.mxu1 %v14608_v26  ;;  %v14687_v26 = vld [vmem:[#allocation5 + $0x560] ss:$48 sps:$4 sm:$0xff]  }
 0x19a   :  { %3410 = vmatmul.mubr.bf16.vlgmr.msra.gmra.mrb[4].mxu0 %v16571_v32  ;;  %3533 = vmatmul.mubr.bf16.vlgmr.msra.gmra.mrb[4].mxu1 %v16571_v32 }
 0x19b   :  { %3542 = vmatpush1.bf16.msra.mxu0 %v14603_v27  ;;  %3665 = vmatpush1.bf16.msra.mxu1 %v14606_v28  ;;  %v14690_v27 = vld [vmem:[#allocation5 + $0x568] ss:$48 sps:$4 sm:$0xff]  }
 0x19c   :  { %3543 = vmatprep.subr.bf16.mxu0 %v14611_v29  ;;  %3666 = vmatprep.subr.bf16.mxu1 %v14614_v31 }
 0x19d   :  { %3573 = vmatprep.mubr.bf16.mxu0 %v16815_v48  ;;  %3696 = vmatprep.mubr.bf16.mxu1 %v16815_v48  ;;  %v14630_v48 = vld [vmem:[#allocation5 + $0x1a8] ss:$48 sps:$4 sm:$0xff]  }
 0x19f   :  { %3544 = vmatpush1.bf16.msra.mxu0 %v14609_v33  ;;  %3667 = vmatpush1.bf16.msra.mxu1 %v14612_v34 }
 0x1a0   :  { %3545 = vmatprep.subr.bf16.mxu0 %v14617_v35  ;;  %3668 = vmatprep.subr.bf16.mxu1 %v14620_v36  ;;  %v14695_v35 = vld [vmem:[#allocation5 + $0x5c4] ss:$48 sps:$4 sm:$0xff]   ;;  %v14698_v36 = vld [vmem:[#allocation5 + $0x5cc] ss:$48 sps:$4 sm:$0xff]  }
 0x1a3   :  { %3546 = vmatpush1.bf16.msra.mxu0 %v14615_v37  ;;  %3669 = vmatpush1.bf16.msra.mxu1 %v14618_v38  ;;  %v14693_v37 = vld [vmem:[#allocation5 + $0x5c0] ss:$48 sps:$4 sm:$0xff]   ;;  %v14696_v38 = vld [vmem:[#allocation5 + $0x5c8] ss:$48 sps:$4 sm:$0xff]  }
 0x1a4   :  { %3547 = vmatprep.subr.bf16.mxu0 %v14623_v39  ;;  %3670 = vmatprep.subr.bf16.mxu1 %v14626_v40  ;;  %v14701_v39 = vld [vmem:[#allocation5 + $0x624] ss:$48 sps:$4 sm:$0xff]   ;;  %v14704_v40 = vld [vmem:[#allocation5 + $0x62c] ss:$48 sps:$4 sm:$0xff]  }
 0x1a7   :  { %3548 = vmatpush1.bf16.msra.mxu0 %v14621_v41  ;;  %3671 = vmatpush1.bf16.msra.mxu1 %v14624_v42  ;;  %v14699_v41 = vld [vmem:[#allocation5 + $0x620] ss:$48 sps:$4 sm:$0xff]   ;;  %v14702_v42 = vld [vmem:[#allocation5 + $0x628] ss:$48 sps:$4 sm:$0xff]  }
 0x1a8   :  { %3549 = vmatprep.subr.bf16.mxu0 %v14629_v43  ;;  %3672 = vmatprep.subr.bf16.mxu1 %v14632_v44  ;;  %v14707_v43 = vld [vmem:[#allocation5 + $0x684] ss:$48 sps:$4 sm:$0xff]   ;;  %v14710_v44 = vld [vmem:[#allocation5 + $0x68c] ss:$48 sps:$4 sm:$0xff]  }
 0x1ab   :  { %3550 = vmatpush1.bf16.msra.mxu0 %v14627_v45  ;;  %3673 = vmatpush1.bf16.msra.mxu1 %v14630_v48  ;;  %v14705_v45 = vld [vmem:[#allocation5 + $0x680] ss:$48 sps:$4 sm:$0xff]   ;;  %v14708_v48 = vld [vmem:[#allocation5 + $0x688] ss:$48 sps:$4 sm:$0xff]  }
 0x1ac   :  { %3551 = vmatprep.subr.bf16.mxu0 %v14635_v46  ;;  %3674 = vmatprep.subr.bf16.mxu1 %v14638_v47  ;;  %v14713_v46 = vld [vmem:[#allocation5 + $0x6e4] ss:$48 sps:$4 sm:$0xff]   ;;  %v14716_v47 = vld [vmem:[#allocation5 + $0x6ec] ss:$48 sps:$4 sm:$0xff]  }
 0x1af   :  { %3552 = vmatpush1.bf16.msra.mxu0 %v14633_v49  ;;  %3675 = vmatpush1.bf16.msra.mxu1 %v14636_v50  ;;  %v14711_v49 = vld [vmem:[#allocation5 + $0x6e0] ss:$48 sps:$4 sm:$0xff]   ;;  %v14714_v50 = vld [vmem:[#allocation5 + $0x6e8] ss:$48 sps:$4 sm:$0xff]  }
 0x1b0   :  { %3553 = vmatprep.subr.bf16.mxu0 %v14641_v51  ;;  %3676 = vmatprep.subr.bf16.mxu1 %v14644_v52  ;;  %v14719_v51 = vld [vmem:[#allocation5 + $0x744] ss:$48 sps:$4 sm:$0xff]   ;;  %v14722_v52 = vld [vmem:[#allocation5 + $0x74c] ss:$48 sps:$4 sm:$0xff]  }
 0x1b3   :  { %3554 = vmatpush1.bf16.msra.mxu0 %v14639_v53  ;;  %3677 = vmatpush1.bf16.msra.mxu1 %v14642_v54  ;;  %v14717_v53 = vld [vmem:[#allocation5 + $0x740] ss:$48 sps:$4 sm:$0xff]   ;;  %v14725_v54 = vld [vmem:[#allocation5 + $0x7a4] ss:$48 sps:$4 sm:$0xff]  }
 0x1b4   :  { %3555 = vmatprep.subr.bf16.mxu0 %v14647_v55  ;;  %3678 = vmatprep.subr.bf16.mxu1 %v14650_v56  ;;  %v14728_v55 = vld [vmem:[#allocation5 + $0x7ac] ss:$48 sps:$4 sm:$0xff]   ;;  %v14723_v56 = vld [vmem:[#allocation5 + $0x7a0] ss:$48 sps:$4 sm:$0xff]  }
 0x1b7   :  { %3556 = vmatpush1.bf16.msra.mxu0 %v14645_v57  ;;  %3679 = vmatpush1.bf16.msra.mxu1 %v14648_v58  ;;  %v14726_v57 = vld [vmem:[#allocation5 + $0x7a8] ss:$48 sps:$4 sm:$0xff]   ;;  %v14734_v58 = vld [vmem:[#allocation5 + $0x80c] ss:$48 sps:$4 sm:$0xff]  }
 0x1b8   :  { %3557 = vmatprep.subr.bf16.mxu0 %v14653_v59  ;;  %3680 = vmatprep.subr.bf16.mxu1 %v14656_v60  ;;  %v14729_v59 = vld [vmem:[#allocation5 + $0x800] ss:$48 sps:$4 sm:$0xff]   ;;  %v14732_v60 = vld [vmem:[#allocation5 + $0x808] ss:$48 sps:$4 sm:$0xff]  }
 0x1bb   :  { %3558 = vmatpush1.bf16.msra.mxu0 %v14651_v61  ;;  %3681 = vmatpush1.bf16.msra.mxu1 %v14654_v62  ;;  %v14737_v61 = vld [vmem:[#allocation5 + $0x864] ss:$48 sps:$4 sm:$0xff]   ;;  %v14740_v62 = vld [vmem:[#allocation5 + $0x86c] ss:$48 sps:$4 sm:$0xff]  }
 0x1bc   :  { %3559 = vmatprep.subr.bf16.mxu0 %v14659_v63  ;;  %3682 = vmatprep.subr.bf16.mxu1 %v14662_v0  ;;  %v14735_v63 = vld [vmem:[#allocation5 + $0x860] ss:$48 sps:$4 sm:$0xff]   ;;  %v14738_v0 = vld [vmem:[#allocation5 + $0x868] ss:$48 sps:$4 sm:$0xff]  }
 0x1bf   :  { %3560 = vmatpush1.bf16.msra.mxu0 %v14657_v1  ;;  %3683 = vmatpush1.bf16.msra.mxu1 %v14660_v2  ;;  %v14743_v1 = vld [vmem:[#allocation5 + $0x8c4] ss:$48 sps:$4 sm:$0xff]   ;;  %v14746_v2 = vld [vmem:[#allocation5 + $0x8cc] ss:$48 sps:$4 sm:$0xff]  }
 0x1c0   :  { %3561 = vmatprep.subr.bf16.mxu0 %v14665_v3  ;;  %3684 = vmatprep.subr.bf16.mxu1 %v14668_v4  ;;  %v14741_v3 = vld [vmem:[#allocation5 + $0x8c0] ss:$48 sps:$4 sm:$0xff]   ;;  %v14744_v4 = vld [vmem:[#allocation5 + $0x8c8] ss:$48 sps:$4 sm:$0xff]  }
 0x1c3   :  { %3562 = vmatpush1.bf16.msra.mxu0 %v14663_v6  ;;  %3685 = vmatpush1.bf16.msra.mxu1 %v14666_v7  ;;  %v14749_v6 = vld [vmem:[#allocation5 + $0x924] ss:$48 sps:$4 sm:$0xff]   ;;  %v14752_v7 = vld [vmem:[#allocation5 + $0x92c] ss:$48 sps:$4 sm:$0xff]  }
 0x1c4   :  { %3563 = vmatprep.subr.bf16.mxu0 %v14671_v8  ;;  %3686 = vmatprep.subr.bf16.mxu1 %v14674_v9  ;;  %v14747_v8 = vld [vmem:[#allocation5 + $0x920] ss:$48 sps:$4 sm:$0xff]   ;;  %v14750_v9 = vld [vmem:[#allocation5 + $0x928] ss:$48 sps:$4 sm:$0xff]  }
 0x1c7   :  { %3564 = vmatpush1.bf16.msra.mxu0 %v14669_v10  ;;  %3687 = vmatpush1.bf16.msra.mxu1 %v14672_v12  ;;  %v14755_v10 = vld [vmem:[#allocation5 + $0x984] ss:$48 sps:$4 sm:$0xff]   ;;  %v14758_v12 = vld [vmem:[#allocation5 + $0x98c] ss:$48 sps:$4 sm:$0xff]  }
 0x1c8   :  { %3565 = vmatprep.subr.bf16.mxu0 %v14677_v13  ;;  %3688 = vmatprep.subr.bf16.mxu1 %v14680_v14  ;;  %v14753_v13 = vld [vmem:[#allocation5 + $0x980] ss:$48 sps:$4 sm:$0xff]   ;;  %v14756_v14 = vld [vmem:[#allocation5 + $0x988] ss:$48 sps:$4 sm:$0xff]  }
 0x1cb   :  { %3566 = vmatpush1.bf16.msra.mxu0 %v14675_v15  ;;  %3689 = vmatpush1.bf16.msra.mxu1 %v14678_v16  ;;  %v14761_v15 = vld [vmem:[#allocation5 + $0x9e4] ss:$48 sps:$4 sm:$0xff]   ;;  %v14764_v16 = vld [vmem:[#allocation5 + $0x9ec] ss:$48 sps:$4 sm:$0xff]  }
 0x1cc   :  { %3567 = vmatprep.subr.bf16.mxu0 %v14683_v17  ;;  %3690 = vmatprep.subr.bf16.mxu1 %v14686_v19  ;;  %v14759_v17 = vld [vmem:[#allocation5 + $0x9e0] ss:$48 sps:$4 sm:$0xff]   ;;  %v14762_v19 = vld [vmem:[#allocation5 + $0x9e8] ss:$48 sps:$4 sm:$0xff]  }
 0x1cd   :  { %v16851_v24 = vpop.f32.mrb[0].mxu0  ;;  %v16853_v25 = vpop.f32.mrb[0].mxu1 }
 0x1ce   :  { %v16855_v28 = vpop.f32.mrb[1].mxu0  ;;  %v16857_v29 = vpop.f32.mrb[1].mxu1 }
 0x1cf   :  { %v3169_v31 = vpop.f32.mrb[2].mxu0  ;;  %v3292_v32 = vpop.f32.mrb[2].mxu1  ;;  %3568 = vmatpush1.bf16.msra.mxu0 %v14681_v20  ;;  %3691 = vmatpush1.bf16.msra.mxu1 %v14684_v21  ;;  %v14767_v20 = vld [vmem:[#allocation5 + $0xa44] ss:$48 sps:$4 sm:$0xff]   ;;  %v14770_v21 = vld [vmem:[#allocation5 + $0xa4c] ss:$48 sps:$4 sm:$0xff]  }
 0x1d0   :  { %v3170_v33 = vpop.f32.mrb[3].mxu0  ;;  %v3293_v34 = vpop.f32.mrb[3].mxu1  ;;  %3569 = vmatprep.subr.bf16.mxu0 %v14689_v22  ;;  %3692 = vmatprep.subr.bf16.mxu1 %v14692_v23  ;;  %v14765_v22 = vld [vmem:[#allocation5 + $0xa40] ss:$48 sps:$4 sm:$0xff]   ;;  %v14768_v23 = vld [vmem:[#allocation5 + $0xa48] ss:$48 sps:$4 sm:$0xff]  }
 0x1d1   :  { %v14771_v31 = vld [vmem:[#allocation5 + $0xaa0] ss:$48 sps:$4 sm:$0xff]   ;;  %v14774_v32 = vld [vmem:[#allocation5 + $0xaa8] ss:$48 sps:$4 sm:$0xff]   ;;  %v14779_v33 = vld [vmem:[#allocation5 + $0xb04] ss:$48 sps:$4 sm:$0xff]  }
 0x1d2   :  { %v14782_v34 = vld [vmem:[#allocation5 + $0xb0c] ss:$48 sps:$4 sm:$0xff]  }
 0x1d3   :  { %3570 = vmatpush1.bf16.msra.mxu0 %v14687_v26  ;;  %3693 = vmatpush1.bf16.msra.mxu1 %v14690_v27  ;;  %v14773_v26 = vld [vmem:[#allocation5 + $0xaa4] ss:$48 sps:$4 sm:$0xff]   ;;  %v14776_v27 = vld [vmem:[#allocation5 + $0xaac] ss:$48 sps:$4 sm:$0xff]  }
 0x1d4   :  { %3571 = vmatprep.subr.bf16.mxu0 %v14695_v35  ;;  %3694 = vmatprep.subr.bf16.mxu1 %v14698_v36  ;;  %v14777_v35 = vld [vmem:[#allocation5 + $0xb00] ss:$48 sps:$4 sm:$0xff]   ;;  %v14780_v36 = vld [vmem:[#allocation5 + $0xb08] ss:$48 sps:$4 sm:$0xff]  }
 0x1d7   :  { %3572 = vmatpush1.bf16.msra.mxu0 %v14693_v37  ;;  %3695 = vmatpush1.bf16.msra.mxu1 %v14696_v38  ;;  %v14785_v37 = vld [vmem:[#allocation5 + $0xb64] ss:$48 sps:$4 sm:$0xff]   ;;  %v14788_v38 = vld [vmem:[#allocation5 + $0xb6c] ss:$48 sps:$4 sm:$0xff]  }
 0x1d8   :  { %3582 = vmatprep.subr.bf16.mxu0 %v14701_v39  ;;  %3705 = vmatprep.subr.bf16.mxu1 %v14704_v40  ;;  %v14783_v39 = vld [vmem:[#allocation5 + $0xb60] ss:$48 sps:$4 sm:$0xff]   ;;  %v14786_v40 = vld [vmem:[#allocation5 + $0xb68] ss:$48 sps:$4 sm:$0xff]  }
 0x1da   :  { %3574 = vmatmul.mubr.bf16.vlgmr.msra.gmra.mrb[8].mxu0 %v16819_v5  ;;  %3697 = vmatmul.mubr.bf16.vlgmr.msra.gmra.mrb[8].mxu1 %v16819_v5  ;;  %v14720_v5 = vld [vmem:[#allocation5 + $0x748] ss:$48 sps:$4 sm:$0xff]  }
 0x1db   :  { %3583 = vmatpush1.bf16.msra.mxu0 %v14699_v41  ;;  %3706 = vmatpush1.bf16.msra.mxu1 %v14702_v42  ;;  %v14791_v41 = vld [vmem:[#allocation5 + $0xbc4] ss:$48 sps:$4 sm:$0xff]   ;;  %v14794_v42 = vld [vmem:[#allocation5 + $0xbcc] ss:$48 sps:$4 sm:$0xff]  }
 0x1dc   :  { %3584 = vmatprep.subr.bf16.mxu0 %v14707_v43  ;;  %3707 = vmatprep.subr.bf16.mxu1 %v14710_v44  ;;  %v14789_v43 = vld [vmem:[#allocation5 + $0xbc0] ss:$48 sps:$4 sm:$0xff]   ;;  %v14792_v44 = vld [vmem:[#allocation5 + $0xbc8] ss:$48 sps:$4 sm:$0xff]  }
 0x1dd   :  { %3614 = vmatprep.mubr.bf16.mxu0 %v16827_v30  ;;  %3737 = vmatprep.mubr.bf16.mxu1 %v16827_v30  ;;  %v14731_v30 = vld [vmem:[#allocation5 + $0x804] ss:$48 sps:$4 sm:$0xff]  }
 0x1df   :  { %3585 = vmatpush1.bf16.msra.mxu0 %v14705_v45  ;;  %3708 = vmatpush1.bf16.msra.mxu1 %v14708_v48  ;;  %v14797_v45 = vld [vmem:[#allocation5 + $0xc24] ss:$48 sps:$4 sm:$0xff]   ;;  %v14800_v48 = vld [vmem:[#allocation5 + $0xc2c] ss:$48 sps:$4 sm:$0xff]  }
 0x1e0   :  { %3586 = vmatprep.subr.bf16.mxu0 %v14713_v46  ;;  %3709 = vmatprep.subr.bf16.mxu1 %v14716_v47  ;;  %v14795_v46 = vld [vmem:[#allocation5 + $0xc20] ss:$48 sps:$4 sm:$0xff]   ;;  %v14798_v47 = vld [vmem:[#allocation5 + $0xc28] ss:$48 sps:$4 sm:$0xff]  }
 0x1e3   :  { %3587 = vmatpush1.bf16.msra.mxu0 %v14711_v49  ;;  %3710 = vmatpush1.bf16.msra.mxu1 %v14714_v50  ;;  %v14803_v49 = vld [vmem:[#allocation5 + $0xc84] ss:$48 sps:$4 sm:$0xff]   ;;  %v14806_v50 = vld [vmem:[#allocation5 + $0xc8c] ss:$48 sps:$4 sm:$0xff]  }
 0x1e4   :  { %3588 = vmatprep.subr.bf16.mxu0 %v14719_v51  ;;  %3711 = vmatprep.subr.bf16.mxu1 %v14722_v52  ;;  %v14801_v51 = vld [vmem:[#allocation5 + $0xc80] ss:$48 sps:$4 sm:$0xff]   ;;  %v14804_v52 = vld [vmem:[#allocation5 + $0xc88] ss:$48 sps:$4 sm:$0xff]  }
 0x1e7   :  { %3589 = vmatpush1.bf16.msra.mxu0 %v14717_v53  ;;  %3712 = vmatpush1.bf16.msra.mxu1 %v14720_v5  ;;  %v14809_v53 = vld [vmem:[#allocation5 + $0xce4] ss:$48 sps:$4 sm:$0xff]   ;;  %v14812_v5 = vld [vmem:[#allocation5 + $0xcec] ss:$48 sps:$4 sm:$0xff]  }
 0x1e8   :  { %3590 = vmatprep.subr.bf16.mxu0 %v14725_v54  ;;  %3713 = vmatprep.subr.bf16.mxu1 %v14728_v55  ;;  %v14807_v54 = vld [vmem:[#allocation5 + $0xce0] ss:$48 sps:$4 sm:$0xff]   ;;  %v14810_v55 = vld [vmem:[#allocation5 + $0xce8] ss:$48 sps:$4 sm:$0xff]  }
 0x1eb   :  { %3591 = vmatpush1.bf16.msra.mxu0 %v14723_v56  ;;  %3714 = vmatpush1.bf16.msra.mxu1 %v14726_v57  ;;  %v14815_v56 = vld [vmem:[#allocation5 + $0xd44] ss:$48 sps:$4 sm:$0xff]   ;;  %v14818_v57 = vld [vmem:[#allocation5 + $0xd4c] ss:$48 sps:$4 sm:$0xff]  }
 0x1ec   :  { %3592 = vmatprep.subr.bf16.mxu0 %v14731_v30  ;;  %3715 = vmatprep.subr.bf16.mxu1 %v14734_v58  ;;  %v14813_v30 = vld [vmem:[#allocation5 + $0xd40] ss:$48 sps:$4 sm:$0xff]   ;;  %v14821_v58 = vld [vmem:[#allocation5 + $0xda4] ss:$48 sps:$4 sm:$0xff]  }
 0x1ef   :  { %3593 = vmatpush1.bf16.msra.mxu0 %v14729_v59  ;;  %3716 = vmatpush1.bf16.msra.mxu1 %v14732_v60  ;;  %v14824_v59 = vld [vmem:[#allocation5 + $0xdac] ss:$48 sps:$4 sm:$0xff]   ;;  %v571_v60 = vlaneseq }
 0x1f0   :  { %3594 = vmatprep.subr.bf16.mxu0 %v14737_v61  ;;  %3717 = vmatprep.subr.bf16.mxu1 %v14740_v62  ;;  %v14819_v61 = vld [vmem:[#allocation5 + $0xda0] ss:$48 sps:$4 sm:$0xff]   ;;  %v14822_v62 = vld [vmem:[#allocation5 + $0xda8] ss:$48 sps:$4 sm:$0xff]  }
 0x1f3   :  { %3595 = vmatpush1.bf16.msra.mxu0 %v14735_v63  ;;  %3718 = vmatpush1.bf16.msra.mxu1 %v14738_v0  ;;  %v14830_v63 = vld [vmem:[#allocation5 + $0xe0c] ss:$48 sps:$4 sm:$0xff]   ;;  %v16867_v0 = vshrl.u32 %v571_v60, 7  ;;  %v14900_v60 = vld [vmem:[#allocation8 + $0x368] ss:$48 sps:$4 sm:$0xff]  }
 0x1f4   :  { %3596 = vmatprep.subr.bf16.mxu0 %v14743_v1  ;;  %3719 = vmatprep.subr.bf16.mxu1 %v14746_v2  ;;  %v14825_v1 = vld [vmem:[#allocation5 + $0xe00] ss:$48 sps:$4 sm:$0xff]   ;;  %v14828_v2 = vld [vmem:[#allocation5 + $0xe08] ss:$48 sps:$4 sm:$0xff]  }
 0x1f7   :  { %3597 = vmatpush1.bf16.msra.mxu0 %v14741_v3  ;;  %3720 = vmatpush1.bf16.msra.mxu1 %v14744_v4  ;;  %v16869_v3 = vld [vmem:[#allocation7] sm:$0xff] }
 0x1f8   :  { %3598 = vmatprep.subr.bf16.mxu0 %v14749_v6  ;;  %3721 = vmatprep.subr.bf16.mxu1 %v14752_v7  ;;  %v14833_v4 = vld [vmem:[#allocation5 + $0xe64] ss:$48 sps:$4 sm:$0xff]   ;;  %v14836_v6 = vld [vmem:[#allocation5 + $0xe6c] ss:$48 sps:$4 sm:$0xff]   ;;  %v16872_v7 = vsub.s32 1, %v16867_v0 }
 0x1fb   :  { %3599 = vmatpush1.bf16.msra.mxu0 %v14747_v8  ;;  %3722 = vmatpush1.bf16.msra.mxu1 %v14750_v9  ;;  %v14831_v8 = vld [vmem:[#allocation5 + $0xe60] ss:$48 sps:$4 sm:$0xff]   ;;  %v14834_v9 = vld [vmem:[#allocation5 + $0xe68] ss:$48 sps:$4 sm:$0xff]  }
 0x1fc   :  { %3600 = vmatprep.subr.bf16.mxu0 %v14755_v10  ;;  %3723 = vmatprep.subr.bf16.mxu1 %v14758_v12  ;;  %v14839_v10 = vld [vmem:[#allocation5 + $0xec4] ss:$48 sps:$4 sm:$0xff]   ;;  %v14842_v12 = vld [vmem:[#allocation5 + $0xecc] ss:$48 sps:$4 sm:$0xff]  }
 0x1ff   :  { %3601 = vmatpush1.bf16.msra.mxu0 %v14753_v13  ;;  %3724 = vmatpush1.bf16.msra.mxu1 %v14756_v14  ;;  %v578_v13 = vrot.slane %v16869_v3, %v16872_v7  ;;  %v14837_v14 = vld [vmem:[#allocation5 + $0xec0] ss:$48 sps:$4 sm:$0xff]  }
 0x200   :  { %3602 = vmatprep.subr.bf16.mxu0 %v14761_v15  ;;  %3725 = vmatprep.subr.bf16.mxu1 %v14764_v16  ;;  %v14840_v15 = vld [vmem:[#allocation5 + $0xec8] ss:$48 sps:$4 sm:$0xff]   ;;  %v14845_v16 = vld [vmem:[#allocation8 + $0x4] ss:$48 sps:$4 sm:$0xff]  }
 0x203   :  { %3603 = vmatpush1.bf16.msra.mxu0 %v14759_v17  ;;  %3726 = vmatpush1.bf16.msra.mxu1 %v14762_v19  ;;  %v14848_v17 = vld [vmem:[#allocation8 + $0xc] ss:$48 sps:$4 sm:$0xff]   ;;  %v13918_v19 = vadd.f32 %v16855_v28, %v578_v13  ;;  %v14923_v13 = vld [vmem:[#allocation8 + $0x4e4] ss:$48 sps:$4 sm:$0xff]  }
 0x204   :  { %3604 = vmatprep.subr.bf16.mxu0 %v14767_v20  ;;  %3727 = vmatprep.subr.bf16.mxu1 %v14770_v21  ;;  %v14843_v20 = vld [vmem:[#allocation8] ss:$48 sps:$4 sm:$0xff]   ;;  %v14846_v21 = vld [vmem:[#allocation8 + $0x8] ss:$48 sps:$4 sm:$0xff]   ;;  %v14860_v28 = vld [vmem:[#allocation8 + $0xcc] ss:$48 sps:$4 sm:$0xff]  }
 0x207   :  { %3605 = vmatpush1.bf16.msra.mxu0 %v14765_v22  ;;  %3728 = vmatpush1.bf16.msra.mxu1 %v14768_v23  ;;  %v14851_v22 = vld [vmem:[#allocation8 + $0x64] ss:$48 sps:$4 sm:$0xff]   ;;  %v14854_v23 = vld [vmem:[#allocation8 + $0x6c] ss:$48 sps:$4 sm:$0xff]  }
 0x208   :  { %3606 = vmatprep.subr.bf16.mxu0 %v14773_v26  ;;  %3729 = vmatprep.subr.bf16.mxu1 %v14776_v27  ;;  %v16877_v26 = vpack.c.bf16 %v13918_v19, %v13918_v19  ;;  %v16572_v27 = vld [vmem:[#allocation2 + $0x10] ss:$0 sps:$4 sm:$0xff]   ;;  %v14929_v19 = vld [vmem:[#allocation8 + $0x544] ss:$48 sps:$4 sm:$0xff]  }
 0x20b   :  { %3607 = vmatpush1.bf16.msra.mxu0 %v14771_v31  ;;  %3730 = vmatpush1.bf16.msra.mxu1 %v14774_v32  ;;  %v14849_v31 = vld [vmem:[#allocation8 + $0x60] ss:$48 sps:$4 sm:$0xff]   ;;  %v14852_v32 = vld [vmem:[#allocation8 + $0x68] ss:$48 sps:$4 sm:$0xff]  }
 0x20c   :  { %3608 = vmatprep.subr.bf16.mxu0 %v14779_v33  ;;  %3731 = vmatprep.subr.bf16.mxu1 %v14782_v34  ;;  %v14857_v33 = vld [vmem:[#allocation8 + $0xc4] ss:$48 sps:$4 sm:$0xff]   ;;  %v14855_v34 = vld [vmem:[#allocation8 + $0xc0] ss:$48 sps:$4 sm:$0xff]  }
 0x20f   :  { %3609 = vmatpush1.bf16.msra.mxu0 %v14777_v35  ;;  %3732 = vmatpush1.bf16.msra.mxu1 %v14780_v36  ;;  %v14858_v35 = vld [vmem:[#allocation8 + $0xc8] ss:$48 sps:$4 sm:$0xff]   ;;  %v14863_v36 = vld [vmem:[#allocation8 + $0x124] ss:$48 sps:$4 sm:$0xff]  }
 0x210   :  { %3610 = vmatprep.subr.bf16.mxu0 %v14785_v37  ;;  %3733 = vmatprep.subr.bf16.mxu1 %v14788_v38  ;;  %v14861_v37 = vld [vmem:[#allocation8 + $0x120] ss:$48 sps:$4 sm:$0xff]   ;;  %v14866_v38 = vld [vmem:[#allocation8 + $0x12c] ss:$48 sps:$4 sm:$0xff]  }
 0x213   :  { %3611 = vmatpush1.bf16.msra.mxu0 %v14783_v39  ;;  %3734 = vmatpush1.bf16.msra.mxu1 %v14786_v40  ;;  %v14864_v39 = vld [vmem:[#allocation8 + $0x128] ss:$48 sps:$4 sm:$0xff]   ;;  %v14869_v40 = vld [vmem:[#allocation8 + $0x184] ss:$48 sps:$4 sm:$0xff]  }
 0x214   :  { %3612 = vmatprep.subr.bf16.mxu0 %v14791_v41  ;;  %3735 = vmatprep.subr.bf16.mxu1 %v14794_v42  ;;  %v14867_v41 = vld [vmem:[#allocation8 + $0x180] ss:$48 sps:$4 sm:$0xff]   ;;  %v14872_v42 = vld [vmem:[#allocation8 + $0x18c] ss:$48 sps:$4 sm:$0xff]  }
 0x217   :  { %3613 = vmatpush1.bf16.msra.mxu0 %v14789_v43  ;;  %3736 = vmatpush1.bf16.msra.mxu1 %v14792_v44  ;;  %v14870_v43 = vld [vmem:[#allocation8 + $0x188] ss:$48 sps:$4 sm:$0xff]   ;;  %v14875_v44 = vld [vmem:[#allocation8 + $0x1e4] ss:$48 sps:$4 sm:$0xff]  }
 0x218   :  { %3623 = vmatprep.subr.bf16.mxu0 %v14797_v45  ;;  %3746 = vmatprep.subr.bf16.mxu1 %v14800_v48  ;;  %v14873_v45 = vld [vmem:[#allocation8 + $0x1e0] ss:$48 sps:$4 sm:$0xff]   ;;  %v14878_v48 = vld [vmem:[#allocation8 + $0x1ec] ss:$48 sps:$4 sm:$0xff]  }
 0x21a   :  { %3615 = vmatmul.mubr.bf16.vlgmr.msra.gmra.mrb[8].mxu0 %v16833_v11  ;;  %3738 = vmatmul.mubr.bf16.vlgmr.msra.gmra.mrb[8].mxu1 %v16833_v11  ;;  %v14816_v11 = vld [vmem:[#allocation5 + $0xd48] ss:$48 sps:$4 sm:$0xff]  }
 0x21b   :  { %3624 = vmatpush1.bf16.msra.mxu0 %v14795_v46  ;;  %3747 = vmatpush1.bf16.msra.mxu1 %v14798_v47  ;;  %v14876_v46 = vld [vmem:[#allocation8 + $0x1e8] ss:$48 sps:$4 sm:$0xff]   ;;  %v14881_v47 = vld [vmem:[#allocation8 + $0x244] ss:$48 sps:$4 sm:$0xff]  }
 0x21c   :  { %3625 = vmatprep.subr.bf16.mxu0 %v14803_v49  ;;  %3748 = vmatprep.subr.bf16.mxu1 %v14806_v50  ;;  %v14879_v49 = vld [vmem:[#allocation8 + $0x240] ss:$48 sps:$4 sm:$0xff]   ;;  %v14884_v50 = vld [vmem:[#allocation8 + $0x24c] ss:$48 sps:$4 sm:$0xff]  }
 0x21d   :  { %3655 = vmatprep.mubr.bf16.mxu0 %v16723_v18  ;;  %3778 = vmatprep.mubr.bf16.mxu1 %v16723_v18  ;;  %v14827_v18 = vld [vmem:[#allocation5 + $0xe04] ss:$48 sps:$4 sm:$0xff]  }
 0x21f   :  { %3626 = vmatpush1.bf16.msra.mxu0 %v14801_v51  ;;  %3749 = vmatpush1.bf16.msra.mxu1 %v14804_v52  ;;  %v14882_v51 = vld [vmem:[#allocation8 + $0x248] ss:$48 sps:$4 sm:$0xff]   ;;  %v14887_v52 = vld [vmem:[#allocation8 + $0x2a4] ss:$48 sps:$4 sm:$0xff]  }
 0x220   :  { %3627 = vmatprep.subr.bf16.mxu0 %v14809_v53  ;;  %3750 = vmatprep.subr.bf16.mxu1 %v14812_v5  ;;  %v14885_v53 = vld [vmem:[#allocation8 + $0x2a0] ss:$48 sps:$4 sm:$0xff]   ;;  %v14890_v5 = vld [vmem:[#allocation8 + $0x2ac] ss:$48 sps:$4 sm:$0xff]  }
 0x223   :  { %3628 = vmatpush1.bf16.msra.mxu0 %v14807_v54  ;;  %3751 = vmatpush1.bf16.msra.mxu1 %v14810_v55  ;;  %v14888_v54 = vld [vmem:[#allocation8 + $0x2a8] ss:$48 sps:$4 sm:$0xff]   ;;  %v14893_v55 = vld [vmem:[#allocation8 + $0x304] ss:$48 sps:$4 sm:$0xff]  }
 0x224   :  { %3629 = vmatprep.subr.bf16.mxu0 %v14815_v56  ;;  %3752 = vmatprep.subr.bf16.mxu1 %v14818_v57  ;;  %v14891_v56 = vld [vmem:[#allocation8 + $0x300] ss:$48 sps:$4 sm:$0xff]   ;;  %v14896_v57 = vld [vmem:[#allocation8 + $0x30c] ss:$48 sps:$4 sm:$0xff]  }
 0x227   :  { %3630 = vmatpush1.bf16.msra.mxu0 %v14813_v30  ;;  %3753 = vmatpush1.bf16.msra.mxu1 %v14816_v11  ;;  %v14894_v30 = vld [vmem:[#allocation8 + $0x308] ss:$48 sps:$4 sm:$0xff]   ;;  %v14899_v11 = vld [vmem:[#allocation8 + $0x364] ss:$48 sps:$4 sm:$0xff]  }
 0x228   :  { %3631 = vmatprep.subr.bf16.mxu0 %v14821_v58  ;;  %3754 = vmatprep.subr.bf16.mxu1 %v14824_v59  ;;  %v14897_v58 = vld [vmem:[#allocation8 + $0x360] ss:$48 sps:$4 sm:$0xff]   ;;  %v14902_v59 = vld [vmem:[#allocation8 + $0x36c] ss:$48 sps:$4 sm:$0xff]  }
 0x22b   :  { %3632 = vmatpush1.bf16.msra.mxu0 %v14819_v61  ;;  %3755 = vmatpush1.bf16.msra.mxu1 %v14822_v62  ;;  %v14905_v61 = vld [vmem:[#allocation8 + $0x3c4] ss:$48 sps:$4 sm:$0xff]   ;;  %v14903_v62 = vld [vmem:[#allocation8 + $0x3c0] ss:$48 sps:$4 sm:$0xff]  }
 0x22c   :  { %3633 = vmatprep.subr.bf16.mxu0 %v14827_v18  ;;  %3756 = vmatprep.subr.bf16.mxu1 %v14830_v63  ;;  %v14908_v18 = vld [vmem:[#allocation8 + $0x3cc] ss:$48 sps:$4 sm:$0xff]   ;;  %v14906_v63 = vld [vmem:[#allocation8 + $0x3c8] ss:$48 sps:$4 sm:$0xff]  }
 0x22f   :  { %3634 = vmatpush1.bf16.msra.mxu0 %v14825_v1  ;;  %3757 = vmatpush1.bf16.msra.mxu1 %v14828_v2  ;;  %v14911_v1 = vld [vmem:[#allocation8 + $0x424] ss:$48 sps:$4 sm:$0xff]   ;;  %v14909_v2 = vld [vmem:[#allocation8 + $0x420] ss:$48 sps:$4 sm:$0xff]  }
 0x230   :  { %3635 = vmatprep.subr.bf16.mxu0 %v14833_v4  ;;  %3758 = vmatprep.subr.bf16.mxu1 %v14836_v6  ;;  %v14914_v4 = vld [vmem:[#allocation8 + $0x42c] ss:$48 sps:$4 sm:$0xff]   ;;  %v14912_v6 = vld [vmem:[#allocation8 + $0x428] ss:$48 sps:$4 sm:$0xff]  }
 0x233   :  { %3636 = vmatpush1.bf16.msra.mxu0 %v14831_v8  ;;  %3759 = vmatpush1.bf16.msra.mxu1 %v14834_v9  ;;  %v14917_v8 = vld [vmem:[#allocation8 + $0x484] ss:$48 sps:$4 sm:$0xff]   ;;  %v14915_v9 = vld [vmem:[#allocation8 + $0x480] ss:$48 sps:$4 sm:$0xff]  }
 0x234   :  { %3637 = vmatprep.subr.bf16.mxu0 %v14839_v10  ;;  %3760 = vmatprep.subr.bf16.mxu1 %v14842_v12  ;;  %v14920_v10 = vld [vmem:[#allocation8 + $0x48c] ss:$48 sps:$4 sm:$0xff]   ;;  %v14918_v12 = vld [vmem:[#allocation8 + $0x488] ss:$48 sps:$4 sm:$0xff]  }
 0x237   :  { %3638 = vmatpush1.bf16.msra.mxu0 %v14837_v14  ;;  %3761 = vmatpush1.bf16.msra.mxu1 %v14840_v15  ;;  %v14926_v14 = vld [vmem:[#allocation8 + $0x4ec] ss:$48 sps:$4 sm:$0xff]   ;;  %v14921_v15 = vld [vmem:[#allocation8 + $0x4e0] ss:$48 sps:$4 sm:$0xff]  }
 0x238   :  { %10775 = vmatprep.subr.bf16.mxu0 %v14845_v16  ;;  %11021 = vmatprep.subr.bf16.mxu1 %v14848_v17  ;;  %v16882_v16 = vsub.s32 0, %v16867_v0  ;;  %v14924_v17 = vld [vmem:[#allocation8 + $0x4e8] ss:$48 sps:$4 sm:$0xff]  }
 0x23a   :  { %3656 = vmatmul.mubr.bf16.vlgmr.msra.gmra.mrb[8].mxu0 %v16572_v27  ;;  %3779 = vmatmul.mubr.bf16.vlgmr.msra.gmra.mrb[8].mxu1 %v16572_v27  ;;  %v16889_v27 = vsub.s32 3, %v16867_v0 }
 0x23b   :  { %10776 = vmatpush1.bf16.msra.mxu0 %v14843_v20  ;;  %10807 = vmatprep.mubr.bf16.mxu0 %v16877_v26 }
 0x23c   :  { %11022 = vmatpush1.bf16.msra.mxu1 %v14846_v21  ;;  %11053 = vmatprep.mubr.bf16.mxu1 %v16877_v26 }
 0x23d   :  { %10777 = vmatprep.subr.bf16.mxu0 %v14851_v22  ;;  %11023 = vmatprep.subr.bf16.mxu1 %v14854_v23  ;;  %v14927_v22 = vld [vmem:[#allocation8 + $0x540] ss:$48 sps:$4 sm:$0xff]   ;;  %v14932_v23 = vld [vmem:[#allocation8 + $0x54c] ss:$48 sps:$4 sm:$0xff]  }
 0x23f   :  { %10778 = vmatpush1.bf16.msra.mxu0 %v14849_v31 }
 0x240   :  { %11024 = vmatpush1.bf16.msra.mxu1 %v14852_v32  ;;  %10779 = vmatprep.subr.bf16.mxu0 %v14857_v33 }
 0x241   :  { %11025 = vmatprep.subr.bf16.mxu1 %v14860_v28 }
 0x243   :  { %10780 = vmatpush1.bf16.msra.mxu0 %v14855_v34  ;;  %v574_v34 = vrot.slane %v16869_v3, %v16882_v16 }
 0x244   :  { %11026 = vmatpush1.bf16.msra.mxu1 %v14858_v35  ;;  %10781 = vmatprep.subr.bf16.mxu0 %v14863_v36 }
 0x245   :  { %11027 = vmatprep.subr.bf16.mxu1 %v14866_v38  ;;  %v14935_v38 = vld [vmem:[#allocation8 + $0x5a4] ss:$48 sps:$4 sm:$0xff]  }
 0x247   :  { %10782 = vmatpush1.bf16.msra.mxu0 %v14861_v37  ;;  %v14930_v37 = vld [vmem:[#allocation8 + $0x548] ss:$48 sps:$4 sm:$0xff]  }
 0x248   :  { %11028 = vmatpush1.bf16.msra.mxu1 %v14864_v39  ;;  %10783 = vmatprep.subr.bf16.mxu0 %v14869_v40  ;;  %v14933_v39 = vld [vmem:[#allocation8 + $0x5a0] ss:$48 sps:$4 sm:$0xff]   ;;  %v14938_v40 = vld [vmem:[#allocation8 + $0x5ac] ss:$48 sps:$4 sm:$0xff]  }
 0x249   :  { %11029 = vmatprep.subr.bf16.mxu1 %v14872_v42  ;;  %v13917_v42 = vadd.f32 %v16851_v24, %v574_v34  ;;  %v14945_v24 = vld [vmem:[#allocation8 + $0x660] ss:$48 sps:$4 sm:$0xff]  }
 0x24a   :  { %v14999_v34 = vld [vmem:[#allocation8 + $0x9c0] ss:$48 sps:$4 sm:$0xff]  }
 0x24b   :  { %10784 = vmatpush1.bf16.msra.mxu0 %v14867_v41  ;;  %v586_v41 = vrot.slane %v16869_v3, %v16889_v27 }
 0x24c   :  { %11030 = vmatpush1.bf16.msra.mxu1 %v14870_v43  ;;  %10785 = vmatprep.subr.bf16.mxu0 %v14875_v44  ;;  %v14936_v43 = vld [vmem:[#allocation8 + $0x5a8] ss:$48 sps:$4 sm:$0xff]   ;;  %v14941_v44 = vld [vmem:[#allocation8 + $0x604] ss:$48 sps:$4 sm:$0xff]  }
 0x24d   :  { %11031 = vmatprep.subr.bf16.mxu1 %v14878_v48  ;;  %v14939_v48 = vld [vmem:[#allocation8 + $0x600] ss:$48 sps:$4 sm:$0xff]  }
 0x24f   :  { %10786 = vmatpush1.bf16.msra.mxu0 %v14873_v45  ;;  %v14944_v45 = vld [vmem:[#allocation8 + $0x60c] ss:$48 sps:$4 sm:$0xff]  }
 0x250   :  { %11032 = vmatpush1.bf16.msra.mxu1 %v14876_v46  ;;  %10787 = vmatprep.subr.bf16.mxu0 %v14881_v47  ;;  %v13920_v46 = vadd.f32 %v16857_v29, %v586_v41  ;;  %v14942_v47 = vld [vmem:[#allocation8 + $0x608] ss:$48 sps:$4 sm:$0xff]   ;;  %v14956_v29 = vld [vmem:[#allocation8 + $0x6cc] ss:$48 sps:$4 sm:$0xff]   ;;  %v15013_v41 = vld [vmem:[#allocation8 + $0xa84] ss:$48 sps:$4 sm:$0xff]  }
 0x251   :  { %11033 = vmatprep.subr.bf16.mxu1 %v14884_v50  ;;  %v16901_v50 = vpack.c.bf16 %v13917_v42, %v13917_v42  ;;  %v15011_v42 = vld [vmem:[#allocation8 + $0xa80] ss:$48 sps:$4 sm:$0xff]  }
 0x252   :  { %v16903_v3 = vpack.c.bf16 %v13920_v46, %v13920_v46  ;;  %v15022_v46 = vld [vmem:[#allocation8 + $0xaec] ss:$48 sps:$4 sm:$0xff]  }
 0x253   :  { %10788 = vmatpush1.bf16.msra.mxu0 %v14879_v49  ;;  %v14947_v49 = vld [vmem:[#allocation8 + $0x664] ss:$48 sps:$4 sm:$0xff]  }
 0x254   :  { %11034 = vmatpush1.bf16.msra.mxu1 %v14882_v51  ;;  %10789 = vmatprep.subr.bf16.mxu0 %v14887_v52  ;;  %v14948_v51 = vld [vmem:[#allocation8 + $0x668] ss:$48 sps:$4 sm:$0xff]   ;;  %v14950_v52 = vld [vmem:[#allocation8 + $0x66c] ss:$48 sps:$4 sm:$0xff]  }
 0x255   :  { %11035 = vmatprep.subr.bf16.mxu1 %v14890_v5  ;;  %v14951_v5 = vld [vmem:[#allocation8 + $0x6c0] ss:$48 sps:$4 sm:$0xff]  }
 0x257   :  { %10790 = vmatpush1.bf16.msra.mxu0 %v14885_v53  ;;  %v14953_v53 = vld [vmem:[#allocation8 + $0x6c4] ss:$48 sps:$4 sm:$0xff]  }
 0x258   :  { %11036 = vmatpush1.bf16.msra.mxu1 %v14888_v54  ;;  %10791 = vmatprep.subr.bf16.mxu0 %v14893_v55  ;;  %v14954_v54 = vld [vmem:[#allocation8 + $0x6c8] ss:$48 sps:$4 sm:$0xff]   ;;  %v14959_v55 = vld [vmem:[#allocation8 + $0x724] ss:$48 sps:$4 sm:$0xff]  }
 0x259   :  { %11037 = vmatprep.subr.bf16.mxu1 %v14896_v57  ;;  %v14962_v57 = vld [vmem:[#allocation8 + $0x72c] ss:$48 sps:$4 sm:$0xff]  }
 0x25b   :  { %10792 = vmatpush1.bf16.msra.mxu0 %v14891_v56  ;;  %v14957_v56 = vld [vmem:[#allocation8 + $0x720] ss:$48 sps:$4 sm:$0xff]  }
 0x25c   :  { %11038 = vmatpush1.bf16.msra.mxu1 %v14894_v30  ;;  %10793 = vmatprep.subr.bf16.mxu0 %v14899_v11  ;;  %v14960_v30 = vld [vmem:[#allocation8 + $0x728] ss:$48 sps:$4 sm:$0xff]   ;;  %v14965_v11 = vld [vmem:[#allocation8 + $0x784] ss:$48 sps:$4 sm:$0xff]  }
 0x25d   :  { %11039 = vmatprep.subr.bf16.mxu1 %v14902_v59  ;;  %v14968_v59 = vld [vmem:[#allocation8 + $0x78c] ss:$48 sps:$4 sm:$0xff]  }
 0x25f   :  { %10794 = vmatpush1.bf16.msra.mxu0 %v14897_v58  ;;  %v14963_v58 = vld [vmem:[#allocation8 + $0x780] ss:$48 sps:$4 sm:$0xff]  }
 0x260   :  { %11040 = vmatpush1.bf16.msra.mxu1 %v14900_v60  ;;  %10795 = vmatprep.subr.bf16.mxu0 %v14905_v61  ;;  %v14966_v60 = vld [vmem:[#allocation8 + $0x788] ss:$48 sps:$4 sm:$0xff]   ;;  %v14971_v61 = vld [vmem:[#allocation8 + $0x7e4] ss:$48 sps:$4 sm:$0xff]  }
 0x261   :  { %11041 = vmatprep.subr.bf16.mxu1 %v14908_v18  ;;  %v14974_v18 = vld [vmem:[#allocation8 + $0x7ec] ss:$48 sps:$4 sm:$0xff]  }
 0x263   :  { %10796 = vmatpush1.bf16.msra.mxu0 %v14903_v62  ;;  %v14969_v62 = vld [vmem:[#allocation8 + $0x7e0] ss:$48 sps:$4 sm:$0xff]  }
 0x264   :  { %11042 = vmatpush1.bf16.msra.mxu1 %v14906_v63  ;;  %10797 = vmatprep.subr.bf16.mxu0 %v14911_v1  ;;  %v14972_v63 = vld [vmem:[#allocation8 + $0x7e8] ss:$48 sps:$4 sm:$0xff]   ;;  %v14977_v1 = vld [vmem:[#allocation8 + $0x844] ss:$48 sps:$4 sm:$0xff]  }
 0x265   :  { %11043 = vmatprep.subr.bf16.mxu1 %v14914_v4  ;;  %v14975_v4 = vld [vmem:[#allocation8 + $0x840] ss:$48 sps:$4 sm:$0xff]  }
 0x267   :  { %10798 = vmatpush1.bf16.msra.mxu0 %v14909_v2  ;;  %v14980_v2 = vld [vmem:[#allocation8 + $0x84c] ss:$48 sps:$4 sm:$0xff]  }
 0x268   :  { %11044 = vmatpush1.bf16.msra.mxu1 %v14912_v6  ;;  %10799 = vmatprep.subr.bf16.mxu0 %v14917_v8  ;;  %v14978_v6 = vld [vmem:[#allocation8 + $0x848] ss:$48 sps:$4 sm:$0xff]   ;;  %v14983_v8 = vld [vmem:[#allocation8 + $0x8a4] ss:$48 sps:$4 sm:$0xff]  }
 0x269   :  { %11045 = vmatprep.subr.bf16.mxu1 %v14920_v10  ;;  %v14981_v10 = vld [vmem:[#allocation8 + $0x8a0] ss:$48 sps:$4 sm:$0xff]  }
 0x26b   :  { %10800 = vmatpush1.bf16.msra.mxu0 %v14915_v9  ;;  %v14986_v9 = vld [vmem:[#allocation8 + $0x8ac] ss:$48 sps:$4 sm:$0xff]  }
 0x26c   :  { %11046 = vmatpush1.bf16.msra.mxu1 %v14918_v12  ;;  %10801 = vmatprep.subr.bf16.mxu0 %v14923_v13  ;;  %v14984_v12 = vld [vmem:[#allocation8 + $0x8a8] ss:$48 sps:$4 sm:$0xff]   ;;  %v14989_v13 = vld [vmem:[#allocation8 + $0x904] ss:$48 sps:$4 sm:$0xff]  }
 0x26d   :  { %v16884_v20 = vpop.f32.mrb[4].mxu0  ;;  %v16886_v21 = vpop.f32.mrb[4].mxu1  ;;  %11047 = vmatprep.subr.bf16.mxu1 %v14926_v14  ;;  %v14987_v14 = vld [vmem:[#allocation8 + $0x900] ss:$48 sps:$4 sm:$0xff]  }
 0x26e   :  { %v16891_v31 = vpop.f32.mrb[5].mxu0  ;;  %v16893_v32 = vpop.f32.mrb[5].mxu1 }
 0x26f   :  { %v3415_v33 = vpop.f32.mrb[6].mxu0  ;;  %v3538_v28 = vpop.f32.mrb[6].mxu1  ;;  %10802 = vmatpush1.bf16.msra.mxu0 %v14921_v15  ;;  %v14992_v15 = vld [vmem:[#allocation8 + $0x90c] ss:$48 sps:$4 sm:$0xff]  }
 0x270   :  { %11048 = vmatpush1.bf16.msra.mxu1 %v14924_v17  ;;  %v3416_v35 = vpop.f32.mrb[7].mxu0  ;;  %v3539_v36 = vpop.f32.mrb[7].mxu1  ;;  %10803 = vmatprep.subr.bf16.mxu0 %v14929_v19  ;;  %v14990_v17 = vld [vmem:[#allocation8 + $0x908] ss:$48 sps:$4 sm:$0xff]   ;;  %v14995_v19 = vld [vmem:[#allocation8 + $0x964] ss:$48 sps:$4 sm:$0xff]  }
 0x271   :  { %11049 = vmatprep.subr.bf16.mxu1 %v14932_v23  ;;  %v14998_v23 = vld [vmem:[#allocation8 + $0x96c] ss:$48 sps:$4 sm:$0xff]   ;;  %v14996_v33 = vld [vmem:[#allocation8 + $0x968] ss:$48 sps:$4 sm:$0xff]   ;;  %v15001_v28 = vld [vmem:[#allocation8 + $0x9c4] ss:$48 sps:$4 sm:$0xff]  }
 0x272   :  { %v15004_v35 = vld [vmem:[#allocation8 + $0x9cc] ss:$48 sps:$4 sm:$0xff]   ;;  %v15002_v36 = vld [vmem:[#allocation8 + $0x9c8] ss:$48 sps:$4 sm:$0xff]  }
 0x273   :  { %10804 = vmatpush1.bf16.msra.mxu0 %v14927_v22  ;;  %v14993_v22 = vld [vmem:[#allocation8 + $0x960] ss:$48 sps:$4 sm:$0xff]  }
 0x274   :  { %11050 = vmatpush1.bf16.msra.mxu1 %v14930_v37  ;;  %10805 = vmatprep.subr.bf16.mxu0 %v14935_v38  ;;  %v15007_v37 = vld [vmem:[#allocation8 + $0xa24] ss:$48 sps:$4 sm:$0xff]   ;;  %v15005_v38 = vld [vmem:[#allocation8 + $0xa20] ss:$48 sps:$4 sm:$0xff]  }
 0x275   :  { %11051 = vmatprep.subr.bf16.mxu1 %v14938_v40  ;;  %v15008_v40 = vld [vmem:[#allocation8 + $0xa28] ss:$48 sps:$4 sm:$0xff]  }
 0x277   :  { %10806 = vmatpush1.bf16.msra.mxu0 %v14933_v39  ;;  %v15010_v39 = vld [vmem:[#allocation8 + $0xa2c] ss:$48 sps:$4 sm:$0xff]  }
 0x278   :  { %11052 = vmatpush1.bf16.msra.mxu1 %v14936_v43  ;;  %10816 = vmatprep.subr.bf16.mxu0 %v14941_v44  ;;  %v15016_v43 = vld [vmem:[#allocation8 + $0xa8c] ss:$48 sps:$4 sm:$0xff]   ;;  %v15014_v44 = vld [vmem:[#allocation8 + $0xa88] ss:$48 sps:$4 sm:$0xff]  }
 0x279   :  { %11062 = vmatprep.subr.bf16.mxu1 %v14944_v45  ;;  %v15019_v45 = vld [vmem:[#allocation8 + $0xae4] ss:$48 sps:$4 sm:$0xff]  }
 0x27a   :  { %10808 = vmatmul.mubr.bf16.vlgmr.msra.gmra.mrb[12].mxu0 %v16901_v50 }
 0x27b   :  { %11054 = vmatmul.mubr.bf16.vlgmr.msra.gmra.mrb[12].mxu1 %v16901_v50  ;;  %10817 = vmatpush1.bf16.msra.mxu0 %v14939_v48  ;;  %v15017_v48 = vld [vmem:[#allocation8 + $0xae0] ss:$48 sps:$4 sm:$0xff]  }
 0x27c   :  { %10848 = vmatprep.mubr.bf16.mxu0 %v16903_v3  ;;  %11063 = vmatpush1.bf16.msra.mxu1 %v14942_v47  ;;  %v16910_v47 = vsub.s32 2, %v16867_v0 }
 0x27d   :  { %11094 = vmatprep.mubr.bf16.mxu1 %v16903_v3  ;;  %10818 = vmatprep.subr.bf16.mxu0 %v14947_v49  ;;  %v15020_v49 = vld [vmem:[#allocation8 + $0xae8] ss:$48 sps:$4 sm:$0xff]  }
 0x27e   :  { %11064 = vmatprep.subr.bf16.mxu1 %v14950_v52  ;;  %v15028_v52 = vld [vmem:[#allocation8 + $0xb4c] ss:$48 sps:$4 sm:$0xff]  }
 0x27f   :  { %10819 = vmatpush1.bf16.msra.mxu0 %v14945_v24  ;;  %v15025_v24 = vld [vmem:[#allocation8 + $0xb44] ss:$48 sps:$4 sm:$0xff]  }
 0x280   :  { %11065 = vmatpush1.bf16.msra.mxu1 %v14948_v51  ;;  %10820 = vmatprep.subr.bf16.mxu0 %v14953_v53  ;;  %v15023_v51 = vld [vmem:[#allocation8 + $0xb40] ss:$48 sps:$4 sm:$0xff]   ;;  %v593_v53 = vsub.s32 5, %v16867_v0 }
 0x281   :  { %11066 = vmatprep.subr.bf16.mxu1 %v14956_v29  ;;  %v16913_v29 = vld [vmem:[#allocation7] sm:$0xff] }
 0x283   :  { %10821 = vmatpush1.bf16.msra.mxu0 %v14951_v5  ;;  %v582_v5 = vrot.slane %v16913_v29, %v16910_v47 }
 0x284   :  { %11067 = vmatpush1.bf16.msra.mxu1 %v14954_v54  ;;  %10822 = vmatprep.subr.bf16.mxu0 %v14959_v55  ;;  %v15026_v54 = vld [vmem:[#allocation8 + $0xb48] ss:$48 sps:$4 sm:$0xff]   ;;  %v15031_v55 = vld [vmem:[#allocation8 + $0xba4] ss:$48 sps:$4 sm:$0xff]  }
 0x285   :  { %11068 = vmatprep.subr.bf16.mxu1 %v14962_v57  ;;  %v15034_v57 = vld [vmem:[#allocation8 + $0xbac] ss:$48 sps:$4 sm:$0xff]  }
 0x287   :  { %10823 = vmatpush1.bf16.msra.mxu0 %v14957_v56  ;;  %v15029_v56 = vld [vmem:[#allocation8 + $0xba0] ss:$48 sps:$4 sm:$0xff]  }
 0x288   :  { %11069 = vmatpush1.bf16.msra.mxu1 %v14960_v30  ;;  %10824 = vmatprep.subr.bf16.mxu0 %v14965_v11  ;;  %v594_v30 = vrot.slane %v16913_v29, %v593_v53  ;;  %v13919_v11 = vadd.f32 %v16853_v25, %v582_v5  ;;  %v15041_v25 = vld [vmem:[#allocation8 + $0xc60] ss:$48 sps:$4 sm:$0xff]   ;;  %v15097_v5 = vld [vmem:[#allocation8 + $0xfc4] ss:$48 sps:$4 sm:$0xff]  }
 0x289   :  { %11070 = vmatprep.subr.bf16.mxu1 %v14968_v59  ;;  %v15037_v59 = vld [vmem:[#allocation8 + $0xc04] ss:$48 sps:$4 sm:$0xff]  }
 0x28b   :  { %10825 = vmatpush1.bf16.msra.mxu0 %v14963_v58  ;;  %v15032_v58 = vld [vmem:[#allocation8 + $0xba8] ss:$48 sps:$4 sm:$0xff]  }
 0x28c   :  { %11071 = vmatpush1.bf16.msra.mxu1 %v14966_v60  ;;  %10826 = vmatprep.subr.bf16.mxu0 %v14971_v61  ;;  %v15035_v60 = vld [vmem:[#allocation8 + $0xc00] ss:$48 sps:$4 sm:$0xff]   ;;  %v15040_v61 = vld [vmem:[#allocation8 + $0xc0c] ss:$48 sps:$4 sm:$0xff]  }
 0x28d   :  { %11072 = vmatprep.subr.bf16.mxu1 %v14974_v18  ;;  %v15038_v18 = vld [vmem:[#allocation8 + $0xc08] ss:$48 sps:$4 sm:$0xff]  }
 0x28f   :  { %10827 = vmatpush1.bf16.msra.mxu0 %v14969_v62  ;;  %v13922_v62 = vadd.f32 %v16891_v31, %v594_v30  ;;  %v15052_v31 = vld [vmem:[#allocation8 + $0xccc] ss:$48 sps:$4 sm:$0xff]   ;;  %v15101_v30 = vld [vmem:[#allocation8 + $0x1020] ss:$48 sps:$4 sm:$0xff]  }
 0x290   :  { %11073 = vmatpush1.bf16.msra.mxu1 %v14972_v63  ;;  %10828 = vmatprep.subr.bf16.mxu0 %v14977_v1  ;;  %v15043_v63 = vld [vmem:[#allocation8 + $0xc64] ss:$48 sps:$4 sm:$0xff]   ;;  %v16922_v1 = vpack.c.bf16 %v13919_v11, %v13919_v11  ;;  %v15106_v11 = vld [vmem:[#allocation8 + $0x102c] ss:$48 sps:$4 sm:$0xff]  }
 0x291   :  { %11074 = vmatprep.subr.bf16.mxu1 %v14980_v2  ;;  %v16924_v2 = vpack.c.bf16 %v13922_v62, %v13922_v62  ;;  %v15110_v62 = vld [vmem:[#allocation8 + $0x1088] ss:$48 sps:$4 sm:$0xff]  }
 0x293   :  { %10829 = vmatpush1.bf16.msra.mxu0 %v14975_v4  ;;  %v15044_v4 = vld [vmem:[#allocation8 + $0xc68] ss:$48 sps:$4 sm:$0xff]  }
 0x294   :  { %11075 = vmatpush1.bf16.msra.mxu1 %v14978_v6  ;;  %10830 = vmatprep.subr.bf16.mxu0 %v14983_v8  ;;  %v15046_v6 = vld [vmem:[#allocation8 + $0xc6c] ss:$48 sps:$4 sm:$0xff]   ;;  %v15049_v8 = vld [vmem:[#allocation8 + $0xcc4] ss:$48 sps:$4 sm:$0xff]  }
 0x295   :  { %11076 = vmatprep.subr.bf16.mxu1 %v14986_v9  ;;  %v15047_v9 = vld [vmem:[#allocation8 + $0xcc0] ss:$48 sps:$4 sm:$0xff]  }
 0x297   :  { %10831 = vmatpush1.bf16.msra.mxu0 %v14981_v10  ;;  %v15050_v10 = vld [vmem:[#allocation8 + $0xcc8] ss:$48 sps:$4 sm:$0xff]  }
 0x298   :  { %11077 = vmatpush1.bf16.msra.mxu1 %v14984_v12  ;;  %10832 = vmatprep.subr.bf16.mxu0 %v14989_v13  ;;  %v15055_v12 = vld [vmem:[#allocation8 + $0xd24] ss:$48 sps:$4 sm:$0xff]   ;;  %v15053_v13 = vld [vmem:[#allocation8 + $0xd20] ss:$48 sps:$4 sm:$0xff]  }
 0x299   :  { %11078 = vmatprep.subr.bf16.mxu1 %v14992_v15  ;;  %v15056_v15 = vld [vmem:[#allocation8 + $0xd28] ss:$48 sps:$4 sm:$0xff]  }
 0x29b   :  { %10833 = vmatpush1.bf16.msra.mxu0 %v14987_v14  ;;  %v15058_v14 = vld [vmem:[#allocation8 + $0xd2c] ss:$48 sps:$4 sm:$0xff]  }
 0x29c   :  { %11079 = vmatpush1.bf16.msra.mxu1 %v14990_v17  ;;  %10834 = vmatprep.subr.bf16.mxu0 %v14995_v19  ;;  %v15061_v17 = vld [vmem:[#allocation8 + $0xd84] ss:$48 sps:$4 sm:$0xff]   ;;  %v15059_v19 = vld [vmem:[#allocation8 + $0xd80] ss:$48 sps:$4 sm:$0xff]  }
 0x29d   :  { %11080 = vmatprep.subr.bf16.mxu1 %v14998_v23  ;;  %v15062_v23 = vld [vmem:[#allocation8 + $0xd88] ss:$48 sps:$4 sm:$0xff]  }
 0x29f   :  { %10835 = vmatpush1.bf16.msra.mxu0 %v14993_v22  ;;  %v15064_v22 = vld [vmem:[#allocation8 + $0xd8c] ss:$48 sps:$4 sm:$0xff]  }
 0x2a0   :  { %11081 = vmatpush1.bf16.msra.mxu1 %v14996_v33  ;;  %10836 = vmatprep.subr.bf16.mxu0 %v15001_v28  ;;  %v15067_v33 = vld [vmem:[#allocation8 + $0xde4] ss:$48 sps:$4 sm:$0xff]   ;;  %v15065_v28 = vld [vmem:[#allocation8 + $0xde0] ss:$48 sps:$4 sm:$0xff]  }
 0x2a1   :  { %11082 = vmatprep.subr.bf16.mxu1 %v15004_v35  ;;  %v15068_v35 = vld [vmem:[#allocation8 + $0xde8] ss:$48 sps:$4 sm:$0xff]  }
 0x2a3   :  { %10837 = vmatpush1.bf16.msra.mxu0 %v14999_v34  ;;  %v15070_v34 = vld [vmem:[#allocation8 + $0xdec] ss:$48 sps:$4 sm:$0xff]  }
 0x2a4   :  { %11083 = vmatpush1.bf16.msra.mxu1 %v15002_v36  ;;  %10838 = vmatprep.subr.bf16.mxu0 %v15007_v37  ;;  %v15073_v36 = vld [vmem:[#allocation8 + $0xe44] ss:$48 sps:$4 sm:$0xff]   ;;  %v15071_v37 = vld [vmem:[#allocation8 + $0xe40] ss:$48 sps:$4 sm:$0xff]  }
 0x2a5   :  { %11084 = vmatprep.subr.bf16.mxu1 %v15010_v39  ;;  %v15074_v39 = vld [vmem:[#allocation8 + $0xe48] ss:$48 sps:$4 sm:$0xff]  }
 0x2a7   :  { %10839 = vmatpush1.bf16.msra.mxu0 %v15005_v38  ;;  %v15076_v38 = vld [vmem:[#allocation8 + $0xe4c] ss:$48 sps:$4 sm:$0xff]  }
 0x2a8   :  { %11085 = vmatpush1.bf16.msra.mxu1 %v15008_v40  ;;  %10840 = vmatprep.subr.bf16.mxu0 %v15013_v41  ;;  %v15079_v40 = vld [vmem:[#allocation8 + $0xea4] ss:$48 sps:$4 sm:$0xff]   ;;  %v15077_v41 = vld [vmem:[#allocation8 + $0xea0] ss:$48 sps:$4 sm:$0xff]  }
 0x2a9   :  { %11086 = vmatprep.subr.bf16.mxu1 %v15016_v43  ;;  %v15080_v43 = vld [vmem:[#allocation8 + $0xea8] ss:$48 sps:$4 sm:$0xff]  }
 0x2ab   :  { %10841 = vmatpush1.bf16.msra.mxu0 %v15011_v42  ;;  %v15082_v42 = vld [vmem:[#allocation8 + $0xeac] ss:$48 sps:$4 sm:$0xff]  }
 0x2ac   :  { %11087 = vmatpush1.bf16.msra.mxu1 %v15014_v44  ;;  %10842 = vmatprep.subr.bf16.mxu0 %v15019_v45  ;;  %v15085_v44 = vld [vmem:[#allocation8 + $0xf04] ss:$48 sps:$4 sm:$0xff]   ;;  %v15083_v45 = vld [vmem:[#allocation8 + $0xf00] ss:$48 sps:$4 sm:$0xff]  }
 0x2ad   :  { %11088 = vmatprep.subr.bf16.mxu1 %v15022_v46  ;;  %v15086_v46 = vld [vmem:[#allocation8 + $0xf08] ss:$48 sps:$4 sm:$0xff]  }
 0x2af   :  { %10843 = vmatpush1.bf16.msra.mxu0 %v15017_v48  ;;  %v15088_v48 = vld [vmem:[#allocation8 + $0xf0c] ss:$48 sps:$4 sm:$0xff]  }
 0x2b0   :  { %11089 = vmatpush1.bf16.msra.mxu1 %v15020_v49  ;;  %10844 = vmatprep.subr.bf16.mxu0 %v15025_v24  ;;  %v15091_v49 = vld [vmem:[#allocation8 + $0xf64] ss:$48 sps:$4 sm:$0xff]   ;;  %v15089_v24 = vld [vmem:[#allocation8 + $0xf60] ss:$48 sps:$4 sm:$0xff]  }
 0x2b1   :  { %11090 = vmatprep.subr.bf16.mxu1 %v15028_v52  ;;  %v15092_v52 = vld [vmem:[#allocation8 + $0xf68] ss:$48 sps:$4 sm:$0xff]  }
 0x2b3   :  { %10845 = vmatpush1.bf16.msra.mxu0 %v15023_v51  ;;  %v15094_v51 = vld [vmem:[#allocation8 + $0xf6c] ss:$48 sps:$4 sm:$0xff]  }
 0x2b4   :  { %11091 = vmatpush1.bf16.msra.mxu1 %v15026_v54  ;;  %10846 = vmatprep.subr.bf16.mxu0 %v15031_v55  ;;  %v15095_v54 = vld [vmem:[#allocation8 + $0xfc0] ss:$48 sps:$4 sm:$0xff]   ;;  %v15100_v55 = vld [vmem:[#allocation8 + $0xfcc] ss:$48 sps:$4 sm:$0xff]  }
 0x2b5   :  { %11092 = vmatprep.subr.bf16.mxu1 %v15034_v57  ;;  %v15103_v57 = vld [vmem:[#allocation8 + $0x1024] ss:$48 sps:$4 sm:$0xff]  }
 0x2b7   :  { %10847 = vmatpush1.bf16.msra.mxu0 %v15029_v56  ;;  %v15098_v56 = vld [vmem:[#allocation8 + $0xfc8] ss:$48 sps:$4 sm:$0xff]  }
 0x2b8   :  { %11093 = vmatpush1.bf16.msra.mxu1 %v15032_v58  ;;  %10857 = vmatprep.subr.bf16.mxu0 %v15037_v59  ;;  %v15104_v58 = vld [vmem:[#allocation8 + $0x1028] ss:$48 sps:$4 sm:$0xff]   ;;  %v15109_v59 = vld [vmem:[#allocation8 + $0x1084] ss:$48 sps:$4 sm:$0xff]  }
 0x2b9   :  { %11103 = vmatprep.subr.bf16.mxu1 %v15040_v61  ;;  %v15112_v61 = vld [vmem:[#allocation8 + $0x108c] ss:$48 sps:$4 sm:$0xff]  }
 0x2ba   :  { %10849 = vmatmul.mubr.bf16.vlgmr.msra.gmra.mrb[12].mxu0 %v16922_v1 }
 0x2bb   :  { %11095 = vmatmul.mubr.bf16.vlgmr.msra.gmra.mrb[12].mxu1 %v16922_v1  ;;  %10858 = vmatpush1.bf16.msra.mxu0 %v15035_v60  ;;  %v15107_v60 = vld [vmem:[#allocation8 + $0x1080] ss:$48 sps:$4 sm:$0xff]  }
 0x2bc   :  { %10889 = vmatprep.mubr.bf16.mxu0 %v16924_v2  ;;  %11104 = vmatpush1.bf16.msra.mxu1 %v15038_v18  ;;  %v15115_v18 = vld [vmem:[#allocation8 + $0x10e4] ss:$48 sps:$4 sm:$0xff]  }
 0x2bd   :  { %11135 = vmatprep.mubr.bf16.mxu1 %v16924_v2  ;;  %10859 = vmatprep.subr.bf16.mxu0 %v15043_v63  ;;  %v15113_v63 = vld [vmem:[#allocation8 + $0x10e0] ss:$48 sps:$4 sm:$0xff]  }
 0x2be   :  { %11105 = vmatprep.subr.bf16.mxu1 %v15046_v6  ;;  %v15116_v6 = vld [vmem:[#allocation8 + $0x10e8] ss:$48 sps:$4 sm:$0xff]  }
 0x2bf   :  { %10860 = vmatpush1.bf16.msra.mxu0 %v15041_v25  ;;  %v15118_v25 = vld [vmem:[#allocation8 + $0x10ec] ss:$48 sps:$4 sm:$0xff]  }
 0x2c0   :  { %11106 = vmatpush1.bf16.msra.mxu1 %v15044_v4  ;;  %10861 = vmatprep.subr.bf16.mxu0 %v15049_v8  ;;  %v589_v4 = vsub.s32 4, %v16867_v0  ;;  %v15121_v8 = vld [vmem:[#allocation8 + $0x1144] ss:$48 sps:$4 sm:$0xff]  }
 0x2c1   :  { %11107 = vmatprep.subr.bf16.mxu1 %v15052_v31  ;;  %v15119_v31 = vld [vmem:[#allocation8 + $0x1140] ss:$48 sps:$4 sm:$0xff]  }
 0x2c3   :  { %10862 = vmatpush1.bf16.msra.mxu0 %v15047_v9  ;;  %v15124_v9 = vld [vmem:[#allocation8 + $0x114c] ss:$48 sps:$4 sm:$0xff]  }
 0x2c4   :  { %11108 = vmatpush1.bf16.msra.mxu1 %v15050_v10  ;;  %10863 = vmatprep.subr.bf16.mxu0 %v15055_v12  ;;  %v601_v10 = vsub.s32 7, %v16867_v0  ;;  %v590_v12 = vrot.slane %v16913_v29, %v589_v4 }
 0x2c5   :  { %11109 = vmatprep.subr.bf16.mxu1 %v15058_v14  ;;  %v15127_v14 = vld [vmem:[#allocation8 + $0x11a4] ss:$48 sps:$4 sm:$0xff]  }
 0x2c7   :  { %10864 = vmatpush1.bf16.msra.mxu0 %v15053_v13  ;;  %v15122_v13 = vld [vmem:[#allocation8 + $0x1148] ss:$48 sps:$4 sm:$0xff]  }
 0x2c8   :  { %11110 = vmatpush1.bf16.msra.mxu1 %v15056_v15  ;;  %10865 = vmatprep.subr.bf16.mxu0 %v15061_v17  ;;  %v15125_v15 = vld [vmem:[#allocation8 + $0x11a0] ss:$48 sps:$4 sm:$0xff]   ;;  %v15130_v17 = vld [vmem:[#allocation8 + $0x11ac] ss:$48 sps:$4 sm:$0xff]  }
 0x2c9   :  { %11111 = vmatprep.subr.bf16.mxu1 %v15064_v22  ;;  %v13921_v22 = vadd.f32 %v16884_v20, %v590_v12  ;;  %v15137_v20 = vld [vmem:[#allocation8 + $0x1260] ss:$48 sps:$4 sm:$0xff]  }
 0x2cb   :  { %10866 = vmatpush1.bf16.msra.mxu0 %v15059_v19  ;;  %v602_v19 = vrot.slane %v16913_v29, %v601_v10 }
 0x2cc   :  { %11112 = vmatpush1.bf16.msra.mxu1 %v15062_v23  ;;  %10867 = vmatprep.subr.bf16.mxu0 %v15067_v33  ;;  %v15128_v23 = vld [vmem:[#allocation8 + $0x11a8] ss:$48 sps:$4 sm:$0xff]   ;;  %v15133_v33 = vld [vmem:[#allocation8 + $0x1204] ss:$48 sps:$4 sm:$0xff]  }
 0x2cd   :  { %11113 = vmatprep.subr.bf16.mxu1 %v15070_v34  ;;  %v15136_v34 = vld [vmem:[#allocation8 + $0x120c] ss:$48 sps:$4 sm:$0xff]  }
 0x2cf   :  { %10868 = vmatpush1.bf16.msra.mxu0 %v15065_v28  ;;  %v15131_v28 = vld [vmem:[#allocation8 + $0x1200] ss:$48 sps:$4 sm:$0xff]  }
 0x2d0   :  { %11114 = vmatpush1.bf16.msra.mxu1 %v15068_v35  ;;  %10869 = vmatprep.subr.bf16.mxu0 %v15073_v36  ;;  %v13924_v35 = vadd.f32 %v16893_v32, %v602_v19  ;;  %v15134_v36 = vld [vmem:[#allocation8 + $0x1208] ss:$48 sps:$4 sm:$0xff]   ;;  %v15148_v32 = vld [vmem:[#allocation8 + $0x12cc] ss:$48 sps:$4 sm:$0xff]  }
 0x2d1   :  { %11115 = vmatprep.subr.bf16.mxu1 %v15076_v38  ;;  %v16940_v38 = vpack.c.bf16 %v13921_v22, %v13921_v22  ;;  %v15176_v19 = vld [vmem:[#allocation8 + $0x14a8] ss:$48 sps:$4 sm:$0xff]   ;;  %v15181_v22 = vld [vmem:[#allocation8 + $0x1504] ss:$48 sps:$4 sm:$0xff]  }
 0x2d2   :  { %v16942_v29 = vpack.c.bf16 %v13924_v35, %v13924_v35  ;;  %v15185_v35 = vld [vmem:[#allocation8 + $0x1560] ss:$48 sps:$4 sm:$0xff]  }
 0x2d3   :  { %10870 = vmatpush1.bf16.msra.mxu0 %v15071_v37  ;;  %v15139_v37 = vld [vmem:[#allocation8 + $0x1264] ss:$48 sps:$4 sm:$0xff]  }
 0x2d4   :  { %11116 = vmatpush1.bf16.msra.mxu1 %v15074_v39  ;;  %10871 = vmatprep.subr.bf16.mxu0 %v15079_v40  ;;  %v15140_v39 = vld [vmem:[#allocation8 + $0x1268] ss:$48 sps:$4 sm:$0xff]   ;;  %v15142_v40 = vld [vmem:[#allocation8 + $0x126c] ss:$48 sps:$4 sm:$0xff]  }
 0x2d5   :  { %11117 = vmatprep.subr.bf16.mxu1 %v15082_v42  ;;  %v15143_v42 = vld [vmem:[#allocation8 + $0x12c0] ss:$48 sps:$4 sm:$0xff]  }
 0x2d7   :  { %10872 = vmatpush1.bf16.msra.mxu0 %v15077_v41  ;;  %v15145_v41 = vld [vmem:[#allocation8 + $0x12c4] ss:$48 sps:$4 sm:$0xff]  }
 0x2d8   :  { %11118 = vmatpush1.bf16.msra.mxu1 %v15080_v43  ;;  %10873 = vmatprep.subr.bf16.mxu0 %v15085_v44  ;;  %v15146_v43 = vld [vmem:[#allocation8 + $0x12c8] ss:$48 sps:$4 sm:$0xff]   ;;  %v15151_v44 = vld [vmem:[#allocation8 + $0x1324] ss:$48 sps:$4 sm:$0xff]  }
 0x2d9   :  { %11119 = vmatprep.subr.bf16.mxu1 %v15088_v48  ;;  %v15154_v48 = vld [vmem:[#allocation8 + $0x132c] ss:$48 sps:$4 sm:$0xff]  }
 0x2db   :  { %10874 = vmatpush1.bf16.msra.mxu0 %v15083_v45  ;;  %v15149_v45 = vld [vmem:[#allocation8 + $0x1320] ss:$48 sps:$4 sm:$0xff]  }
 0x2dc   :  { %11120 = vmatpush1.bf16.msra.mxu1 %v15086_v46  ;;  %10875 = vmatprep.subr.bf16.mxu0 %v15091_v49  ;;  %v15152_v46 = vld [vmem:[#allocation8 + $0x1328] ss:$48 sps:$4 sm:$0xff]   ;;  %v15157_v49 = vld [vmem:[#allocation8 + $0x1384] ss:$48 sps:$4 sm:$0xff]  }
 0x2dd   :  { %11121 = vmatprep.subr.bf16.mxu1 %v15094_v51  ;;  %v15155_v51 = vld [vmem:[#allocation8 + $0x1380] ss:$48 sps:$4 sm:$0xff]  }
 0x2df   :  { %10876 = vmatpush1.bf16.msra.mxu0 %v15089_v24  ;;  %v15160_v24 = vld [vmem:[#allocation8 + $0x138c] ss:$48 sps:$4 sm:$0xff]  }
 0x2e0   :  { %11122 = vmatpush1.bf16.msra.mxu1 %v15092_v52  ;;  %10877 = vmatprep.subr.bf16.mxu0 %v15097_v5  ;;  %v16948_v52 = vld [vmem:[#allocation7 + $0x8] sm:$0xf]  ;;  %v15158_v5 = vld [vmem:[#allocation8 + $0x1388] ss:$48 sps:$4 sm:$0xff]  }
 0x2e1   :  { %11123 = vmatprep.subr.bf16.mxu1 %v15100_v55  ;;  %v15166_v55 = vld [vmem:[#allocation8 + $0x13ec] ss:$48 sps:$4 sm:$0xff]  }
 0x2e3   :  { %10878 = vmatpush1.bf16.msra.mxu0 %v15095_v54  ;;  %v15163_v54 = vld [vmem:[#allocation8 + $0x13e4] ss:$48 sps:$4 sm:$0xff]  }
 0x2e4   :  { %11124 = vmatpush1.bf16.msra.mxu1 %v15098_v56  ;;  %10879 = vmatprep.subr.bf16.mxu0 %v15103_v57  ;;  %v15161_v56 = vld [vmem:[#allocation8 + $0x13e0] ss:$48 sps:$4 sm:$0xff]   ;;  %v614_v57 = vrot.slane %v16948_v52, %v16910_v47 }
 0x2e5   :  { %11125 = vmatprep.subr.bf16.mxu1 %v15106_v11  ;;  %v15164_v11 = vld [vmem:[#allocation8 + $0x13e8] ss:$48 sps:$4 sm:$0xff]  }
 0x2e7   :  { %10880 = vmatpush1.bf16.msra.mxu0 %v15101_v30  ;;  %v618_v30 = vrot.slane %v16948_v52, %v16889_v27 }
 0x2e8   :  { %11126 = vmatpush1.bf16.msra.mxu1 %v15104_v58  ;;  %10881 = vmatprep.subr.bf16.mxu0 %v15109_v59  ;;  %v15169_v58 = vld [vmem:[#allocation8 + $0x1444] ss:$48 sps:$4 sm:$0xff]  }
 0x2e9   :  { %11127 = vmatprep.subr.bf16.mxu1 %v15112_v61  ;;  %v15167_v61 = vld [vmem:[#allocation8 + $0x1440] ss:$48 sps:$4 sm:$0xff]  }
 0x2eb   :  { %10882 = vmatpush1.bf16.msra.mxu0 %v15107_v60 }
 0x2ec   :  { %11128 = vmatpush1.bf16.msra.mxu1 %v15110_v62  ;;  %10883 = vmatprep.subr.bf16.mxu0 %v15115_v18  ;;  %v15172_v62 = vld [vmem:[#allocation8 + $0x144c] ss:$48 sps:$4 sm:$0xff]  }
 0x2ed   :  { %11129 = vmatprep.subr.bf16.mxu1 %v15118_v25 }
 0x2ef   :  { %10884 = vmatpush1.bf16.msra.mxu0 %v15113_v63 }
 0x2f0   :  { %11130 = vmatpush1.bf16.msra.mxu1 %v15116_v6  ;;  %10885 = vmatprep.subr.bf16.mxu0 %v15121_v8 }
 0x2f1   :  { %11131 = vmatprep.subr.bf16.mxu1 %v15124_v9 }
 0x2f3   :  { %10886 = vmatpush1.bf16.msra.mxu0 %v15119_v31 }
 0x2f4   :  { %11132 = vmatpush1.bf16.msra.mxu1 %v15122_v13  ;;  %10887 = vmatprep.subr.bf16.mxu0 %v15127_v14  ;;  %v15170_v13 = vld [vmem:[#allocation8 + $0x1448] ss:$48 sps:$4 sm:$0xff]   ;;  %v15175_v14 = vld [vmem:[#allocation8 + $0x14a4] ss:$48 sps:$4 sm:$0xff]  }
 0x2f5   :  { %11133 = vmatprep.subr.bf16.mxu1 %v15130_v17  ;;  %v15178_v17 = vld [vmem:[#allocation8 + $0x14ac] ss:$48 sps:$4 sm:$0xff]  }
 0x2f7   :  { %10888 = vmatpush1.bf16.msra.mxu0 %v15125_v15  ;;  %v15173_v15 = vld [vmem:[#allocation8 + $0x14a0] ss:$48 sps:$4 sm:$0xff]  }
 0x2f8   :  { %11134 = vmatpush1.bf16.msra.mxu1 %v15128_v23  ;;  %10898 = vmatprep.subr.bf16.mxu0 %v15133_v33  ;;  %v15179_v23 = vld [vmem:[#allocation8 + $0x1500] ss:$48 sps:$4 sm:$0xff]   ;;  %v15184_v33 = vld [vmem:[#allocation8 + $0x150c] ss:$48 sps:$4 sm:$0xff]  }
 0x2f9   :  { %11144 = vmatprep.subr.bf16.mxu1 %v15136_v34  ;;  %v15187_v34 = vld [vmem:[#allocation8 + $0x1564] ss:$48 sps:$4 sm:$0xff]  }
 0x2fa   :  { %10890 = vmatmul.mubr.bf16.vlgmr.msra.gmra.mrb[12].mxu0 %v16940_v38 }
 0x2fb   :  { %11136 = vmatmul.mubr.bf16.vlgmr.msra.gmra.mrb[12].mxu1 %v16940_v38  ;;  %10899 = vmatpush1.bf16.msra.mxu0 %v15131_v28  ;;  %v15182_v28 = vld [vmem:[#allocation8 + $0x1508] ss:$48 sps:$4 sm:$0xff]  }
 0x2fc   :  { %10930 = vmatprep.mubr.bf16.mxu0 %v16942_v29  ;;  %11145 = vmatpush1.bf16.msra.mxu1 %v15134_v36  ;;  %v15190_v36 = vld [vmem:[#allocation8 + $0x156c] ss:$48 sps:$4 sm:$0xff]  }
 0x2fd   :  { %11176 = vmatprep.mubr.bf16.mxu1 %v16942_v29  ;;  %10900 = vmatprep.subr.bf16.mxu0 %v15139_v37  ;;  %v15188_v37 = vld [vmem:[#allocation8 + $0x1568] ss:$48 sps:$4 sm:$0xff]  }
 0x2fe   :  { %11146 = vmatprep.subr.bf16.mxu1 %v15142_v40  ;;  %v15196_v40 = vld [vmem:[#allocation8 + $0x15cc] ss:$48 sps:$4 sm:$0xff]  }
 0x2ff   :  { %10901 = vmatpush1.bf16.msra.mxu0 %v15137_v20  ;;  %v15193_v20 = vld [vmem:[#allocation8 + $0x15c4] ss:$48 sps:$4 sm:$0xff]  }
 0x300   :  { %11147 = vmatpush1.bf16.msra.mxu1 %v15140_v39  ;;  %10902 = vmatprep.subr.bf16.mxu0 %v15145_v41  ;;  %v15191_v39 = vld [vmem:[#allocation8 + $0x15c0] ss:$48 sps:$4 sm:$0xff]   ;;  %v15194_v41 = vld [vmem:[#allocation8 + $0x15c8] ss:$48 sps:$4 sm:$0xff]  }
 0x301   :  { %11148 = vmatprep.subr.bf16.mxu1 %v15148_v32  ;;  %v15199_v32 = vld [vmem:[#allocation8 + $0x1624] ss:$48 sps:$4 sm:$0xff]  }
 0x303   :  { %10903 = vmatpush1.bf16.msra.mxu0 %v15143_v42  ;;  %v15197_v42 = vld [vmem:[#allocation8 + $0x1620] ss:$48 sps:$4 sm:$0xff]  }
 0x304   :  { %11149 = vmatpush1.bf16.msra.mxu1 %v15146_v43  ;;  %10904 = vmatprep.subr.bf16.mxu0 %v15151_v44  ;;  %v15202_v43 = vld [vmem:[#allocation8 + $0x162c] ss:$48 sps:$4 sm:$0xff]   ;;  %v15200_v44 = vld [vmem:[#allocation8 + $0x1628] ss:$48 sps:$4 sm:$0xff]  }
 0x305   :  { %11150 = vmatprep.subr.bf16.mxu1 %v15154_v48  ;;  %v15203_v48 = vld [vmem:[#allocation8 + $0x1680] ss:$48 sps:$4 sm:$0xff]  }
 0x307   :  { %10905 = vmatpush1.bf16.msra.mxu0 %v15149_v45  ;;  %v15205_v45 = vld [vmem:[#allocation8 + $0x1684] ss:$48 sps:$4 sm:$0xff]  }
 0x308   :  { %11151 = vmatpush1.bf16.msra.mxu1 %v15152_v46  ;;  %10906 = vmatprep.subr.bf16.mxu0 %v15157_v49  ;;  %v15208_v46 = vld [vmem:[#allocation8 + $0x168c] ss:$48 sps:$4 sm:$0xff]   ;;  %v15206_v49 = vld [vmem:[#allocation8 + $0x1688] ss:$48 sps:$4 sm:$0xff]  }
 0x309   :  { %11152 = vmatprep.subr.bf16.mxu1 %v15160_v24  ;;  %v15211_v24 = vld [vmem:[#allocation8 + $0x16e4] ss:$48 sps:$4 sm:$0xff]  }
 0x30b   :  { %10907 = vmatpush1.bf16.msra.mxu0 %v15155_v51  ;;  %v15209_v51 = vld [vmem:[#allocation8 + $0x16e0] ss:$48 sps:$4 sm:$0xff]  }
 0x30c   :  { %11153 = vmatpush1.bf16.msra.mxu1 %v15158_v5  ;;  %10908 = vmatprep.subr.bf16.mxu0 %v15163_v54  ;;  %v15214_v5 = vld [vmem:[#allocation8 + $0x16ec] ss:$48 sps:$4 sm:$0xff]   ;;  %v597_v54 = vsub.s32 6, %v16867_v0 }
 0x30d   :  { %v16954_v59 = vpop.f32.mrb[8].mxu0  ;;  %v3780_v60 = vpop.f32.mrb[8].mxu1  ;;  %11154 = vmatprep.subr.bf16.mxu1 %v15166_v55  ;;  %v15212_v55 = vld [vmem:[#allocation8 + $0x16e8] ss:$48 sps:$4 sm:$0xff]  }
 0x30e   :  { %v16956_v18 = vadd.f32 %v3780_v60, %v614_v57  ;;  %v16958_v63 = vpop.f32.mrb[9].mxu0  ;;  %v3782_v25 = vpop.f32.mrb[9].mxu1  ;;  %v15215_v57 = vld [vmem:[#allocation8 + $0x1740] ss:$48 sps:$4 sm:$0xff]   ;;  %v15218_v60 = vld [vmem:[#allocation8 + $0x1748] ss:$48 sps:$4 sm:$0xff]  }
 0x30f   :  { %v16960_v6 = vadd.f32 %v3782_v25, %v618_v30  ;;  %v3661_v8 = vpop.f32.mrb[10].mxu0  ;;  %v3784_v31 = vpop.f32.mrb[10].mxu1  ;;  %10909 = vmatpush1.bf16.msra.mxu0 %v15161_v56  ;;  %v15217_v56 = vld [vmem:[#allocation8 + $0x1744] ss:$48 sps:$4 sm:$0xff]   ;;  %v15220_v30 = vld [vmem:[#allocation8 + $0x174c] ss:$48 sps:$4 sm:$0xff]  }
 0x310   :  { %11155 = vmatpush1.bf16.msra.mxu1 %v15164_v11  ;;  %v3662_v9 = vpop.f32.mrb[11].mxu0  ;;  %v3785_v12 = vpop.f32.mrb[11].mxu1  ;;  %10910 = vmatprep.subr.bf16.mxu0 %v15169_v58  ;;  %v16574_v11 = vld [vmem:[#allocation7] sm:$0xff]  ;;  %v15226_v25 = vld [vmem:[#allocation8 + $0x17ac] ss:$48 sps:$4 sm:$0xff]   ;;  %v610_v8 = vrot.slane %v16948_v52, %v16872_v7 }
 0x311   :  { %11156 = vmatprep.subr.bf16.mxu1 %v15172_v62  ;;  %v598_v58 = vrot.slane %v16574_v11, %v597_v54  ;;  %v15221_v62 = vld [vmem:[#allocation8 + $0x17a0] ss:$48 sps:$4 sm:$0xff]   ;;  %v15224_v9 = vld [vmem:[#allocation8 + $0x17a8] ss:$48 sps:$4 sm:$0xff]   ;;  %v15229_v12 = vld [vmem:[#allocation8 + $0x1804] ss:$48 sps:$4 sm:$0xff]  }
 0x312   :  { %v15277_v11 = vld [vmem:[#allocation8 + $0x1b04] ss:$48 sps:$4 sm:$0xff]  }
 0x313   :  { %10911 = vmatpush1.bf16.msra.mxu0 %v15167_v61  ;;  %v15223_v61 = vld [vmem:[#allocation8 + $0x17a4] ss:$48 sps:$4 sm:$0xff]   ;;  %v13923_v31 = vadd.f32 %v16886_v21, %v598_v58  ;;  %v15233_v21 = vld [vmem:[#allocation8 + $0x1860] ss:$48 sps:$4 sm:$0xff]  }
 0x314   :  { %11157 = vmatpush1.bf16.msra.mxu1 %v15170_v13  ;;  %10912 = vmatprep.subr.bf16.mxu0 %v15175_v14  ;;  %v15227_v13 = vld [vmem:[#allocation8 + $0x1800] ss:$48 sps:$4 sm:$0xff]   ;;  %v15232_v14 = vld [vmem:[#allocation8 + $0x180c] ss:$48 sps:$4 sm:$0xff]  }
 0x315   :  { %11158 = vmatprep.subr.bf16.mxu1 %v15178_v17  ;;  %v15230_v17 = vld [vmem:[#allocation8 + $0x1808] ss:$48 sps:$4 sm:$0xff]   ;;  %v15275_v58 = vld [vmem:[#allocation8 + $0x1b00] ss:$48 sps:$4 sm:$0xff]  }
 0x317   :  { %10913 = vmatpush1.bf16.msra.mxu0 %v15173_v15  ;;  %v13926_v15 = vadd.f32 %v16958_v63, %v610_v8  ;;  %v15244_v63 = vld [vmem:[#allocation8 + $0x18cc] ss:$48 sps:$4 sm:$0xff]  }
 0x318   :  { %11159 = vmatpush1.bf16.msra.mxu1 %v15176_v19  ;;  %10914 = vmatprep.subr.bf16.mxu0 %v15181_v22  ;;  %v15235_v19 = vld [vmem:[#allocation8 + $0x1864] ss:$48 sps:$4 sm:$0xff]   ;;  %v16969_v22 = vpack.c.bf16 %v13923_v31, %v13923_v31  ;;  %v15286_v8 = vld [vmem:[#allocation8 + $0x1b6c] ss:$48 sps:$4 sm:$0xff]   ;;  %v15284_v31 = vld [vmem:[#allocation8 + $0x1b68] ss:$48 sps:$4 sm:$0xff]  }
 0x319   :  { %11160 = vmatprep.subr.bf16.mxu1 %v15184_v33  ;;  %v15238_v33 = vld [vmem:[#allocation8 + $0x186c] ss:$48 sps:$4 sm:$0xff]  }
 0x31b   :  { %10915 = vmatpush1.bf16.msra.mxu0 %v15179_v23  ;;  %v16971_v23 = vpack.c.bf16 %v13926_v15, %v13926_v15  ;;  %v15295_v15 = vld [vmem:[#allocation8 + $0x1c24] ss:$48 sps:$4 sm:$0xff]  }
 0x31c   :  { %11161 = vmatpush1.bf16.msra.mxu1 %v15182_v28  ;;  %10916 = vmatprep.subr.bf16.mxu0 %v15187_v34  ;;  %v15236_v28 = vld [vmem:[#allocation8 + $0x1868] ss:$48 sps:$4 sm:$0xff]   ;;  %v15241_v34 = vld [vmem:[#allocation8 + $0x18c4] ss:$48 sps:$4 sm:$0xff]  }
 0x31d   :  { %11162 = vmatprep.subr.bf16.mxu1 %v15190_v36  ;;  %v15242_v36 = vld [vmem:[#allocation8 + $0x18c8] ss:$48 sps:$4 sm:$0xff]  }
 0x31f   :  { %10917 = vmatpush1.bf16.msra.mxu0 %v15185_v35  ;;  %v15239_v35 = vld [vmem:[#allocation8 + $0x18c0] ss:$48 sps:$4 sm:$0xff]  }
 0x320   :  { %11163 = vmatpush1.bf16.msra.mxu1 %v15188_v37  ;;  %10918 = vmatprep.subr.bf16.mxu0 %v15193_v20  ;;  %v15247_v37 = vld [vmem:[#allocation8 + $0x1924] ss:$48 sps:$4 sm:$0xff]   ;;  %v15245_v20 = vld [vmem:[#allocation8 + $0x1920] ss:$48 sps:$4 sm:$0xff]  }
 0x321   :  { %11164 = vmatprep.subr.bf16.mxu1 %v15196_v40  ;;  %v15248_v40 = vld [vmem:[#allocation8 + $0x1928] ss:$48 sps:$4 sm:$0xff]  }
 0x323   :  { %10919 = vmatpush1.bf16.msra.mxu0 %v15191_v39  ;;  %v15250_v39 = vld [vmem:[#allocation8 + $0x192c] ss:$48 sps:$4 sm:$0xff]  }
 0x324   :  { %11165 = vmatpush1.bf16.msra.mxu1 %v15194_v41  ;;  %10920 = vmatprep.subr.bf16.mxu0 %v15199_v32  ;;  %v15253_v41 = vld [vmem:[#allocation8 + $0x1984] ss:$48 sps:$4 sm:$0xff]   ;;  %v15251_v32 = vld [vmem:[#allocation8 + $0x1980] ss:$48 sps:$4 sm:$0xff]  }
 0x325   :  { %11166 = vmatprep.subr.bf16.mxu1 %v15202_v43  ;;  %v15254_v43 = vld [vmem:[#allocation8 + $0x1988] ss:$48 sps:$4 sm:$0xff]  }
 0x327   :  { %10921 = vmatpush1.bf16.msra.mxu0 %v15197_v42  ;;  %v15256_v42 = vld [vmem:[#allocation8 + $0x198c] ss:$48 sps:$4 sm:$0xff]  }
 0x328   :  { %11167 = vmatpush1.bf16.msra.mxu1 %v15200_v44  ;;  %10922 = vmatprep.subr.bf16.mxu0 %v15205_v45  ;;  %v15259_v44 = vld [vmem:[#allocation8 + $0x19e4] ss:$48 sps:$4 sm:$0xff]   ;;  %v15257_v45 = vld [vmem:[#allocation8 + $0x19e0] ss:$48 sps:$4 sm:$0xff]  }
 0x329   :  { %11168 = vmatprep.subr.bf16.mxu1 %v15208_v46  ;;  %v15260_v46 = vld [vmem:[#allocation8 + $0x19e8] ss:$48 sps:$4 sm:$0xff]  }
 0x32b   :  { %10923 = vmatpush1.bf16.msra.mxu0 %v15203_v48  ;;  %v15262_v48 = vld [vmem:[#allocation8 + $0x19ec] ss:$48 sps:$4 sm:$0xff]  }
 0x32c   :  { %11169 = vmatpush1.bf16.msra.mxu1 %v15206_v49  ;;  %10924 = vmatprep.subr.bf16.mxu0 %v15211_v24  ;;  %v15265_v49 = vld [vmem:[#allocation8 + $0x1a44] ss:$48 sps:$4 sm:$0xff]   ;;  %v15263_v24 = vld [vmem:[#allocation8 + $0x1a40] ss:$48 sps:$4 sm:$0xff]  }
 0x32d   :  { %11170 = vmatprep.subr.bf16.mxu1 %v15214_v5  ;;  %v15266_v5 = vld [vmem:[#allocation8 + $0x1a48] ss:$48 sps:$4 sm:$0xff]  }
 0x32f   :  { %10925 = vmatpush1.bf16.msra.mxu0 %v15209_v51  ;;  %v15268_v51 = vld [vmem:[#allocation8 + $0x1a4c] ss:$48 sps:$4 sm:$0xff]  }
 0x330   :  { %11171 = vmatpush1.bf16.msra.mxu1 %v15212_v55  ;;  %10926 = vmatprep.subr.bf16.mxu0 %v15217_v56  ;;  %v15271_v55 = vld [vmem:[#allocation8 + $0x1aa4] ss:$48 sps:$4 sm:$0xff]   ;;  %v15269_v56 = vld [vmem:[#allocation8 + $0x1aa0] ss:$48 sps:$4 sm:$0xff]  }
 0x331   :  { %11172 = vmatprep.subr.bf16.mxu1 %v15220_v30  ;;  %v15272_v30 = vld [vmem:[#allocation8 + $0x1aa8] ss:$48 sps:$4 sm:$0xff]  }
 0x333   :  { %10927 = vmatpush1.bf16.msra.mxu0 %v15215_v57  ;;  %v15274_v57 = vld [vmem:[#allocation8 + $0x1aac] ss:$48 sps:$4 sm:$0xff]  }
 0x334   :  { %11173 = vmatpush1.bf16.msra.mxu1 %v15218_v60  ;;  %10928 = vmatprep.subr.bf16.mxu0 %v15223_v61  ;;  %v15280_v60 = vld [vmem:[#allocation8 + $0x1b0c] ss:$48 sps:$4 sm:$0xff]   ;;  %v15278_v61 = vld [vmem:[#allocation8 + $0x1b08] ss:$48 sps:$4 sm:$0xff]  }
 0x335   :  { %11174 = vmatprep.subr.bf16.mxu1 %v15226_v25  ;;  %v15281_v25 = vld [vmem:[#allocation8 + $0x1b60] ss:$48 sps:$4 sm:$0xff]  }
 0x337   :  { %10929 = vmatpush1.bf16.msra.mxu0 %v15221_v62  ;;  %v15283_v62 = vld [vmem:[#allocation8 + $0x1b64] ss:$48 sps:$4 sm:$0xff]  }
 0x338   :  { %11175 = vmatpush1.bf16.msra.mxu1 %v15224_v9  ;;  %10939 = vmatprep.subr.bf16.mxu0 %v15229_v12  ;;  %v15289_v9 = vld [vmem:[#allocation8 + $0x1bc4] ss:$48 sps:$4 sm:$0xff]   ;;  %v15287_v12 = vld [vmem:[#allocation8 + $0x1bc0] ss:$48 sps:$4 sm:$0xff]  }
 0x339   :  { %11185 = vmatprep.subr.bf16.mxu1 %v15232_v14  ;;  %v15290_v14 = vld [vmem:[#allocation8 + $0x1bc8] ss:$48 sps:$4 sm:$0xff]  }
 0x33a   :  { %10931 = vmatmul.mubr.bf16.vlgmr.msra.gmra.mrb[12].mxu0 %v16969_v22 }
 0x33b   :  { %11177 = vmatmul.mubr.bf16.vlgmr.msra.gmra.mrb[12].mxu1 %v16969_v22  ;;  %10940 = vmatpush1.bf16.msra.mxu0 %v15227_v13  ;;  %v15292_v13 = vld [vmem:[#allocation8 + $0x1bcc] ss:$48 sps:$4 sm:$0xff]  }
 0x33c   :  { %10971 = vmatprep.mubr.bf16.mxu0 %v16971_v23  ;;  %11186 = vmatpush1.bf16.msra.mxu1 %v15230_v17  ;;  %v15293_v17 = vld [vmem:[#allocation8 + $0x1c20] ss:$48 sps:$4 sm:$0xff]  }
 0x33d   :  { %11217 = vmatprep.mubr.bf16.mxu1 %v16971_v23  ;;  %10941 = vmatprep.subr.bf16.mxu0 %v15235_v19  ;;  %v15298_v19 = vld [vmem:[#allocation8 + $0x1c2c] ss:$48 sps:$4 sm:$0xff]  }
 0x33e   :  { %11187 = vmatprep.subr.bf16.mxu1 %v15238_v33  ;;  %v15301_v33 = vld [vmem:[#allocation8 + $0x1c84] ss:$48 sps:$4 sm:$0xff]  }
 0x33f   :  { %10942 = vmatpush1.bf16.msra.mxu0 %v15233_v21  ;;  %v15296_v21 = vld [vmem:[#allocation8 + $0x1c28] ss:$48 sps:$4 sm:$0xff]  }
 0x340   :  { %11188 = vmatpush1.bf16.msra.mxu1 %v15236_v28  ;;  %10943 = vmatprep.subr.bf16.mxu0 %v15241_v34  ;;  %v15299_v28 = vld [vmem:[#allocation8 + $0x1c80] ss:$48 sps:$4 sm:$0xff]   ;;  %v15304_v34 = vld [vmem:[#allocation8 + $0x1c8c] ss:$48 sps:$4 sm:$0xff]  }
 0x341   :  { %11189 = vmatprep.subr.bf16.mxu1 %v15244_v63  ;;  %v15302_v63 = vld [vmem:[#allocation8 + $0x1c88] ss:$48 sps:$4 sm:$0xff]  }
 0x343   :  { %10944 = vmatpush1.bf16.msra.mxu0 %v15239_v35  ;;  %v15307_v35 = vld [vmem:[#allocation8 + $0x1ce4] ss:$48 sps:$4 sm:$0xff]  }
 0x344   :  { %11190 = vmatpush1.bf16.msra.mxu1 %v15242_v36  ;;  %10945 = vmatprep.subr.bf16.mxu0 %v15247_v37  ;;  %v15305_v36 = vld [vmem:[#allocation8 + $0x1ce0] ss:$48 sps:$4 sm:$0xff]   ;;  %v15310_v37 = vld [vmem:[#allocation8 + $0x1cec] ss:$48 sps:$4 sm:$0xff]  }
 0x345   :  { %11191 = vmatprep.subr.bf16.mxu1 %v15250_v39  ;;  %v15313_v39 = vld [vmem:[#allocation8 + $0x1d44] ss:$48 sps:$4 sm:$0xff]  }
 0x347   :  { %10946 = vmatpush1.bf16.msra.mxu0 %v15245_v20  ;;  %v15308_v20 = vld [vmem:[#allocation8 + $0x1ce8] ss:$48 sps:$4 sm:$0xff]  }
 0x348   :  { %11192 = vmatpush1.bf16.msra.mxu1 %v15248_v40  ;;  %10947 = vmatprep.subr.bf16.mxu0 %v15253_v41  ;;  %v15311_v40 = vld [vmem:[#allocation8 + $0x1d40] ss:$48 sps:$4 sm:$0xff]   ;;  %v15316_v41 = vld [vmem:[#allocation8 + $0x1d4c] ss:$48 sps:$4 sm:$0xff]  }
 0x349   :  { %11193 = vmatprep.subr.bf16.mxu1 %v15256_v42  ;;  %v15314_v42 = vld [vmem:[#allocation8 + $0x1d48] ss:$48 sps:$4 sm:$0xff]  }
 0x34b   :  { %10948 = vmatpush1.bf16.msra.mxu0 %v15251_v32  ;;  %v606_v32 = vrot.slane %v16948_v52, %v16882_v16  ;;  %v15331_v52 = vld [vmem:[#allocation8 + $0x1e64] ss:$48 sps:$4 sm:$0xff]  }
 0x34c   :  { %11194 = vmatpush1.bf16.msra.mxu1 %v15254_v43  ;;  %10949 = vmatprep.subr.bf16.mxu0 %v15259_v44  ;;  %v15319_v43 = vld [vmem:[#allocation8 + $0x1da4] ss:$48 sps:$4 sm:$0xff]   ;;  %v15317_v44 = vld [vmem:[#allocation8 + $0x1da0] ss:$48 sps:$4 sm:$0xff]  }
 0x34d   :  { %11195 = vmatprep.subr.bf16.mxu1 %v15262_v48  ;;  %v13925_v48 = vadd.f32 %v16954_v59, %v606_v32  ;;  %v15329_v59 = vld [vmem:[#allocation8 + $0x1e60] ss:$48 sps:$4 sm:$0xff]   ;;  %v15379_v32 = vld [vmem:[#allocation8 + $0x2164] ss:$48 sps:$4 sm:$0xff]  }
 0x34f   :  { %10950 = vmatpush1.bf16.msra.mxu0 %v15257_v45  ;;  %v15322_v45 = vld [vmem:[#allocation8 + $0x1dac] ss:$48 sps:$4 sm:$0xff]  }
 0x350   :  { %11196 = vmatpush1.bf16.msra.mxu1 %v15260_v46  ;;  %10951 = vmatprep.subr.bf16.mxu0 %v15265_v49  ;;  %v15320_v46 = vld [vmem:[#allocation8 + $0x1da8] ss:$48 sps:$4 sm:$0xff]   ;;  %v15325_v49 = vld [vmem:[#allocation8 + $0x1e04] ss:$48 sps:$4 sm:$0xff]  }
 0x351   :  { %11197 = vmatprep.subr.bf16.mxu1 %v15268_v51  ;;  %v15328_v51 = vld [vmem:[#allocation8 + $0x1e0c] ss:$48 sps:$4 sm:$0xff]  }
 0x353   :  { %10952 = vmatpush1.bf16.msra.mxu0 %v15263_v24  ;;  %v15323_v24 = vld [vmem:[#allocation8 + $0x1e00] ss:$48 sps:$4 sm:$0xff]  }
 0x354   :  { %11198 = vmatpush1.bf16.msra.mxu1 %v15266_v5  ;;  %10953 = vmatprep.subr.bf16.mxu0 %v15271_v55  ;;  %v15326_v5 = vld [vmem:[#allocation8 + $0x1e08] ss:$48 sps:$4 sm:$0xff]   ;;  %v16980_v55 = vpack.c.bf16 %v13925_v48, %v13925_v48  ;;  %v15383_v48 = vld [vmem:[#allocation8 + $0x21c0] ss:$48 sps:$4 sm:$0xff]  }
 0x355   :  { %11199 = vmatprep.subr.bf16.mxu1 %v15274_v57  ;;  %v15332_v57 = vld [vmem:[#allocation8 + $0x1e68] ss:$48 sps:$4 sm:$0xff]  }
 0x357   :  { %10954 = vmatpush1.bf16.msra.mxu0 %v15269_v56  ;;  %v16984_v56 = vpack.c.bf16 %v16960_v6, %v16960_v6  ;;  %v15338_v6 = vld [vmem:[#allocation8 + $0x1ec8] ss:$48 sps:$4 sm:$0xff]  }
 0x358   :  { %11200 = vmatpush1.bf16.msra.mxu1 %v15272_v30  ;;  %10955 = vmatprep.subr.bf16.mxu0 %v15277_v11  ;;  %v15334_v30 = vld [vmem:[#allocation8 + $0x1e6c] ss:$48 sps:$4 sm:$0xff]   ;;  %v15337_v11 = vld [vmem:[#allocation8 + $0x1ec4] ss:$48 sps:$4 sm:$0xff]  }
 0x359   :  { %11201 = vmatprep.subr.bf16.mxu1 %v15280_v60  ;;  %v15335_v60 = vld [vmem:[#allocation8 + $0x1ec0] ss:$48 sps:$4 sm:$0xff]  }
 0x35b   :  { %10956 = vmatpush1.bf16.msra.mxu0 %v15275_v58  ;;  %v15340_v58 = vld [vmem:[#allocation8 + $0x1ecc] ss:$48 sps:$4 sm:$0xff]  }
 0x35c   :  { %11202 = vmatpush1.bf16.msra.mxu1 %v15278_v61  ;;  %10957 = vmatprep.subr.bf16.mxu0 %v15283_v62  ;;  %v15343_v61 = vld [vmem:[#allocation8 + $0x1f24] ss:$48 sps:$4 sm:$0xff]   ;;  %v15341_v62 = vld [vmem:[#allocation8 + $0x1f20] ss:$48 sps:$4 sm:$0xff]  }
 0x35d   :  { %11203 = vmatprep.subr.bf16.mxu1 %v15286_v8  ;;  %v15344_v8 = vld [vmem:[#allocation8 + $0x1f28] ss:$48 sps:$4 sm:$0xff]  }
 0x35f   :  { %10958 = vmatpush1.bf16.msra.mxu0 %v15281_v25  ;;  %v15346_v25 = vld [vmem:[#allocation8 + $0x1f2c] ss:$48 sps:$4 sm:$0xff]  }
 0x360   :  { %11204 = vmatpush1.bf16.msra.mxu1 %v15284_v31  ;;  %10959 = vmatprep.subr.bf16.mxu0 %v15289_v9  ;;  %v15349_v31 = vld [vmem:[#allocation8 + $0x1f84] ss:$48 sps:$4 sm:$0xff]   ;;  %v15347_v9 = vld [vmem:[#allocation8 + $0x1f80] ss:$48 sps:$4 sm:$0xff]  }
 0x361   :  { %11205 = vmatprep.subr.bf16.mxu1 %v15292_v13  ;;  %v15350_v13 = vld [vmem:[#allocation8 + $0x1f88] ss:$48 sps:$4 sm:$0xff]  }
 0x363   :  { %10960 = vmatpush1.bf16.msra.mxu0 %v15287_v12  ;;  %v15352_v12 = vld [vmem:[#allocation8 + $0x1f8c] ss:$48 sps:$4 sm:$0xff]  }
 0x364   :  { %11206 = vmatpush1.bf16.msra.mxu1 %v15290_v14  ;;  %10961 = vmatprep.subr.bf16.mxu0 %v15295_v15  ;;  %v15355_v14 = vld [vmem:[#allocation8 + $0x1fe4] ss:$48 sps:$4 sm:$0xff]   ;;  %v15353_v15 = vld [vmem:[#allocation8 + $0x1fe0] ss:$48 sps:$4 sm:$0xff]  }
 0x365   :  { %11207 = vmatprep.subr.bf16.mxu1 %v15298_v19  ;;  %v15356_v19 = vld [vmem:[#allocation8 + $0x1fe8] ss:$48 sps:$4 sm:$0xff]  }
 0x367   :  { %10962 = vmatpush1.bf16.msra.mxu0 %v15293_v17  ;;  %v15358_v17 = vld [vmem:[#allocation8 + $0x1fec] ss:$48 sps:$4 sm:$0xff]  }
 0x368   :  { %11208 = vmatpush1.bf16.msra.mxu1 %v15296_v21  ;;  %10963 = vmatprep.subr.bf16.mxu0 %v15301_v33  ;;  %v15361_v21 = vld [vmem:[#allocation8 + $0x2044] ss:$48 sps:$4 sm:$0xff]   ;;  %v15359_v33 = vld [vmem:[#allocation8 + $0x2040] ss:$48 sps:$4 sm:$0xff]  }
 0x369   :  { %11209 = vmatprep.subr.bf16.mxu1 %v15304_v34  ;;  %v15362_v34 = vld [vmem:[#allocation8 + $0x2048] ss:$48 sps:$4 sm:$0xff]  }
 0x36b   :  { %10964 = vmatpush1.bf16.msra.mxu0 %v15299_v28  ;;  %v15364_v28 = vld [vmem:[#allocation8 + $0x204c] ss:$48 sps:$4 sm:$0xff]  }
 0x36c   :  { %11210 = vmatpush1.bf16.msra.mxu1 %v15302_v63  ;;  %10965 = vmatprep.subr.bf16.mxu0 %v15307_v35  ;;  %v15367_v63 = vld [vmem:[#allocation8 + $0x20a4] ss:$48 sps:$4 sm:$0xff]   ;;  %v15365_v35 = vld [vmem:[#allocation8 + $0x20a0] ss:$48 sps:$4 sm:$0xff]  }
 0x36d   :  { %11211 = vmatprep.subr.bf16.mxu1 %v15310_v37  ;;  %v15368_v37 = vld [vmem:[#allocation8 + $0x20a8] ss:$48 sps:$4 sm:$0xff]  }
 0x36f   :  { %10966 = vmatpush1.bf16.msra.mxu0 %v15305_v36  ;;  %v15370_v36 = vld [vmem:[#allocation8 + $0x20ac] ss:$48 sps:$4 sm:$0xff]  }
 0x370   :  { %11212 = vmatpush1.bf16.msra.mxu1 %v15308_v20  ;;  %10967 = vmatprep.subr.bf16.mxu0 %v15313_v39  ;;  %v15373_v20 = vld [vmem:[#allocation8 + $0x2104] ss:$48 sps:$4 sm:$0xff]   ;;  %v15371_v39 = vld [vmem:[#allocation8 + $0x2100] ss:$48 sps:$4 sm:$0xff]  }
 0x371   :  { %11213 = vmatprep.subr.bf16.mxu1 %v15316_v41  ;;  %v15374_v41 = vld [vmem:[#allocation8 + $0x2108] ss:$48 sps:$4 sm:$0xff]  }
 0x373   :  { %10968 = vmatpush1.bf16.msra.mxu0 %v15311_v40  ;;  %v15376_v40 = vld [vmem:[#allocation8 + $0x210c] ss:$48 sps:$4 sm:$0xff]  }
 0x374   :  { %11214 = vmatpush1.bf16.msra.mxu1 %v15314_v42  ;;  %10969 = vmatprep.subr.bf16.mxu0 %v15319_v43  ;;  %v15377_v42 = vld [vmem:[#allocation8 + $0x2160] ss:$48 sps:$4 sm:$0xff]   ;;  %v15382_v43 = vld [vmem:[#allocation8 + $0x216c] ss:$48 sps:$4 sm:$0xff]  }
 0x375   :  { %11215 = vmatprep.subr.bf16.mxu1 %v15322_v45  ;;  %v15385_v45 = vld [vmem:[#allocation8 + $0x21c4] ss:$48 sps:$4 sm:$0xff]  }
 0x377   :  { %10970 = vmatpush1.bf16.msra.mxu0 %v15317_v44  ;;  %v15380_v44 = vld [vmem:[#allocation8 + $0x2168] ss:$48 sps:$4 sm:$0xff]  }
 0x378   :  { %11216 = vmatpush1.bf16.msra.mxu1 %v15320_v46  ;;  %10980 = vmatprep.subr.bf16.mxu0 %v15325_v49  ;;  %v15388_v46 = vld [vmem:[#allocation8 + $0x21cc] ss:$48 sps:$4 sm:$0xff]   ;;  %v15386_v49 = vld [vmem:[#allocation8 + $0x21c8] ss:$48 sps:$4 sm:$0xff]  }
 0x379   :  { %11226 = vmatprep.subr.bf16.mxu1 %v15328_v51  ;;  %v15389_v51 = vld [vmem:[#allocation8 + $0x2220] ss:$48 sps:$4 sm:$0xff]  }
 0x37a   :  { %10972 = vmatmul.mubr.bf16.vlgmr.msra.gmra.mrb[12].mxu0 %v16980_v55 }
 0x37b   :  { %11218 = vmatmul.mubr.bf16.vlgmr.msra.gmra.mrb[12].mxu1 %v16980_v55  ;;  %10981 = vmatpush1.bf16.msra.mxu0 %v15323_v24  ;;  %v15391_v24 = vld [vmem:[#allocation8 + $0x2224] ss:$48 sps:$4 sm:$0xff]  }
 0x37c   :  { %11012 = vmatprep.mubr.bf16.mxu0 %v16984_v56  ;;  %11227 = vmatpush1.bf16.msra.mxu1 %v15326_v5  ;;  %v15394_v5 = vld [vmem:[#allocation8 + $0x222c] ss:$48 sps:$4 sm:$0xff]  }
 0x37d   :  { %11258 = vmatprep.mubr.bf16.mxu1 %v16984_v56  ;;  %10982 = vmatprep.subr.bf16.mxu0 %v15331_v52  ;;  %v15392_v52 = vld [vmem:[#allocation8 + $0x2228] ss:$48 sps:$4 sm:$0xff]  }
 0x37e   :  { %11228 = vmatprep.subr.bf16.mxu1 %v15334_v30  ;;  %v15400_v30 = vld [vmem:[#allocation8 + $0x228c] ss:$48 sps:$4 sm:$0xff]  }
 0x37f   :  { %10983 = vmatpush1.bf16.msra.mxu0 %v15329_v59  ;;  %v15397_v59 = vld [vmem:[#allocation8 + $0x2284] ss:$48 sps:$4 sm:$0xff]  }
 0x380   :  { %11229 = vmatpush1.bf16.msra.mxu1 %v15332_v57  ;;  %10984 = vmatprep.subr.bf16.mxu0 %v15337_v11  ;;  %v15395_v57 = vld [vmem:[#allocation8 + $0x2280] ss:$48 sps:$4 sm:$0xff]   ;;  %v15398_v11 = vld [vmem:[#allocation8 + $0x2288] ss:$48 sps:$4 sm:$0xff]  }
 0x381   :  { %11230 = vmatprep.subr.bf16.mxu1 %v15340_v58  ;;  %v15403_v58 = vld [vmem:[#allocation8 + $0x22e4] ss:$48 sps:$4 sm:$0xff]  }
 0x383   :  { %10985 = vmatpush1.bf16.msra.mxu0 %v15335_v60  ;;  %v15401_v60 = vld [vmem:[#allocation8 + $0x22e0] ss:$48 sps:$4 sm:$0xff]  }
 0x384   :  { %11231 = vmatpush1.bf16.msra.mxu1 %v15338_v6  ;;  %10986 = vmatprep.subr.bf16.mxu0 %v15343_v61  ;;  %v15406_v6 = vld [vmem:[#allocation8 + $0x22ec] ss:$48 sps:$4 sm:$0xff]   ;;  %v15404_v61 = vld [vmem:[#allocation8 + $0x22e8] ss:$48 sps:$4 sm:$0xff]  }
 0x385   :  { %11232 = vmatprep.subr.bf16.mxu1 %v15346_v25  ;;  %v15407_v25 = vld [vmem:[#allocation8 + $0x2340] ss:$48 sps:$4 sm:$0xff]  }
 0x387   :  { %10987 = vmatpush1.bf16.msra.mxu0 %v15341_v62  ;;  %v15409_v62 = vld [vmem:[#allocation8 + $0x2344] ss:$48 sps:$4 sm:$0xff]  }
 0x388   :  { %11233 = vmatpush1.bf16.msra.mxu1 %v15344_v8  ;;  %10988 = vmatprep.subr.bf16.mxu0 %v15349_v31  ;;  %v15412_v8 = vld [vmem:[#allocation8 + $0x234c] ss:$48 sps:$4 sm:$0xff]   ;;  %v15410_v31 = vld [vmem:[#allocation8 + $0x2348] ss:$48 sps:$4 sm:$0xff]  }
 0x389   :  { %11234 = vmatprep.subr.bf16.mxu1 %v15352_v12  ;;  %v15413_v12 = vld [vmem:[#allocation8 + $0x23a0] ss:$48 sps:$4 sm:$0xff]  }
 0x38b   :  { %10989 = vmatpush1.bf16.msra.mxu0 %v15347_v9  ;;  %v15415_v9 = vld [vmem:[#allocation8 + $0x23a4] ss:$48 sps:$4 sm:$0xff]  }
 0x38c   :  { %11235 = vmatpush1.bf16.msra.mxu1 %v15350_v13  ;;  %10990 = vmatprep.subr.bf16.mxu0 %v15355_v14  ;;  %v15418_v13 = vld [vmem:[#allocation8 + $0x23ac] ss:$48 sps:$4 sm:$0xff]   ;;  %v15416_v14 = vld [vmem:[#allocation8 + $0x23a8] ss:$48 sps:$4 sm:$0xff]  }
 0x38d   :  { %11236 = vmatprep.subr.bf16.mxu1 %v15358_v17  ;;  %v15424_v17 = vld [vmem:[#allocation8 + $0x1c] ss:$48 sps:$4 sm:$0xff]  }
 0x38f   :  { %10991 = vmatpush1.bf16.msra.mxu0 %v15353_v15  ;;  %v15421_v15 = vld [vmem:[#allocation8 + $0x14] ss:$48 sps:$4 sm:$0xff]  }
 0x390   :  { %11237 = vmatpush1.bf16.msra.mxu1 %v15356_v19  ;;  %10992 = vmatprep.subr.bf16.mxu0 %v15361_v21  ;;  %v15419_v19 = vld [vmem:[#allocation8 + $0x10] ss:$48 sps:$4 sm:$0xff]   ;;  %v15422_v21 = vld [vmem:[#allocation8 + $0x18] ss:$48 sps:$4 sm:$0xff]  }
 0x391   :  { %11238 = vmatprep.subr.bf16.mxu1 %v15364_v28  ;;  %v16992_v28 = vpack.c.bf16 %v16956_v18, %v16956_v18  ;;  %v15436_v18 = vld [vmem:[#allocation8 + $0xdc] ss:$48 sps:$4 sm:$0xff]  }
 0x393   :  { %10993 = vmatpush1.bf16.msra.mxu0 %v15359_v33  ;;  %v15427_v33 = vld [vmem:[#allocation8 + $0x74] ss:$48 sps:$4 sm:$0xff]  }
 0x394   :  { %11239 = vmatpush1.bf16.msra.mxu1 %v15362_v34  ;;  %10994 = vmatprep.subr.bf16.mxu0 %v15367_v63  ;;  %v15425_v34 = vld [vmem:[#allocation8 + $0x70] ss:$48 sps:$4 sm:$0xff]   ;;  %v15428_v63 = vld [vmem:[#allocation8 + $0x78] ss:$48 sps:$4 sm:$0xff]  }
 0x395   :  { %11240 = vmatprep.subr.bf16.mxu1 %v15370_v36  ;;  %v15433_v36 = vld [vmem:[#allocation8 + $0xd4] ss:$48 sps:$4 sm:$0xff]  }
 0x397   :  { %10995 = vmatpush1.bf16.msra.mxu0 %v15365_v35  ;;  %v15430_v35 = vld [vmem:[#allocation8 + $0x7c] ss:$48 sps:$4 sm:$0xff]  }
 0x398   :  { %11241 = vmatpush1.bf16.msra.mxu1 %v15368_v37  ;;  %10996 = vmatprep.subr.bf16.mxu0 %v15373_v20  ;;  %v15431_v37 = vld [vmem:[#allocation8 + $0xd0] ss:$48 sps:$4 sm:$0xff]   ;;  %v15434_v20 = vld [vmem:[#allocation8 + $0xd8] ss:$48 sps:$4 sm:$0xff]  }
 0x399   :  { %11242 = vmatprep.subr.bf16.mxu1 %v15376_v40  ;;  %v15437_v40 = vld [vmem:[#allocation8 + $0x130] ss:$48 sps:$4 sm:$0xff]  }
 0x39b   :  { %10997 = vmatpush1.bf16.msra.mxu0 %v15371_v39  ;;  %v15439_v39 = vld [vmem:[#allocation8 + $0x134] ss:$48 sps:$4 sm:$0xff]  }
 0x39c   :  { %11243 = vmatpush1.bf16.msra.mxu1 %v15374_v41  ;;  %10998 = vmatprep.subr.bf16.mxu0 %v15379_v32  ;;  %v15442_v41 = vld [vmem:[#allocation8 + $0x13c] ss:$48 sps:$4 sm:$0xff]   ;;  %v15440_v32 = vld [vmem:[#allocation8 + $0x138] ss:$48 sps:$4 sm:$0xff]  }
 0x39d   :  { %11244 = vmatprep.subr.bf16.mxu1 %v15382_v43  ;;  %v15443_v43 = vld [vmem:[#allocation8 + $0x190] ss:$48 sps:$4 sm:$0xff]  }
 0x39f   :  { %10999 = vmatpush1.bf16.msra.mxu0 %v15377_v42  ;;  %v15445_v42 = vld [vmem:[#allocation8 + $0x194] ss:$48 sps:$4 sm:$0xff]  }
 0x3a0   :  { %11245 = vmatpush1.bf16.msra.mxu1 %v15380_v44  ;;  %11000 = vmatprep.subr.bf16.mxu0 %v15385_v45  ;;  %v15448_v44 = vld [vmem:[#allocation8 + $0x19c] ss:$48 sps:$4 sm:$0xff]   ;;  %v15446_v45 = vld [vmem:[#allocation8 + $0x198] ss:$48 sps:$4 sm:$0xff]  }
 0x3a1   :  { %11246 = vmatprep.subr.bf16.mxu1 %v15388_v46  ;;  %v15454_v46 = vld [vmem:[#allocation8 + $0x1fc] ss:$48 sps:$4 sm:$0xff]  }
 0x3a3   :  { %11001 = vmatpush1.bf16.msra.mxu0 %v15383_v48  ;;  %v15451_v48 = vld [vmem:[#allocation8 + $0x1f4] ss:$48 sps:$4 sm:$0xff]  }
 0x3a4   :  { %11247 = vmatpush1.bf16.msra.mxu1 %v15386_v49  ;;  %11002 = vmatprep.subr.bf16.mxu0 %v15391_v24  ;;  %v15449_v49 = vld [vmem:[#allocation8 + $0x1f0] ss:$48 sps:$4 sm:$0xff]   ;;  %v15452_v24 = vld [vmem:[#allocation8 + $0x1f8] ss:$48 sps:$4 sm:$0xff]  }
 0x3a5   :  { %11248 = vmatprep.subr.bf16.mxu1 %v15394_v5  ;;  %v15460_v5 = vld [vmem:[#allocation8 + $0x25c] ss:$48 sps:$4 sm:$0xff]  }
 0x3a7   :  { %11003 = vmatpush1.bf16.msra.mxu0 %v15389_v51  ;;  %v15457_v51 = vld [vmem:[#allocation8 + $0x254] ss:$48 sps:$4 sm:$0xff]  }
 0x3a8   :  { %11249 = vmatpush1.bf16.msra.mxu1 %v15392_v52  ;;  %11004 = vmatprep.subr.bf16.mxu0 %v15397_v59  ;;  %v15455_v52 = vld [vmem:[#allocation8 + $0x250] ss:$48 sps:$4 sm:$0xff]   ;;  %v15458_v59 = vld [vmem:[#allocation8 + $0x258] ss:$48 sps:$4 sm:$0xff]  }
 0x3a9   :  { %11250 = vmatprep.subr.bf16.mxu1 %v15400_v30  ;;  %v15466_v30 = vld [vmem:[#allocation8 + $0x2bc] ss:$48 sps:$4 sm:$0xff]  }
 0x3ab   :  { %11005 = vmatpush1.bf16.msra.mxu0 %v15395_v57  ;;  %v15463_v57 = vld [vmem:[#allocation8 + $0x2b4] ss:$48 sps:$4 sm:$0xff]  }
 0x3ac   :  { %11251 = vmatpush1.bf16.msra.mxu1 %v15398_v11  ;;  %11006 = vmatprep.subr.bf16.mxu0 %v15403_v58  ;;  %v15461_v11 = vld [vmem:[#allocation8 + $0x2b0] ss:$48 sps:$4 sm:$0xff]   ;;  %v15464_v58 = vld [vmem:[#allocation8 + $0x2b8] ss:$48 sps:$4 sm:$0xff]  }
 0x3ad   :  { %11252 = vmatprep.subr.bf16.mxu1 %v15406_v6  ;;  %v15472_v6 = vld [vmem:[#allocation8 + $0x31c] ss:$48 sps:$4 sm:$0xff]  }
 0x3af   :  { %11007 = vmatpush1.bf16.msra.mxu0 %v15401_v60  ;;  %v15469_v60 = vld [vmem:[#allocation8 + $0x314] ss:$48 sps:$4 sm:$0xff]  }
 0x3b0   :  { %11253 = vmatpush1.bf16.msra.mxu1 %v15404_v61  ;;  %11008 = vmatprep.subr.bf16.mxu0 %v15409_v62  ;;  %v15467_v61 = vld [vmem:[#allocation8 + $0x310] ss:$48 sps:$4 sm:$0xff]   ;;  %v15470_v62 = vld [vmem:[#allocation8 + $0x318] ss:$48 sps:$4 sm:$0xff]  }
 0x3b1   :  { %11254 = vmatprep.subr.bf16.mxu1 %v15412_v8  ;;  %v15478_v8 = vld [vmem:[#allocation8 + $0x37c] ss:$48 sps:$4 sm:$0xff]  }
 0x3b3   :  { %11009 = vmatpush1.bf16.msra.mxu0 %v15407_v25  ;;  %v15475_v25 = vld [vmem:[#allocation8 + $0x374] ss:$48 sps:$4 sm:$0xff]  }
 0x3b4   :  { %11255 = vmatpush1.bf16.msra.mxu1 %v15410_v31  ;;  %11010 = vmatprep.subr.bf16.mxu0 %v15415_v9  ;;  %v15473_v31 = vld [vmem:[#allocation8 + $0x370] ss:$48 sps:$4 sm:$0xff]   ;;  %v15476_v9 = vld [vmem:[#allocation8 + $0x378] ss:$48 sps:$4 sm:$0xff]  }
 0x3b5   :  { %11256 = vmatprep.subr.bf16.mxu1 %v15418_v13  ;;  %v15484_v13 = vld [vmem:[#allocation8 + $0x3dc] ss:$48 sps:$4 sm:$0xff]  }
 0x3b7   :  { %11011 = vmatpush1.bf16.msra.mxu0 %v15413_v12  ;;  %v15481_v12 = vld [vmem:[#allocation8 + $0x3d4] ss:$48 sps:$4 sm:$0xff]  }
 0x3b8   :  { %11257 = vmatpush1.bf16.msra.mxu1 %v15416_v14  ;;  %11267 = vmatprep.subr.bf16.mxu0 %v15421_v15  ;;  %v15479_v14 = vld [vmem:[#allocation8 + $0x3d0] ss:$48 sps:$4 sm:$0xff]   ;;  %v15482_v15 = vld [vmem:[#allocation8 + $0x3d8] ss:$48 sps:$4 sm:$0xff]  }
 0x3b9   :  { %11513 = vmatprep.subr.bf16.mxu1 %v15424_v17  ;;  %v15487_v17 = vld [vmem:[#allocation8 + $0x434] ss:$48 sps:$4 sm:$0xff]  }
 0x3ba   :  { %11013 = vmatmul.mubr.bf16.vlgmr.msra.gmra.mrb[12].mxu0 %v16992_v28 }
 0x3bb   :  { %11259 = vmatmul.mubr.bf16.vlgmr.msra.gmra.mrb[12].mxu1 %v16992_v28  ;;  %11268 = vmatpush1.bf16.msra.mxu0 %v15419_v19  ;;  %v15490_v19 = vld [vmem:[#allocation8 + $0x43c] ss:$48 sps:$4 sm:$0xff]  }
 0x3bc   :  { %11299 = vmatprep.mubr.bf16.mxu0 %v16877_v26  ;;  %11514 = vmatpush1.bf16.msra.mxu1 %v15422_v21  ;;  %v15485_v21 = vld [vmem:[#allocation8 + $0x430] ss:$48 sps:$4 sm:$0xff]  }
 0x3bd   :  { %11545 = vmatprep.mubr.bf16.mxu1 %v16877_v26  ;;  %11269 = vmatprep.subr.bf16.mxu0 %v15427_v33  ;;  %v15488_v33 = vld [vmem:[#allocation8 + $0x438] ss:$48 sps:$4 sm:$0xff]  }
 0x3be   :  { %11515 = vmatprep.subr.bf16.mxu1 %v15430_v35  ;;  %v15491_v35 = vld [vmem:[#allocation8 + $0x490] ss:$48 sps:$4 sm:$0xff]  }
 0x3bf   :  { %11270 = vmatpush1.bf16.msra.mxu0 %v15425_v34  ;;  %v15493_v34 = vld [vmem:[#allocation8 + $0x494] ss:$48 sps:$4 sm:$0xff]  }
 0x3c0   :  { %11516 = vmatpush1.bf16.msra.mxu1 %v15428_v63  ;;  %11271 = vmatprep.subr.bf16.mxu0 %v15433_v36  ;;  %v15496_v63 = vld [vmem:[#allocation8 + $0x49c] ss:$48 sps:$4 sm:$0xff]   ;;  %v15494_v36 = vld [vmem:[#allocation8 + $0x498] ss:$48 sps:$4 sm:$0xff]  }
 0x3c1   :  { %11517 = vmatprep.subr.bf16.mxu1 %v15436_v18  ;;  %v15499_v18 = vld [vmem:[#allocation8 + $0x4f4] ss:$48 sps:$4 sm:$0xff]  }
 0x3c3   :  { %11272 = vmatpush1.bf16.msra.mxu0 %v15431_v37  ;;  %v15502_v37 = vld [vmem:[#allocation8 + $0x4fc] ss:$48 sps:$4 sm:$0xff]  }
 0x3c4   :  { %11518 = vmatpush1.bf16.msra.mxu1 %v15434_v20  ;;  %11273 = vmatprep.subr.bf16.mxu0 %v15439_v39  ;;  %v15497_v20 = vld [vmem:[#allocation8 + $0x4f0] ss:$48 sps:$4 sm:$0xff]   ;;  %v15500_v39 = vld [vmem:[#allocation8 + $0x4f8] ss:$48 sps:$4 sm:$0xff]  }
 0x3c5   :  { %11519 = vmatprep.subr.bf16.mxu1 %v15442_v41  ;;  %v15508_v41 = vld [vmem:[#allocation8 + $0x55c] ss:$48 sps:$4 sm:$0xff]  }
 0x3c7   :  { %11274 = vmatpush1.bf16.msra.mxu0 %v15437_v40  ;;  %v15505_v40 = vld [vmem:[#allocation8 + $0x554] ss:$48 sps:$4 sm:$0xff]  }
 0x3c8   :  { %11520 = vmatpush1.bf16.msra.mxu1 %v15440_v32  ;;  %11275 = vmatprep.subr.bf16.mxu0 %v15445_v42  ;;  %v15503_v32 = vld [vmem:[#allocation8 + $0x550] ss:$48 sps:$4 sm:$0xff]   ;;  %v15506_v42 = vld [vmem:[#allocation8 + $0x558] ss:$48 sps:$4 sm:$0xff]  }
 0x3c9   :  { %11521 = vmatprep.subr.bf16.mxu1 %v15448_v44  ;;  %v15514_v44 = vld [vmem:[#allocation8 + $0x5bc] ss:$48 sps:$4 sm:$0xff]  }
 0x3cb   :  { %11276 = vmatpush1.bf16.msra.mxu0 %v15443_v43  ;;  %v15511_v43 = vld [vmem:[#allocation8 + $0x5b4] ss:$48 sps:$4 sm:$0xff]  }
 0x3cc   :  { %11522 = vmatpush1.bf16.msra.mxu1 %v15446_v45  ;;  %11277 = vmatprep.subr.bf16.mxu0 %v15451_v48  ;;  %v15509_v45 = vld [vmem:[#allocation8 + $0x5b0] ss:$48 sps:$4 sm:$0xff]   ;;  %v15512_v48 = vld [vmem:[#allocation8 + $0x5b8] ss:$48 sps:$4 sm:$0xff]  }
 0x3cd   :  { %11523 = vmatprep.subr.bf16.mxu1 %v15454_v46  ;;  %v15517_v46 = vld [vmem:[#allocation8 + $0x614] ss:$48 sps:$4 sm:$0xff]  }
 0x3cf   :  { %11278 = vmatpush1.bf16.msra.mxu0 %v15449_v49  ;;  %v15520_v49 = vld [vmem:[#allocation8 + $0x61c] ss:$48 sps:$4 sm:$0xff]  }
 0x3d0   :  { %11524 = vmatpush1.bf16.msra.mxu1 %v15452_v24  ;;  %11279 = vmatprep.subr.bf16.mxu0 %v15457_v51  ;;  %v15515_v24 = vld [vmem:[#allocation8 + $0x610] ss:$48 sps:$4 sm:$0xff]   ;;  %v15518_v51 = vld [vmem:[#allocation8 + $0x618] ss:$48 sps:$4 sm:$0xff]  }
 0x3d1   :  { %11525 = vmatprep.subr.bf16.mxu1 %v15460_v5  ;;  %v15523_v5 = vld [vmem:[#allocation8 + $0x674] ss:$48 sps:$4 sm:$0xff]  }
 0x3d3   :  { %11280 = vmatpush1.bf16.msra.mxu0 %v15455_v52  ;;  %v15526_v52 = vld [vmem:[#allocation8 + $0x67c] ss:$48 sps:$4 sm:$0xff]  }
 0x3d4   :  { %11526 = vmatpush1.bf16.msra.mxu1 %v15458_v59  ;;  %11281 = vmatprep.subr.bf16.mxu0 %v15463_v57  ;;  %v15521_v59 = vld [vmem:[#allocation8 + $0x670] ss:$48 sps:$4 sm:$0xff]   ;;  %v15524_v57 = vld [vmem:[#allocation8 + $0x678] ss:$48 sps:$4 sm:$0xff]  }
 0x3d5   :  { %11527 = vmatprep.subr.bf16.mxu1 %v15466_v30  ;;  %v15529_v30 = vld [vmem:[#allocation8 + $0x6d4] ss:$48 sps:$4 sm:$0xff]  }
 0x3d7   :  { %11282 = vmatpush1.bf16.msra.mxu0 %v15461_v11  ;;  %v15532_v11 = vld [vmem:[#allocation8 + $0x6dc] ss:$48 sps:$4 sm:$0xff]  }
 0x3d8   :  { %11528 = vmatpush1.bf16.msra.mxu1 %v15464_v58  ;;  %11283 = vmatprep.subr.bf16.mxu0 %v15469_v60  ;;  %v15527_v58 = vld [vmem:[#allocation8 + $0x6d0] ss:$48 sps:$4 sm:$0xff]   ;;  %v15530_v60 = vld [vmem:[#allocation8 + $0x6d8] ss:$48 sps:$4 sm:$0xff]  }
 0x3d9   :  { %11529 = vmatprep.subr.bf16.mxu1 %v15472_v6  ;;  %v15535_v6 = vld [vmem:[#allocation8 + $0x734] ss:$48 sps:$4 sm:$0xff]  }
 0x3db   :  { %11284 = vmatpush1.bf16.msra.mxu0 %v15467_v61  ;;  %v15538_v61 = vld [vmem:[#allocation8 + $0x73c] ss:$48 sps:$4 sm:$0xff]  }
 0x3dc   :  { %11530 = vmatpush1.bf16.msra.mxu1 %v15470_v62  ;;  %11285 = vmatprep.subr.bf16.mxu0 %v15475_v25  ;;  %v15533_v62 = vld [vmem:[#allocation8 + $0x730] ss:$48 sps:$4 sm:$0xff]   ;;  %v15536_v25 = vld [vmem:[#allocation8 + $0x738] ss:$48 sps:$4 sm:$0xff]  }
 0x3dd   :  { %11531 = vmatprep.subr.bf16.mxu1 %v15478_v8  ;;  %v15541_v8 = vld [vmem:[#allocation8 + $0x794] ss:$48 sps:$4 sm:$0xff]  }
 0x3df   :  { %11286 = vmatpush1.bf16.msra.mxu0 %v15473_v31  ;;  %v15544_v31 = vld [vmem:[#allocation8 + $0x79c] ss:$48 sps:$4 sm:$0xff]  }
 0x3e0   :  { %11532 = vmatpush1.bf16.msra.mxu1 %v15476_v9  ;;  %11287 = vmatprep.subr.bf16.mxu0 %v15481_v12  ;;  %v15539_v9 = vld [vmem:[#allocation8 + $0x790] ss:$48 sps:$4 sm:$0xff]   ;;  %v15542_v12 = vld [vmem:[#allocation8 + $0x798] ss:$48 sps:$4 sm:$0xff]  }
 0x3e1   :  { %11533 = vmatprep.subr.bf16.mxu1 %v15484_v13  ;;  %v15547_v13 = vld [vmem:[#allocation8 + $0x7f4] ss:$48 sps:$4 sm:$0xff]  }
 0x3e3   :  { %11288 = vmatpush1.bf16.msra.mxu0 %v15479_v14  ;;  %v15550_v14 = vld [vmem:[#allocation8 + $0x7fc] ss:$48 sps:$4 sm:$0xff]  }
 0x3e4   :  { %11534 = vmatpush1.bf16.msra.mxu1 %v15482_v15  ;;  %11289 = vmatprep.subr.bf16.mxu0 %v15487_v17  ;;  %v15545_v15 = vld [vmem:[#allocation8 + $0x7f0] ss:$48 sps:$4 sm:$0xff]   ;;  %v15548_v17 = vld [vmem:[#allocation8 + $0x7f8] ss:$48 sps:$4 sm:$0xff]  }
 0x3e5   :  { %11535 = vmatprep.subr.bf16.mxu1 %v15490_v19  ;;  %v15553_v19 = vld [vmem:[#allocation8 + $0x854] ss:$48 sps:$4 sm:$0xff]  }
 0x3e7   :  { %11290 = vmatpush1.bf16.msra.mxu0 %v15485_v21  ;;  %v15556_v21 = vld [vmem:[#allocation8 + $0x85c] ss:$48 sps:$4 sm:$0xff]  }
 0x3e8   :  { %11536 = vmatpush1.bf16.msra.mxu1 %v15488_v33  ;;  %11291 = vmatprep.subr.bf16.mxu0 %v15493_v34  ;;  %v15551_v33 = vld [vmem:[#allocation8 + $0x850] ss:$48 sps:$4 sm:$0xff]   ;;  %v15554_v34 = vld [vmem:[#allocation8 + $0x858] ss:$48 sps:$4 sm:$0xff]  }
 0x3e9   :  { %11537 = vmatprep.subr.bf16.mxu1 %v15496_v63  ;;  %v15559_v63 = vld [vmem:[#allocation8 + $0x8b4] ss:$48 sps:$4 sm:$0xff]  }
 0x3eb   :  { %11292 = vmatpush1.bf16.msra.mxu0 %v15491_v35  ;;  %v15562_v35 = vld [vmem:[#allocation8 + $0x8bc] ss:$48 sps:$4 sm:$0xff]  }
 0x3ec   :  { %11538 = vmatpush1.bf16.msra.mxu1 %v15494_v36  ;;  %11293 = vmatprep.subr.bf16.mxu0 %v15499_v18  ;;  %v15557_v36 = vld [vmem:[#allocation8 + $0x8b0] ss:$48 sps:$4 sm:$0xff]   ;;  %v15560_v18 = vld [vmem:[#allocation8 + $0x8b8] ss:$48 sps:$4 sm:$0xff]  }
 0x3ed   :  { %11539 = vmatprep.subr.bf16.mxu1 %v15502_v37  ;;  %v15565_v37 = vld [vmem:[#allocation8 + $0x914] ss:$48 sps:$4 sm:$0xff]  }
 0x3ef   :  { %11294 = vmatpush1.bf16.msra.mxu0 %v15497_v20  ;;  %v15568_v20 = vld [vmem:[#allocation8 + $0x91c] ss:$48 sps:$4 sm:$0xff]  }
 0x3f0   :  { %11540 = vmatpush1.bf16.msra.mxu1 %v15500_v39  ;;  %11295 = vmatprep.subr.bf16.mxu0 %v15505_v40  ;;  %v15563_v39 = vld [vmem:[#allocation8 + $0x910] ss:$48 sps:$4 sm:$0xff]   ;;  %v15566_v40 = vld [vmem:[#allocation8 + $0x918] ss:$48 sps:$4 sm:$0xff]  }
 0x3f1   :  { %11541 = vmatprep.subr.bf16.mxu1 %v15508_v41  ;;  %v15571_v41 = vld [vmem:[#allocation8 + $0x974] ss:$48 sps:$4 sm:$0xff]  }
 0x3f3   :  { %11296 = vmatpush1.bf16.msra.mxu0 %v15503_v32  ;;  %v15574_v32 = vld [vmem:[#allocation8 + $0x97c] ss:$48 sps:$4 sm:$0xff]  }
 0x3f4   :  { %11542 = vmatpush1.bf16.msra.mxu1 %v15506_v42  ;;  %11297 = vmatprep.subr.bf16.mxu0 %v15511_v43  ;;  %v15569_v42 = vld [vmem:[#allocation8 + $0x970] ss:$48 sps:$4 sm:$0xff]   ;;  %v15572_v43 = vld [vmem:[#allocation8 + $0x978] ss:$48 sps:$4 sm:$0xff]  }
 0x3f5   :  { %11543 = vmatprep.subr.bf16.mxu1 %v15514_v44  ;;  %v15577_v44 = vld [vmem:[#allocation8 + $0x9d4] ss:$48 sps:$4 sm:$0xff]  }
 0x3f7   :  { %11298 = vmatpush1.bf16.msra.mxu0 %v15509_v45  ;;  %v15580_v45 = vld [vmem:[#allocation8 + $0x9dc] ss:$48 sps:$4 sm:$0xff]  }
 0x3f8   :  { %11544 = vmatpush1.bf16.msra.mxu1 %v15512_v48  ;;  %11308 = vmatprep.subr.bf16.mxu0 %v15517_v46  ;;  %v15575_v48 = vld [vmem:[#allocation8 + $0x9d0] ss:$48 sps:$4 sm:$0xff]   ;;  %v15578_v46 = vld [vmem:[#allocation8 + $0x9d8] ss:$48 sps:$4 sm:$0xff]  }
 0x3f9   :  { %11554 = vmatprep.subr.bf16.mxu1 %v15520_v49  ;;  %v15583_v49 = vld [vmem:[#allocation8 + $0xa34] ss:$48 sps:$4 sm:$0xff]  }
 0x3fa   :  { %11300 = vmatmul.mubr.bf16.vlgmr.msra.gmra.mrb[16].mxu0 %v16901_v50 }
 0x3fb   :  { %11546 = vmatmul.mubr.bf16.vlgmr.msra.gmra.mrb[16].mxu1 %v16901_v50  ;;  %11309 = vmatpush1.bf16.msra.mxu0 %v15515_v24  ;;  %v15586_v24 = vld [vmem:[#allocation8 + $0xa3c] ss:$48 sps:$4 sm:$0xff]  }
 0x3fc   :  { %11340 = vmatprep.mubr.bf16.mxu0 %v16903_v3  ;;  %11555 = vmatpush1.bf16.msra.mxu1 %v15518_v51  ;;  %v15581_v51 = vld [vmem:[#allocation8 + $0xa30] ss:$48 sps:$4 sm:$0xff]  }
 0x3fd   :  { %11586 = vmatprep.mubr.bf16.mxu1 %v16903_v3  ;;  %11310 = vmatprep.subr.bf16.mxu0 %v15523_v5  ;;  %v15584_v5 = vld [vmem:[#allocation8 + $0xa38] ss:$48 sps:$4 sm:$0xff]  }
 0x3fe   :  { %11556 = vmatprep.subr.bf16.mxu1 %v15526_v52  ;;  %v15589_v52 = vld [vmem:[#allocation8 + $0xa94] ss:$48 sps:$4 sm:$0xff]  }
 0x3ff   :  { %11311 = vmatpush1.bf16.msra.mxu0 %v15521_v59  ;;  %v15592_v59 = vld [vmem:[#allocation8 + $0xa9c] ss:$48 sps:$4 sm:$0xff]  }
 0x400   :  { %11557 = vmatpush1.bf16.msra.mxu1 %v15524_v57  ;;  %11312 = vmatprep.subr.bf16.mxu0 %v15529_v30  ;;  %v15587_v57 = vld [vmem:[#allocation8 + $0xa90] ss:$48 sps:$4 sm:$0xff]   ;;  %v15590_v30 = vld [vmem:[#allocation8 + $0xa98] ss:$48 sps:$4 sm:$0xff]  }
 0x401   :  { %11558 = vmatprep.subr.bf16.mxu1 %v15532_v11  ;;  %v15595_v11 = vld [vmem:[#allocation8 + $0xaf4] ss:$48 sps:$4 sm:$0xff]  }
 0x403   :  { %11313 = vmatpush1.bf16.msra.mxu0 %v15527_v58  ;;  %v15598_v58 = vld [vmem:[#allocation8 + $0xafc] ss:$48 sps:$4 sm:$0xff]  }
 0x404   :  { %11559 = vmatpush1.bf16.msra.mxu1 %v15530_v60  ;;  %11314 = vmatprep.subr.bf16.mxu0 %v15535_v6  ;;  %v15593_v60 = vld [vmem:[#allocation8 + $0xaf0] ss:$48 sps:$4 sm:$0xff]   ;;  %v15596_v6 = vld [vmem:[#allocation8 + $0xaf8] ss:$48 sps:$4 sm:$0xff]  }
 0x405   :  { %11560 = vmatprep.subr.bf16.mxu1 %v15538_v61  ;;  %v15601_v61 = vld [vmem:[#allocation8 + $0xb54] ss:$48 sps:$4 sm:$0xff]  }
 0x407   :  { %11315 = vmatpush1.bf16.msra.mxu0 %v15533_v62  ;;  %v15604_v62 = vld [vmem:[#allocation8 + $0xb5c] ss:$48 sps:$4 sm:$0xff]  }
 0x408   :  { %11561 = vmatpush1.bf16.msra.mxu1 %v15536_v25  ;;  %11316 = vmatprep.subr.bf16.mxu0 %v15541_v8  ;;  %v15599_v25 = vld [vmem:[#allocation8 + $0xb50] ss:$48 sps:$4 sm:$0xff]   ;;  %v15602_v8 = vld [vmem:[#allocation8 + $0xb58] ss:$48 sps:$4 sm:$0xff]  }
 0x409   :  { %11562 = vmatprep.subr.bf16.mxu1 %v15544_v31  ;;  %v15607_v31 = vld [vmem:[#allocation8 + $0xbb4] ss:$48 sps:$4 sm:$0xff]  }
 0x40b   :  { %11317 = vmatpush1.bf16.msra.mxu0 %v15539_v9  ;;  %v15610_v9 = vld [vmem:[#allocation8 + $0xbbc] ss:$48 sps:$4 sm:$0xff]  }
 0x40c   :  { %11563 = vmatpush1.bf16.msra.mxu1 %v15542_v12  ;;  %11318 = vmatprep.subr.bf16.mxu0 %v15547_v13  ;;  %v15605_v12 = vld [vmem:[#allocation8 + $0xbb0] ss:$48 sps:$4 sm:$0xff]   ;;  %v15608_v13 = vld [vmem:[#allocation8 + $0xbb8] ss:$48 sps:$4 sm:$0xff]  }
 0x40d   :  { %11564 = vmatprep.subr.bf16.mxu1 %v15550_v14  ;;  %v15613_v14 = vld [vmem:[#allocation8 + $0xc14] ss:$48 sps:$4 sm:$0xff]  }
 0x40f   :  { %11319 = vmatpush1.bf16.msra.mxu0 %v15545_v15  ;;  %v15616_v15 = vld [vmem:[#allocation8 + $0xc1c] ss:$48 sps:$4 sm:$0xff]  }
 0x410   :  { %11565 = vmatpush1.bf16.msra.mxu1 %v15548_v17  ;;  %11320 = vmatprep.subr.bf16.mxu0 %v15553_v19  ;;  %v15611_v17 = vld [vmem:[#allocation8 + $0xc10] ss:$48 sps:$4 sm:$0xff]   ;;  %v15614_v19 = vld [vmem:[#allocation8 + $0xc18] ss:$48 sps:$4 sm:$0xff]  }
 0x411   :  { %11566 = vmatprep.subr.bf16.mxu1 %v15556_v21  ;;  %v15619_v21 = vld [vmem:[#allocation8 + $0xc74] ss:$48 sps:$4 sm:$0xff]  }
 0x413   :  { %11321 = vmatpush1.bf16.msra.mxu0 %v15551_v33  ;;  %v15622_v33 = vld [vmem:[#allocation8 + $0xc7c] ss:$48 sps:$4 sm:$0xff]  }
 0x414   :  { %11567 = vmatpush1.bf16.msra.mxu1 %v15554_v34  ;;  %11322 = vmatprep.subr.bf16.mxu0 %v15559_v63  ;;  %v15617_v34 = vld [vmem:[#allocation8 + $0xc70] ss:$48 sps:$4 sm:$0xff]   ;;  %v15620_v63 = vld [vmem:[#allocation8 + $0xc78] ss:$48 sps:$4 sm:$0xff]  }
 0x415   :  { %11568 = vmatprep.subr.bf16.mxu1 %v15562_v35  ;;  %v15625_v35 = vld [vmem:[#allocation8 + $0xcd4] ss:$48 sps:$4 sm:$0xff]  }
 0x417   :  { %11323 = vmatpush1.bf16.msra.mxu0 %v15557_v36  ;;  %v15628_v36 = vld [vmem:[#allocation8 + $0xcdc] ss:$48 sps:$4 sm:$0xff]  }
 0x418   :  { %11569 = vmatpush1.bf16.msra.mxu1 %v15560_v18  ;;  %11324 = vmatprep.subr.bf16.mxu0 %v15565_v37  ;;  %v15623_v18 = vld [vmem:[#allocation8 + $0xcd0] ss:$48 sps:$4 sm:$0xff]   ;;  %v15626_v37 = vld [vmem:[#allocation8 + $0xcd8] ss:$48 sps:$4 sm:$0xff]  }
 0x419   :  { %11570 = vmatprep.subr.bf16.mxu1 %v15568_v20  ;;  %v15631_v20 = vld [vmem:[#allocation8 + $0xd34] ss:$48 sps:$4 sm:$0xff]  }
 0x41b   :  { %11325 = vmatpush1.bf16.msra.mxu0 %v15563_v39  ;;  %v15634_v39 = vld [vmem:[#allocation8 + $0xd3c] ss:$48 sps:$4 sm:$0xff]  }
 0x41c   :  { %11571 = vmatpush1.bf16.msra.mxu1 %v15566_v40  ;;  %11326 = vmatprep.subr.bf16.mxu0 %v15571_v41  ;;  %v15629_v40 = vld [vmem:[#allocation8 + $0xd30] ss:$48 sps:$4 sm:$0xff]   ;;  %v15632_v41 = vld [vmem:[#allocation8 + $0xd38] ss:$48 sps:$4 sm:$0xff]  }
 0x41d   :  { %11572 = vmatprep.subr.bf16.mxu1 %v15574_v32  ;;  %v15637_v32 = vld [vmem:[#allocation8 + $0xd94] ss:$48 sps:$4 sm:$0xff]  }
 0x41f   :  { %11327 = vmatpush1.bf16.msra.mxu0 %v15569_v42  ;;  %v15640_v42 = vld [vmem:[#allocation8 + $0xd9c] ss:$48 sps:$4 sm:$0xff]  }
 0x420   :  { %11573 = vmatpush1.bf16.msra.mxu1 %v15572_v43  ;;  %11328 = vmatprep.subr.bf16.mxu0 %v15577_v44  ;;  %v15635_v43 = vld [vmem:[#allocation8 + $0xd90] ss:$48 sps:$4 sm:$0xff]   ;;  %v15638_v44 = vld [vmem:[#allocation8 + $0xd98] ss:$48 sps:$4 sm:$0xff]  }
 0x421   :  { %11574 = vmatprep.subr.bf16.mxu1 %v15580_v45  ;;  %v15643_v45 = vld [vmem:[#allocation8 + $0xdf4] ss:$48 sps:$4 sm:$0xff]  }
 0x423   :  { %11329 = vmatpush1.bf16.msra.mxu0 %v15575_v48  ;;  %v15646_v48 = vld [vmem:[#allocation8 + $0xdfc] ss:$48 sps:$4 sm:$0xff]  }
 0x424   :  { %11575 = vmatpush1.bf16.msra.mxu1 %v15578_v46  ;;  %11330 = vmatprep.subr.bf16.mxu0 %v15583_v49  ;;  %v15641_v46 = vld [vmem:[#allocation8 + $0xdf0] ss:$48 sps:$4 sm:$0xff]   ;;  %v15644_v49 = vld [vmem:[#allocation8 + $0xdf8] ss:$48 sps:$4 sm:$0xff]  }
 0x425   :  { %11576 = vmatprep.subr.bf16.mxu1 %v15586_v24  ;;  %v15649_v24 = vld [vmem:[#allocation8 + $0xe54] ss:$48 sps:$4 sm:$0xff]  }
 0x427   :  { %11331 = vmatpush1.bf16.msra.mxu0 %v15581_v51  ;;  %v15652_v51 = vld [vmem:[#allocation8 + $0xe5c] ss:$48 sps:$4 sm:$0xff]  }
 0x428   :  { %11577 = vmatpush1.bf16.msra.mxu1 %v15584_v5  ;;  %11332 = vmatprep.subr.bf16.mxu0 %v15589_v52  ;;  %v15647_v5 = vld [vmem:[#allocation8 + $0xe50] ss:$48 sps:$4 sm:$0xff]   ;;  %v15650_v52 = vld [vmem:[#allocation8 + $0xe58] ss:$48 sps:$4 sm:$0xff]  }
 0x429   :  { %11578 = vmatprep.subr.bf16.mxu1 %v15592_v59  ;;  %v15655_v59 = vld [vmem:[#allocation8 + $0xeb4] ss:$48 sps:$4 sm:$0xff]  }
 0x42b   :  { %11333 = vmatpush1.bf16.msra.mxu0 %v15587_v57  ;;  %v15658_v57 = vld [vmem:[#allocation8 + $0xebc] ss:$48 sps:$4 sm:$0xff]  }
 0x42c   :  { %11579 = vmatpush1.bf16.msra.mxu1 %v15590_v30  ;;  %11334 = vmatprep.subr.bf16.mxu0 %v15595_v11  ;;  %v15653_v30 = vld [vmem:[#allocation8 + $0xeb0] ss:$48 sps:$4 sm:$0xff]   ;;  %v15656_v11 = vld [vmem:[#allocation8 + $0xeb8] ss:$48 sps:$4 sm:$0xff]  }
 0x42d   :  { %11580 = vmatprep.subr.bf16.mxu1 %v15598_v58  ;;  %v15661_v58 = vld [vmem:[#allocation8 + $0xf14] ss:$48 sps:$4 sm:$0xff]  }
 0x42f   :  { %11335 = vmatpush1.bf16.msra.mxu0 %v15593_v60  ;;  %v15664_v60 = vld [vmem:[#allocation8 + $0xf1c] ss:$48 sps:$4 sm:$0xff]  }
 0x430   :  { %11581 = vmatpush1.bf16.msra.mxu1 %v15596_v6  ;;  %11336 = vmatprep.subr.bf16.mxu0 %v15601_v61  ;;  %v15659_v6 = vld [vmem:[#allocation8 + $0xf10] ss:$48 sps:$4 sm:$0xff]   ;;  %v15662_v61 = vld [vmem:[#allocation8 + $0xf18] ss:$48 sps:$4 sm:$0xff]  }
 0x431   :  { %11582 = vmatprep.subr.bf16.mxu1 %v15604_v62  ;;  %v15667_v62 = vld [vmem:[#allocation8 + $0xf74] ss:$48 sps:$4 sm:$0xff]  }
 0x433   :  { %11337 = vmatpush1.bf16.msra.mxu0 %v15599_v25  ;;  %v15670_v25 = vld [vmem:[#allocation8 + $0xf7c] ss:$48 sps:$4 sm:$0xff]  }
 0x434   :  { %11583 = vmatpush1.bf16.msra.mxu1 %v15602_v8  ;;  %11338 = vmatprep.subr.bf16.mxu0 %v15607_v31  ;;  %v15665_v8 = vld [vmem:[#allocation8 + $0xf70] ss:$48 sps:$4 sm:$0xff]   ;;  %v15668_v31 = vld [vmem:[#allocation8 + $0xf78] ss:$48 sps:$4 sm:$0xff]  }
 0x435   :  { %11584 = vmatprep.subr.bf16.mxu1 %v15610_v9  ;;  %v15673_v9 = vld [vmem:[#allocation8 + $0xfd4] ss:$48 sps:$4 sm:$0xff]  }
 0x437   :  { %11339 = vmatpush1.bf16.msra.mxu0 %v15605_v12  ;;  %v15676_v12 = vld [vmem:[#allocation8 + $0xfdc] ss:$48 sps:$4 sm:$0xff]  }
 0x438   :  { %11585 = vmatpush1.bf16.msra.mxu1 %v15608_v13  ;;  %11349 = vmatprep.subr.bf16.mxu0 %v15613_v14  ;;  %v15671_v13 = vld [vmem:[#allocation8 + $0xfd0] ss:$48 sps:$4 sm:$0xff]   ;;  %v15674_v14 = vld [vmem:[#allocation8 + $0xfd8] ss:$48 sps:$4 sm:$0xff]  }
 0x439   :  { %11595 = vmatprep.subr.bf16.mxu1 %v15616_v15  ;;  %v15679_v15 = vld [vmem:[#allocation8 + $0x1034] ss:$48 sps:$4 sm:$0xff]  }
 0x43a   :  { %11341 = vmatmul.mubr.bf16.vlgmr.msra.gmra.mrb[16].mxu0 %v16922_v1 }
 0x43b   :  { %11587 = vmatmul.mubr.bf16.vlgmr.msra.gmra.mrb[16].mxu1 %v16922_v1  ;;  %11350 = vmatpush1.bf16.msra.mxu0 %v15611_v17  ;;  %v15682_v17 = vld [vmem:[#allocation8 + $0x103c] ss:$48 sps:$4 sm:$0xff]  }
 0x43c   :  { %11381 = vmatprep.mubr.bf16.mxu0 %v16924_v2  ;;  %11596 = vmatpush1.bf16.msra.mxu1 %v15614_v19  ;;  %v15677_v19 = vld [vmem:[#allocation8 + $0x1030] ss:$48 sps:$4 sm:$0xff]  }
 0x43d   :  { %11627 = vmatprep.mubr.bf16.mxu1 %v16924_v2  ;;  %11351 = vmatprep.subr.bf16.mxu0 %v15619_v21  ;;  %v15680_v21 = vld [vmem:[#allocation8 + $0x1038] ss:$48 sps:$4 sm:$0xff]  }
 0x43e   :  { %11597 = vmatprep.subr.bf16.mxu1 %v15622_v33  ;;  %v15685_v33 = vld [vmem:[#allocation8 + $0x1094] ss:$48 sps:$4 sm:$0xff]  }
 0x43f   :  { %11352 = vmatpush1.bf16.msra.mxu0 %v15617_v34  ;;  %v15688_v34 = vld [vmem:[#allocation8 + $0x109c] ss:$48 sps:$4 sm:$0xff]  }
 0x440   :  { %11598 = vmatpush1.bf16.msra.mxu1 %v15620_v63  ;;  %11353 = vmatprep.subr.bf16.mxu0 %v15625_v35  ;;  %v15683_v63 = vld [vmem:[#allocation8 + $0x1090] ss:$48 sps:$4 sm:$0xff]   ;;  %v15686_v35 = vld [vmem:[#allocation8 + $0x1098] ss:$48 sps:$4 sm:$0xff]  }
 0x441   :  { %11599 = vmatprep.subr.bf16.mxu1 %v15628_v36  ;;  %v15691_v36 = vld [vmem:[#allocation8 + $0x10f4] ss:$48 sps:$4 sm:$0xff]  }
 0x443   :  { %11354 = vmatpush1.bf16.msra.mxu0 %v15623_v18  ;;  %v15694_v18 = vld [vmem:[#allocation8 + $0x10fc] ss:$48 sps:$4 sm:$0xff]  }
 0x444   :  { %11600 = vmatpush1.bf16.msra.mxu1 %v15626_v37  ;;  %11355 = vmatprep.subr.bf16.mxu0 %v15631_v20  ;;  %v15689_v37 = vld [vmem:[#allocation8 + $0x10f0] ss:$48 sps:$4 sm:$0xff]   ;;  %v15692_v20 = vld [vmem:[#allocation8 + $0x10f8] ss:$48 sps:$4 sm:$0xff]  }
 0x445   :  { %11601 = vmatprep.subr.bf16.mxu1 %v15634_v39  ;;  %v15697_v39 = vld [vmem:[#allocation8 + $0x1154] ss:$48 sps:$4 sm:$0xff]  }
 0x447   :  { %11356 = vmatpush1.bf16.msra.mxu0 %v15629_v40  ;;  %v15700_v40 = vld [vmem:[#allocation8 + $0x115c] ss:$48 sps:$4 sm:$0xff]  }
 0x448   :  { %11602 = vmatpush1.bf16.msra.mxu1 %v15632_v41  ;;  %11357 = vmatprep.subr.bf16.mxu0 %v15637_v32  ;;  %v15695_v41 = vld [vmem:[#allocation8 + $0x1150] ss:$48 sps:$4 sm:$0xff]   ;;  %v15698_v32 = vld [vmem:[#allocation8 + $0x1158] ss:$48 sps:$4 sm:$0xff]  }
 0x449   :  { %11603 = vmatprep.subr.bf16.mxu1 %v15640_v42  ;;  %v15703_v42 = vld [vmem:[#allocation8 + $0x11b4] ss:$48 sps:$4 sm:$0xff]  }
 0x44b   :  { %11358 = vmatpush1.bf16.msra.mxu0 %v15635_v43  ;;  %v15706_v43 = vld [vmem:[#allocation8 + $0x11bc] ss:$48 sps:$4 sm:$0xff]  }
 0x44c   :  { %11604 = vmatpush1.bf16.msra.mxu1 %v15638_v44  ;;  %11359 = vmatprep.subr.bf16.mxu0 %v15643_v45  ;;  %v15701_v44 = vld [vmem:[#allocation8 + $0x11b0] ss:$48 sps:$4 sm:$0xff]   ;;  %v15704_v45 = vld [vmem:[#allocation8 + $0x11b8] ss:$48 sps:$4 sm:$0xff]  }
 0x44d   :  { %11605 = vmatprep.subr.bf16.mxu1 %v15646_v48  ;;  %v15709_v48 = vld [vmem:[#allocation8 + $0x1214] ss:$48 sps:$4 sm:$0xff]  }
 0x44f   :  { %11360 = vmatpush1.bf16.msra.mxu0 %v15641_v46  ;;  %v15712_v46 = vld [vmem:[#allocation8 + $0x121c] ss:$48 sps:$4 sm:$0xff]  }
 0x450   :  { %11606 = vmatpush1.bf16.msra.mxu1 %v15644_v49  ;;  %11361 = vmatprep.subr.bf16.mxu0 %v15649_v24  ;;  %v15707_v49 = vld [vmem:[#allocation8 + $0x1210] ss:$48 sps:$4 sm:$0xff]   ;;  %v15710_v24 = vld [vmem:[#allocation8 + $0x1218] ss:$48 sps:$4 sm:$0xff]  }
 0x451   :  { %11607 = vmatprep.subr.bf16.mxu1 %v15652_v51  ;;  %v15715_v51 = vld [vmem:[#allocation8 + $0x1274] ss:$48 sps:$4 sm:$0xff]  }
 0x453   :  { %11362 = vmatpush1.bf16.msra.mxu0 %v15647_v5  ;;  %v15718_v5 = vld [vmem:[#allocation8 + $0x127c] ss:$48 sps:$4 sm:$0xff]  }
 0x454   :  { %11608 = vmatpush1.bf16.msra.mxu1 %v15650_v52  ;;  %11363 = vmatprep.subr.bf16.mxu0 %v15655_v59  ;;  %v15713_v52 = vld [vmem:[#allocation8 + $0x1270] ss:$48 sps:$4 sm:$0xff]   ;;  %v15716_v59 = vld [vmem:[#allocation8 + $0x1278] ss:$48 sps:$4 sm:$0xff]  }
 0x455   :  { %11609 = vmatprep.subr.bf16.mxu1 %v15658_v57  ;;  %v15721_v57 = vld [vmem:[#allocation8 + $0x12d4] ss:$48 sps:$4 sm:$0xff]  }
 0x457   :  { %11364 = vmatpush1.bf16.msra.mxu0 %v15653_v30  ;;  %v15724_v30 = vld [vmem:[#allocation8 + $0x12dc] ss:$48 sps:$4 sm:$0xff]  }
 0x458   :  { %11610 = vmatpush1.bf16.msra.mxu1 %v15656_v11  ;;  %11365 = vmatprep.subr.bf16.mxu0 %v15661_v58  ;;  %v15719_v11 = vld [vmem:[#allocation8 + $0x12d0] ss:$48 sps:$4 sm:$0xff]   ;;  %v15722_v58 = vld [vmem:[#allocation8 + $0x12d8] ss:$48 sps:$4 sm:$0xff]  }
 0x459   :  { %11611 = vmatprep.subr.bf16.mxu1 %v15664_v60  ;;  %v15727_v60 = vld [vmem:[#allocation8 + $0x1334] ss:$48 sps:$4 sm:$0xff]  }
 0x45b   :  { %11366 = vmatpush1.bf16.msra.mxu0 %v15659_v6  ;;  %v15730_v6 = vld [vmem:[#allocation8 + $0x133c] ss:$48 sps:$4 sm:$0xff]  }
 0x45c   :  { %11612 = vmatpush1.bf16.msra.mxu1 %v15662_v61  ;;  %11367 = vmatprep.subr.bf16.mxu0 %v15667_v62  ;;  %v15725_v61 = vld [vmem:[#allocation8 + $0x1330] ss:$48 sps:$4 sm:$0xff]   ;;  %v15728_v62 = vld [vmem:[#allocation8 + $0x1338] ss:$48 sps:$4 sm:$0xff]  }
 0x45d   :  { %11613 = vmatprep.subr.bf16.mxu1 %v15670_v25  ;;  %v15733_v25 = vld [vmem:[#allocation8 + $0x1394] ss:$48 sps:$4 sm:$0xff]  }
 0x45f   :  { %11368 = vmatpush1.bf16.msra.mxu0 %v15665_v8  ;;  %v15736_v8 = vld [vmem:[#allocation8 + $0x139c] ss:$48 sps:$4 sm:$0xff]  }
 0x460   :  { %11614 = vmatpush1.bf16.msra.mxu1 %v15668_v31  ;;  %11369 = vmatprep.subr.bf16.mxu0 %v15673_v9  ;;  %v15731_v31 = vld [vmem:[#allocation8 + $0x1390] ss:$48 sps:$4 sm:$0xff]  }
 0x461   :  { %11615 = vmatprep.subr.bf16.mxu1 %v15676_v12  ;;  %v4951_v9 = vld [vmem:[#allocation10] sm:$0xff]  ;;  %v15734_v12 = vld [vmem:[#allocation8 + $0x1398] ss:$48 sps:$4 sm:$0xff]  }
 0x463   :  { %11370 = vmatpush1.bf16.msra.mxu0 %v15671_v13  ;;  %v15739_v13 = vld [vmem:[#allocation8 + $0x13f4] ss:$48 sps:$4 sm:$0xff]  }
 0x464   :  { %11616 = vmatpush1.bf16.msra.mxu1 %v15674_v14  ;;  %11371 = vmatprep.subr.bf16.mxu0 %v15679_v15  ;;  %v15742_v14 = vld [vmem:[#allocation8 + $0x13fc] ss:$48 sps:$4 sm:$0xff]   ;;  %v4958_v15 = vrot.slane %v4951_v9, %v16882_v16 }
 0x465   :  { %11617 = vmatprep.subr.bf16.mxu1 %v15682_v17  ;;  %v4966_v17 = vrot.slane %v4951_v9, %v16910_v47 }
 0x467   :  { %11372 = vmatpush1.bf16.msra.mxu0 %v15677_v19  ;;  %v4962_v19 = vrot.slane %v4951_v9, %v16872_v7 }
 0x468   :  { %11618 = vmatpush1.bf16.msra.mxu1 %v15680_v21  ;;  %11373 = vmatprep.subr.bf16.mxu0 %v15685_v33  ;;  %v15737_v21 = vld [vmem:[#allocation8 + $0x13f0] ss:$48 sps:$4 sm:$0xff]   ;;  %v4970_v33 = vrot.slane %v4951_v9, %v16889_v27  ;;  %v15778_v9 = vld [vmem:[#allocation8 + $0x163c] ss:$48 sps:$4 sm:$0xff]  }
 0x469   :  { %11619 = vmatprep.subr.bf16.mxu1 %v15688_v34  ;;  %v15740_v34 = vld [vmem:[#allocation8 + $0x13f8] ss:$48 sps:$4 sm:$0xff]  }
 0x46b   :  { %11374 = vmatpush1.bf16.msra.mxu0 %v15683_v63  ;;  %v15745_v63 = vld [vmem:[#allocation8 + $0x1454] ss:$48 sps:$4 sm:$0xff]  }
 0x46c   :  { %11620 = vmatpush1.bf16.msra.mxu1 %v15686_v35  ;;  %11375 = vmatprep.subr.bf16.mxu0 %v15691_v36  ;;  %v15748_v36 = vld [vmem:[#allocation8 + $0x145c] ss:$48 sps:$4 sm:$0xff]  }
 0x46d   :  { %11621 = vmatprep.subr.bf16.mxu1 %v15694_v18 }
 0x46f   :  { %11376 = vmatpush1.bf16.msra.mxu0 %v15689_v37 }
 0x470   :  { %11622 = vmatpush1.bf16.msra.mxu1 %v15692_v20  ;;  %11377 = vmatprep.subr.bf16.mxu0 %v15697_v39 }
 0x471   :  { %11623 = vmatprep.subr.bf16.mxu1 %v15700_v40 }
 0x473   :  { %11378 = vmatpush1.bf16.msra.mxu0 %v15695_v41 }
 0x474   :  { %11624 = vmatpush1.bf16.msra.mxu1 %v15698_v32  ;;  %11379 = vmatprep.subr.bf16.mxu0 %v15703_v42  ;;  %v15743_v42 = vld [vmem:[#allocation8 + $0x1450] ss:$48 sps:$4 sm:$0xff]  }
 0x475   :  { %11625 = vmatprep.subr.bf16.mxu1 %v15706_v43 }
 0x477   :  { %11380 = vmatpush1.bf16.msra.mxu0 %v15701_v44 }
 0x478   :  { %11626 = vmatpush1.bf16.msra.mxu1 %v15704_v45  ;;  %11390 = vmatprep.subr.bf16.mxu0 %v15709_v48  ;;  %v15746_v48 = vld [vmem:[#allocation8 + $0x1458] ss:$48 sps:$4 sm:$0xff]  }
 0x479   :  { %11636 = vmatprep.subr.bf16.mxu1 %v15712_v46  ;;  %v15751_v46 = vld [vmem:[#allocation8 + $0x14b4] ss:$48 sps:$4 sm:$0xff]  }
 0x47a   :  { %11382 = vmatmul.mubr.bf16.vlgmr.msra.gmra.mrb[16].mxu0 %v16940_v38 }
 0x47b   :  { %11628 = vmatmul.mubr.bf16.vlgmr.msra.gmra.mrb[16].mxu1 %v16940_v38  ;;  %11391 = vmatpush1.bf16.msra.mxu0 %v15707_v49 }
 0x47c   :  { %11422 = vmatprep.mubr.bf16.mxu0 %v16942_v29  ;;  %11637 = vmatpush1.bf16.msra.mxu1 %v15710_v24  ;;  %v15754_v24 = vld [vmem:[#allocation8 + $0x14bc] ss:$48 sps:$4 sm:$0xff]  }
 0x47d   :  { %11668 = vmatprep.mubr.bf16.mxu1 %v16942_v29  ;;  %11392 = vmatprep.subr.bf16.mxu0 %v15715_v51  ;;  %v15749_v51 = vld [vmem:[#allocation8 + $0x14b0] ss:$48 sps:$4 sm:$0xff]  }
 0x47e   :  { %11638 = vmatprep.subr.bf16.mxu1 %v15718_v5  ;;  %v15752_v5 = vld [vmem:[#allocation8 + $0x14b8] ss:$48 sps:$4 sm:$0xff]  }
 0x47f   :  { %11393 = vmatpush1.bf16.msra.mxu0 %v15713_v52  ;;  %v15757_v52 = vld [vmem:[#allocation8 + $0x1514] ss:$48 sps:$4 sm:$0xff]  }
 0x480   :  { %11639 = vmatpush1.bf16.msra.mxu1 %v15716_v59  ;;  %11394 = vmatprep.subr.bf16.mxu0 %v15721_v57  ;;  %v15760_v59 = vld [vmem:[#allocation8 + $0x151c] ss:$48 sps:$4 sm:$0xff]   ;;  %v15755_v57 = vld [vmem:[#allocation8 + $0x1510] ss:$48 sps:$4 sm:$0xff]  }
 0x481   :  { %11640 = vmatprep.subr.bf16.mxu1 %v15724_v30  ;;  %v15758_v30 = vld [vmem:[#allocation8 + $0x1518] ss:$48 sps:$4 sm:$0xff]  }
 0x483   :  { %11395 = vmatpush1.bf16.msra.mxu0 %v15719_v11  ;;  %v15763_v11 = vld [vmem:[#allocation8 + $0x1574] ss:$48 sps:$4 sm:$0xff]  }
 0x484   :  { %11641 = vmatpush1.bf16.msra.mxu1 %v15722_v58  ;;  %11396 = vmatprep.subr.bf16.mxu0 %v15727_v60  ;;  %v15766_v58 = vld [vmem:[#allocation8 + $0x157c] ss:$48 sps:$4 sm:$0xff]   ;;  %v15761_v60 = vld [vmem:[#allocation8 + $0x1570] ss:$48 sps:$4 sm:$0xff]  }
 0x485   :  { %11642 = vmatprep.subr.bf16.mxu1 %v15730_v6  ;;  %v15764_v6 = vld [vmem:[#allocation8 + $0x1578] ss:$48 sps:$4 sm:$0xff]  }
 0x487   :  { %11397 = vmatpush1.bf16.msra.mxu0 %v15725_v61  ;;  %v15769_v61 = vld [vmem:[#allocation8 + $0x15d4] ss:$48 sps:$4 sm:$0xff]  }
 0x488   :  { %11643 = vmatpush1.bf16.msra.mxu1 %v15728_v62  ;;  %11398 = vmatprep.subr.bf16.mxu0 %v15733_v25  ;;  %v15772_v62 = vld [vmem:[#allocation8 + $0x15dc] ss:$48 sps:$4 sm:$0xff]   ;;  %v15767_v25 = vld [vmem:[#allocation8 + $0x15d0] ss:$48 sps:$4 sm:$0xff]  }
 0x489   :  { %11644 = vmatprep.subr.bf16.mxu1 %v15736_v8  ;;  %v15770_v8 = vld [vmem:[#allocation8 + $0x15d8] ss:$48 sps:$4 sm:$0xff]  }
 0x48b   :  { %11399 = vmatpush1.bf16.msra.mxu0 %v15731_v31  ;;  %v15775_v31 = vld [vmem:[#allocation8 + $0x1634] ss:$48 sps:$4 sm:$0xff]  }
 0x48c   :  { %11645 = vmatpush1.bf16.msra.mxu1 %v15734_v12  ;;  %11400 = vmatprep.subr.bf16.mxu0 %v15739_v13  ;;  %v15773_v12 = vld [vmem:[#allocation8 + $0x1630] ss:$48 sps:$4 sm:$0xff]   ;;  %v15776_v13 = vld [vmem:[#allocation8 + $0x1638] ss:$48 sps:$4 sm:$0xff]  }
 0x48d   :  { %v11014_v35 = vpop.f32.mrb[12].mxu0  ;;  %11646 = vmatprep.subr.bf16.mxu1 %v15742_v14  ;;  %v15781_v14 = vld [vmem:[#allocation8 + $0x1694] ss:$48 sps:$4 sm:$0xff]  }
 0x48e   :  { %v13929_v18 = vadd.f32 %v11014_v35, %v4958_v15  ;;  %v11260_v37 = vpop.f32.mrb[12].mxu1  ;;  %v11016_v20 = vpop.f32.mrb[13].mxu0  ;;  %v15784_v15 = vld [vmem:[#allocation8 + $0x169c] ss:$48 sps:$4 sm:$0xff]   ;;  %v15793_v35 = vld [vmem:[#allocation8 + $0x1754] ss:$48 sps:$4 sm:$0xff]  }
 0x48f   :  { %v13931_v39 = vadd.f32 %v11260_v37, %v4966_v17  ;;  %v13930_v40 = vadd.f32 %v11016_v20, %v4962_v19  ;;  %v11262_v41 = vpop.f32.mrb[13].mxu1  ;;  %v11018_v32 = vpop.f32.mrb[14].mxu0  ;;  %11401 = vmatpush1.bf16.msra.mxu0 %v15737_v21  ;;  %v15779_v17 = vld [vmem:[#allocation8 + $0x1690] ss:$48 sps:$4 sm:$0xff]   ;;  %v15782_v19 = vld [vmem:[#allocation8 + $0x1698] ss:$48 sps:$4 sm:$0xff]  }
 0x490   :  { %12251 = vst [vmem:[#allocation11] sm:$0xff] %v13929_v18  ;;  %v13932_v43 = vadd.f32 %v11262_v41, %v4970_v33  ;;  %v11264_v44 = vpop.f32.mrb[14].mxu1  ;;  %11647 = vmatpush1.bf16.msra.mxu1 %v15740_v34  ;;  %v11019_v45 = vpop.f32.mrb[15].mxu0  ;;  %11402 = vmatprep.subr.bf16.mxu0 %v15745_v63  ;;  %v15787_v21 = vld [vmem:[#allocation8 + $0x16f4] ss:$48 sps:$4 sm:$0xff]  }
 0x491   :  { %12253 = vst [vmem:[#allocation11 + $0x10] sm:$0xff] %v13931_v39  ;;  %12252 = vst [vmem:[#allocation11 + $0x8] sm:$0xff] %v13930_v40  ;;  %v11265_v49 = vpop.f32.mrb[15].mxu1  ;;  %11648 = vmatprep.subr.bf16.mxu1 %v15748_v36  ;;  %v15790_v33 = vld [vmem:[#allocation8 + $0x16fc] ss:$48 sps:$4 sm:$0xff]  }
 0x492   :  { %12254 = vst [vmem:[#allocation11 + $0x18] sm:$0xff] %v13932_v43  ;;  %v15785_v34 = vld [vmem:[#allocation8 + $0x16f0] ss:$48 sps:$4 sm:$0xff]   ;;  %v15788_v63 = vld [vmem:[#allocation8 + $0x16f8] ss:$48 sps:$4 sm:$0xff]  }
 0x493   :  { %11403 = vmatpush1.bf16.msra.mxu0 %v15743_v42  ;;  %v15796_v36 = vld [vmem:[#allocation8 + $0x175c] ss:$48 sps:$4 sm:$0xff]   ;;  %v15791_v18 = vld [vmem:[#allocation8 + $0x1750] ss:$48 sps:$4 sm:$0xff]   ;;  %v15794_v37 = vld [vmem:[#allocation8 + $0x1758] ss:$48 sps:$4 sm:$0xff]  }
 0x494   :  { %11649 = vmatpush1.bf16.msra.mxu1 %v15746_v48  ;;  %11404 = vmatprep.subr.bf16.mxu0 %v15751_v46  ;;  %v15799_v20 = vld [vmem:[#allocation8 + $0x17b4] ss:$48 sps:$4 sm:$0xff]   ;;  %v15802_v39 = vld [vmem:[#allocation8 + $0x17bc] ss:$48 sps:$4 sm:$0xff]   ;;  %v15797_v40 = vld [vmem:[#allocation8 + $0x17b0] ss:$48 sps:$4 sm:$0xff]  }
 0x495   :  { %11650 = vmatprep.subr.bf16.mxu1 %v15754_v24  ;;  %v15800_v41 = vld [vmem:[#allocation8 + $0x17b8] ss:$48 sps:$4 sm:$0xff]   ;;  %v15805_v32 = vld [vmem:[#allocation8 + $0x1814] ss:$48 sps:$4 sm:$0xff]   ;;  %v15808_v42 = vld [vmem:[#allocation8 + $0x181c] ss:$48 sps:$4 sm:$0xff]  }
 0x496   :  { %v15803_v43 = vld [vmem:[#allocation8 + $0x1810] ss:$48 sps:$4 sm:$0xff]   ;;  %v15806_v44 = vld [vmem:[#allocation8 + $0x1818] ss:$48 sps:$4 sm:$0xff]   ;;  %v15811_v45 = vld [vmem:[#allocation8 + $0x1874] ss:$48 sps:$4 sm:$0xff]  }
 0x497   :  { %11405 = vmatpush1.bf16.msra.mxu0 %v15749_v51  ;;  %v15814_v48 = vld [vmem:[#allocation8 + $0x187c] ss:$48 sps:$4 sm:$0xff]   ;;  %v15809_v46 = vld [vmem:[#allocation8 + $0x1870] ss:$48 sps:$4 sm:$0xff]   ;;  %v15812_v49 = vld [vmem:[#allocation8 + $0x1878] ss:$48 sps:$4 sm:$0xff]  }
 0x498   :  { %11651 = vmatpush1.bf16.msra.mxu1 %v15752_v5  ;;  %11406 = vmatprep.subr.bf16.mxu0 %v15757_v52  ;;  %v15817_v24 = vld [vmem:[#allocation8 + $0x18d4] ss:$48 sps:$4 sm:$0xff]   ;;  %v15820_v51 = vld [vmem:[#allocation8 + $0x18dc] ss:$48 sps:$4 sm:$0xff]   ;;  %v15815_v5 = vld [vmem:[#allocation8 + $0x18d0] ss:$48 sps:$4 sm:$0xff]  }
 0x499   :  { %11652 = vmatprep.subr.bf16.mxu1 %v15760_v59  ;;  %v15818_v52 = vld [vmem:[#allocation8 + $0x18d8] ss:$48 sps:$4 sm:$0xff]   ;;  %v15823_v59 = vld [vmem:[#allocation8 + $0x1934] ss:$48 sps:$4 sm:$0xff]  }
 0x49b   :  { %11407 = vmatpush1.bf16.msra.mxu0 %v15755_v57  ;;  %v15826_v57 = vld [vmem:[#allocation8 + $0x193c] ss:$48 sps:$4 sm:$0xff]  }
 0x49c   :  { %11653 = vmatpush1.bf16.msra.mxu1 %v15758_v30  ;;  %11408 = vmatprep.subr.bf16.mxu0 %v15763_v11  ;;  %v15821_v30 = vld [vmem:[#allocation8 + $0x1930] ss:$48 sps:$4 sm:$0xff]   ;;  %v15824_v11 = vld [vmem:[#allocation8 + $0x1938] ss:$48 sps:$4 sm:$0xff]  }
 0x49d   :  { %11654 = vmatprep.subr.bf16.mxu1 %v15766_v58  ;;  %v15829_v58 = vld [vmem:[#allocation8 + $0x1994] ss:$48 sps:$4 sm:$0xff]  }
 0x49f   :  { %11409 = vmatpush1.bf16.msra.mxu0 %v15761_v60  ;;  %v15832_v60 = vld [vmem:[#allocation8 + $0x199c] ss:$48 sps:$4 sm:$0xff]  }
 0x4a0   :  { %11655 = vmatpush1.bf16.msra.mxu1 %v15764_v6  ;;  %11410 = vmatprep.subr.bf16.mxu0 %v15769_v61  ;;  %v15827_v6 = vld [vmem:[#allocation8 + $0x1990] ss:$48 sps:$4 sm:$0xff]   ;;  %v15830_v61 = vld [vmem:[#allocation8 + $0x1998] ss:$48 sps:$4 sm:$0xff]  }
 0x4a1   :  { %11656 = vmatprep.subr.bf16.mxu1 %v15772_v62  ;;  %v15835_v62 = vld [vmem:[#allocation8 + $0x19f4] ss:$48 sps:$4 sm:$0xff]  }
 0x4a3   :  { %11411 = vmatpush1.bf16.msra.mxu0 %v15767_v25  ;;  %v15838_v25 = vld [vmem:[#allocation8 + $0x19fc] ss:$48 sps:$4 sm:$0xff]  }
 0x4a4   :  { %11657 = vmatpush1.bf16.msra.mxu1 %v15770_v8  ;;  %11412 = vmatprep.subr.bf16.mxu0 %v15775_v31  ;;  %v15833_v8 = vld [vmem:[#allocation8 + $0x19f0] ss:$48 sps:$4 sm:$0xff]   ;;  %v15836_v31 = vld [vmem:[#allocation8 + $0x19f8] ss:$48 sps:$4 sm:$0xff]  }
 0x4a5   :  { %11658 = vmatprep.subr.bf16.mxu1 %v15778_v9  ;;  %v15841_v9 = vld [vmem:[#allocation8 + $0x1a54] ss:$48 sps:$4 sm:$0xff]  }
 0x4a7   :  { %11413 = vmatpush1.bf16.msra.mxu0 %v15773_v12  ;;  %v15844_v12 = vld [vmem:[#allocation8 + $0x1a5c] ss:$48 sps:$4 sm:$0xff]  }
 0x4a8   :  { %11659 = vmatpush1.bf16.msra.mxu1 %v15776_v13  ;;  %11414 = vmatprep.subr.bf16.mxu0 %v15781_v14  ;;  %v15839_v13 = vld [vmem:[#allocation8 + $0x1a50] ss:$48 sps:$4 sm:$0xff]   ;;  %v15842_v14 = vld [vmem:[#allocation8 + $0x1a58] ss:$48 sps:$4 sm:$0xff]  }
 0x4a9   :  { %11660 = vmatprep.subr.bf16.mxu1 %v15784_v15  ;;  %v15847_v15 = vld [vmem:[#allocation8 + $0x1ab4] ss:$48 sps:$4 sm:$0xff]  }
 0x4ab   :  { %11415 = vmatpush1.bf16.msra.mxu0 %v15779_v17  ;;  %v15850_v17 = vld [vmem:[#allocation8 + $0x1abc] ss:$48 sps:$4 sm:$0xff]  }
 0x4ac   :  { %11661 = vmatpush1.bf16.msra.mxu1 %v15782_v19  ;;  %11416 = vmatprep.subr.bf16.mxu0 %v15787_v21  ;;  %v15845_v19 = vld [vmem:[#allocation8 + $0x1ab0] ss:$48 sps:$4 sm:$0xff]   ;;  %v15848_v21 = vld [vmem:[#allocation8 + $0x1ab8] ss:$48 sps:$4 sm:$0xff]  }
 0x4ad   :  { %11662 = vmatprep.subr.bf16.mxu1 %v15790_v33  ;;  %v15853_v33 = vld [vmem:[#allocation8 + $0x1b14] ss:$48 sps:$4 sm:$0xff]  }
 0x4af   :  { %11417 = vmatpush1.bf16.msra.mxu0 %v15785_v34  ;;  %v15856_v34 = vld [vmem:[#allocation8 + $0x1b1c] ss:$48 sps:$4 sm:$0xff]  }
 0x4b0   :  { %11663 = vmatpush1.bf16.msra.mxu1 %v15788_v63  ;;  %11418 = vmatprep.subr.bf16.mxu0 %v15793_v35  ;;  %v15851_v63 = vld [vmem:[#allocation8 + $0x1b10] ss:$48 sps:$4 sm:$0xff]   ;;  %v15854_v35 = vld [vmem:[#allocation8 + $0x1b18] ss:$48 sps:$4 sm:$0xff]  }
 0x4b1   :  { %11664 = vmatprep.subr.bf16.mxu1 %v15796_v36  ;;  %v15859_v36 = vld [vmem:[#allocation8 + $0x1b74] ss:$48 sps:$4 sm:$0xff]  }
 0x4b3   :  { %11419 = vmatpush1.bf16.msra.mxu0 %v15791_v18  ;;  %v15862_v18 = vld [vmem:[#allocation8 + $0x1b7c] ss:$48 sps:$4 sm:$0xff]  }
 0x4b4   :  { %11665 = vmatpush1.bf16.msra.mxu1 %v15794_v37  ;;  %11420 = vmatprep.subr.bf16.mxu0 %v15799_v20  ;;  %v15857_v37 = vld [vmem:[#allocation8 + $0x1b70] ss:$48 sps:$4 sm:$0xff]   ;;  %v15860_v20 = vld [vmem:[#allocation8 + $0x1b78] ss:$48 sps:$4 sm:$0xff]  }
 0x4b5   :  { %11666 = vmatprep.subr.bf16.mxu1 %v15802_v39  ;;  %v15865_v39 = vld [vmem:[#allocation8 + $0x1bd4] ss:$48 sps:$4 sm:$0xff]  }
 0x4b7   :  { %11421 = vmatpush1.bf16.msra.mxu0 %v15797_v40  ;;  %v15868_v40 = vld [vmem:[#allocation8 + $0x1bdc] ss:$48 sps:$4 sm:$0xff]  }
 0x4b8   :  { %11667 = vmatpush1.bf16.msra.mxu1 %v15800_v41  ;;  %11431 = vmatprep.subr.bf16.mxu0 %v15805_v32  ;;  %v15863_v41 = vld [vmem:[#allocation8 + $0x1bd0] ss:$48 sps:$4 sm:$0xff]   ;;  %v15866_v32 = vld [vmem:[#allocation8 + $0x1bd8] ss:$48 sps:$4 sm:$0xff]  }
 0x4b9   :  { %11677 = vmatprep.subr.bf16.mxu1 %v15808_v42  ;;  %v15871_v42 = vld [vmem:[#allocation8 + $0x1c34] ss:$48 sps:$4 sm:$0xff]  }
 0x4ba   :  { %11423 = vmatmul.mubr.bf16.vlgmr.msra.gmra.mrb[16].mxu0 %v16969_v22 }
 0x4bb   :  { %11669 = vmatmul.mubr.bf16.vlgmr.msra.gmra.mrb[16].mxu1 %v16969_v22  ;;  %11432 = vmatpush1.bf16.msra.mxu0 %v15803_v43  ;;  %v15874_v43 = vld [vmem:[#allocation8 + $0x1c3c] ss:$48 sps:$4 sm:$0xff]  }
 0x4bc   :  { %11463 = vmatprep.mubr.bf16.mxu0 %v16971_v23  ;;  %11678 = vmatpush1.bf16.msra.mxu1 %v15806_v44  ;;  %v15869_v44 = vld [vmem:[#allocation8 + $0x1c30] ss:$48 sps:$4 sm:$0xff]  }
 0x4bd   :  { %11709 = vmatprep.mubr.bf16.mxu1 %v16971_v23  ;;  %11433 = vmatprep.subr.bf16.mxu0 %v15811_v45  ;;  %v15872_v45 = vld [vmem:[#allocation8 + $0x1c38] ss:$48 sps:$4 sm:$0xff]  }
 0x4be   :  { %11679 = vmatprep.subr.bf16.mxu1 %v15814_v48  ;;  %v15877_v48 = vld [vmem:[#allocation8 + $0x1c94] ss:$48 sps:$4 sm:$0xff]  }
 0x4bf   :  { %11434 = vmatpush1.bf16.msra.mxu0 %v15809_v46  ;;  %v15880_v46 = vld [vmem:[#allocation8 + $0x1c9c] ss:$48 sps:$4 sm:$0xff]  }
 0x4c0   :  { %11680 = vmatpush1.bf16.msra.mxu1 %v15812_v49  ;;  %11435 = vmatprep.subr.bf16.mxu0 %v15817_v24  ;;  %v15875_v49 = vld [vmem:[#allocation8 + $0x1c90] ss:$48 sps:$4 sm:$0xff]   ;;  %v15878_v24 = vld [vmem:[#allocation8 + $0x1c98] ss:$48 sps:$4 sm:$0xff]  }
 0x4c1   :  { %11681 = vmatprep.subr.bf16.mxu1 %v15820_v51  ;;  %v15883_v51 = vld [vmem:[#allocation8 + $0x1cf4] ss:$48 sps:$4 sm:$0xff]  }
 0x4c3   :  { %11436 = vmatpush1.bf16.msra.mxu0 %v15815_v5  ;;  %v15886_v5 = vld [vmem:[#allocation8 + $0x1cfc] ss:$48 sps:$4 sm:$0xff]  }
 0x4c4   :  { %11682 = vmatpush1.bf16.msra.mxu1 %v15818_v52  ;;  %11437 = vmatprep.subr.bf16.mxu0 %v15823_v59  ;;  %v15881_v52 = vld [vmem:[#allocation8 + $0x1cf0] ss:$48 sps:$4 sm:$0xff]   ;;  %v15884_v59 = vld [vmem:[#allocation8 + $0x1cf8] ss:$48 sps:$4 sm:$0xff]  }
 0x4c5   :  { %11683 = vmatprep.subr.bf16.mxu1 %v15826_v57  ;;  %v15889_v57 = vld [vmem:[#allocation8 + $0x1d54] ss:$48 sps:$4 sm:$0xff]  }
 0x4c7   :  { %11438 = vmatpush1.bf16.msra.mxu0 %v15821_v30  ;;  %v15892_v30 = vld [vmem:[#allocation8 + $0x1d5c] ss:$48 sps:$4 sm:$0xff]  }
 0x4c8   :  { %11684 = vmatpush1.bf16.msra.mxu1 %v15824_v11  ;;  %11439 = vmatprep.subr.bf16.mxu0 %v15829_v58  ;;  %v15887_v11 = vld [vmem:[#allocation8 + $0x1d50] ss:$48 sps:$4 sm:$0xff]   ;;  %v15890_v58 = vld [vmem:[#allocation8 + $0x1d58] ss:$48 sps:$4 sm:$0xff]  }
 0x4c9   :  { %11685 = vmatprep.subr.bf16.mxu1 %v15832_v60  ;;  %v15895_v60 = vld [vmem:[#allocation8 + $0x1db4] ss:$48 sps:$4 sm:$0xff]  }
 0x4cb   :  { %11440 = vmatpush1.bf16.msra.mxu0 %v15827_v6  ;;  %v15898_v6 = vld [vmem:[#allocation8 + $0x1dbc] ss:$48 sps:$4 sm:$0xff]  }
 0x4cc   :  { %11686 = vmatpush1.bf16.msra.mxu1 %v15830_v61  ;;  %11441 = vmatprep.subr.bf16.mxu0 %v15835_v62  ;;  %v15893_v61 = vld [vmem:[#allocation8 + $0x1db0] ss:$48 sps:$4 sm:$0xff]   ;;  %v15896_v62 = vld [vmem:[#allocation8 + $0x1db8] ss:$48 sps:$4 sm:$0xff]  }
 0x4cd   :  { %11687 = vmatprep.subr.bf16.mxu1 %v15838_v25  ;;  %v15901_v25 = vld [vmem:[#allocation8 + $0x1e14] ss:$48 sps:$4 sm:$0xff]  }
 0x4cf   :  { %11442 = vmatpush1.bf16.msra.mxu0 %v15833_v8  ;;  %v15904_v8 = vld [vmem:[#allocation8 + $0x1e1c] ss:$48 sps:$4 sm:$0xff]  }
 0x4d0   :  { %11688 = vmatpush1.bf16.msra.mxu1 %v15836_v31  ;;  %11443 = vmatprep.subr.bf16.mxu0 %v15841_v9  ;;  %v15899_v31 = vld [vmem:[#allocation8 + $0x1e10] ss:$48 sps:$4 sm:$0xff]   ;;  %v15902_v9 = vld [vmem:[#allocation8 + $0x1e18] ss:$48 sps:$4 sm:$0xff]  }
 0x4d1   :  { %11689 = vmatprep.subr.bf16.mxu1 %v15844_v12  ;;  %v15907_v12 = vld [vmem:[#allocation8 + $0x1e74] ss:$48 sps:$4 sm:$0xff]  }
 0x4d3   :  { %11444 = vmatpush1.bf16.msra.mxu0 %v15839_v13  ;;  %v15910_v13 = vld [vmem:[#allocation8 + $0x1e7c] ss:$48 sps:$4 sm:$0xff]  }
 0x4d4   :  { %11690 = vmatpush1.bf16.msra.mxu1 %v15842_v14  ;;  %11445 = vmatprep.subr.bf16.mxu0 %v15847_v15  ;;  %v15905_v14 = vld [vmem:[#allocation8 + $0x1e70] ss:$48 sps:$4 sm:$0xff]   ;;  %v15908_v15 = vld [vmem:[#allocation8 + $0x1e78] ss:$48 sps:$4 sm:$0xff]  }
 0x4d5   :  { %11691 = vmatprep.subr.bf16.mxu1 %v15850_v17  ;;  %v15913_v17 = vld [vmem:[#allocation8 + $0x1ed4] ss:$48 sps:$4 sm:$0xff]  }
 0x4d7   :  { %11446 = vmatpush1.bf16.msra.mxu0 %v15845_v19  ;;  %v15916_v19 = vld [vmem:[#allocation8 + $0x1edc] ss:$48 sps:$4 sm:$0xff]  }
 0x4d8   :  { %11692 = vmatpush1.bf16.msra.mxu1 %v15848_v21  ;;  %11447 = vmatprep.subr.bf16.mxu0 %v15853_v33  ;;  %v15911_v21 = vld [vmem:[#allocation8 + $0x1ed0] ss:$48 sps:$4 sm:$0xff]   ;;  %v15914_v33 = vld [vmem:[#allocation8 + $0x1ed8] ss:$48 sps:$4 sm:$0xff]  }
 0x4d9   :  { %11693 = vmatprep.subr.bf16.mxu1 %v15856_v34  ;;  %v15919_v34 = vld [vmem:[#allocation8 + $0x1f34] ss:$48 sps:$4 sm:$0xff]  }
 0x4db   :  { %11448 = vmatpush1.bf16.msra.mxu0 %v15851_v63  ;;  %v15922_v63 = vld [vmem:[#allocation8 + $0x1f3c] ss:$48 sps:$4 sm:$0xff]  }
 0x4dc   :  { %11694 = vmatpush1.bf16.msra.mxu1 %v15854_v35  ;;  %11449 = vmatprep.subr.bf16.mxu0 %v15859_v36  ;;  %v15917_v35 = vld [vmem:[#allocation8 + $0x1f30] ss:$48 sps:$4 sm:$0xff]   ;;  %v15920_v36 = vld [vmem:[#allocation8 + $0x1f38] ss:$48 sps:$4 sm:$0xff]  }
 0x4dd   :  { %11695 = vmatprep.subr.bf16.mxu1 %v15862_v18  ;;  %v15925_v18 = vld [vmem:[#allocation8 + $0x1f94] ss:$48 sps:$4 sm:$0xff]  }
 0x4df   :  { %11450 = vmatpush1.bf16.msra.mxu0 %v15857_v37  ;;  %v15928_v37 = vld [vmem:[#allocation8 + $0x1f9c] ss:$48 sps:$4 sm:$0xff]  }
 0x4e0   :  { %11696 = vmatpush1.bf16.msra.mxu1 %v15860_v20  ;;  %11451 = vmatprep.subr.bf16.mxu0 %v15865_v39  ;;  %v15923_v20 = vld [vmem:[#allocation8 + $0x1f90] ss:$48 sps:$4 sm:$0xff]   ;;  %v15926_v39 = vld [vmem:[#allocation8 + $0x1f98] ss:$48 sps:$4 sm:$0xff]  }
 0x4e1   :  { %11697 = vmatprep.subr.bf16.mxu1 %v15868_v40  ;;  %v15931_v40 = vld [vmem:[#allocation8 + $0x1ff4] ss:$48 sps:$4 sm:$0xff]  }
 0x4e3   :  { %11452 = vmatpush1.bf16.msra.mxu0 %v15863_v41  ;;  %v15934_v41 = vld [vmem:[#allocation8 + $0x1ffc] ss:$48 sps:$4 sm:$0xff]  }
 0x4e4   :  { %11698 = vmatpush1.bf16.msra.mxu1 %v15866_v32  ;;  %11453 = vmatprep.subr.bf16.mxu0 %v15871_v42  ;;  %v15929_v32 = vld [vmem:[#allocation8 + $0x1ff0] ss:$48 sps:$4 sm:$0xff]   ;;  %v15932_v42 = vld [vmem:[#allocation8 + $0x1ff8] ss:$48 sps:$4 sm:$0xff]  }
 0x4e5   :  { %11699 = vmatprep.subr.bf16.mxu1 %v15874_v43  ;;  %v15937_v43 = vld [vmem:[#allocation8 + $0x2054] ss:$48 sps:$4 sm:$0xff]  }
 0x4e7   :  { %11454 = vmatpush1.bf16.msra.mxu0 %v15869_v44  ;;  %v15940_v44 = vld [vmem:[#allocation8 + $0x205c] ss:$48 sps:$4 sm:$0xff]  }
 0x4e8   :  { %11700 = vmatpush1.bf16.msra.mxu1 %v15872_v45  ;;  %11455 = vmatprep.subr.bf16.mxu0 %v15877_v48  ;;  %v15935_v45 = vld [vmem:[#allocation8 + $0x2050] ss:$48 sps:$4 sm:$0xff]   ;;  %v15938_v48 = vld [vmem:[#allocation8 + $0x2058] ss:$48 sps:$4 sm:$0xff]  }
 0x4e9   :  { %11701 = vmatprep.subr.bf16.mxu1 %v15880_v46  ;;  %v15943_v46 = vld [vmem:[#allocation8 + $0x20b4] ss:$48 sps:$4 sm:$0xff]  }
 0x4eb   :  { %11456 = vmatpush1.bf16.msra.mxu0 %v15875_v49  ;;  %v15946_v49 = vld [vmem:[#allocation8 + $0x20bc] ss:$48 sps:$4 sm:$0xff]  }
 0x4ec   :  { %11702 = vmatpush1.bf16.msra.mxu1 %v15878_v24  ;;  %11457 = vmatprep.subr.bf16.mxu0 %v15883_v51  ;;  %v15941_v24 = vld [vmem:[#allocation8 + $0x20b0] ss:$48 sps:$4 sm:$0xff]   ;;  %v15944_v51 = vld [vmem:[#allocation8 + $0x20b8] ss:$48 sps:$4 sm:$0xff]  }
 0x4ed   :  { %11703 = vmatprep.subr.bf16.mxu1 %v15886_v5  ;;  %v15949_v5 = vld [vmem:[#allocation8 + $0x2114] ss:$48 sps:$4 sm:$0xff]  }
 0x4ef   :  { %11458 = vmatpush1.bf16.msra.mxu0 %v15881_v52  ;;  %v15952_v52 = vld [vmem:[#allocation8 + $0x211c] ss:$48 sps:$4 sm:$0xff]  }
 0x4f0   :  { %11704 = vmatpush1.bf16.msra.mxu1 %v15884_v59  ;;  %11459 = vmatprep.subr.bf16.mxu0 %v15889_v57  ;;  %v15947_v59 = vld [vmem:[#allocation8 + $0x2110] ss:$48 sps:$4 sm:$0xff]   ;;  %v15950_v57 = vld [vmem:[#allocation8 + $0x2118] ss:$48 sps:$4 sm:$0xff]  }
 0x4f1   :  { %11705 = vmatprep.subr.bf16.mxu1 %v15892_v30  ;;  %v15955_v30 = vld [vmem:[#allocation8 + $0x2174] ss:$48 sps:$4 sm:$0xff]  }
 0x4f3   :  { %11460 = vmatpush1.bf16.msra.mxu0 %v15887_v11  ;;  %v15958_v11 = vld [vmem:[#allocation8 + $0x217c] ss:$48 sps:$4 sm:$0xff]  }
 0x4f4   :  { %11706 = vmatpush1.bf16.msra.mxu1 %v15890_v58  ;;  %11461 = vmatprep.subr.bf16.mxu0 %v15895_v60  ;;  %v15953_v58 = vld [vmem:[#allocation8 + $0x2170] ss:$48 sps:$4 sm:$0xff]   ;;  %v15956_v60 = vld [vmem:[#allocation8 + $0x2178] ss:$48 sps:$4 sm:$0xff]  }
 0x4f5   :  { %11707 = vmatprep.subr.bf16.mxu1 %v15898_v6  ;;  %v15961_v6 = vld [vmem:[#allocation8 + $0x21d4] ss:$48 sps:$4 sm:$0xff]  }
 0x4f7   :  { %11462 = vmatpush1.bf16.msra.mxu0 %v15893_v61  ;;  %v15964_v61 = vld [vmem:[#allocation8 + $0x21dc] ss:$48 sps:$4 sm:$0xff]  }
 0x4f8   :  { %11708 = vmatpush1.bf16.msra.mxu1 %v15896_v62  ;;  %11472 = vmatprep.subr.bf16.mxu0 %v15901_v25  ;;  %v15959_v62 = vld [vmem:[#allocation8 + $0x21d0] ss:$48 sps:$4 sm:$0xff]   ;;  %v15962_v25 = vld [vmem:[#allocation8 + $0x21d8] ss:$48 sps:$4 sm:$0xff]  }
 0x4f9   :  { %11718 = vmatprep.subr.bf16.mxu1 %v15904_v8  ;;  %v15967_v8 = vld [vmem:[#allocation8 + $0x2234] ss:$48 sps:$4 sm:$0xff]  }
 0x4fa   :  { %11464 = vmatmul.mubr.bf16.vlgmr.msra.gmra.mrb[16].mxu0 %v16980_v55 }
 0x4fb   :  { %11710 = vmatmul.mubr.bf16.vlgmr.msra.gmra.mrb[16].mxu1 %v16980_v55  ;;  %11473 = vmatpush1.bf16.msra.mxu0 %v15899_v31  ;;  %v15970_v31 = vld [vmem:[#allocation8 + $0x223c] ss:$48 sps:$4 sm:$0xff]  }
 0x4fc   :  { %11504 = vmatprep.mubr.bf16.mxu0 %v16984_v56  ;;  %11719 = vmatpush1.bf16.msra.mxu1 %v15902_v9  ;;  %v15965_v9 = vld [vmem:[#allocation8 + $0x2230] ss:$48 sps:$4 sm:$0xff]  }
 0x4fd   :  { %11750 = vmatprep.mubr.bf16.mxu1 %v16984_v56  ;;  %11474 = vmatprep.subr.bf16.mxu0 %v15907_v12  ;;  %v15968_v12 = vld [vmem:[#allocation8 + $0x2238] ss:$48 sps:$4 sm:$0xff]  }
 0x4fe   :  { %11720 = vmatprep.subr.bf16.mxu1 %v15910_v13  ;;  %v15973_v13 = vld [vmem:[#allocation8 + $0x2294] ss:$48 sps:$4 sm:$0xff]  }
 0x4ff   :  { %11475 = vmatpush1.bf16.msra.mxu0 %v15905_v14  ;;  %v15976_v14 = vld [vmem:[#allocation8 + $0x229c] ss:$48 sps:$4 sm:$0xff]  }
 0x500   :  { %11721 = vmatpush1.bf16.msra.mxu1 %v15908_v15  ;;  %11476 = vmatprep.subr.bf16.mxu0 %v15913_v17  ;;  %v15971_v15 = vld [vmem:[#allocation8 + $0x2290] ss:$48 sps:$4 sm:$0xff]   ;;  %v15974_v17 = vld [vmem:[#allocation8 + $0x2298] ss:$48 sps:$4 sm:$0xff]  }
 0x501   :  { %11722 = vmatprep.subr.bf16.mxu1 %v15916_v19  ;;  %v15979_v19 = vld [vmem:[#allocation8 + $0x22f4] ss:$48 sps:$4 sm:$0xff]  }
 0x503   :  { %11477 = vmatpush1.bf16.msra.mxu0 %v15911_v21  ;;  %v15982_v21 = vld [vmem:[#allocation8 + $0x22fc] ss:$48 sps:$4 sm:$0xff]  }
 0x504   :  { %11723 = vmatpush1.bf16.msra.mxu1 %v15914_v33  ;;  %11478 = vmatprep.subr.bf16.mxu0 %v15919_v34  ;;  %v15977_v33 = vld [vmem:[#allocation8 + $0x22f0] ss:$48 sps:$4 sm:$0xff]   ;;  %v15980_v34 = vld [vmem:[#allocation8 + $0x22f8] ss:$48 sps:$4 sm:$0xff]  }
 0x505   :  { %11724 = vmatprep.subr.bf16.mxu1 %v15922_v63  ;;  %v15985_v63 = vld [vmem:[#allocation8 + $0x2354] ss:$48 sps:$4 sm:$0xff]  }
 0x507   :  { %11479 = vmatpush1.bf16.msra.mxu0 %v15917_v35  ;;  %v15988_v35 = vld [vmem:[#allocation8 + $0x235c] ss:$48 sps:$4 sm:$0xff]  }
 0x508   :  { %11725 = vmatpush1.bf16.msra.mxu1 %v15920_v36  ;;  %11480 = vmatprep.subr.bf16.mxu0 %v15925_v18  ;;  %v15983_v36 = vld [vmem:[#allocation8 + $0x2350] ss:$48 sps:$4 sm:$0xff]   ;;  %v15986_v18 = vld [vmem:[#allocation8 + $0x2358] ss:$48 sps:$4 sm:$0xff]  }
 0x509   :  { %11726 = vmatprep.subr.bf16.mxu1 %v15928_v37  ;;  %v15991_v37 = vld [vmem:[#allocation8 + $0x23b4] ss:$48 sps:$4 sm:$0xff]  }
 0x50b   :  { %11481 = vmatpush1.bf16.msra.mxu0 %v15923_v20  ;;  %v15994_v20 = vld [vmem:[#allocation8 + $0x23bc] ss:$48 sps:$4 sm:$0xff]  }
 0x50c   :  { %11727 = vmatpush1.bf16.msra.mxu1 %v15926_v39  ;;  %11482 = vmatprep.subr.bf16.mxu0 %v15931_v40  ;;  %v15989_v39 = vld [vmem:[#allocation8 + $0x23b0] ss:$48 sps:$4 sm:$0xff]   ;;  %v15992_v40 = vld [vmem:[#allocation8 + $0x23b8] ss:$48 sps:$4 sm:$0xff]  }
 0x50d   :  { %11728 = vmatprep.subr.bf16.mxu1 %v15934_v41  ;;  %v15997_v41 = vld [vmem:[#allocation8 + $0x24] ss:$48 sps:$4 sm:$0xff]  }
 0x50f   :  { %11483 = vmatpush1.bf16.msra.mxu0 %v15929_v32  ;;  %v16000_v32 = vld [vmem:[#allocation8 + $0x2c] ss:$48 sps:$4 sm:$0xff]  }
 0x510   :  { %11729 = vmatpush1.bf16.msra.mxu1 %v15932_v42  ;;  %11484 = vmatprep.subr.bf16.mxu0 %v15937_v43  ;;  %v15995_v42 = vld [vmem:[#allocation8 + $0x20] ss:$48 sps:$4 sm:$0xff]   ;;  %v15998_v43 = vld [vmem:[#allocation8 + $0x28] ss:$48 sps:$4 sm:$0xff]  }
 0x511   :  { %11730 = vmatprep.subr.bf16.mxu1 %v15940_v44  ;;  %v16003_v44 = vld [vmem:[#allocation8 + $0x84] ss:$48 sps:$4 sm:$0xff]  }
 0x513   :  { %11485 = vmatpush1.bf16.msra.mxu0 %v15935_v45  ;;  %v16006_v45 = vld [vmem:[#allocation8 + $0x8c] ss:$48 sps:$4 sm:$0xff]  }
 0x514   :  { %11731 = vmatpush1.bf16.msra.mxu1 %v15938_v48  ;;  %11486 = vmatprep.subr.bf16.mxu0 %v15943_v46  ;;  %v16001_v48 = vld [vmem:[#allocation8 + $0x80] ss:$48 sps:$4 sm:$0xff]   ;;  %v16004_v46 = vld [vmem:[#allocation8 + $0x88] ss:$48 sps:$4 sm:$0xff]  }
 0x515   :  { %11732 = vmatprep.subr.bf16.mxu1 %v15946_v49  ;;  %v16009_v49 = vld [vmem:[#allocation8 + $0xe4] ss:$48 sps:$4 sm:$0xff]  }
 0x517   :  { %11487 = vmatpush1.bf16.msra.mxu0 %v15941_v24  ;;  %v16012_v24 = vld [vmem:[#allocation8 + $0xec] ss:$48 sps:$4 sm:$0xff]  }
 0x518   :  { %11733 = vmatpush1.bf16.msra.mxu1 %v15944_v51  ;;  %11488 = vmatprep.subr.bf16.mxu0 %v15949_v5  ;;  %v16007_v51 = vld [vmem:[#allocation8 + $0xe0] ss:$48 sps:$4 sm:$0xff]   ;;  %v16010_v5 = vld [vmem:[#allocation8 + $0xe8] ss:$48 sps:$4 sm:$0xff]  }
 0x519   :  { %11734 = vmatprep.subr.bf16.mxu1 %v15952_v52  ;;  %v16015_v52 = vld [vmem:[#allocation8 + $0x144] ss:$48 sps:$4 sm:$0xff]  }
 0x51b   :  { %11489 = vmatpush1.bf16.msra.mxu0 %v15947_v59  ;;  %v16018_v59 = vld [vmem:[#allocation8 + $0x14c] ss:$48 sps:$4 sm:$0xff]  }
 0x51c   :  { %11735 = vmatpush1.bf16.msra.mxu1 %v15950_v57  ;;  %11490 = vmatprep.subr.bf16.mxu0 %v15955_v30  ;;  %v16013_v57 = vld [vmem:[#allocation8 + $0x140] ss:$48 sps:$4 sm:$0xff]   ;;  %v16016_v30 = vld [vmem:[#allocation8 + $0x148] ss:$48 sps:$4 sm:$0xff]  }
 0x51d   :  { %11736 = vmatprep.subr.bf16.mxu1 %v15958_v11  ;;  %v16021_v11 = vld [vmem:[#allocation8 + $0x1a4] ss:$48 sps:$4 sm:$0xff]  }
 0x51f   :  { %11491 = vmatpush1.bf16.msra.mxu0 %v15953_v58  ;;  %v16024_v58 = vld [vmem:[#allocation8 + $0x1ac] ss:$48 sps:$4 sm:$0xff]  }
 0x520   :  { %11737 = vmatpush1.bf16.msra.mxu1 %v15956_v60  ;;  %11492 = vmatprep.subr.bf16.mxu0 %v15961_v6  ;;  %v16022_v60 = vld [vmem:[#allocation8 + $0x1a8] ss:$48 sps:$4 sm:$0xff]   ;;  %v16027_v6 = vld [vmem:[#allocation8 + $0x204] ss:$48 sps:$4 sm:$0xff]  }
 0x521   :  { %11738 = vmatprep.subr.bf16.mxu1 %v15964_v61  ;;  %v16030_v61 = vld [vmem:[#allocation8 + $0x20c] ss:$48 sps:$4 sm:$0xff]  }
 0x523   :  { %11493 = vmatpush1.bf16.msra.mxu0 %v15959_v62  ;;  %v16025_v62 = vld [vmem:[#allocation8 + $0x200] ss:$48 sps:$4 sm:$0xff]  }
 0x524   :  { %11739 = vmatpush1.bf16.msra.mxu1 %v15962_v25  ;;  %11494 = vmatprep.subr.bf16.mxu0 %v15967_v8  ;;  %v16028_v25 = vld [vmem:[#allocation8 + $0x208] ss:$48 sps:$4 sm:$0xff]   ;;  %v16033_v8 = vld [vmem:[#allocation8 + $0x264] ss:$48 sps:$4 sm:$0xff]  }
 0x525   :  { %11740 = vmatprep.subr.bf16.mxu1 %v15970_v31  ;;  %v16036_v31 = vld [vmem:[#allocation8 + $0x26c] ss:$48 sps:$4 sm:$0xff]  }
 0x527   :  { %11495 = vmatpush1.bf16.msra.mxu0 %v15965_v9  ;;  %v16031_v9 = vld [vmem:[#allocation8 + $0x260] ss:$48 sps:$4 sm:$0xff]  }
 0x528   :  { %11741 = vmatpush1.bf16.msra.mxu1 %v15968_v12  ;;  %11496 = vmatprep.subr.bf16.mxu0 %v15973_v13  ;;  %v16034_v12 = vld [vmem:[#allocation8 + $0x268] ss:$48 sps:$4 sm:$0xff]   ;;  %v16039_v13 = vld [vmem:[#allocation8 + $0x2c4] ss:$48 sps:$4 sm:$0xff]  }
 0x529   :  { %11742 = vmatprep.subr.bf16.mxu1 %v15976_v14  ;;  %v16042_v14 = vld [vmem:[#allocation8 + $0x2cc] ss:$48 sps:$4 sm:$0xff]  }
 0x52b   :  { %11497 = vmatpush1.bf16.msra.mxu0 %v15971_v15  ;;  %v16037_v15 = vld [vmem:[#allocation8 + $0x2c0] ss:$48 sps:$4 sm:$0xff]  }
 0x52c   :  { %11743 = vmatpush1.bf16.msra.mxu1 %v15974_v17  ;;  %11498 = vmatprep.subr.bf16.mxu0 %v15979_v19  ;;  %v16040_v17 = vld [vmem:[#allocation8 + $0x2c8] ss:$48 sps:$4 sm:$0xff]   ;;  %v16045_v19 = vld [vmem:[#allocation8 + $0x324] ss:$48 sps:$4 sm:$0xff]  }
 0x52d   :  { %11744 = vmatprep.subr.bf16.mxu1 %v15982_v21  ;;  %v16048_v21 = vld [vmem:[#allocation8 + $0x32c] ss:$48 sps:$4 sm:$0xff]  }
 0x52f   :  { %11499 = vmatpush1.bf16.msra.mxu0 %v15977_v33  ;;  %v16043_v33 = vld [vmem:[#allocation8 + $0x320] ss:$48 sps:$4 sm:$0xff]  }
 0x530   :  { %11745 = vmatpush1.bf16.msra.mxu1 %v15980_v34  ;;  %11500 = vmatprep.subr.bf16.mxu0 %v15985_v63  ;;  %v16046_v34 = vld [vmem:[#allocation8 + $0x328] ss:$48 sps:$4 sm:$0xff]   ;;  %v16051_v63 = vld [vmem:[#allocation8 + $0x384] ss:$48 sps:$4 sm:$0xff]  }
 0x531   :  { %11746 = vmatprep.subr.bf16.mxu1 %v15988_v35  ;;  %v16054_v35 = vld [vmem:[#allocation8 + $0x38c] ss:$48 sps:$4 sm:$0xff]  }
 0x533   :  { %11501 = vmatpush1.bf16.msra.mxu0 %v15983_v36  ;;  %v16049_v36 = vld [vmem:[#allocation8 + $0x380] ss:$48 sps:$4 sm:$0xff]  }
 0x534   :  { %11747 = vmatpush1.bf16.msra.mxu1 %v15986_v18  ;;  %11502 = vmatprep.subr.bf16.mxu0 %v15991_v37  ;;  %v16052_v18 = vld [vmem:[#allocation8 + $0x388] ss:$48 sps:$4 sm:$0xff]   ;;  %v16057_v37 = vld [vmem:[#allocation8 + $0x3e4] ss:$48 sps:$4 sm:$0xff]  }
 0x535   :  { %11748 = vmatprep.subr.bf16.mxu1 %v15994_v20  ;;  %v16060_v20 = vld [vmem:[#allocation8 + $0x3ec] ss:$48 sps:$4 sm:$0xff]  }
 0x537   :  { %11503 = vmatpush1.bf16.msra.mxu0 %v15989_v39  ;;  %v16055_v39 = vld [vmem:[#allocation8 + $0x3e0] ss:$48 sps:$4 sm:$0xff]  }
 0x538   :  { %11749 = vmatpush1.bf16.msra.mxu1 %v15992_v40  ;;  %11759 = vmatprep.subr.bf16.mxu0 %v15997_v41  ;;  %v16058_v40 = vld [vmem:[#allocation8 + $0x3e8] ss:$48 sps:$4 sm:$0xff]   ;;  %v16063_v41 = vld [vmem:[#allocation8 + $0x444] ss:$48 sps:$4 sm:$0xff]  }
 0x539   :  { %12005 = vmatprep.subr.bf16.mxu1 %v16000_v32  ;;  %v16066_v32 = vld [vmem:[#allocation8 + $0x44c] ss:$48 sps:$4 sm:$0xff]  }
 0x53a   :  { %11505 = vmatmul.mubr.bf16.vlgmr.msra.gmra.mrb[16].mxu0 %v16992_v28 }
 0x53b   :  { %11751 = vmatmul.mubr.bf16.vlgmr.msra.gmra.mrb[16].mxu1 %v16992_v28  ;;  %11760 = vmatpush1.bf16.msra.mxu0 %v15995_v42  ;;  %v16061_v42 = vld [vmem:[#allocation8 + $0x440] ss:$48 sps:$4 sm:$0xff]  }
 0x53c   :  { %11791 = vmatprep.mubr.bf16.mxu0 %v16877_v26  ;;  %12006 = vmatpush1.bf16.msra.mxu1 %v15998_v43  ;;  %v16064_v43 = vld [vmem:[#allocation8 + $0x448] ss:$48 sps:$4 sm:$0xff]  }
 0x53d   :  { %12037 = vmatprep.mubr.bf16.mxu1 %v16877_v26  ;;  %11761 = vmatprep.subr.bf16.mxu0 %v16003_v44  ;;  %v16019_v26 = vld [vmem:[#allocation8 + $0x1a0] ss:$48 sps:$4 sm:$0xff]   ;;  %v16069_v44 = vld [vmem:[#allocation8 + $0x4a4] ss:$48 sps:$4 sm:$0xff]  }
 0x53e   :  { %12007 = vmatprep.subr.bf16.mxu1 %v16006_v45  ;;  %v16072_v45 = vld [vmem:[#allocation8 + $0x4ac] ss:$48 sps:$4 sm:$0xff]  }
 0x53f   :  { %11762 = vmatpush1.bf16.msra.mxu0 %v16001_v48  ;;  %v16067_v48 = vld [vmem:[#allocation8 + $0x4a0] ss:$48 sps:$4 sm:$0xff]  }
 0x540   :  { %12008 = vmatpush1.bf16.msra.mxu1 %v16004_v46  ;;  %11763 = vmatprep.subr.bf16.mxu0 %v16009_v49  ;;  %v16070_v46 = vld [vmem:[#allocation8 + $0x4a8] ss:$48 sps:$4 sm:$0xff]   ;;  %v16075_v49 = vld [vmem:[#allocation8 + $0x504] ss:$48 sps:$4 sm:$0xff]  }
 0x541   :  { %12009 = vmatprep.subr.bf16.mxu1 %v16012_v24  ;;  %v16078_v24 = vld [vmem:[#allocation8 + $0x50c] ss:$48 sps:$4 sm:$0xff]  }
 0x543   :  { %11764 = vmatpush1.bf16.msra.mxu0 %v16007_v51  ;;  %v16073_v51 = vld [vmem:[#allocation8 + $0x500] ss:$48 sps:$4 sm:$0xff]  }
 0x544   :  { %12010 = vmatpush1.bf16.msra.mxu1 %v16010_v5  ;;  %11765 = vmatprep.subr.bf16.mxu0 %v16015_v52  ;;  %v16076_v5 = vld [vmem:[#allocation8 + $0x508] ss:$48 sps:$4 sm:$0xff]   ;;  %v16081_v52 = vld [vmem:[#allocation8 + $0x564] ss:$48 sps:$4 sm:$0xff]  }
 0x545   :  { %12011 = vmatprep.subr.bf16.mxu1 %v16018_v59  ;;  %v16084_v59 = vld [vmem:[#allocation8 + $0x56c] ss:$48 sps:$4 sm:$0xff]  }
 0x547   :  { %11766 = vmatpush1.bf16.msra.mxu0 %v16013_v57  ;;  %v16079_v57 = vld [vmem:[#allocation8 + $0x560] ss:$48 sps:$4 sm:$0xff]  }
 0x548   :  { %12012 = vmatpush1.bf16.msra.mxu1 %v16016_v30  ;;  %11767 = vmatprep.subr.bf16.mxu0 %v16021_v11  ;;  %v16082_v30 = vld [vmem:[#allocation8 + $0x568] ss:$48 sps:$4 sm:$0xff]   ;;  %v16087_v11 = vld [vmem:[#allocation8 + $0x5c4] ss:$48 sps:$4 sm:$0xff]  }
 0x549   :  { %12013 = vmatprep.subr.bf16.mxu1 %v16024_v58  ;;  %v16090_v58 = vld [vmem:[#allocation8 + $0x5cc] ss:$48 sps:$4 sm:$0xff]  }
 0x54b   :  { %11768 = vmatpush1.bf16.msra.mxu0 %v16019_v26  ;;  %v16085_v26 = vld [vmem:[#allocation8 + $0x5c0] ss:$48 sps:$4 sm:$0xff]  }
 0x54c   :  { %12014 = vmatpush1.bf16.msra.mxu1 %v16022_v60  ;;  %11769 = vmatprep.subr.bf16.mxu0 %v16027_v6  ;;  %v16088_v60 = vld [vmem:[#allocation8 + $0x5c8] ss:$48 sps:$4 sm:$0xff]   ;;  %v16093_v6 = vld [vmem:[#allocation8 + $0x624] ss:$48 sps:$4 sm:$0xff]  }
 0x54d   :  { %12015 = vmatprep.subr.bf16.mxu1 %v16030_v61  ;;  %v16096_v61 = vld [vmem:[#allocation8 + $0x62c] ss:$48 sps:$4 sm:$0xff]  }
 0x54f   :  { %11770 = vmatpush1.bf16.msra.mxu0 %v16025_v62  ;;  %v16091_v62 = vld [vmem:[#allocation8 + $0x620] ss:$48 sps:$4 sm:$0xff]  }
 0x550   :  { %12016 = vmatpush1.bf16.msra.mxu1 %v16028_v25  ;;  %11771 = vmatprep.subr.bf16.mxu0 %v16033_v8  ;;  %v16094_v25 = vld [vmem:[#allocation8 + $0x628] ss:$48 sps:$4 sm:$0xff]   ;;  %v16099_v8 = vld [vmem:[#allocation8 + $0x684] ss:$48 sps:$4 sm:$0xff]  }
 0x551   :  { %12017 = vmatprep.subr.bf16.mxu1 %v16036_v31  ;;  %v16102_v31 = vld [vmem:[#allocation8 + $0x68c] ss:$48 sps:$4 sm:$0xff]  }
 0x553   :  { %11772 = vmatpush1.bf16.msra.mxu0 %v16031_v9  ;;  %v16097_v9 = vld [vmem:[#allocation8 + $0x680] ss:$48 sps:$4 sm:$0xff]  }
 0x554   :  { %12018 = vmatpush1.bf16.msra.mxu1 %v16034_v12  ;;  %11773 = vmatprep.subr.bf16.mxu0 %v16039_v13  ;;  %v16100_v12 = vld [vmem:[#allocation8 + $0x688] ss:$48 sps:$4 sm:$0xff]   ;;  %v16105_v13 = vld [vmem:[#allocation8 + $0x6e4] ss:$48 sps:$4 sm:$0xff]  }
 0x555   :  { %12019 = vmatprep.subr.bf16.mxu1 %v16042_v14  ;;  %v16108_v14 = vld [vmem:[#allocation8 + $0x6ec] ss:$48 sps:$4 sm:$0xff]  }
 0x557   :  { %11774 = vmatpush1.bf16.msra.mxu0 %v16037_v15  ;;  %v16103_v15 = vld [vmem:[#allocation8 + $0x6e0] ss:$48 sps:$4 sm:$0xff]  }
 0x558   :  { %12020 = vmatpush1.bf16.msra.mxu1 %v16040_v17  ;;  %11775 = vmatprep.subr.bf16.mxu0 %v16045_v19  ;;  %v16106_v17 = vld [vmem:[#allocation8 + $0x6e8] ss:$48 sps:$4 sm:$0xff]   ;;  %v16111_v19 = vld [vmem:[#allocation8 + $0x744] ss:$48 sps:$4 sm:$0xff]  }
 0x559   :  { %12021 = vmatprep.subr.bf16.mxu1 %v16048_v21  ;;  %v16109_v21 = vld [vmem:[#allocation8 + $0x740] ss:$48 sps:$4 sm:$0xff]  }
 0x55b   :  { %11776 = vmatpush1.bf16.msra.mxu0 %v16043_v33  ;;  %v16112_v33 = vld [vmem:[#allocation8 + $0x748] ss:$48 sps:$4 sm:$0xff]  }
 0x55c   :  { %12022 = vmatpush1.bf16.msra.mxu1 %v16046_v34  ;;  %11777 = vmatprep.subr.bf16.mxu0 %v16051_v63  ;;  %v16117_v34 = vld [vmem:[#allocation8 + $0x7a4] ss:$48 sps:$4 sm:$0xff]   ;;  %v16120_v63 = vld [vmem:[#allocation8 + $0x7ac] ss:$48 sps:$4 sm:$0xff]  }
 0x55d   :  { %12023 = vmatprep.subr.bf16.mxu1 %v16054_v35  ;;  %v16118_v35 = vld [vmem:[#allocation8 + $0x7a8] ss:$48 sps:$4 sm:$0xff]  }
 0x55f   :  { %11778 = vmatpush1.bf16.msra.mxu0 %v16049_v36  ;;  %v16123_v36 = vld [vmem:[#allocation8 + $0x804] ss:$48 sps:$4 sm:$0xff]  }
 0x560   :  { %12024 = vmatpush1.bf16.msra.mxu1 %v16052_v18  ;;  %11779 = vmatprep.subr.bf16.mxu0 %v16057_v37  ;;  %v16126_v18 = vld [vmem:[#allocation8 + $0x80c] ss:$48 sps:$4 sm:$0xff]   ;;  %v16121_v37 = vld [vmem:[#allocation8 + $0x800] ss:$48 sps:$4 sm:$0xff]  }
 0x561   :  { %12025 = vmatprep.subr.bf16.mxu1 %v16060_v20  ;;  %v16124_v20 = vld [vmem:[#allocation8 + $0x808] ss:$48 sps:$4 sm:$0xff]  }
 0x563   :  { %11780 = vmatpush1.bf16.msra.mxu0 %v16055_v39  ;;  %v16129_v39 = vld [vmem:[#allocation8 + $0x864] ss:$48 sps:$4 sm:$0xff]  }
 0x564   :  { %12026 = vmatpush1.bf16.msra.mxu1 %v16058_v40  ;;  %11781 = vmatprep.subr.bf16.mxu0 %v16063_v41  ;;  %v16132_v40 = vld [vmem:[#allocation8 + $0x86c] ss:$48 sps:$4 sm:$0xff]   ;;  %v16127_v41 = vld [vmem:[#allocation8 + $0x860] ss:$48 sps:$4 sm:$0xff]  }
 0x565   :  { %12027 = vmatprep.subr.bf16.mxu1 %v16066_v32  ;;  %v16130_v32 = vld [vmem:[#allocation8 + $0x868] ss:$48 sps:$4 sm:$0xff]  }
 0x567   :  { %11782 = vmatpush1.bf16.msra.mxu0 %v16061_v42  ;;  %v16135_v42 = vld [vmem:[#allocation8 + $0x8c4] ss:$48 sps:$4 sm:$0xff]  }
 0x568   :  { %12028 = vmatpush1.bf16.msra.mxu1 %v16064_v43  ;;  %11783 = vmatprep.subr.bf16.mxu0 %v16069_v44  ;;  %v16138_v43 = vld [vmem:[#allocation8 + $0x8cc] ss:$48 sps:$4 sm:$0xff]   ;;  %v16133_v44 = vld [vmem:[#allocation8 + $0x8c0] ss:$48 sps:$4 sm:$0xff]  }
 0x569   :  { %12029 = vmatprep.subr.bf16.mxu1 %v16072_v45  ;;  %v16136_v45 = vld [vmem:[#allocation8 + $0x8c8] ss:$48 sps:$4 sm:$0xff]  }
 0x56b   :  { %11784 = vmatpush1.bf16.msra.mxu0 %v16067_v48  ;;  %v16141_v48 = vld [vmem:[#allocation8 + $0x924] ss:$48 sps:$4 sm:$0xff]  }
 0x56c   :  { %12030 = vmatpush1.bf16.msra.mxu1 %v16070_v46  ;;  %11785 = vmatprep.subr.bf16.mxu0 %v16075_v49  ;;  %v16144_v46 = vld [vmem:[#allocation8 + $0x92c] ss:$48 sps:$4 sm:$0xff]   ;;  %v16139_v49 = vld [vmem:[#allocation8 + $0x920] ss:$48 sps:$4 sm:$0xff]  }
 0x56d   :  { %12031 = vmatprep.subr.bf16.mxu1 %v16078_v24  ;;  %v16142_v24 = vld [vmem:[#allocation8 + $0x928] ss:$48 sps:$4 sm:$0xff]  }
 0x56f   :  { %11786 = vmatpush1.bf16.msra.mxu0 %v16073_v51  ;;  %v16147_v51 = vld [vmem:[#allocation8 + $0x984] ss:$48 sps:$4 sm:$0xff]  }
 0x570   :  { %12032 = vmatpush1.bf16.msra.mxu1 %v16076_v5  ;;  %11787 = vmatprep.subr.bf16.mxu0 %v16081_v52  ;;  %v16150_v5 = vld [vmem:[#allocation8 + $0x98c] ss:$48 sps:$4 sm:$0xff]   ;;  %v16145_v52 = vld [vmem:[#allocation8 + $0x980] ss:$48 sps:$4 sm:$0xff]  }
 0x571   :  { %12033 = vmatprep.subr.bf16.mxu1 %v16084_v59  ;;  %v16148_v59 = vld [vmem:[#allocation8 + $0x988] ss:$48 sps:$4 sm:$0xff]  }
 0x573   :  { %11788 = vmatpush1.bf16.msra.mxu0 %v16079_v57  ;;  %v16153_v57 = vld [vmem:[#allocation8 + $0x9e4] ss:$48 sps:$4 sm:$0xff]  }
 0x574   :  { %12034 = vmatpush1.bf16.msra.mxu1 %v16082_v30  ;;  %11789 = vmatprep.subr.bf16.mxu0 %v16087_v11  ;;  %v16156_v30 = vld [vmem:[#allocation8 + $0x9ec] ss:$48 sps:$4 sm:$0xff]   ;;  %v16151_v11 = vld [vmem:[#allocation8 + $0x9e0] ss:$48 sps:$4 sm:$0xff]  }
 0x575   :  { %12035 = vmatprep.subr.bf16.mxu1 %v16090_v58  ;;  %v16154_v58 = vld [vmem:[#allocation8 + $0x9e8] ss:$48 sps:$4 sm:$0xff]  }
 0x577   :  { %11790 = vmatpush1.bf16.msra.mxu0 %v16085_v26  ;;  %v16159_v26 = vld [vmem:[#allocation8 + $0xa44] ss:$48 sps:$4 sm:$0xff]  }
 0x578   :  { %12036 = vmatpush1.bf16.msra.mxu1 %v16088_v60  ;;  %11800 = vmatprep.subr.bf16.mxu0 %v16093_v6  ;;  %v16162_v60 = vld [vmem:[#allocation8 + $0xa4c] ss:$48 sps:$4 sm:$0xff]   ;;  %v16157_v6 = vld [vmem:[#allocation8 + $0xa40] ss:$48 sps:$4 sm:$0xff]  }
 0x579   :  { %12046 = vmatprep.subr.bf16.mxu1 %v16096_v61  ;;  %v16160_v61 = vld [vmem:[#allocation8 + $0xa48] ss:$48 sps:$4 sm:$0xff]  }
 0x57a   :  { %11792 = vmatmul.mubr.bf16.vlgmr.msra.gmra.mrb[20].mxu0 %v16901_v50 }
 0x57b   :  { %12038 = vmatmul.mubr.bf16.vlgmr.msra.gmra.mrb[20].mxu1 %v16901_v50  ;;  %11801 = vmatpush1.bf16.msra.mxu0 %v16091_v62  ;;  %v16114_v50 = vld [vmem:[#allocation8 + $0x74c] ss:$48 sps:$4 sm:$0xff]   ;;  %v16165_v62 = vld [vmem:[#allocation8 + $0xaa4] ss:$48 sps:$4 sm:$0xff]  }
 0x57c   :  { %11832 = vmatprep.mubr.bf16.mxu0 %v16903_v3  ;;  %12047 = vmatpush1.bf16.msra.mxu1 %v16094_v25  ;;  %v16168_v25 = vld [vmem:[#allocation8 + $0xaac] ss:$48 sps:$4 sm:$0xff]  }
 0x57d   :  { %12078 = vmatprep.mubr.bf16.mxu1 %v16903_v3  ;;  %11802 = vmatprep.subr.bf16.mxu0 %v16099_v8  ;;  %v16115_v3 = vld [vmem:[#allocation8 + $0x7a0] ss:$48 sps:$4 sm:$0xff]  }
 0x57e   :  { %12048 = vmatprep.subr.bf16.mxu1 %v16102_v31  ;;  %v16163_v8 = vld [vmem:[#allocation8 + $0xaa0] ss:$48 sps:$4 sm:$0xff]   ;;  %v16166_v31 = vld [vmem:[#allocation8 + $0xaa8] ss:$48 sps:$4 sm:$0xff]  }
 0x57f   :  { %11803 = vmatpush1.bf16.msra.mxu0 %v16097_v9  ;;  %v16171_v9 = vld [vmem:[#allocation8 + $0xb04] ss:$48 sps:$4 sm:$0xff]  }
 0x580   :  { %12049 = vmatpush1.bf16.msra.mxu1 %v16100_v12  ;;  %11804 = vmatprep.subr.bf16.mxu0 %v16105_v13  ;;  %v16174_v12 = vld [vmem:[#allocation8 + $0xb0c] ss:$48 sps:$4 sm:$0xff]   ;;  %v16169_v13 = vld [vmem:[#allocation8 + $0xb00] ss:$48 sps:$4 sm:$0xff]  }
 0x581   :  { %12050 = vmatprep.subr.bf16.mxu1 %v16108_v14  ;;  %v16172_v14 = vld [vmem:[#allocation8 + $0xb08] ss:$48 sps:$4 sm:$0xff]  }
 0x583   :  { %11805 = vmatpush1.bf16.msra.mxu0 %v16103_v15  ;;  %v16177_v15 = vld [vmem:[#allocation8 + $0xb64] ss:$48 sps:$4 sm:$0xff]  }
 0x584   :  { %12051 = vmatpush1.bf16.msra.mxu1 %v16106_v17  ;;  %11806 = vmatprep.subr.bf16.mxu0 %v16111_v19  ;;  %v16180_v17 = vld [vmem:[#allocation8 + $0xb6c] ss:$48 sps:$4 sm:$0xff]   ;;  %v16175_v19 = vld [vmem:[#allocation8 + $0xb60] ss:$48 sps:$4 sm:$0xff]  }
 0x585   :  { %12052 = vmatprep.subr.bf16.mxu1 %v16114_v50  ;;  %v16178_v50 = vld [vmem:[#allocation8 + $0xb68] ss:$48 sps:$4 sm:$0xff]  }
 0x587   :  { %11807 = vmatpush1.bf16.msra.mxu0 %v16109_v21  ;;  %v16183_v21 = vld [vmem:[#allocation8 + $0xbc4] ss:$48 sps:$4 sm:$0xff]  }
 0x588   :  { %12053 = vmatpush1.bf16.msra.mxu1 %v16112_v33  ;;  %11808 = vmatprep.subr.bf16.mxu0 %v16117_v34  ;;  %v16186_v33 = vld [vmem:[#allocation8 + $0xbcc] ss:$48 sps:$4 sm:$0xff]   ;;  %v16181_v34 = vld [vmem:[#allocation8 + $0xbc0] ss:$48 sps:$4 sm:$0xff]  }
 0x589   :  { %12054 = vmatprep.subr.bf16.mxu1 %v16120_v63  ;;  %v16184_v63 = vld [vmem:[#allocation8 + $0xbc8] ss:$48 sps:$4 sm:$0xff]  }
 0x58b   :  { %11809 = vmatpush1.bf16.msra.mxu0 %v16115_v3  ;;  %v16189_v3 = vld [vmem:[#allocation8 + $0xc24] ss:$48 sps:$4 sm:$0xff]  }
 0x58c   :  { %12055 = vmatpush1.bf16.msra.mxu1 %v16118_v35  ;;  %11810 = vmatprep.subr.bf16.mxu0 %v16123_v36  ;;  %v16192_v35 = vld [vmem:[#allocation8 + $0xc2c] ss:$48 sps:$4 sm:$0xff]   ;;  %v16187_v36 = vld [vmem:[#allocation8 + $0xc20] ss:$48 sps:$4 sm:$0xff]  }
 0x58d   :  { %12056 = vmatprep.subr.bf16.mxu1 %v16126_v18  ;;  %v16190_v18 = vld [vmem:[#allocation8 + $0xc28] ss:$48 sps:$4 sm:$0xff]  }
 0x58f   :  { %11811 = vmatpush1.bf16.msra.mxu0 %v16121_v37  ;;  %v16195_v37 = vld [vmem:[#allocation8 + $0xc84] ss:$48 sps:$4 sm:$0xff]  }
 0x590   :  { %12057 = vmatpush1.bf16.msra.mxu1 %v16124_v20  ;;  %11812 = vmatprep.subr.bf16.mxu0 %v16129_v39  ;;  %v16198_v20 = vld [vmem:[#allocation8 + $0xc8c] ss:$48 sps:$4 sm:$0xff]   ;;  %v16193_v39 = vld [vmem:[#allocation8 + $0xc80] ss:$48 sps:$4 sm:$0xff]  }
 0x591   :  { %12058 = vmatprep.subr.bf16.mxu1 %v16132_v40  ;;  %v16196_v40 = vld [vmem:[#allocation8 + $0xc88] ss:$48 sps:$4 sm:$0xff]  }
 0x593   :  { %11813 = vmatpush1.bf16.msra.mxu0 %v16127_v41  ;;  %v16201_v41 = vld [vmem:[#allocation8 + $0xce4] ss:$48 sps:$4 sm:$0xff]  }
 0x594   :  { %12059 = vmatpush1.bf16.msra.mxu1 %v16130_v32  ;;  %11814 = vmatprep.subr.bf16.mxu0 %v16135_v42  ;;  %v16204_v32 = vld [vmem:[#allocation8 + $0xcec] ss:$48 sps:$4 sm:$0xff]   ;;  %v16199_v42 = vld [vmem:[#allocation8 + $0xce0] ss:$48 sps:$4 sm:$0xff]  }
 0x595   :  { %12060 = vmatprep.subr.bf16.mxu1 %v16138_v43  ;;  %v16202_v43 = vld [vmem:[#allocation8 + $0xce8] ss:$48 sps:$4 sm:$0xff]  }
 0x597   :  { %11815 = vmatpush1.bf16.msra.mxu0 %v16133_v44  ;;  %v16207_v44 = vld [vmem:[#allocation8 + $0xd44] ss:$48 sps:$4 sm:$0xff]  }
 0x598   :  { %12061 = vmatpush1.bf16.msra.mxu1 %v16136_v45  ;;  %11816 = vmatprep.subr.bf16.mxu0 %v16141_v48  ;;  %v16205_v45 = vld [vmem:[#allocation8 + $0xd40] ss:$48 sps:$4 sm:$0xff]   ;;  %v16208_v48 = vld [vmem:[#allocation8 + $0xd48] ss:$48 sps:$4 sm:$0xff]  }
 0x599   :  { %12062 = vmatprep.subr.bf16.mxu1 %v16144_v46  ;;  %v16213_v46 = vld [vmem:[#allocation8 + $0xda4] ss:$48 sps:$4 sm:$0xff]  }
 0x59b   :  { %11817 = vmatpush1.bf16.msra.mxu0 %v16139_v49  ;;  %v16216_v49 = vld [vmem:[#allocation8 + $0xdac] ss:$48 sps:$4 sm:$0xff]  }
 0x59c   :  { %12063 = vmatpush1.bf16.msra.mxu1 %v16142_v24  ;;  %11818 = vmatprep.subr.bf16.mxu0 %v16147_v51  ;;  %v16214_v24 = vld [vmem:[#allocation8 + $0xda8] ss:$48 sps:$4 sm:$0xff]   ;;  %v16219_v51 = vld [vmem:[#allocation8 + $0xe04] ss:$48 sps:$4 sm:$0xff]  }
 0x59d   :  { %12064 = vmatprep.subr.bf16.mxu1 %v16150_v5  ;;  %v16222_v5 = vld [vmem:[#allocation8 + $0xe0c] ss:$48 sps:$4 sm:$0xff]  }
 0x59f   :  { %11819 = vmatpush1.bf16.msra.mxu0 %v16145_v52  ;;  %v16217_v52 = vld [vmem:[#allocation8 + $0xe00] ss:$48 sps:$4 sm:$0xff]  }
 0x5a0   :  { %12065 = vmatpush1.bf16.msra.mxu1 %v16148_v59  ;;  %11820 = vmatprep.subr.bf16.mxu0 %v16153_v57  ;;  %v16220_v59 = vld [vmem:[#allocation8 + $0xe08] ss:$48 sps:$4 sm:$0xff]   ;;  %v16225_v57 = vld [vmem:[#allocation8 + $0xe64] ss:$48 sps:$4 sm:$0xff]  }
 0x5a1   :  { %12066 = vmatprep.subr.bf16.mxu1 %v16156_v30  ;;  %v16228_v30 = vld [vmem:[#allocation8 + $0xe6c] ss:$48 sps:$4 sm:$0xff]  }
 0x5a3   :  { %11821 = vmatpush1.bf16.msra.mxu0 %v16151_v11  ;;  %v16223_v11 = vld [vmem:[#allocation8 + $0xe60] ss:$48 sps:$4 sm:$0xff]  }
 0x5a4   :  { %12067 = vmatpush1.bf16.msra.mxu1 %v16154_v58  ;;  %11822 = vmatprep.subr.bf16.mxu0 %v16159_v26  ;;  %v16226_v58 = vld [vmem:[#allocation8 + $0xe68] ss:$48 sps:$4 sm:$0xff]   ;;  %v16231_v26 = vld [vmem:[#allocation8 + $0xec4] ss:$48 sps:$4 sm:$0xff]  }
 0x5a5   :  { %12068 = vmatprep.subr.bf16.mxu1 %v16162_v60  ;;  %v16234_v60 = vld [vmem:[#allocation8 + $0xecc] ss:$48 sps:$4 sm:$0xff]  }
 0x5a7   :  { %11823 = vmatpush1.bf16.msra.mxu0 %v16157_v6  ;;  %v16229_v6 = vld [vmem:[#allocation8 + $0xec0] ss:$48 sps:$4 sm:$0xff]  }
 0x5a8   :  { %12069 = vmatpush1.bf16.msra.mxu1 %v16160_v61  ;;  %11824 = vmatprep.subr.bf16.mxu0 %v16165_v62  ;;  %v16232_v61 = vld [vmem:[#allocation8 + $0xec8] ss:$48 sps:$4 sm:$0xff]   ;;  %v16237_v62 = vld [vmem:[#allocation8 + $0xf24] ss:$48 sps:$4 sm:$0xff]  }
 0x5a9   :  { %12070 = vmatprep.subr.bf16.mxu1 %v16168_v25  ;;  %v16240_v25 = vld [vmem:[#allocation8 + $0xf2c] ss:$48 sps:$4 sm:$0xff]  }
 0x5ab   :  { %11825 = vmatpush1.bf16.msra.mxu0 %v16163_v8  ;;  %v16235_v8 = vld [vmem:[#allocation8 + $0xf20] ss:$48 sps:$4 sm:$0xff]  }
 0x5ac   :  { %12071 = vmatpush1.bf16.msra.mxu1 %v16166_v31  ;;  %11826 = vmatprep.subr.bf16.mxu0 %v16171_v9  ;;  %v16238_v31 = vld [vmem:[#allocation8 + $0xf28] ss:$48 sps:$4 sm:$0xff]   ;;  %v16243_v9 = vld [vmem:[#allocation8 + $0xf84] ss:$48 sps:$4 sm:$0xff]  }
 0x5ad   :  { %12072 = vmatprep.subr.bf16.mxu1 %v16174_v12  ;;  %v16246_v12 = vld [vmem:[#allocation8 + $0xf8c] ss:$48 sps:$4 sm:$0xff]  }
 0x5af   :  { %11827 = vmatpush1.bf16.msra.mxu0 %v16169_v13  ;;  %v16241_v13 = vld [vmem:[#allocation8 + $0xf80] ss:$48 sps:$4 sm:$0xff]  }
 0x5b0   :  { %12073 = vmatpush1.bf16.msra.mxu1 %v16172_v14  ;;  %11828 = vmatprep.subr.bf16.mxu0 %v16177_v15  ;;  %v16244_v14 = vld [vmem:[#allocation8 + $0xf88] ss:$48 sps:$4 sm:$0xff]   ;;  %v16249_v15 = vld [vmem:[#allocation8 + $0xfe4] ss:$48 sps:$4 sm:$0xff]  }
 0x5b1   :  { %12074 = vmatprep.subr.bf16.mxu1 %v16180_v17  ;;  %v16252_v17 = vld [vmem:[#allocation8 + $0xfec] ss:$48 sps:$4 sm:$0xff]  }
 0x5b3   :  { %11829 = vmatpush1.bf16.msra.mxu0 %v16175_v19  ;;  %v16247_v19 = vld [vmem:[#allocation8 + $0xfe0] ss:$48 sps:$4 sm:$0xff]  }
 0x5b4   :  { %12075 = vmatpush1.bf16.msra.mxu1 %v16178_v50  ;;  %11830 = vmatprep.subr.bf16.mxu0 %v16183_v21  ;;  %v16250_v50 = vld [vmem:[#allocation8 + $0xfe8] ss:$48 sps:$4 sm:$0xff]   ;;  %v16255_v21 = vld [vmem:[#allocation8 + $0x1044] ss:$48 sps:$4 sm:$0xff]  }
 0x5b5   :  { %12076 = vmatprep.subr.bf16.mxu1 %v16186_v33  ;;  %v16258_v33 = vld [vmem:[#allocation8 + $0x104c] ss:$48 sps:$4 sm:$0xff]  }
 0x5b7   :  { %11831 = vmatpush1.bf16.msra.mxu0 %v16181_v34  ;;  %v16253_v34 = vld [vmem:[#allocation8 + $0x1040] ss:$48 sps:$4 sm:$0xff]  }
 0x5b8   :  { %12077 = vmatpush1.bf16.msra.mxu1 %v16184_v63  ;;  %11841 = vmatprep.subr.bf16.mxu0 %v16189_v3  ;;  %v16256_v63 = vld [vmem:[#allocation8 + $0x1048] ss:$48 sps:$4 sm:$0xff]   ;;  %v16261_v3 = vld [vmem:[#allocation8 + $0x10a4] ss:$48 sps:$4 sm:$0xff]  }
 0x5b9   :  { %12087 = vmatprep.subr.bf16.mxu1 %v16192_v35  ;;  %v16264_v35 = vld [vmem:[#allocation8 + $0x10ac] ss:$48 sps:$4 sm:$0xff]  }
 0x5ba   :  { %11833 = vmatmul.mubr.bf16.vlgmr.msra.gmra.mrb[20].mxu0 %v16922_v1 }
 0x5bb   :  { %12079 = vmatmul.mubr.bf16.vlgmr.msra.gmra.mrb[20].mxu1 %v16922_v1  ;;  %11842 = vmatpush1.bf16.msra.mxu0 %v16187_v36  ;;  %v16210_v1 = vld [vmem:[#allocation8 + $0xd4c] ss:$48 sps:$4 sm:$0xff]   ;;  %v16259_v36 = vld [vmem:[#allocation8 + $0x10a0] ss:$48 sps:$4 sm:$0xff]  }
 0x5bc   :  { %11873 = vmatprep.mubr.bf16.mxu0 %v16924_v2  ;;  %12088 = vmatpush1.bf16.msra.mxu1 %v16190_v18  ;;  %v16262_v18 = vld [vmem:[#allocation8 + $0x10a8] ss:$48 sps:$4 sm:$0xff]  }
 0x5bd   :  { %12119 = vmatprep.mubr.bf16.mxu1 %v16924_v2  ;;  %11843 = vmatprep.subr.bf16.mxu0 %v16195_v37  ;;  %v16211_v2 = vld [vmem:[#allocation8 + $0xda0] ss:$48 sps:$4 sm:$0xff]   ;;  %v16267_v37 = vld [vmem:[#allocation8 + $0x1104] ss:$48 sps:$4 sm:$0xff]  }
 0x5be   :  { %12089 = vmatprep.subr.bf16.mxu1 %v16198_v20  ;;  %v16270_v20 = vld [vmem:[#allocation8 + $0x110c] ss:$48 sps:$4 sm:$0xff]  }
 0x5bf   :  { %11844 = vmatpush1.bf16.msra.mxu0 %v16193_v39  ;;  %v16265_v39 = vld [vmem:[#allocation8 + $0x1100] ss:$48 sps:$4 sm:$0xff]  }
 0x5c0   :  { %12090 = vmatpush1.bf16.msra.mxu1 %v16196_v40  ;;  %11845 = vmatprep.subr.bf16.mxu0 %v16201_v41  ;;  %v16268_v40 = vld [vmem:[#allocation8 + $0x1108] ss:$48 sps:$4 sm:$0xff]   ;;  %v16273_v41 = vld [vmem:[#allocation8 + $0x1164] ss:$48 sps:$4 sm:$0xff]  }
 0x5c1   :  { %12091 = vmatprep.subr.bf16.mxu1 %v16204_v32  ;;  %v16276_v32 = vld [vmem:[#allocation8 + $0x116c] ss:$48 sps:$4 sm:$0xff]  }
 0x5c3   :  { %11846 = vmatpush1.bf16.msra.mxu0 %v16199_v42  ;;  %v16271_v42 = vld [vmem:[#allocation8 + $0x1160] ss:$48 sps:$4 sm:$0xff]  }
 0x5c4   :  { %12092 = vmatpush1.bf16.msra.mxu1 %v16202_v43  ;;  %11847 = vmatprep.subr.bf16.mxu0 %v16207_v44  ;;  %v16274_v43 = vld [vmem:[#allocation8 + $0x1168] ss:$48 sps:$4 sm:$0xff]   ;;  %v16279_v44 = vld [vmem:[#allocation8 + $0x11c4] ss:$48 sps:$4 sm:$0xff]  }
 0x5c5   :  { %12093 = vmatprep.subr.bf16.mxu1 %v16210_v1  ;;  %v16282_v1 = vld [vmem:[#allocation8 + $0x11cc] ss:$48 sps:$4 sm:$0xff]  }
 0x5c7   :  { %11848 = vmatpush1.bf16.msra.mxu0 %v16205_v45  ;;  %v16277_v45 = vld [vmem:[#allocation8 + $0x11c0] ss:$48 sps:$4 sm:$0xff]  }
 0x5c8   :  { %12094 = vmatpush1.bf16.msra.mxu1 %v16208_v48  ;;  %11849 = vmatprep.subr.bf16.mxu0 %v16213_v46  ;;  %v16280_v48 = vld [vmem:[#allocation8 + $0x11c8] ss:$48 sps:$4 sm:$0xff]   ;;  %v16285_v46 = vld [vmem:[#allocation8 + $0x1224] ss:$48 sps:$4 sm:$0xff]  }
 0x5c9   :  { %12095 = vmatprep.subr.bf16.mxu1 %v16216_v49  ;;  %v16288_v49 = vld [vmem:[#allocation8 + $0x122c] ss:$48 sps:$4 sm:$0xff]  }
 0x5cb   :  { %11850 = vmatpush1.bf16.msra.mxu0 %v16211_v2  ;;  %v16283_v2 = vld [vmem:[#allocation8 + $0x1220] ss:$48 sps:$4 sm:$0xff]  }
 0x5cc   :  { %12096 = vmatpush1.bf16.msra.mxu1 %v16214_v24  ;;  %11851 = vmatprep.subr.bf16.mxu0 %v16219_v51  ;;  %v16286_v24 = vld [vmem:[#allocation8 + $0x1228] ss:$48 sps:$4 sm:$0xff]   ;;  %v16291_v51 = vld [vmem:[#allocation8 + $0x1284] ss:$48 sps:$4 sm:$0xff]  }
 0x5cd   :  { %12097 = vmatprep.subr.bf16.mxu1 %v16222_v5  ;;  %v16294_v5 = vld [vmem:[#allocation8 + $0x128c] ss:$48 sps:$4 sm:$0xff]  }
 0x5cf   :  { %11852 = vmatpush1.bf16.msra.mxu0 %v16217_v52  ;;  %v16289_v52 = vld [vmem:[#allocation8 + $0x1280] ss:$48 sps:$4 sm:$0xff]  }
 0x5d0   :  { %12098 = vmatpush1.bf16.msra.mxu1 %v16220_v59  ;;  %11853 = vmatprep.subr.bf16.mxu0 %v16225_v57  ;;  %v16292_v59 = vld [vmem:[#allocation8 + $0x1288] ss:$48 sps:$4 sm:$0xff]   ;;  %v16297_v57 = vld [vmem:[#allocation8 + $0x12e4] ss:$48 sps:$4 sm:$0xff]  }
 0x5d1   :  { %12099 = vmatprep.subr.bf16.mxu1 %v16228_v30  ;;  %v16300_v30 = vld [vmem:[#allocation8 + $0x12ec] ss:$48 sps:$4 sm:$0xff]  }
 0x5d3   :  { %11854 = vmatpush1.bf16.msra.mxu0 %v16223_v11  ;;  %v16295_v11 = vld [vmem:[#allocation8 + $0x12e0] ss:$48 sps:$4 sm:$0xff]  }
 0x5d4   :  { %12100 = vmatpush1.bf16.msra.mxu1 %v16226_v58  ;;  %11855 = vmatprep.subr.bf16.mxu0 %v16231_v26  ;;  %v16298_v58 = vld [vmem:[#allocation8 + $0x12e8] ss:$48 sps:$4 sm:$0xff]   ;;  %v16303_v26 = vld [vmem:[#allocation8 + $0x1344] ss:$48 sps:$4 sm:$0xff]  }
 0x5d5   :  { %12101 = vmatprep.subr.bf16.mxu1 %v16234_v60  ;;  %v16301_v60 = vld [vmem:[#allocation8 + $0x1340] ss:$48 sps:$4 sm:$0xff]  }
 0x5d7   :  { %11856 = vmatpush1.bf16.msra.mxu0 %v16229_v6  ;;  %v16304_v6 = vld [vmem:[#allocation8 + $0x1348] ss:$48 sps:$4 sm:$0xff]  }
 0x5d8   :  { %12102 = vmatpush1.bf16.msra.mxu1 %v16232_v61  ;;  %11857 = vmatprep.subr.bf16.mxu0 %v16237_v62  ;;  %v16309_v61 = vld [vmem:[#allocation8 + $0x13a4] ss:$48 sps:$4 sm:$0xff]   ;;  %v16312_v62 = vld [vmem:[#allocation8 + $0x13ac] ss:$48 sps:$4 sm:$0xff]  }
 0x5d9   :  { %12103 = vmatprep.subr.bf16.mxu1 %v16240_v25  ;;  %v16310_v25 = vld [vmem:[#allocation8 + $0x13a8] ss:$48 sps:$4 sm:$0xff]  }
 0x5db   :  { %11858 = vmatpush1.bf16.msra.mxu0 %v16235_v8  ;;  %v16315_v8 = vld [vmem:[#allocation8 + $0x1404] ss:$48 sps:$4 sm:$0xff]  }
 0x5dc   :  { %12104 = vmatpush1.bf16.msra.mxu1 %v16238_v31  ;;  %11859 = vmatprep.subr.bf16.mxu0 %v16243_v9  ;;  %v16318_v31 = vld [vmem:[#allocation8 + $0x140c] ss:$48 sps:$4 sm:$0xff]   ;;  %v16575_v9 = vld [vmem:[#allocation10] sm:$0xff] }
 0x5dd   :  { %12105 = vmatprep.subr.bf16.mxu1 %v16246_v12  ;;  %v4974_v12 = vrot.slane %v16575_v9, %v589_v4 }
 0x5df   :  { %11860 = vmatpush1.bf16.msra.mxu0 %v16241_v13  ;;  %v4982_v13 = vrot.slane %v16575_v9, %v597_v54 }
 0x5e0   :  { %12106 = vmatpush1.bf16.msra.mxu1 %v16244_v14  ;;  %11861 = vmatprep.subr.bf16.mxu0 %v16249_v15  ;;  %v4978_v14 = vrot.slane %v16575_v9, %v593_v53  ;;  %v16313_v15 = vld [vmem:[#allocation8 + $0x1400] ss:$48 sps:$4 sm:$0xff]  }
 0x5e1   :  { %12107 = vmatprep.subr.bf16.mxu1 %v16252_v17  ;;  %v4986_v17 = vrot.slane %v16575_v9, %v601_v10  ;;  %v16319_v53 = vld [vmem:[#allocation8 + $0x1460] ss:$48 sps:$4 sm:$0xff]   ;;  %v16322_v10 = vld [vmem:[#allocation8 + $0x1468] ss:$48 sps:$4 sm:$0xff]   ;;  %v16375_v9 = vld [vmem:[#allocation8 + $0x17c4] ss:$48 sps:$4 sm:$0xff]  }
 0x5e3   :  { %11862 = vmatpush1.bf16.msra.mxu0 %v16247_v19  ;;  %v16316_v19 = vld [vmem:[#allocation8 + $0x1408] ss:$48 sps:$4 sm:$0xff]  }
 0x5e4   :  { %12108 = vmatpush1.bf16.msra.mxu1 %v16250_v50  ;;  %11863 = vmatprep.subr.bf16.mxu0 %v16255_v21  ;;  %v16321_v50 = vld [vmem:[#allocation8 + $0x1464] ss:$48 sps:$4 sm:$0xff]  }
 0x5e5   :  { %12109 = vmatprep.subr.bf16.mxu1 %v16258_v33  ;;  %v16324_v33 = vld [vmem:[#allocation8 + $0x146c] ss:$48 sps:$4 sm:$0xff]  }
 0x5e7   :  { %11864 = vmatpush1.bf16.msra.mxu0 %v16253_v34 }
 0x5e8   :  { %12110 = vmatpush1.bf16.msra.mxu1 %v16256_v63  ;;  %11865 = vmatprep.subr.bf16.mxu0 %v16261_v3 }
 0x5e9   :  { %12111 = vmatprep.subr.bf16.mxu1 %v16264_v35 }
 0x5eb   :  { %11866 = vmatpush1.bf16.msra.mxu0 %v16259_v36 }
 0x5ec   :  { %12112 = vmatpush1.bf16.msra.mxu1 %v16262_v18  ;;  %11867 = vmatprep.subr.bf16.mxu0 %v16267_v37 }
 0x5ed   :  { %12113 = vmatprep.subr.bf16.mxu1 %v16270_v20  ;;  %v16327_v20 = vld [vmem:[#allocation8 + $0x14c4] ss:$48 sps:$4 sm:$0xff]  }
 0x5ef   :  { %11868 = vmatpush1.bf16.msra.mxu0 %v16265_v39 }
 0x5f0   :  { %12114 = vmatpush1.bf16.msra.mxu1 %v16268_v40  ;;  %11869 = vmatprep.subr.bf16.mxu0 %v16273_v41  ;;  %v16330_v40 = vld [vmem:[#allocation8 + $0x14cc] ss:$48 sps:$4 sm:$0xff]   ;;  %v16325_v41 = vld [vmem:[#allocation8 + $0x14c0] ss:$48 sps:$4 sm:$0xff]  }
 0x5f1   :  { %12115 = vmatprep.subr.bf16.mxu1 %v16276_v32  ;;  %v16328_v32 = vld [vmem:[#allocation8 + $0x14c8] ss:$48 sps:$4 sm:$0xff]  }
 0x5f3   :  { %11870 = vmatpush1.bf16.msra.mxu0 %v16271_v42  ;;  %v16333_v42 = vld [vmem:[#allocation8 + $0x1524] ss:$48 sps:$4 sm:$0xff]  }
 0x5f4   :  { %12116 = vmatpush1.bf16.msra.mxu1 %v16274_v43  ;;  %11871 = vmatprep.subr.bf16.mxu0 %v16279_v44  ;;  %v16336_v43 = vld [vmem:[#allocation8 + $0x152c] ss:$48 sps:$4 sm:$0xff]   ;;  %v16331_v44 = vld [vmem:[#allocation8 + $0x1520] ss:$48 sps:$4 sm:$0xff]  }
 0x5f5   :  { %12117 = vmatprep.subr.bf16.mxu1 %v16282_v1  ;;  %v16334_v1 = vld [vmem:[#allocation8 + $0x1528] ss:$48 sps:$4 sm:$0xff]  }
 0x5f7   :  { %11872 = vmatpush1.bf16.msra.mxu0 %v16277_v45  ;;  %v16339_v45 = vld [vmem:[#allocation8 + $0x1584] ss:$48 sps:$4 sm:$0xff]  }
 0x5f8   :  { %12118 = vmatpush1.bf16.msra.mxu1 %v16280_v48  ;;  %11882 = vmatprep.subr.bf16.mxu0 %v16285_v46  ;;  %v16342_v48 = vld [vmem:[#allocation8 + $0x158c] ss:$48 sps:$4 sm:$0xff]   ;;  %v16337_v46 = vld [vmem:[#allocation8 + $0x1580] ss:$48 sps:$4 sm:$0xff]  }
 0x5f9   :  { %12128 = vmatprep.subr.bf16.mxu1 %v16288_v49  ;;  %v16340_v49 = vld [vmem:[#allocation8 + $0x1588] ss:$48 sps:$4 sm:$0xff]  }
 0x5fa   :  { %11874 = vmatmul.mubr.bf16.vlgmr.msra.gmra.mrb[20].mxu0 %v16940_v38 }
 0x5fb   :  { %12120 = vmatmul.mubr.bf16.vlgmr.msra.gmra.mrb[20].mxu1 %v16940_v38  ;;  %11883 = vmatpush1.bf16.msra.mxu0 %v16283_v2  ;;  %v16306_v38 = vld [vmem:[#allocation8 + $0x134c] ss:$48 sps:$4 sm:$0xff]   ;;  %v16345_v2 = vld [vmem:[#allocation8 + $0x15e4] ss:$48 sps:$4 sm:$0xff]  }
 0x5fc   :  { %11914 = vmatprep.mubr.bf16.mxu0 %v16942_v29  ;;  %12129 = vmatpush1.bf16.msra.mxu1 %v16286_v24  ;;  %v16348_v24 = vld [vmem:[#allocation8 + $0x15ec] ss:$48 sps:$4 sm:$0xff]  }
 0x5fd   :  { %12160 = vmatprep.mubr.bf16.mxu1 %v16942_v29  ;;  %11884 = vmatprep.subr.bf16.mxu0 %v16291_v51  ;;  %v16307_v29 = vld [vmem:[#allocation8 + $0x13a0] ss:$48 sps:$4 sm:$0xff]  }
 0x5fe   :  { %12130 = vmatprep.subr.bf16.mxu1 %v16294_v5  ;;  %v16343_v51 = vld [vmem:[#allocation8 + $0x15e0] ss:$48 sps:$4 sm:$0xff]   ;;  %v16346_v5 = vld [vmem:[#allocation8 + $0x15e8] ss:$48 sps:$4 sm:$0xff]  }
 0x5ff   :  { %11885 = vmatpush1.bf16.msra.mxu0 %v16289_v52  ;;  %v16351_v52 = vld [vmem:[#allocation8 + $0x1644] ss:$48 sps:$4 sm:$0xff]  }
 0x600   :  { %12131 = vmatpush1.bf16.msra.mxu1 %v16292_v59  ;;  %11886 = vmatprep.subr.bf16.mxu0 %v16297_v57  ;;  %v16354_v59 = vld [vmem:[#allocation8 + $0x164c] ss:$48 sps:$4 sm:$0xff]   ;;  %v16349_v57 = vld [vmem:[#allocation8 + $0x1640] ss:$48 sps:$4 sm:$0xff]  }
 0x601   :  { %12132 = vmatprep.subr.bf16.mxu1 %v16300_v30  ;;  %v16352_v30 = vld [vmem:[#allocation8 + $0x1648] ss:$48 sps:$4 sm:$0xff]  }
 0x603   :  { %11887 = vmatpush1.bf16.msra.mxu0 %v16295_v11  ;;  %v16357_v11 = vld [vmem:[#allocation8 + $0x16a4] ss:$48 sps:$4 sm:$0xff]  }
 0x604   :  { %12133 = vmatpush1.bf16.msra.mxu1 %v16298_v58  ;;  %11888 = vmatprep.subr.bf16.mxu0 %v16303_v26  ;;  %v16360_v58 = vld [vmem:[#allocation8 + $0x16ac] ss:$48 sps:$4 sm:$0xff]   ;;  %v16355_v26 = vld [vmem:[#allocation8 + $0x16a0] ss:$48 sps:$4 sm:$0xff]  }
 0x605   :  { %12134 = vmatprep.subr.bf16.mxu1 %v16306_v38  ;;  %v16358_v38 = vld [vmem:[#allocation8 + $0x16a8] ss:$48 sps:$4 sm:$0xff]  }
 0x607   :  { %11889 = vmatpush1.bf16.msra.mxu0 %v16301_v60  ;;  %v16363_v60 = vld [vmem:[#allocation8 + $0x1704] ss:$48 sps:$4 sm:$0xff]  }
 0x608   :  { %12135 = vmatpush1.bf16.msra.mxu1 %v16304_v6  ;;  %11890 = vmatprep.subr.bf16.mxu0 %v16309_v61  ;;  %v16366_v6 = vld [vmem:[#allocation8 + $0x170c] ss:$48 sps:$4 sm:$0xff]   ;;  %v16361_v61 = vld [vmem:[#allocation8 + $0x1700] ss:$48 sps:$4 sm:$0xff]  }
 0x609   :  { %12136 = vmatprep.subr.bf16.mxu1 %v16312_v62  ;;  %v16364_v62 = vld [vmem:[#allocation8 + $0x1708] ss:$48 sps:$4 sm:$0xff]  }
 0x60b   :  { %11891 = vmatpush1.bf16.msra.mxu0 %v16307_v29  ;;  %v16369_v29 = vld [vmem:[#allocation8 + $0x1764] ss:$48 sps:$4 sm:$0xff]  }
 0x60c   :  { %12137 = vmatpush1.bf16.msra.mxu1 %v16310_v25  ;;  %11892 = vmatprep.subr.bf16.mxu0 %v16315_v8  ;;  %v16372_v25 = vld [vmem:[#allocation8 + $0x176c] ss:$48 sps:$4 sm:$0xff]   ;;  %v16367_v8 = vld [vmem:[#allocation8 + $0x1760] ss:$48 sps:$4 sm:$0xff]  }
 0x60d   :  { %v11506_v21 = vpop.f32.mrb[16].mxu0  ;;  %12138 = vmatprep.subr.bf16.mxu1 %v16318_v31  ;;  %v16370_v31 = vld [vmem:[#allocation8 + $0x1768] ss:$48 sps:$4 sm:$0xff]  }
 0x60e   :  { %v13933_v34 = vadd.f32 %v11506_v21, %v4974_v12  ;;  %v11752_v4 = vpop.f32.mrb[16].mxu1  ;;  %v11508_v63 = vpop.f32.mrb[17].mxu0  ;;  %v16378_v12 = vld [vmem:[#allocation8 + $0x17cc] ss:$48 sps:$4 sm:$0xff]   ;;  %v16387_v21 = vld [vmem:[#allocation8 + $0x1884] ss:$48 sps:$4 sm:$0xff]  }
 0x60f   :  { %v13935_v3 = vadd.f32 %v11752_v4, %v4982_v13  ;;  %v13934_v35 = vadd.f32 %v11508_v63, %v4978_v14  ;;  %v11754_v54 = vpop.f32.mrb[17].mxu1  ;;  %v11510_v36 = vpop.f32.mrb[18].mxu0  ;;  %11893 = vmatpush1.bf16.msra.mxu0 %v16313_v15  ;;  %v16373_v13 = vld [vmem:[#allocation8 + $0x17c0] ss:$48 sps:$4 sm:$0xff]   ;;  %v16376_v14 = vld [vmem:[#allocation8 + $0x17c8] ss:$48 sps:$4 sm:$0xff]  }
 0x610   :  { %12255 = vst [vmem:[#allocation11 + $0x20] sm:$0xff] %v13933_v34  ;;  %v13936_v18 = vadd.f32 %v11754_v54, %v4986_v17  ;;  %v11756_v37 = vpop.f32.mrb[18].mxu1  ;;  %12139 = vmatpush1.bf16.msra.mxu1 %v16316_v19  ;;  %v11511_v0 = vpop.f32.mrb[19].mxu0  ;;  %11894 = vmatprep.subr.bf16.mxu0 %v16321_v50  ;;  %v16381_v15 = vld [vmem:[#allocation8 + $0x1824] ss:$48 sps:$4 sm:$0xff]  }
 0x611   :  { %12257 = vst [vmem:[#allocation11 + $0x30] sm:$0xff] %v13935_v3  ;;  %12256 = vst [vmem:[#allocation11 + $0x28] sm:$0xff] %v13934_v35  ;;  %v11757_v39 = vpop.f32.mrb[19].mxu1  ;;  %12140 = vmatprep.subr.bf16.mxu1 %v16324_v33  ;;  %v16384_v17 = vld [vmem:[#allocation8 + $0x182c] ss:$48 sps:$4 sm:$0xff]  }
 0x612   :  { %12258 = vst [vmem:[#allocation11 + $0x38] sm:$0xff] %v13936_v18  ;;  %v16379_v19 = vld [vmem:[#allocation8 + $0x1820] ss:$48 sps:$4 sm:$0xff]   ;;  %v16382_v50 = vld [vmem:[#allocation8 + $0x1828] ss:$48 sps:$4 sm:$0xff]  }
 0x613   :  { %11895 = vmatpush1.bf16.msra.mxu0 %v16319_v53  ;;  %v16390_v33 = vld [vmem:[#allocation8 + $0x188c] ss:$48 sps:$4 sm:$0xff]   ;;  %v16385_v34 = vld [vmem:[#allocation8 + $0x1880] ss:$48 sps:$4 sm:$0xff]   ;;  %v16388_v4 = vld [vmem:[#allocation8 + $0x1888] ss:$48 sps:$4 sm:$0xff]  }
 0x614   :  { %12141 = vmatpush1.bf16.msra.mxu1 %v16322_v10  ;;  %11896 = vmatprep.subr.bf16.mxu0 %v16327_v20  ;;  %v16393_v63 = vld [vmem:[#allocation8 + $0x18e4] ss:$48 sps:$4 sm:$0xff]   ;;  %v16396_v3 = vld [vmem:[#allocation8 + $0x18ec] ss:$48 sps:$4 sm:$0xff]   ;;  %v16391_v35 = vld [vmem:[#allocation8 + $0x18e0] ss:$48 sps:$4 sm:$0xff]  }
 0x615   :  { %12142 = vmatprep.subr.bf16.mxu1 %v16330_v40  ;;  %v16394_v54 = vld [vmem:[#allocation8 + $0x18e8] ss:$48 sps:$4 sm:$0xff]   ;;  %v16399_v36 = vld [vmem:[#allocation8 + $0x1944] ss:$48 sps:$4 sm:$0xff]   ;;  %v16397_v53 = vld [vmem:[#allocation8 + $0x1940] ss:$48 sps:$4 sm:$0xff]  }
 0x616   :  { %v16400_v18 = vld [vmem:[#allocation8 + $0x1948] ss:$48 sps:$4 sm:$0xff]   ;;  %v16405_v37 = vld [vmem:[#allocation8 + $0x19a4] ss:$48 sps:$4 sm:$0xff]   ;;  %v16408_v0 = vld [vmem:[#allocation8 + $0x19ac] ss:$48 sps:$4 sm:$0xff]  }
 0x617   :  { %11897 = vmatpush1.bf16.msra.mxu0 %v16325_v41  ;;  %v16406_v10 = vld [vmem:[#allocation8 + $0x19a8] ss:$48 sps:$4 sm:$0xff]   ;;  %v16411_v20 = vld [vmem:[#allocation8 + $0x1a04] ss:$48 sps:$4 sm:$0xff]   ;;  %v16414_v39 = vld [vmem:[#allocation8 + $0x1a0c] ss:$48 sps:$4 sm:$0xff]  }
 0x618   :  { %12143 = vmatpush1.bf16.msra.mxu1 %v16328_v32  ;;  %11898 = vmatprep.subr.bf16.mxu0 %v16333_v42  ;;  %v16409_v40 = vld [vmem:[#allocation8 + $0x1a00] ss:$48 sps:$4 sm:$0xff]   ;;  %v16412_v41 = vld [vmem:[#allocation8 + $0x1a08] ss:$48 sps:$4 sm:$0xff]   ;;  %v16417_v32 = vld [vmem:[#allocation8 + $0x1a64] ss:$48 sps:$4 sm:$0xff]  }
 0x619   :  { %12144 = vmatprep.subr.bf16.mxu1 %v16336_v43  ;;  %v16420_v42 = vld [vmem:[#allocation8 + $0x1a6c] ss:$48 sps:$4 sm:$0xff]   ;;  %v16415_v43 = vld [vmem:[#allocation8 + $0x1a60] ss:$48 sps:$4 sm:$0xff]  }
 0x61b   :  { %11899 = vmatpush1.bf16.msra.mxu0 %v16331_v44  ;;  %v16418_v44 = vld [vmem:[#allocation8 + $0x1a68] ss:$48 sps:$4 sm:$0xff]  }
 0x61c   :  { %12145 = vmatpush1.bf16.msra.mxu1 %v16334_v1  ;;  %11900 = vmatprep.subr.bf16.mxu0 %v16339_v45  ;;  %v16423_v1 = vld [vmem:[#allocation8 + $0x1ac4] ss:$48 sps:$4 sm:$0xff]   ;;  %v16426_v45 = vld [vmem:[#allocation8 + $0x1acc] ss:$48 sps:$4 sm:$0xff]  }
 0x61d   :  { %12146 = vmatprep.subr.bf16.mxu1 %v16342_v48  ;;  %v16421_v48 = vld [vmem:[#allocation8 + $0x1ac0] ss:$48 sps:$4 sm:$0xff]  }
 0x61f   :  { %11901 = vmatpush1.bf16.msra.mxu0 %v16337_v46  ;;  %v16424_v46 = vld [vmem:[#allocation8 + $0x1ac8] ss:$48 sps:$4 sm:$0xff]  }
 0x620   :  { %12147 = vmatpush1.bf16.msra.mxu1 %v16340_v49  ;;  %11902 = vmatprep.subr.bf16.mxu0 %v16345_v2  ;;  %v16429_v49 = vld [vmem:[#allocation8 + $0x1b24] ss:$48 sps:$4 sm:$0xff]   ;;  %v16432_v2 = vld [vmem:[#allocation8 + $0x1b2c] ss:$48 sps:$4 sm:$0xff]  }
 0x621   :  { %12148 = vmatprep.subr.bf16.mxu1 %v16348_v24  ;;  %v16427_v24 = vld [vmem:[#allocation8 + $0x1b20] ss:$48 sps:$4 sm:$0xff]  }
 0x623   :  { %11903 = vmatpush1.bf16.msra.mxu0 %v16343_v51  ;;  %v16430_v51 = vld [vmem:[#allocation8 + $0x1b28] ss:$48 sps:$4 sm:$0xff]  }
 0x624   :  { %12149 = vmatpush1.bf16.msra.mxu1 %v16346_v5  ;;  %11904 = vmatprep.subr.bf16.mxu0 %v16351_v52  ;;  %v16435_v5 = vld [vmem:[#allocation8 + $0x1b84] ss:$48 sps:$4 sm:$0xff]   ;;  %v16438_v52 = vld [vmem:[#allocation8 + $0x1b8c] ss:$48 sps:$4 sm:$0xff]  }
 0x625   :  { %12150 = vmatprep.subr.bf16.mxu1 %v16354_v59  ;;  %v16433_v59 = vld [vmem:[#allocation8 + $0x1b80] ss:$48 sps:$4 sm:$0xff]  }
 0x627   :  { %11905 = vmatpush1.bf16.msra.mxu0 %v16349_v57  ;;  %v16436_v57 = vld [vmem:[#allocation8 + $0x1b88] ss:$48 sps:$4 sm:$0xff]  }
 0x628   :  { %12151 = vmatpush1.bf16.msra.mxu1 %v16352_v30  ;;  %11906 = vmatprep.subr.bf16.mxu0 %v16357_v11  ;;  %v16441_v30 = vld [vmem:[#allocation8 + $0x1be4] ss:$48 sps:$4 sm:$0xff]   ;;  %v16444_v11 = vld [vmem:[#allocation8 + $0x1bec] ss:$48 sps:$4 sm:$0xff]  }
 0x629   :  { %12152 = vmatprep.subr.bf16.mxu1 %v16360_v58  ;;  %v16439_v58 = vld [vmem:[#allocation8 + $0x1be0] ss:$48 sps:$4 sm:$0xff]  }
 0x62b   :  { %11907 = vmatpush1.bf16.msra.mxu0 %v16355_v26  ;;  %v16442_v26 = vld [vmem:[#allocation8 + $0x1be8] ss:$48 sps:$4 sm:$0xff]  }
 0x62c   :  { %12153 = vmatpush1.bf16.msra.mxu1 %v16358_v38  ;;  %11908 = vmatprep.subr.bf16.mxu0 %v16363_v60  ;;  %v16447_v38 = vld [vmem:[#allocation8 + $0x1c44] ss:$48 sps:$4 sm:$0xff]   ;;  %v16450_v60 = vld [vmem:[#allocation8 + $0x1c4c] ss:$48 sps:$4 sm:$0xff]  }
 0x62d   :  { %12154 = vmatprep.subr.bf16.mxu1 %v16366_v6  ;;  %v16445_v6 = vld [vmem:[#allocation8 + $0x1c40] ss:$48 sps:$4 sm:$0xff]  }
 0x62f   :  { %11909 = vmatpush1.bf16.msra.mxu0 %v16361_v61  ;;  %v16448_v61 = vld [vmem:[#allocation8 + $0x1c48] ss:$48 sps:$4 sm:$0xff]  }
 0x630   :  { %12155 = vmatpush1.bf16.msra.mxu1 %v16364_v62  ;;  %11910 = vmatprep.subr.bf16.mxu0 %v16369_v29  ;;  %v16453_v62 = vld [vmem:[#allocation8 + $0x1ca4] ss:$48 sps:$4 sm:$0xff]   ;;  %v16456_v29 = vld [vmem:[#allocation8 + $0x1cac] ss:$48 sps:$4 sm:$0xff]  }
 0x631   :  { %12156 = vmatprep.subr.bf16.mxu1 %v16372_v25  ;;  %v16451_v25 = vld [vmem:[#allocation8 + $0x1ca0] ss:$48 sps:$4 sm:$0xff]  }
 0x633   :  { %11911 = vmatpush1.bf16.msra.mxu0 %v16367_v8  ;;  %v16454_v8 = vld [vmem:[#allocation8 + $0x1ca8] ss:$48 sps:$4 sm:$0xff]  }
 0x634   :  { %12157 = vmatpush1.bf16.msra.mxu1 %v16370_v31  ;;  %11912 = vmatprep.subr.bf16.mxu0 %v16375_v9  ;;  %v16459_v31 = vld [vmem:[#allocation8 + $0x1d04] ss:$48 sps:$4 sm:$0xff]   ;;  %v16462_v9 = vld [vmem:[#allocation8 + $0x1d0c] ss:$48 sps:$4 sm:$0xff]  }
 0x635   :  { %12158 = vmatprep.subr.bf16.mxu1 %v16378_v12  ;;  %v16457_v12 = vld [vmem:[#allocation8 + $0x1d00] ss:$48 sps:$4 sm:$0xff]  }
 0x637   :  { %11913 = vmatpush1.bf16.msra.mxu0 %v16373_v13  ;;  %v16460_v13 = vld [vmem:[#allocation8 + $0x1d08] ss:$48 sps:$4 sm:$0xff]  }
 0x638   :  { %12159 = vmatpush1.bf16.msra.mxu1 %v16376_v14  ;;  %11923 = vmatprep.subr.bf16.mxu0 %v16381_v15  ;;  %v16465_v14 = vld [vmem:[#allocation8 + $0x1d64] ss:$48 sps:$4 sm:$0xff]   ;;  %v16468_v15 = vld [vmem:[#allocation8 + $0x1d6c] ss:$48 sps:$4 sm:$0xff]  }
 0x639   :  { %12169 = vmatprep.subr.bf16.mxu1 %v16384_v17  ;;  %v16463_v17 = vld [vmem:[#allocation8 + $0x1d60] ss:$48 sps:$4 sm:$0xff]  }
 0x63a   :  { %11915 = vmatmul.mubr.bf16.vlgmr.msra.gmra.mrb[20].mxu0 %v16969_v22 }
 0x63b   :  { %12161 = vmatmul.mubr.bf16.vlgmr.msra.gmra.mrb[20].mxu1 %v16969_v22  ;;  %11924 = vmatpush1.bf16.msra.mxu0 %v16379_v19  ;;  %v16402_v22 = vld [vmem:[#allocation8 + $0x194c] ss:$48 sps:$4 sm:$0xff]   ;;  %v16466_v19 = vld [vmem:[#allocation8 + $0x1d68] ss:$48 sps:$4 sm:$0xff]  }
 0x63c   :  { %11955 = vmatprep.mubr.bf16.mxu0 %v16971_v23  ;;  %12170 = vmatpush1.bf16.msra.mxu1 %v16382_v50  ;;  %v16471_v50 = vld [vmem:[#allocation8 + $0x1dc4] ss:$48 sps:$4 sm:$0xff]  }
 0x63d   :  { %12201 = vmatprep.mubr.bf16.mxu1 %v16971_v23  ;;  %11925 = vmatprep.subr.bf16.mxu0 %v16387_v21  ;;  %v16403_v23 = vld [vmem:[#allocation8 + $0x19a0] ss:$48 sps:$4 sm:$0xff]   ;;  %v16474_v21 = vld [vmem:[#allocation8 + $0x1dcc] ss:$48 sps:$4 sm:$0xff]  }
 0x63e   :  { %12171 = vmatprep.subr.bf16.mxu1 %v16390_v33  ;;  %v16469_v33 = vld [vmem:[#allocation8 + $0x1dc0] ss:$48 sps:$4 sm:$0xff]  }
 0x63f   :  { %11926 = vmatpush1.bf16.msra.mxu0 %v16385_v34  ;;  %v16472_v34 = vld [vmem:[#allocation8 + $0x1dc8] ss:$48 sps:$4 sm:$0xff]  }
 0x640   :  { %12172 = vmatpush1.bf16.msra.mxu1 %v16388_v4  ;;  %11927 = vmatprep.subr.bf16.mxu0 %v16393_v63  ;;  %v16477_v4 = vld [vmem:[#allocation8 + $0x1e24] ss:$48 sps:$4 sm:$0xff]   ;;  %v16480_v63 = vld [vmem:[#allocation8 + $0x1e2c] ss:$48 sps:$4 sm:$0xff]  }
 0x641   :  { %12173 = vmatprep.subr.bf16.mxu1 %v16396_v3  ;;  %v16475_v3 = vld [vmem:[#allocation8 + $0x1e20] ss:$48 sps:$4 sm:$0xff]  }
 0x643   :  { %11928 = vmatpush1.bf16.msra.mxu0 %v16391_v35  ;;  %v16478_v35 = vld [vmem:[#allocation8 + $0x1e28] ss:$48 sps:$4 sm:$0xff]  }
 0x644   :  { %12174 = vmatpush1.bf16.msra.mxu1 %v16394_v54  ;;  %11929 = vmatprep.subr.bf16.mxu0 %v16399_v36  ;;  %v16483_v54 = vld [vmem:[#allocation8 + $0x1e84] ss:$48 sps:$4 sm:$0xff]   ;;  %v16486_v36 = vld [vmem:[#allocation8 + $0x1e8c] ss:$48 sps:$4 sm:$0xff]  }
 0x645   :  { %12175 = vmatprep.subr.bf16.mxu1 %v16402_v22  ;;  %v16481_v22 = vld [vmem:[#allocation8 + $0x1e80] ss:$48 sps:$4 sm:$0xff]  }
 0x647   :  { %11930 = vmatpush1.bf16.msra.mxu0 %v16397_v53  ;;  %v16484_v53 = vld [vmem:[#allocation8 + $0x1e88] ss:$48 sps:$4 sm:$0xff]  }
 0x648   :  { %12176 = vmatpush1.bf16.msra.mxu1 %v16400_v18  ;;  %11931 = vmatprep.subr.bf16.mxu0 %v16405_v37  ;;  %v16489_v18 = vld [vmem:[#allocation8 + $0x1ee4] ss:$48 sps:$4 sm:$0xff]   ;;  %v16492_v37 = vld [vmem:[#allocation8 + $0x1eec] ss:$48 sps:$4 sm:$0xff]  }
 0x649   :  { %12177 = vmatprep.subr.bf16.mxu1 %v16408_v0  ;;  %v16487_v0 = vld [vmem:[#allocation8 + $0x1ee0] ss:$48 sps:$4 sm:$0xff]  }
 0x64b   :  { %11932 = vmatpush1.bf16.msra.mxu0 %v16403_v23  ;;  %v16490_v23 = vld [vmem:[#allocation8 + $0x1ee8] ss:$48 sps:$4 sm:$0xff]  }
 0x64c   :  { %12178 = vmatpush1.bf16.msra.mxu1 %v16406_v10  ;;  %11933 = vmatprep.subr.bf16.mxu0 %v16411_v20  ;;  %v16495_v10 = vld [vmem:[#allocation8 + $0x1f44] ss:$48 sps:$4 sm:$0xff]   ;;  %v16493_v20 = vld [vmem:[#allocation8 + $0x1f40] ss:$48 sps:$4 sm:$0xff]  }
 0x64d   :  { %12179 = vmatprep.subr.bf16.mxu1 %v16414_v39  ;;  %v16496_v39 = vld [vmem:[#allocation8 + $0x1f48] ss:$48 sps:$4 sm:$0xff]  }
 0x64f   :  { %11934 = vmatpush1.bf16.msra.mxu0 %v16409_v40  ;;  %v16501_v40 = vld [vmem:[#allocation8 + $0x1fa4] ss:$48 sps:$4 sm:$0xff]  }
 0x650   :  { %12180 = vmatpush1.bf16.msra.mxu1 %v16412_v41  ;;  %11935 = vmatprep.subr.bf16.mxu0 %v16417_v32  ;;  %v16504_v41 = vld [vmem:[#allocation8 + $0x1fac] ss:$48 sps:$4 sm:$0xff]   ;;  %v16502_v32 = vld [vmem:[#allocation8 + $0x1fa8] ss:$48 sps:$4 sm:$0xff]  }
 0x651   :  { %12181 = vmatprep.subr.bf16.mxu1 %v16420_v42  ;;  %v16507_v42 = vld [vmem:[#allocation8 + $0x2004] ss:$48 sps:$4 sm:$0xff]  }
 0x653   :  { %11936 = vmatpush1.bf16.msra.mxu0 %v16415_v43  ;;  %v16510_v43 = vld [vmem:[#allocation8 + $0x200c] ss:$48 sps:$4 sm:$0xff]  }
 0x654   :  { %12182 = vmatpush1.bf16.msra.mxu1 %v16418_v44  ;;  %11937 = vmatprep.subr.bf16.mxu0 %v16423_v1  ;;  %v16505_v44 = vld [vmem:[#allocation8 + $0x2000] ss:$48 sps:$4 sm:$0xff]   ;;  %v16508_v1 = vld [vmem:[#allocation8 + $0x2008] ss:$48 sps:$4 sm:$0xff]  }
 0x655   :  { %12183 = vmatprep.subr.bf16.mxu1 %v16426_v45  ;;  %v16513_v45 = vld [vmem:[#allocation8 + $0x2064] ss:$48 sps:$4 sm:$0xff]  }
 0x657   :  { %11938 = vmatpush1.bf16.msra.mxu0 %v16421_v48  ;;  %v16516_v48 = vld [vmem:[#allocation8 + $0x206c] ss:$48 sps:$4 sm:$0xff]  }
 0x658   :  { %12184 = vmatpush1.bf16.msra.mxu1 %v16424_v46  ;;  %11939 = vmatprep.subr.bf16.mxu0 %v16429_v49  ;;  %v16511_v46 = vld [vmem:[#allocation8 + $0x2060] ss:$48 sps:$4 sm:$0xff]   ;;  %v16514_v49 = vld [vmem:[#allocation8 + $0x2068] ss:$48 sps:$4 sm:$0xff]  }
 0x659   :  { %12185 = vmatprep.subr.bf16.mxu1 %v16432_v2  ;;  %v16519_v2 = vld [vmem:[#allocation8 + $0x20c4] ss:$48 sps:$4 sm:$0xff]  }
 0x65b   :  { %11940 = vmatpush1.bf16.msra.mxu0 %v16427_v24  ;;  %v16522_v24 = vld [vmem:[#allocation8 + $0x20cc] ss:$48 sps:$4 sm:$0xff]  }
 0x65c   :  { %12186 = vmatpush1.bf16.msra.mxu1 %v16430_v51  ;;  %11941 = vmatprep.subr.bf16.mxu0 %v16435_v5  ;;  %v16517_v51 = vld [vmem:[#allocation8 + $0x20c0] ss:$48 sps:$4 sm:$0xff]   ;;  %v16520_v5 = vld [vmem:[#allocation8 + $0x20c8] ss:$48 sps:$4 sm:$0xff]  }
 0x65d   :  { %12187 = vmatprep.subr.bf16.mxu1 %v16438_v52  ;;  %v16525_v52 = vld [vmem:[#allocation8 + $0x2124] ss:$48 sps:$4 sm:$0xff]  }
 0x65f   :  { %11942 = vmatpush1.bf16.msra.mxu0 %v16433_v59  ;;  %v16528_v59 = vld [vmem:[#allocation8 + $0x212c] ss:$48 sps:$4 sm:$0xff]  }
 0x660   :  { %12188 = vmatpush1.bf16.msra.mxu1 %v16436_v57  ;;  %11943 = vmatprep.subr.bf16.mxu0 %v16441_v30  ;;  %v16523_v57 = vld [vmem:[#allocation8 + $0x2120] ss:$48 sps:$4 sm:$0xff]   ;;  %v16526_v30 = vld [vmem:[#allocation8 + $0x2128] ss:$48 sps:$4 sm:$0xff]  }
 0x661   :  { %12189 = vmatprep.subr.bf16.mxu1 %v16444_v11  ;;  %v16531_v11 = vld [vmem:[#allocation8 + $0x2184] ss:$48 sps:$4 sm:$0xff]  }
 0x663   :  { %11944 = vmatpush1.bf16.msra.mxu0 %v16439_v58  ;;  %v16534_v58 = vld [vmem:[#allocation8 + $0x218c] ss:$48 sps:$4 sm:$0xff]  }
 0x664   :  { %12190 = vmatpush1.bf16.msra.mxu1 %v16442_v26  ;;  %11945 = vmatprep.subr.bf16.mxu0 %v16447_v38  ;;  %v16529_v26 = vld [vmem:[#allocation8 + $0x2180] ss:$48 sps:$4 sm:$0xff]   ;;  %v16532_v38 = vld [vmem:[#allocation8 + $0x2188] ss:$48 sps:$4 sm:$0xff]  }
 0x665   :  { %12191 = vmatprep.subr.bf16.mxu1 %v16450_v60  ;;  %v16537_v60 = vld [vmem:[#allocation8 + $0x21e4] ss:$48 sps:$4 sm:$0xff]  }
 0x667   :  { %11946 = vmatpush1.bf16.msra.mxu0 %v16445_v6  ;;  %v16540_v6 = vld [vmem:[#allocation8 + $0x21ec] ss:$48 sps:$4 sm:$0xff]  }
 0x668   :  { %12192 = vmatpush1.bf16.msra.mxu1 %v16448_v61  ;;  %11947 = vmatprep.subr.bf16.mxu0 %v16453_v62  ;;  %v16535_v61 = vld [vmem:[#allocation8 + $0x21e0] ss:$48 sps:$4 sm:$0xff]   ;;  %v16538_v62 = vld [vmem:[#allocation8 + $0x21e8] ss:$48 sps:$4 sm:$0xff]  }
 0x669   :  { %12193 = vmatprep.subr.bf16.mxu1 %v16456_v29  ;;  %v16543_v29 = vld [vmem:[#allocation8 + $0x2244] ss:$48 sps:$4 sm:$0xff]  }
 0x66b   :  { %11948 = vmatpush1.bf16.msra.mxu0 %v16451_v25  ;;  %v16546_v25 = vld [vmem:[#allocation8 + $0x224c] ss:$48 sps:$4 sm:$0xff]  }
 0x66c   :  { %12194 = vmatpush1.bf16.msra.mxu1 %v16454_v8  ;;  %11949 = vmatprep.subr.bf16.mxu0 %v16459_v31  ;;  %v16541_v8 = vld [vmem:[#allocation8 + $0x2240] ss:$48 sps:$4 sm:$0xff]   ;;  %v16544_v31 = vld [vmem:[#allocation8 + $0x2248] ss:$48 sps:$4 sm:$0xff]  }
 0x66d   :  { %12195 = vmatprep.subr.bf16.mxu1 %v16462_v9  ;;  %v16549_v9 = vld [vmem:[#allocation8 + $0x22a4] ss:$48 sps:$4 sm:$0xff]  }
 0x66f   :  { %11950 = vmatpush1.bf16.msra.mxu0 %v16457_v12  ;;  %v16552_v12 = vld [vmem:[#allocation8 + $0x22ac] ss:$48 sps:$4 sm:$0xff]  }
 0x670   :  { %12196 = vmatpush1.bf16.msra.mxu1 %v16460_v13  ;;  %11951 = vmatprep.subr.bf16.mxu0 %v16465_v14  ;;  %v16547_v13 = vld [vmem:[#allocation8 + $0x22a0] ss:$48 sps:$4 sm:$0xff]   ;;  %v16550_v14 = vld [vmem:[#allocation8 + $0x22a8] ss:$48 sps:$4 sm:$0xff]  }
 0x671   :  { %12197 = vmatprep.subr.bf16.mxu1 %v16468_v15  ;;  %v16555_v15 = vld [vmem:[#allocation8 + $0x2304] ss:$48 sps:$4 sm:$0xff]  }
 0x673   :  { %11952 = vmatpush1.bf16.msra.mxu0 %v16463_v17  ;;  %v16558_v17 = vld [vmem:[#allocation8 + $0x230c] ss:$48 sps:$4 sm:$0xff]  }
 0x674   :  { %12198 = vmatpush1.bf16.msra.mxu1 %v16466_v19  ;;  %11953 = vmatprep.subr.bf16.mxu0 %v16471_v50  ;;  %v16553_v19 = vld [vmem:[#allocation8 + $0x2300] ss:$48 sps:$4 sm:$0xff]   ;;  %v16556_v50 = vld [vmem:[#allocation8 + $0x2308] ss:$48 sps:$4 sm:$0xff]  }
 0x675   :  { %12199 = vmatprep.subr.bf16.mxu1 %v16474_v21  ;;  %v16561_v21 = vld [vmem:[#allocation8 + $0x2364] ss:$48 sps:$4 sm:$0xff]  }
 0x677   :  { %11954 = vmatpush1.bf16.msra.mxu0 %v16469_v33  ;;  %v16564_v33 = vld [vmem:[#allocation8 + $0x236c] ss:$48 sps:$4 sm:$0xff]  }
 0x678   :  { %12200 = vmatpush1.bf16.msra.mxu1 %v16472_v34  ;;  %11964 = vmatprep.subr.bf16.mxu0 %v16477_v4  ;;  %v16559_v34 = vld [vmem:[#allocation8 + $0x2360] ss:$48 sps:$4 sm:$0xff]   ;;  %v16562_v4 = vld [vmem:[#allocation8 + $0x2368] ss:$48 sps:$4 sm:$0xff]  }
 0x679   :  { %12210 = vmatprep.subr.bf16.mxu1 %v16480_v63  ;;  %v16567_v63 = vld [vmem:[#allocation8 + $0x23c4] ss:$48 sps:$4 sm:$0xff]  }
 0x67a   :  { %11956 = vmatmul.mubr.bf16.vlgmr.msra.gmra.mrb[20].mxu0 %v16980_v55 }
 0x67b   :  { %12202 = vmatmul.mubr.bf16.vlgmr.msra.gmra.mrb[20].mxu1 %v16980_v55  ;;  %11965 = vmatpush1.bf16.msra.mxu0 %v16475_v3  ;;  %v16498_v55 = vld [vmem:[#allocation8 + $0x1f4c] ss:$48 sps:$4 sm:$0xff]  }
 0x67c   :  { %11996 = vmatprep.mubr.bf16.mxu0 %v16984_v56  ;;  %12211 = vmatpush1.bf16.msra.mxu1 %v16478_v35  ;;  %v16570_v3 = vld [vmem:[#allocation8 + $0x23cc] ss:$48 sps:$4 sm:$0xff]   ;;  %v16565_v35 = vld [vmem:[#allocation8 + $0x23c0] ss:$48 sps:$4 sm:$0xff]  }
 0x67d   :  { %12242 = vmatprep.mubr.bf16.mxu1 %v16984_v56  ;;  %11966 = vmatprep.subr.bf16.mxu0 %v16483_v54  ;;  %v16499_v56 = vld [vmem:[#allocation8 + $0x1fa0] ss:$48 sps:$4 sm:$0xff]   ;;  %v16568_v54 = vld [vmem:[#allocation8 + $0x23c8] ss:$48 sps:$4 sm:$0xff]  }
 0x67e   :  { %12212 = vmatprep.subr.bf16.mxu1 %v16486_v36  ;;  %v4952_v36 = vld [vmem:[#allocation10 + $0x8] sm:$0xf] }
 0x67f   :  { %11967 = vmatpush1.bf16.msra.mxu0 %v16481_v22  ;;  %v4990_v22 = vrot.slane %v4952_v36, %v16882_v16 }
 0x680   :  { %12213 = vmatpush1.bf16.msra.mxu1 %v16484_v53  ;;  %11968 = vmatprep.subr.bf16.mxu0 %v16489_v18  ;;  %v4998_v53 = vrot.slane %v4952_v36, %v16910_v47  ;;  %v4994_v18 = vrot.slane %v4952_v36, %v16872_v7 }
 0x681   :  { %12214 = vmatprep.subr.bf16.mxu1 %v16492_v37  ;;  %v5002_v37 = vrot.slane %v4952_v36, %v16889_v27 }
 0x683   :  { %11969 = vmatpush1.bf16.msra.mxu0 %v16487_v0 }
 0x684   :  { %12215 = vmatpush1.bf16.msra.mxu1 %v16490_v23  ;;  %11970 = vmatprep.subr.bf16.mxu0 %v16495_v10 }
 0x685   :  { %12216 = vmatprep.subr.bf16.mxu1 %v16498_v55 }
 0x687   :  { %11971 = vmatpush1.bf16.msra.mxu0 %v16493_v20 }
 0x688   :  { %12217 = vmatpush1.bf16.msra.mxu1 %v16496_v39  ;;  %11972 = vmatprep.subr.bf16.mxu0 %v16501_v40 }
 0x689   :  { %12218 = vmatprep.subr.bf16.mxu1 %v16504_v41 }
 0x68b   :  { %11973 = vmatpush1.bf16.msra.mxu0 %v16499_v56 }
 0x68c   :  { %12219 = vmatpush1.bf16.msra.mxu1 %v16502_v32  ;;  %11974 = vmatprep.subr.bf16.mxu0 %v16507_v42 }
 0x68d   :  { %12220 = vmatprep.subr.bf16.mxu1 %v16510_v43 }
 0x68f   :  { %11975 = vmatpush1.bf16.msra.mxu0 %v16505_v44 }
 0x690   :  { %12221 = vmatpush1.bf16.msra.mxu1 %v16508_v1  ;;  %11976 = vmatprep.subr.bf16.mxu0 %v16513_v45 }
 0x691   :  { %12222 = vmatprep.subr.bf16.mxu1 %v16516_v48 }
 0x693   :  { %11977 = vmatpush1.bf16.msra.mxu0 %v16511_v46 }
 0x694   :  { %12223 = vmatpush1.bf16.msra.mxu1 %v16514_v49  ;;  %11978 = vmatprep.subr.bf16.mxu0 %v16519_v2 }
 0x695   :  { %12224 = vmatprep.subr.bf16.mxu1 %v16522_v24 }
 0x697   :  { %11979 = vmatpush1.bf16.msra.mxu0 %v16517_v51 }
 0x698   :  { %12225 = vmatpush1.bf16.msra.mxu1 %v16520_v5  ;;  %11980 = vmatprep.subr.bf16.mxu0 %v16525_v52 }
 0x699   :  { %12226 = vmatprep.subr.bf16.mxu1 %v16528_v59 }
 0x69b   :  { %11981 = vmatpush1.bf16.msra.mxu0 %v16523_v57 }
 0x69c   :  { %12227 = vmatpush1.bf16.msra.mxu1 %v16526_v30  ;;  %11982 = vmatprep.subr.bf16.mxu0 %v16531_v11 }
 0x69d   :  { %12228 = vmatprep.subr.bf16.mxu1 %v16534_v58 }
 0x69f   :  { %11983 = vmatpush1.bf16.msra.mxu0 %v16529_v26 }
 0x6a0   :  { %12229 = vmatpush1.bf16.msra.mxu1 %v16532_v38  ;;  %11984 = vmatprep.subr.bf16.mxu0 %v16537_v60 }
 0x6a1   :  { %12230 = vmatprep.subr.bf16.mxu1 %v16540_v6 }
 0x6a3   :  { %11985 = vmatpush1.bf16.msra.mxu0 %v16535_v61 }
 0x6a4   :  { %12231 = vmatpush1.bf16.msra.mxu1 %v16538_v62  ;;  %11986 = vmatprep.subr.bf16.mxu0 %v16543_v29 }
 0x6a5   :  { %12232 = vmatprep.subr.bf16.mxu1 %v16546_v25 }
 0x6a7   :  { %11987 = vmatpush1.bf16.msra.mxu0 %v16541_v8 }
 0x6a8   :  { %12233 = vmatpush1.bf16.msra.mxu1 %v16544_v31  ;;  %11988 = vmatprep.subr.bf16.mxu0 %v16549_v9 }
 0x6a9   :  { %12234 = vmatprep.subr.bf16.mxu1 %v16552_v12 }
 0x6ab   :  { %11989 = vmatpush1.bf16.msra.mxu0 %v16547_v13 }
 0x6ac   :  { %12235 = vmatpush1.bf16.msra.mxu1 %v16550_v14  ;;  %11990 = vmatprep.subr.bf16.mxu0 %v16555_v15 }
 0x6ad   :  { %12236 = vmatprep.subr.bf16.mxu1 %v16558_v17 }
 0x6af   :  { %11991 = vmatpush1.bf16.msra.mxu0 %v16553_v19 }
 0x6b0   :  { %12237 = vmatpush1.bf16.msra.mxu1 %v16556_v50  ;;  %11992 = vmatprep.subr.bf16.mxu0 %v16561_v21 }
 0x6b1   :  { %12238 = vmatprep.subr.bf16.mxu1 %v16564_v33 }
 0x6b3   :  { %11993 = vmatpush1.bf16.msra.mxu0 %v16559_v34 }
 0x6b4   :  { %12239 = vmatpush1.bf16.msra.mxu1 %v16562_v4  ;;  %11994 = vmatprep.subr.bf16.mxu0 %v16567_v63 }
 0x6b5   :  { %12240 = vmatprep.subr.bf16.mxu1 %v16570_v3 }
 0x6b7   :  { %11995 = vmatpush1.bf16.msra.mxu0 %v16565_v35 }
 0x6b8   :  { %12241 = vmatpush1.bf16.msra.mxu1 %v16568_v54 }
 0x6ba   :  { %11997 = vmatmul.mubr.bf16.vlgmr.msra.gmra.mrb[20].mxu0 %v16992_v28 }
 0x6bb   :  { %12243 = vmatmul.mubr.bf16.vlgmr.msra.gmra.mrb[20].mxu1 %v16992_v28 }
 0x78d   :  { %v11998_v0 = vpop.f32.mrb[20].mxu0 }
 0x78e   :  { %v13937_v23 = vadd.f32 %v11998_v0, %v4990_v22  ;;  %v12244_v10 = vpop.f32.mrb[20].mxu1  ;;  %v12000_v55 = vpop.f32.mrb[21].mxu0 }
 0x78f   :  { %v13939_v20 = vadd.f32 %v12244_v10, %v4998_v53  ;;  %v13938_v39 = vadd.f32 %v12000_v55, %v4994_v18  ;;  %v12246_v40 = vpop.f32.mrb[21].mxu1  ;;  %v12002_v41 = vpop.f32.mrb[22].mxu0 }
 0x790   :  { %12259 = vst [vmem:[#allocation11 + $0x40] sm:$0xff] %v13937_v23  ;;  %v13940_v28 = vadd.f32 %v12246_v40, %v5002_v37  ;;  %v12248_v56 = vpop.f32.mrb[22].mxu1  ;;  %v12003_v16 = vpop.f32.mrb[23].mxu0 }
 0x791   :  { %12261 = vst [vmem:[#allocation11 + $0x50] sm:$0xff] %v13939_v20  ;;  %12260 = vst [vmem:[#allocation11 + $0x48] sm:$0xff] %v13938_v39  ;;  %v12249_v7 = vpop.f32.mrb[23].mxu1 }
 0x792   :  { %12262 = vst [vmem:[#allocation11 + $0x58] sm:$0xff] %v13940_v28 }
 0x793   :  { %16697 = shalt.err (!%p16694_p2)
}
 0x794   :  { %s16698_s28 = scalar_lea.hbm %s17077_s5, 1536 }
 0x795   :  { %p16699_p3 = scmp.ne.s32.totalorder %s17077_s5, %s16698_s28  ;;  %p16702_p4 = scmp.lt.u32.totalorder %s16698_s28, %s17077_s5 }
 0x797   :  { %p16704_p5 = pnand %p16702_p4, %p16699_p3 }
 0x799   :  { %16707 = shalt.err (!%p16704_p5)
}
 0x79a   :  { %12272 = dma.vmem_to_hbm [thread:$0]  %s12270_s25, 1536, %s17077_s5, [#allocation4]  }
 0x79b   :  { %16714 = dma.done.wait [#allocation4], 1536  }
 0x79c   :  { %16715 = vsyncadd [#allocation4], 4294965760 }
 0x79d   :  { %12276 = vsyncpa [#allocation3], 1 }
 0x79e   :  { %12277 = vsyncpa [#allocation6], 1 }
 0x79f   :  { %12278 = vsyncpa [#allocation9], 1 }
 0x7a0   :  { %12279 = vsyncpa [#allocation4], 1 }

</bundles_post_ra>
